<compile_context>
chip_gen: v6e
topology: v6e:2x2x1
jax: 0.10.0
libtpu: 0.0.40
codegen_flags: <defaults>
</compile_context>

<pallas_src>
import math
from functools import partial

import numpy as np
import jax
import jax.numpy as jnp
from jax.experimental import pallas as pl
from jax.experimental.pallas import tpu as pltpu

CONFIG = dict(
    in_dim=16,               # out_dim of cross_smooth_layer (no 'out_dim' key -> out_dim = in_dim)
    hidden_size=32,
    num_attention_heads=4,
    intermediate_size=64,
    num_hidden_layers=2,
    quant_factor=2,
    sequence_length=32,
    pos_encoding="none",     # -> decoder_pos_encoding is None
    temporal_bias="none",    # -> attention_mask is None
)


# ----------------------------------------------------------------------------
# Fused Pallas kernel: the whole TransformerDecoder forward, batch packed on sublanes
# ----------------------------------------------------------------------------
def _fused_decoder_kernel(*refs, n_conv, num_layers, num_heads, neg_slope, ln_eps):
    it = iter(refs)
    x_ref = next(it)
    g_refs = [next(it) for _ in range(1 + n_conv)]     # ConvT Gstack + per-conv-block Gstacks
    convw_ref = next(it)                               # (qf, 5, E, E)   BN folded
    convb_ref = next(it)                               # (qf, 1, E)      BN folded
    we_ref = next(it)                                  # (E, E)          BN folded
    be_ref = next(it)                                  # (1, E)
    attnA_ref = next(it)                               # (L, H, E, E)    Wq Wk^T / sqrt(Dh)
    attnkb_ref = next(it)                              # (L, H, 1, E)    Wk bq / sqrt(Dh)
    attnvo_ref = next(it)                              # (L, H, E, E)    Wv Wo
    mask_ref = next(it)                                # (BT, BT)        batch block-diag additive
    ff1w_ref = next(it)                                # (L, E, I)
    ff1b_ref = next(it)                                # (L, 1, I)
    ff2w_ref = next(it)                                # (L, I, E)
    vecE_ref = next(it)                                # (L, 6, E): [attn_out_b, ln1_g, ln1_b, ff2_b, ln2_g, ln2_b]
    gcr_ref = next(it)                                 # (5*BT, BT)      cross-smooth taps
    wcr_ref = next(it)                                 # (5, E, out_dim)
    bcr_ref = next(it)                                 # (1, out_dim)
    o_ref = next(it)

    f32 = jnp.float32

    def mm(a, b):
        return jnp.dot(a, b, preferred_element_type=f32)

    def lrelu(v):
        return jnp.where(v >= 0, v, neg_slope * v)

    def layer_norm(v, g, b):
        mu = jnp.mean(v, axis=-1, keepdims=True)
        var = jnp.mean((v - mu) * (v - mu), axis=-1, keepdims=True)
        return (v - mu) * jax.lax.rsqrt(var + ln_eps) * g + b

    def gelu_tanh(v):
        # tanh-form GELU: EUP tanh instead of a VALU erf polynomial (|err| ~ few e-4).
        c = 0.7978845608028654  # sqrt(2/pi)
        return 0.5 * v * (1.0 + jnp.tanh(c * (v + 0.044715 * v * v * v)))

    x = x_ref[...]                                     # (bp*T_in, E), all batch elems packed

    # ---- expander: ConvTranspose + (Conv1d + repeat_interleave) blocks.
    # Time mixing is a precomputed stacked selection matrix G = vstack_k(Sel_k);
    # BN(eval) affines and repeat_interleave are folded into weights / G wrapper-side.
    for j in range(1 + n_conv):
        g = g_refs[j][...]                             # (5*T_out, T_in_rows)
        w = convw_ref[j]                               # (5, E, E)
        t_out = g.shape[0] // 5
        z = mm(g, x)                                   # (5*T_out, E) -- one gather matmul
        y = mm(z[0:t_out], w[0])
        for k in range(1, 5):
            y = y + mm(z[k * t_out:(k + 1) * t_out], w[k])
        x = lrelu(y + convb_ref[j])

    # ---- decoder_linear_embedding (last BN folded in)
    x = mm(x, we_ref[...]) + be_ref[...]

    # ---- TransformerEncoder layers (post-norm, eval: dropout == identity)
    mask = mask_ref[...]
    for l in range(num_layers):
        vl = vecE_ref[l]                               # (6, E)
        sa = None
        for h in range(num_heads):
            xa = mm(x, attnA_ref[l, h]) + attnkb_ref[l, h]          # (BT, E)
            s = jax.lax.dot_general(xa, x, (((1,), (1,)), ((), ())),
                                    preferred_element_type=f32)     # (BT, BT)
            s = s + mask                                            # block-diag over batch
            m = jnp.max(s, axis=-1, keepdims=True)
            p = jnp.exp(s - m)
            p = p * pl.reciprocal(jnp.sum(p, axis=-1, keepdims=True), approx=True)
            c = mm(p, mm(x, attnvo_ref[l, h]))                      # (BT, E)
            sa = c if sa is None else sa + c
        x = layer_norm(x + sa + vl[0:1], vl[1:2], vl[2:3])
        hmid = gelu_tanh(mm(x, ff1w_ref[l]) + ff1b_ref[l])
        x = layer_norm(x + mm(hmid, ff2w_ref[l]) + vl[3:4], vl[4:5], vl[5:6])

    # ---- cross_smooth_layer: Conv1d(E -> out_dim, k=5, zero pad=2), taps precomputed
    gcr = gcr_ref[...]
    t_f = gcr.shape[0] // 5
    z = mm(gcr, x)
    y = mm(z[0:t_f], wcr_ref[0])
    for k in range(1, 5):
        y = y + mm(z[k * t_f:(k + 1) * t_f], wcr_ref[k])
    # TODO(synk): out_dim=16 < 128 lanes -> masked stores; output is only ~4 KiB so left as-is.
    o_ref[...] = y + bcr_ref[...]
    # NOTE: post_transformer_linear is computed in the PyTorch forward but unused -> omitted.


# ----------------------------------------------------------------------------
# Host-side constant builders (one-hot time-mixing matrices, block-diag over batch)
# ----------------------------------------------------------------------------
def _blockdiag_stack(taps, bp):
    eye = np.eye(bp, dtype=np.float32)
    return jnp.asarray(np.concatenate([np.kron(eye, t) for t in taps], axis=0))


def _g_convtranspose(t_in, bp):
    # ConvTranspose1d(k=5, stride=2, pad=2, out_pad=1): o = 2*s - 2 + k
    o = np.arange(2 * t_in)[:, None]
    s = np.arange(t_in)[None, :]
    return _blockdiag_stack([(o == 2 * s - 2 + k).astype(np.float32) for k in range(5)], bp)


def _g_convblock_rep(t_in, bp):
    # Conv1d(k=5, stride=1, replicate pad=2) followed by repeat_interleave(2), folded.
    r = np.arange(2 * t_in)[:, None]
    s = np.arange(t_in)[None, :]
    return _blockdiag_stack(
        [(s == np.clip(r // 2 + k - 2, 0, t_in - 1)).astype(np.float32) for k in range(5)], bp)


def _g_cross(t, bp):
    # Conv1d(k=5, zero pad=2): s = o + k - 2 (out-of-range -> no match == zero pad)
    o = np.arange(t)[:, None]
    s = np.arange(t)[None, :]
    return _blockdiag_stack([(s == o + k - 2).astype(np.float32) for k in range(5)], bp)


def _attn_mask(t, bp):
    blk = np.kron(np.eye(bp, dtype=np.float32), np.ones((t, t), np.float32))
    return jnp.asarray(np.where(blk > 0.5, 0.0, -1e9).astype(np.float32))


# ----------------------------------------------------------------------------
# Wrapper: constant folding + one pallas_call
# ----------------------------------------------------------------------------
def transformer_decoder_forward(params, inputs, cfg, num_grid_steps=1):
    B, T_in, E = inputs.shape
    H = cfg["num_attention_heads"]
    L = cfg["num_hidden_layers"]
    qf = cfg["quant_factor"]
    I = cfg["intermediate_size"]
    out_dim = cfg.get("out_dim") or cfg["in_dim"]
    Dh = E // H
    bn_eps = 1e-5

    # --- batch packing: all B elements along the sublane/time axis per grid step.
    # (For v7x with large B, set num_grid_steps=2 so the two TensorCores split the work.)
    G = num_grid_steps
    assert B % G == 0, "B must be divisible by num_grid_steps"
    bp = B // G

    def bn_fold(p):
        s = p["bn_gamma"] / jnp.sqrt(p["bn_var"] + bn_eps)
        t = p["bn_beta"] - p["bn_mean"] * s
        return s, t

    # --- expander weights: BN of stage j-1 folded into stage j; BN of the last stage
    #     folded into the linear embedding; repeat_interleave folded into the Gstacks.
    conv_w_list, conv_b_list = [], []
    carry_s = jnp.ones((E,), jnp.float32)
    carry_t = jnp.zeros((E,), jnp.float32)
    for j in range(qf):
        p = params["expander"][j]
        if j == 0:   # ConvTranspose1d weight (Cin, Cout, K)
            mats = [p["w"][:, :, k] for k in range(5)]
        else:        # Conv1d weight (Cout, Cin, K) -> (Cin, Cout)
            mats = [p["w"][:, :, k].T for k in range(5)]
        conv_w_list.append(jnp.stack([carry_s[:, None] * m for m in mats]))
        conv_b_list.append((p["b"] + carry_t @ sum(mats)).reshape(1, E))
        carry_s, carry_t = bn_fold(p)
    conv_w = jnp.stack(conv_w_list)                     # (qf, 5, E, E)
    conv_b = jnp.stack(conv_b_list)                     # (qf, 1, E)

    we_mat = params["emb_w"].T
    we = carry_s[:, None] * we_mat                      # (E, E)
    be = (carry_t @ we_mat + params["emb_b"]).reshape(1, E)

    # --- attention: per-head A_h = Wq Wk^T (scale folded), kb_h = Wk bq (scale folded),
    #     Wvo_h = Wv Wo; value/out biases folded into one per-layer row.
    scale = 1.0 / math.sqrt(Dh)
    A_l, kb_l, vo_l, vecE_l, ff1w_l, ff1b_l, ff2w_l = [], [], [], [], [], [], []
    for p in params["layers"]:
        Wq, Wk, Wv = p["in_w"][0:E], p["in_w"][E:2 * E], p["in_w"][2 * E:3 * E]
        bq, bv = p["in_b"][0:E], p["in_b"][2 * E:3 * E]
        WoT = p["out_w"].T                              # (E, E)
        A_h, kb_h, vo_h = [], [], []
        ob = p["out_b"]
        for h in range(H):
            sl = slice(h * Dh, (h + 1) * Dh)
            Wq_h, Wk_h, Wv_h = Wq[sl].T, Wk[sl].T, Wv[sl].T          # (E, Dh)
            Wo_h = WoT[sl]                                           # (Dh, E)
            A_h.append((Wq_h @ Wk_h.T) * scale)
            kb_h.append(((Wk_h @ bq[sl]) * scale).reshape(1, E))
            vo_h.append(Wv_h @ Wo_h)
            ob = ob + bv[sl] @ Wo_h
        A_l.append(jnp.stack(A_h))
        kb_l.append(jnp.stack(kb_h))
        vo_l.append(jnp.stack(vo_h))
        vecE_l.append(jnp.stack([ob, p["ln1_g"], p["ln1_b"], p["ff2_b"], p["ln2_g"], p["ln2_b"]]))
        ff1w_l.append(p["ff1_w"].T)
        ff1b_l.append(p["ff1_b"].reshape(1, I))
        ff2w_l.append(p["ff2_w"].T)
    attnA = jnp.stack(A_l)                              # (L, H, E, E)
    attnkb = jnp.stack(kb_l)                            # (L, H, 1, E)
    attnvo = jnp.stack(vo_l)                            # (L, H, E, E)
    vecE = jnp.stack(vecE_l)                            # (L, 6, E)
    ff1_w = jnp.stack(ff1w_l)                           # (L, E, I)
    ff1_b = jnp.stack(ff1b_l)                           # (L, 1, I)
    ff2_w = jnp.stack(ff2w_l)                           # (L, I, E)

    # --- cross_smooth_layer
    wcr = jnp.stack([params["cross"]["w"][:, :, k].T for k in range(5)])   # (5, E, out_dim)
    bcr = params["cross"]["b"].reshape(1, out_dim)

    # --- precomputed time-mixing matrices / attention mask (batch block-diagonal)
    t = T_in
    g0 = _g_convtranspose(t, bp)
    t *= 2
    g_blocks = []
    for _ in range(1, qf):
        g_blocks.append(_g_convblock_rep(t, bp))
        t *= 2
    T_out = t
    gcr = _g_cross(T_out, bp)
    mask = _attn_mask(T_out, bp)

    x_flat = inputs.astype(jnp.float32).reshape(B * T_in, E)

    operands = [x_flat, g0, *g_blocks, conv_w, conv_b, we, be,
                attnA, attnkb, attnvo, mask, ff1_w, ff1_b, ff2_w, vecE,
                gcr, wcr, bcr]

    def _const(a):
        # full-array block, same block index every step -> fetched once, stays in VMEM
        return pl.BlockSpec(a.shape, lambda g, _n=a.ndim: (0,) * _n)

    if G > 1:
        assert (bp * T_in) % 8 == 0 and (bp * T_out) % 8 == 0

    in_specs = ([pl.BlockSpec((bp * T_in, E), lambda g: (g, 0))]
                + [_const(a) for a in operands[1:]])
    out_specs = pl.BlockSpec((bp * T_out, out_dim), lambda g: (g, 0))

    kernel = partial(_fused_decoder_kernel,
                     n_conv=qf - 1, num_layers=L, num_heads=H,
                     neg_slope=0.2, ln_eps=1e-5)

    out = pl.pallas_call(
        kernel,
        grid=(G,),
        in_specs=in_specs,
        out_specs=out_specs,
        out_shape=jax.ShapeDtypeStruct((B * T_out, out_dim), jnp.float32),
        compiler_params=pltpu.CompilerParams(dimension_semantics=("parallel",)),
    )(*operands)
    return out.reshape(B, T_out, out_dim)


# ----------------------------------------------------------------------------
# Plain-JAX reference of the same eval-mode forward (exact GELU / exact division)
# ----------------------------------------------------------------------------
def _reference_forward(params, inputs, cfg):
    E = cfg["hidden_size"]
    H = cfg["num_attention_heads"]
    eps = 1e-5
    x = inputs.astype(jnp.float32)

    def bn_eval(v, p):
        s = p["bn_gamma"] / jnp.sqrt(p["bn_var"] + eps)
        t = p["bn_beta"] - p["bn_mean"] * s
        return v * s + t

    def lrelu(v):
        return jnp.where(v >= 0, v, 0.2 * v)

    def ln(v, g, b):
        mu = jnp.mean(v, axis=-1, keepdims=True)
        var = jnp.mean((v - mu) ** 2, axis=-1, keepdims=True)
        return (v - mu) / jnp.sqrt(var + eps) * g + b

    # expander[0]: ConvTranspose1d(k=5, stride=2, pad=2, out_pad=1)
    p0 = params["expander"][0]
    B, T, _ = x.shape
    To = 2 * T
    y = jnp.zeros((B, To, E), jnp.float32)
    for k in range(5):
        for s in range(T):
            o = 2 * s - 2 + k
            if 0 <= o < To:
                y = y.at[:, o, :].add(x[:, s, :] @ p0["w"][:, :, k])
    x = bn_eval(lrelu(y + p0["b"]), p0)

    # expander[1:]: Conv1d(k=5, replicate pad) + LeakyReLU + BN + repeat_interleave(2)
    for j in range(1, cfg["quant_factor"]):
        pj = params["expander"][j]
        T = x.shape[1]
        y = jnp.zeros_like(x)
        for k in range(5):
            idx = jnp.clip(jnp.arange(T) + (k - 2), 0, T - 1)
            y = y + x[:, idx, :] @ pj["w"][:, :, k].T
        y = bn_eval(lrelu(y + pj["b"]), pj)
        x = jnp.repeat(y, 2, axis=1)

    # linear embedding
    x = x @ params["emb_w"].T + params["emb_b"]

    # transformer encoder layers
    Dh = E // H
    for p in params["layers"]:
        Bq, Tq, _ = x.shape
        qkv = x @ p["in_w"].T + p["in_b"]
        q, k, v = jnp.split(qkv, 3, axis=-1)

        def heads(t):
            return t.reshape(Bq, Tq, H, Dh).transpose(0, 2, 1, 3)

        q, k, v = heads(q), heads(k), heads(v)
        s = jnp.einsum("bhqd,bhkd->bhqk", q, k) / math.sqrt(Dh)
        a = jax.nn.softmax(s, axis=-1)
        o = jnp.einsum("bhqk,bhkd->bhqd", a, v).transpose(0, 2, 1, 3).reshape(Bq, Tq, E)
        sa = o @ p["out_w"].T + p["out_b"]
        x = ln(x + sa, p["ln1_g"], p["ln1_b"])
        hmid = jax.nn.gelu(x @ p["ff1_w"].T + p["ff1_b"], approximate=False)
        x = ln(x + (hmid @ p["ff2_w"].T + p["ff2_b"]), p["ln2_g"], p["ln2_b"])

    # cross_smooth_layer: Conv1d(E -> out_dim, k=5, zero pad=2)
    pc = params["cross"]
    T = x.shape[1]
    xp = jnp.pad(x, ((0, 0), (2, 2), (0, 0)))
    y = jnp.zeros((x.shape[0], T, pc["w"].shape[0]), jnp.float32)
    for k in range(5):
        y = y + xp[:, k:k + T, :] @ pc["w"][:, :, k].T
    return y + pc["b"]


# ----------------------------------------------------------------------------
# Deterministic parameter initialization (synthetic, matches PyTorch shapes)
# ----------------------------------------------------------------------------
def init_params(key, cfg):
    E, I = cfg["hidden_size"], cfg["intermediate_size"]
    out_dim = cfg["in_dim"]
    keys = iter(jax.random.split(key, 256))

    def nrm(shape, s=0.05):
        return (s * jax.random.normal(next(keys), shape)).astype(jnp.float32)

    def bn():
        return dict(bn_gamma=1.0 + nrm((E,)), bn_beta=nrm((E,)),
                    bn_mean=nrm((E,)), bn_var=1.0 + 0.1 * jnp.abs(nrm((E,))))

    expander = [dict(w=nrm((E, E, 5)), b=nrm((E,)), **bn())]          # ConvTranspose1d: (Cin,Cout,K)
    for _ in range(1, cfg["quant_factor"]):
        expander.append(dict(w=nrm((E, E, 5)), b=nrm((E,)), **bn()))  # Conv1d: (Cout,Cin,K)

    layers = []
    for _ in range(cfg["num_hidden_layers"]):
        layers.append(dict(
            in_w=nrm((3 * E, E)), in_b=nrm((3 * E,)),
            out_w=nrm((E, E)), out_b=nrm((E,)),
            ln1_g=1.0 + nrm((E,)), ln1_b=nrm((E,)),
            ff1_w=nrm((I, E)), ff1_b=nrm((I,)),
            ff2_w=nrm((E, I)), ff2_b=nrm((E,)),
            ln2_g=1.0 + nrm((E,)), ln2_b=nrm((E,)),
        ))

    return dict(
        expander=expander,
        layers=layers,
        emb_w=nrm((E, E)), emb_b=nrm((E,)),
        post_w=nrm((E, E)), post_b=nrm((E,)),     # post_transformer_linear (output unused)
        cross=dict(w=nrm((out_dim, E, 5)), b=nrm((out_dim,))),
    )


if __name__ == "__main__":
    key = jax.random.PRNGKey(0)
    pkey, xkey = jax.random.split(key)
    params = init_params(pkey, CONFIG)

    B, T_in = 2, 8
    inputs = jax.random.normal(xkey, (B, T_in, CONFIG["hidden_size"]), dtype=jnp.float32)

    fwd = jax.jit(partial(transformer_decoder_forward, cfg=CONFIG))
    out = fwd(params, inputs)
    out = jax.block_until_ready(out)

    expected = (B, T_in * (2 ** CONFIG["quant_factor"]), CONFIG["in_dim"])
    assert out.shape == expected, (out.shape, expected)
    assert bool(jnp.all(jnp.isfinite(out)))

    # numerical self-check vs plain-JAX reference (exact GELU / exact softmax division);
    # tolerance tightened 5e-2 -> 5e-3 and still covers the tanh-GELU / approx-recip deltas.
    with jax.default_matmul_precision("highest"):
        ref = jax.jit(partial(_reference_forward, cfg=CONFIG))(params, inputs)
        ref = jax.block_until_ready(ref)
    assert bool(jnp.allclose(out, ref, rtol=5e-3, atol=5e-3)), float(jnp.max(jnp.abs(out - ref)))

    print("KERNEL_OK")
</pallas_src>

<mosaic_0001>
module attributes {stable_mosaic.version = 11 : i64} {
  func.func @_fused_decoder_kernel(%arg0: i32, %arg1: memref<16x32xf32, #tpu.memory_space<vmem>>, %arg2: memref<160x16xf32, #tpu.memory_space<vmem>>, %arg3: memref<320x32xf32, #tpu.memory_space<vmem>>, %arg4: memref<2x5x32x32xf32, #tpu.memory_space<vmem>>, %arg5: memref<2x1x32xf32, #tpu.memory_space<vmem>>, %arg6: memref<32x32xf32, #tpu.memory_space<vmem>>, %arg7: memref<1x32xf32, #tpu.memory_space<vmem>>, %arg8: memref<2x4x32x32xf32, #tpu.memory_space<vmem>>, %arg9: memref<2x4x1x32xf32, #tpu.memory_space<vmem>>, %arg10: memref<2x4x32x32xf32, #tpu.memory_space<vmem>>, %arg11: memref<64x64xf32, #tpu.memory_space<vmem>>, %arg12: memref<2x32x64xf32, #tpu.memory_space<vmem>>, %arg13: memref<2x1x64xf32, #tpu.memory_space<vmem>>, %arg14: memref<2x64x32xf32, #tpu.memory_space<vmem>>, %arg15: memref<2x6x32xf32, #tpu.memory_space<vmem>>, %arg16: memref<320x64xf32, #tpu.memory_space<vmem>>, %arg17: memref<5x32x16xf32, #tpu.memory_space<vmem>>, %arg18: memref<1x16xf32, #tpu.memory_space<vmem>>, %arg19: memref<64x16xf32, #tpu.memory_space<vmem>>) attributes {dimension_semantics = [#tpu.dimension_semantics<parallel>], iteration_bounds = array<i64: 1>, scalar_prefetch = 0 : i64, scratch_operands = 0 : i64, tpu.core_type = #tpu.core_type<tc>, window_params = [{transform_indices = @transform_0, window_bounds = array<i64: 16, 32>}, {pipeline_mode = #tpu.pipeline_mode<synchronous>, transform_indices = @transform_1, window_bounds = array<i64: 160, 16>}, {pipeline_mode = #tpu.pipeline_mode<synchronous>, transform_indices = @transform_2, window_bounds = array<i64: 320, 32>}, {pipeline_mode = #tpu.pipeline_mode<synchronous>, transform_indices = @transform_3, window_bounds = array<i64: 2, 5, 32, 32>}, {pipeline_mode = #tpu.pipeline_mode<synchronous>, transform_indices = @transform_4, window_bounds = array<i64: 2, 1, 32>}, {pipeline_mode = #tpu.pipeline_mode<synchronous>, transform_indices = @transform_5, window_bounds = array<i64: 32, 32>}, {pipeline_mode = #tpu.pipeline_mode<synchronous>, transform_indices = @transform_6, window_bounds = array<i64: 1, 32>}, {pipeline_mode = #tpu.pipeline_mode<synchronous>, transform_indices = @transform_7, window_bounds = array<i64: 2, 4, 32, 32>}, {pipeline_mode = #tpu.pipeline_mode<synchronous>, transform_indices = @transform_8, window_bounds = array<i64: 2, 4, 1, 32>}, {pipeline_mode = #tpu.pipeline_mode<synchronous>, transform_indices = @transform_9, window_bounds = array<i64: 2, 4, 32, 32>}, {pipeline_mode = #tpu.pipeline_mode<synchronous>, transform_indices = @transform_10, window_bounds = array<i64: 64, 64>}, {pipeline_mode = #tpu.pipeline_mode<synchronous>, transform_indices = @transform_11, window_bounds = array<i64: 2, 32, 64>}, {pipeline_mode = #tpu.pipeline_mode<synchronous>, transform_indices = @transform_12, window_bounds = array<i64: 2, 1, 64>}, {pipeline_mode = #tpu.pipeline_mode<synchronous>, transform_indices = @transform_13, window_bounds = array<i64: 2, 64, 32>}, {pipeline_mode = #tpu.pipeline_mode<synchronous>, transform_indices = @transform_14, window_bounds = array<i64: 2, 6, 32>}, {pipeline_mode = #tpu.pipeline_mode<synchronous>, transform_indices = @transform_15, window_bounds = array<i64: 320, 64>}, {pipeline_mode = #tpu.pipeline_mode<synchronous>, transform_indices = @transform_16, window_bounds = array<i64: 5, 32, 16>}, {pipeline_mode = #tpu.pipeline_mode<synchronous>, transform_indices = @transform_17, window_bounds = array<i64: 1, 16>}, {transform_indices = @transform_18, window_bounds = array<i64: 64, 16>}]} {
    %c0 = arith.constant 0 : index
    %c0_0 = arith.constant 0 : index
    %0 = vector.load %arg1[%c0, %c0_0] : memref<16x32xf32, #tpu.memory_space<vmem>>, vector<16x32xf32>
    %c0_1 = arith.constant 0 : index
    %c0_2 = arith.constant 0 : index
    %1 = vector.load %arg2[%c0_1, %c0_2] : memref<160x16xf32, #tpu.memory_space<vmem>>, vector<160x16xf32>
    %c0_3 = arith.constant 0 : index
    %c0_4 = arith.constant 0 : index
    %c0_5 = arith.constant 0 : index
    %c0_6 = arith.constant 0 : index
    %2 = vector.load %arg4[%c0_3, %c0_4, %c0_5, %c0_6] : memref<2x5x32x32xf32, #tpu.memory_space<vmem>>, vector<1x5x32x32xf32>
    %3 = vector.shape_cast %2 : vector<1x5x32x32xf32> to vector<5x32x32xf32>
    %cst = arith.constant dense<0.000000e+00> : vector<160x32xf32>
    %4 = tpu.matmul %1, %0, %cst {dimension_numbers = #tpu.dot_dimension_numbers<[1], [0], [0], [1], [0, 0, 1, 1], [], []>} : vector<160x16xf32>, vector<16x32xf32>, vector<160x32xf32> -> vector<160x32xf32>
    %5 = vector.extract_strided_slice %4 {offsets = [0, 0], sizes = [32, 32], strides = [1, 1]} : vector<160x32xf32> to vector<32x32xf32>
    %6 = vector.extract_strided_slice %3 {offsets = [0, 0, 0], sizes = [1, 32, 32], strides = [1, 1, 1]} : vector<5x32x32xf32> to vector<1x32x32xf32>
    %7 = vector.shape_cast %6 : vector<1x32x32xf32> to vector<32x32xf32>
    %cst_7 = arith.constant dense<0.000000e+00> : vector<32x32xf32>
    %8 = tpu.matmul %5, %7, %cst_7 {dimension_numbers = #tpu.dot_dimension_numbers<[1], [0], [0], [1], [0, 0, 1, 1], [], []>} : vector<32x32xf32>, vector<32x32xf32>, vector<32x32xf32> -> vector<32x32xf32>
    %9 = vector.extract_strided_slice %4 {offsets = [32, 0], sizes = [32, 32], strides = [1, 1]} : vector<160x32xf32> to vector<32x32xf32>
    %10 = vector.extract_strided_slice %3 {offsets = [1, 0, 0], sizes = [1, 32, 32], strides = [1, 1, 1]} : vector<5x32x32xf32> to vector<1x32x32xf32>
    %11 = vector.shape_cast %10 : vector<1x32x32xf32> to vector<32x32xf32>
    %cst_8 = arith.constant dense<0.000000e+00> : vector<32x32xf32>
    %12 = tpu.matmul %9, %11, %cst_8 {dimension_numbers = #tpu.dot_dimension_numbers<[1], [0], [0], [1], [0, 0, 1, 1], [], []>} : vector<32x32xf32>, vector<32x32xf32>, vector<32x32xf32> -> vector<32x32xf32>
    %13 = arith.addf %8, %12 : vector<32x32xf32>
    %14 = vector.extract_strided_slice %4 {offsets = [64, 0], sizes = [32, 32], strides = [1, 1]} : vector<160x32xf32> to vector<32x32xf32>
    %15 = vector.extract_strided_slice %3 {offsets = [2, 0, 0], sizes = [1, 32, 32], strides = [1, 1, 1]} : vector<5x32x32xf32> to vector<1x32x32xf32>
    %16 = vector.shape_cast %15 : vector<1x32x32xf32> to vector<32x32xf32>
    %cst_9 = arith.constant dense<0.000000e+00> : vector<32x32xf32>
    %17 = tpu.matmul %14, %16, %cst_9 {dimension_numbers = #tpu.dot_dimension_numbers<[1], [0], [0], [1], [0, 0, 1, 1], [], []>} : vector<32x32xf32>, vector<32x32xf32>, vector<32x32xf32> -> vector<32x32xf32>
    %18 = arith.addf %13, %17 : vector<32x32xf32>
    %19 = vector.extract_strided_slice %4 {offsets = [96, 0], sizes = [32, 32], strides = [1, 1]} : vector<160x32xf32> to vector<32x32xf32>
    %20 = vector.extract_strided_slice %3 {offsets = [3, 0, 0], sizes = [1, 32, 32], strides = [1, 1, 1]} : vector<5x32x32xf32> to vector<1x32x32xf32>
    %21 = vector.shape_cast %20 : vector<1x32x32xf32> to vector<32x32xf32>
    %cst_10 = arith.constant dense<0.000000e+00> : vector<32x32xf32>
    %22 = tpu.matmul %19, %21, %cst_10 {dimension_numbers = #tpu.dot_dimension_numbers<[1], [0], [0], [1], [0, 0, 1, 1], [], []>} : vector<32x32xf32>, vector<32x32xf32>, vector<32x32xf32> -> vector<32x32xf32>
    %23 = arith.addf %18, %22 : vector<32x32xf32>
    %24 = vector.extract_strided_slice %4 {offsets = [128, 0], sizes = [32, 32], strides = [1, 1]} : vector<160x32xf32> to vector<32x32xf32>
    %25 = vector.extract_strided_slice %3 {offsets = [4, 0, 0], sizes = [1, 32, 32], strides = [1, 1, 1]} : vector<5x32x32xf32> to vector<1x32x32xf32>
    %26 = vector.shape_cast %25 : vector<1x32x32xf32> to vector<32x32xf32>
    %cst_11 = arith.constant dense<0.000000e+00> : vector<32x32xf32>
    %27 = tpu.matmul %24, %26, %cst_11 {dimension_numbers = #tpu.dot_dimension_numbers<[1], [0], [0], [1], [0, 0, 1, 1], [], []>} : vector<32x32xf32>, vector<32x32xf32>, vector<32x32xf32> -> vector<32x32xf32>
    %28 = arith.addf %23, %27 : vector<32x32xf32>
    %c0_12 = arith.constant 0 : index
    %c0_13 = arith.constant 0 : index
    %c0_14 = arith.constant 0 : index
    %29 = vector.load %arg5[%c0_12, %c0_13, %c0_14] : memref<2x1x32xf32, #tpu.memory_space<vmem>>, vector<1x1x32xf32>
    %30 = vector.shape_cast %29 : vector<1x1x32xf32> to vector<1x32xf32>
    %31 = vector.broadcast %30 : vector<1x32xf32> to vector<32x32xf32>
    %32 = arith.addf %28, %31 : vector<32x32xf32>
    %cst_15 = arith.constant 0.000000e+00 : f32
    %33 = vector.broadcast %cst_15 : f32 to vector<32x32xf32>
    %34 = arith.cmpf oge, %32, %33 : vector<32x32xf32>
    %cst_16 = arith.constant 2.000000e-01 : f32
    %35 = vector.broadcast %cst_16 : f32 to vector<32x32xf32>
    %36 = arith.mulf %35, %32 : vector<32x32xf32>
    %37 = arith.select %34, %32, %36 : vector<32x32xi1>, vector<32x32xf32>
    %c0_17 = arith.constant 0 : index
    %c0_18 = arith.constant 0 : index
    %38 = vector.load %arg3[%c0_17, %c0_18] : memref<320x32xf32, #tpu.memory_space<vmem>>, vector<320x32xf32>
    %c1 = arith.constant 1 : index
    %c0_19 = arith.constant 0 : index
    %c0_20 = arith.constant 0 : index
    %c0_21 = arith.constant 0 : index
    %39 = vector.load %arg4[%c1, %c0_19, %c0_20, %c0_21] : memref<2x5x32x32xf32, #tpu.memory_space<vmem>>, vector<1x5x32x32xf32>
    %40 = vector.shape_cast %39 : vector<1x5x32x32xf32> to vector<5x32x32xf32>
    %cst_22 = arith.constant dense<0.000000e+00> : vector<320x32xf32>
    %41 = tpu.matmul %38, %37, %cst_22 {dimension_numbers = #tpu.dot_dimension_numbers<[1], [0], [0], [1], [0, 0, 1, 1], [], []>} : vector<320x32xf32>, vector<32x32xf32>, vector<320x32xf32> -> vector<320x32xf32>
    %42 = vector.extract_strided_slice %41 {offsets = [0, 0], sizes = [64, 32], strides = [1, 1]} : vector<320x32xf32> to vector<64x32xf32>
    %43 = vector.extract_strided_slice %40 {offsets = [0, 0, 0], sizes = [1, 32, 32], strides = [1, 1, 1]} : vector<5x32x32xf32> to vector<1x32x32xf32>
    %44 = vector.shape_cast %43 : vector<1x32x32xf32> to vector<32x32xf32>
    %cst_23 = arith.constant dense<0.000000e+00> : vector<64x32xf32>
    %45 = tpu.matmul %42, %44, %cst_23 {dimension_numbers = #tpu.dot_dimension_numbers<[1], [0], [0], [1], [0, 0, 1, 1], [], []>} : vector<64x32xf32>, vector<32x32xf32>, vector<64x32xf32> -> vector<64x32xf32>
    %46 = vector.extract_strided_slice %41 {offsets = [64, 0], sizes = [64, 32], strides = [1, 1]} : vector<320x32xf32> to vector<64x32xf32>
    %47 = vector.extract_strided_slice %40 {offsets = [1, 0, 0], sizes = [1, 32, 32], strides = [1, 1, 1]} : vector<5x32x32xf32> to vector<1x32x32xf32>
    %48 = vector.shape_cast %47 : vector<1x32x32xf32> to vector<32x32xf32>
    %cst_24 = arith.constant dense<0.000000e+00> : vector<64x32xf32>
    %49 = tpu.matmul %46, %48, %cst_24 {dimension_numbers = #tpu.dot_dimension_numbers<[1], [0], [0], [1], [0, 0, 1, 1], [], []>} : vector<64x32xf32>, vector<32x32xf32>, vector<64x32xf32> -> vector<64x32xf32>
    %50 = arith.addf %45, %49 : vector<64x32xf32>
    %51 = vector.extract_strided_slice %41 {offsets = [128, 0], sizes = [64, 32], strides = [1, 1]} : vector<320x32xf32> to vector<64x32xf32>
    %52 = vector.extract_strided_slice %40 {offsets = [2, 0, 0], sizes = [1, 32, 32], strides = [1, 1, 1]} : vector<5x32x32xf32> to vector<1x32x32xf32>
    %53 = vector.shape_cast %52 : vector<1x32x32xf32> to vector<32x32xf32>
    %cst_25 = arith.constant dense<0.000000e+00> : vector<64x32xf32>
    %54 = tpu.matmul %51, %53, %cst_25 {dimension_numbers = #tpu.dot_dimension_numbers<[1], [0], [0], [1], [0, 0, 1, 1], [], []>} : vector<64x32xf32>, vector<32x32xf32>, vector<64x32xf32> -> vector<64x32xf32>
    %55 = arith.addf %50, %54 : vector<64x32xf32>
    %56 = vector.extract_strided_slice %41 {offsets = [192, 0], sizes = [64, 32], strides = [1, 1]} : vector<320x32xf32> to vector<64x32xf32>
    %57 = vector.extract_strided_slice %40 {offsets = [3, 0, 0], sizes = [1, 32, 32], strides = [1, 1, 1]} : vector<5x32x32xf32> to vector<1x32x32xf32>
    %58 = vector.shape_cast %57 : vector<1x32x32xf32> to vector<32x32xf32>
    %cst_26 = arith.constant dense<0.000000e+00> : vector<64x32xf32>
    %59 = tpu.matmul %56, %58, %cst_26 {dimension_numbers = #tpu.dot_dimension_numbers<[1], [0], [0], [1], [0, 0, 1, 1], [], []>} : vector<64x32xf32>, vector<32x32xf32>, vector<64x32xf32> -> vector<64x32xf32>
    %60 = arith.addf %55, %59 : vector<64x32xf32>
    %61 = vector.extract_strided_slice %41 {offsets = [256, 0], sizes = [64, 32], strides = [1, 1]} : vector<320x32xf32> to vector<64x32xf32>
    %62 = vector.extract_strided_slice %40 {offsets = [4, 0, 0], sizes = [1, 32, 32], strides = [1, 1, 1]} : vector<5x32x32xf32> to vector<1x32x32xf32>
    %63 = vector.shape_cast %62 : vector<1x32x32xf32> to vector<32x32xf32>
    %cst_27 = arith.constant dense<0.000000e+00> : vector<64x32xf32>
    %64 = tpu.matmul %61, %63, %cst_27 {dimension_numbers = #tpu.dot_dimension_numbers<[1], [0], [0], [1], [0, 0, 1, 1], [], []>} : vector<64x32xf32>, vector<32x32xf32>, vector<64x32xf32> -> vector<64x32xf32>
    %65 = arith.addf %60, %64 : vector<64x32xf32>
    %c1_28 = arith.constant 1 : index
    %c0_29 = arith.constant 0 : index
    %c0_30 = arith.constant 0 : index
    %66 = vector.load %arg5[%c1_28, %c0_29, %c0_30] : memref<2x1x32xf32, #tpu.memory_space<vmem>>, vector<1x1x32xf32>
    %67 = vector.shape_cast %66 : vector<1x1x32xf32> to vector<1x32xf32>
    %68 = vector.broadcast %67 : vector<1x32xf32> to vector<64x32xf32>
    %69 = arith.addf %65, %68 : vector<64x32xf32>
    %cst_31 = arith.constant 0.000000e+00 : f32
    %70 = vector.broadcast %cst_31 : f32 to vector<64x32xf32>
    %71 = arith.cmpf oge, %69, %70 : vector<64x32xf32>
    %cst_32 = arith.constant 2.000000e-01 : f32
    %72 = vector.broadcast %cst_32 : f32 to vector<64x32xf32>
    %73 = arith.mulf %72, %69 : vector<64x32xf32>
    %74 = arith.select %71, %69, %73 : vector<64x32xi1>, vector<64x32xf32>
    %c0_33 = arith.constant 0 : index
    %c0_34 = arith.constant 0 : index
    %75 = vector.load %arg6[%c0_33, %c0_34] : memref<32x32xf32, #tpu.memory_space<vmem>>, vector<32x32xf32>
    %cst_35 = arith.constant dense<0.000000e+00> : vector<64x32xf32>
    %76 = tpu.matmul %74, %75, %cst_35 {dimension_numbers = #tpu.dot_dimension_numbers<[1], [0], [0], [1], [0, 0, 1, 1], [], []>} : vector<64x32xf32>, vector<32x32xf32>, vector<64x32xf32> -> vector<64x32xf32>
    %c0_36 = arith.constant 0 : index
    %c0_37 = arith.constant 0 : index
    %77 = vector.load %arg7[%c0_36, %c0_37] : memref<1x32xf32, #tpu.memory_space<vmem>>, vector<1x32xf32>
    %78 = vector.broadcast %77 : vector<1x32xf32> to vector<64x32xf32>
    %79 = arith.addf %76, %78 : vector<64x32xf32>
    %c0_38 = arith.constant 0 : index
    %c0_39 = arith.constant 0 : index
    %80 = vector.load %arg11[%c0_38, %c0_39] : memref<64x64xf32, #tpu.memory_space<vmem>>, vector<64x64xf32>
    %c0_40 = arith.constant 0 : index
    %c0_41 = arith.constant 0 : index
    %c0_42 = arith.constant 0 : index
    %81 = vector.load %arg15[%c0_40, %c0_41, %c0_42] : memref<2x6x32xf32, #tpu.memory_space<vmem>>, vector<1x6x32xf32>
    %82 = vector.shape_cast %81 : vector<1x6x32xf32> to vector<6x32xf32>
    %c0_43 = arith.constant 0 : index
    %c0_44 = arith.constant 0 : index
    %c0_45 = arith.constant 0 : index
    %c0_46 = arith.constant 0 : index
    %83 = vector.load %arg8[%c0_43, %c0_44, %c0_45, %c0_46] : memref<2x4x32x32xf32, #tpu.memory_space<vmem>>, vector<1x1x32x32xf32>
    %84 = vector.shape_cast %83 : vector<1x1x32x32xf32> to vector<32x32xf32>
    %cst_47 = arith.constant dense<0.000000e+00> : vector<64x32xf32>
    %85 = tpu.matmul %79, %84, %cst_47 {dimension_numbers = #tpu.dot_dimension_numbers<[1], [0], [0], [1], [0, 0, 1, 1], [], []>} : vector<64x32xf32>, vector<32x32xf32>, vector<64x32xf32> -> vector<64x32xf32>
    %c0_48 = arith.constant 0 : index
    %c0_49 = arith.constant 0 : index
    %c0_50 = arith.constant 0 : index
    %c0_51 = arith.constant 0 : index
    %86 = vector.load %arg9[%c0_48, %c0_49, %c0_50, %c0_51] : memref<2x4x1x32xf32, #tpu.memory_space<vmem>>, vector<1x1x1x32xf32>
    %87 = vector.shape_cast %86 : vector<1x1x1x32xf32> to vector<1x32xf32>
    %88 = vector.broadcast %87 : vector<1x32xf32> to vector<64x32xf32>
    %89 = arith.addf %85, %88 : vector<64x32xf32>
    %cst_52 = arith.constant dense<0.000000e+00> : vector<64x64xf32>
    %90 = tpu.matmul %89, %79, %cst_52 {dimension_numbers = #tpu.dot_dimension_numbers<[1], [1], [0], [0], [0, 0, 1, 0], [], []>} : vector<64x32xf32>, vector<64x32xf32>, vector<64x64xf32> -> vector<64x64xf32>
    %91 = arith.addf %90, %80 : vector<64x64xf32>
    %cst_53 = arith.constant dense<0xFF800000> : vector<64xf32>
    %92 = vector.multi_reduction <maximumf>, %91, %cst_53 [1] : vector<64x64xf32> to vector<64xf32>
    %93 = vector.shape_cast %92 : vector<64xf32> to vector<64x1xf32>
    %94 = vector.broadcast %93 : vector<64x1xf32> to vector<64x64xf32>
    %95 = arith.subf %91, %94 : vector<64x64xf32>
    %96 = math.exp %95 : vector<64x64xf32>
    %cst_54 = arith.constant dense<0.000000e+00> : vector<64xf32>
    %97 = vector.multi_reduction <add>, %96, %cst_54 [1] : vector<64x64xf32> to vector<64xf32>
    %98 = vector.shape_cast %97 : vector<64xf32> to vector<64x1xf32>
    %99 = tpu.reciprocal %98 {approx = true} : vector<64x1xf32> -> vector<64x1xf32>
    %100 = vector.broadcast %99 : vector<64x1xf32> to vector<64x64xf32>
    %101 = arith.mulf %96, %100 : vector<64x64xf32>
    %c0_55 = arith.constant 0 : index
    %c0_56 = arith.constant 0 : index
    %c0_57 = arith.constant 0 : index
    %c0_58 = arith.constant 0 : index
    %102 = vector.load %arg10[%c0_55, %c0_56, %c0_57, %c0_58] : memref<2x4x32x32xf32, #tpu.memory_space<vmem>>, vector<1x1x32x32xf32>
    %103 = vector.shape_cast %102 : vector<1x1x32x32xf32> to vector<32x32xf32>
    %cst_59 = arith.constant dense<0.000000e+00> : vector<64x32xf32>
    %104 = tpu.matmul %79, %103, %cst_59 {dimension_numbers = #tpu.dot_dimension_numbers<[1], [0], [0], [1], [0, 0, 1, 1], [], []>} : vector<64x32xf32>, vector<32x32xf32>, vector<64x32xf32> -> vector<64x32xf32>
    %cst_60 = arith.constant dense<0.000000e+00> : vector<64x32xf32>
    %105 = tpu.matmul %101, %104, %cst_60 {dimension_numbers = #tpu.dot_dimension_numbers<[1], [0], [0], [1], [0, 0, 1, 1], [], []>} : vector<64x64xf32>, vector<64x32xf32>, vector<64x32xf32> -> vector<64x32xf32>
    %c0_61 = arith.constant 0 : index
    %c1_62 = arith.constant 1 : index
    %c0_63 = arith.constant 0 : index
    %c0_64 = arith.constant 0 : index
    %106 = vector.load %arg8[%c0_61, %c1_62, %c0_63, %c0_64] : memref<2x4x32x32xf32, #tpu.memory_space<vmem>>, vector<1x1x32x32xf32>
    %107 = vector.shape_cast %106 : vector<1x1x32x32xf32> to vector<32x32xf32>
    %cst_65 = arith.constant dense<0.000000e+00> : vector<64x32xf32>
    %108 = tpu.matmul %79, %107, %cst_65 {dimension_numbers = #tpu.dot_dimension_numbers<[1], [0], [0], [1], [0, 0, 1, 1], [], []>} : vector<64x32xf32>, vector<32x32xf32>, vector<64x32xf32> -> vector<64x32xf32>
    %c0_66 = arith.constant 0 : index
    %c1_67 = arith.constant 1 : index
    %c0_68 = arith.constant 0 : index
    %c0_69 = arith.constant 0 : index
    %109 = vector.load %arg9[%c0_66, %c1_67, %c0_68, %c0_69] : memref<2x4x1x32xf32, #tpu.memory_space<vmem>>, vector<1x1x1x32xf32>
    %110 = vector.shape_cast %109 : vector<1x1x1x32xf32> to vector<1x32xf32>
    %111 = vector.broadcast %110 : vector<1x32xf32> to vector<64x32xf32>
    %112 = arith.addf %108, %111 : vector<64x32xf32>
    %cst_70 = arith.constant dense<0.000000e+00> : vector<64x64xf32>
    %113 = tpu.matmul %112, %79, %cst_70 {dimension_numbers = #tpu.dot_dimension_numbers<[1], [1], [0], [0], [0, 0, 1, 0], [], []>} : vector<64x32xf32>, vector<64x32xf32>, vector<64x64xf32> -> vector<64x64xf32>
    %114 = arith.addf %113, %80 : vector<64x64xf32>
    %cst_71 = arith.constant dense<0xFF800000> : vector<64xf32>
    %115 = vector.multi_reduction <maximumf>, %114, %cst_71 [1] : vector<64x64xf32> to vector<64xf32>
    %116 = vector.shape_cast %115 : vector<64xf32> to vector<64x1xf32>
    %117 = vector.broadcast %116 : vector<64x1xf32> to vector<64x64xf32>
    %118 = arith.subf %114, %117 : vector<64x64xf32>
    %119 = math.exp %118 : vector<64x64xf32>
    %cst_72 = arith.constant dense<0.000000e+00> : vector<64xf32>
    %120 = vector.multi_reduction <add>, %119, %cst_72 [1] : vector<64x64xf32> to vector<64xf32>
    %121 = vector.shape_cast %120 : vector<64xf32> to vector<64x1xf32>
    %122 = tpu.reciprocal %121 {approx = true} : vector<64x1xf32> -> vector<64x1xf32>
    %123 = vector.broadcast %122 : vector<64x1xf32> to vector<64x64xf32>
    %124 = arith.mulf %119, %123 : vector<64x64xf32>
    %c0_73 = arith.constant 0 : index
    %c1_74 = arith.constant 1 : index
    %c0_75 = arith.constant 0 : index
    %c0_76 = arith.constant 0 : index
    %125 = vector.load %arg10[%c0_73, %c1_74, %c0_75, %c0_76] : memref<2x4x32x32xf32, #tpu.memory_space<vmem>>, vector<1x1x32x32xf32>
    %126 = vector.shape_cast %125 : vector<1x1x32x32xf32> to vector<32x32xf32>
    %cst_77 = arith.constant dense<0.000000e+00> : vector<64x32xf32>
    %127 = tpu.matmul %79, %126, %cst_77 {dimension_numbers = #tpu.dot_dimension_numbers<[1], [0], [0], [1], [0, 0, 1, 1], [], []>} : vector<64x32xf32>, vector<32x32xf32>, vector<64x32xf32> -> vector<64x32xf32>
    %cst_78 = arith.constant dense<0.000000e+00> : vector<64x32xf32>
    %128 = tpu.matmul %124, %127, %cst_78 {dimension_numbers = #tpu.dot_dimension_numbers<[1], [0], [0], [1], [0, 0, 1, 1], [], []>} : vector<64x64xf32>, vector<64x32xf32>, vector<64x32xf32> -> vector<64x32xf32>
    %129 = arith.addf %105, %128 : vector<64x32xf32>
    %c0_79 = arith.constant 0 : index
    %c2 = arith.constant 2 : index
    %c0_80 = arith.constant 0 : index
    %c0_81 = arith.constant 0 : index
    %130 = vector.load %arg8[%c0_79, %c2, %c0_80, %c0_81] : memref<2x4x32x32xf32, #tpu.memory_space<vmem>>, vector<1x1x32x32xf32>
    %131 = vector.shape_cast %130 : vector<1x1x32x32xf32> to vector<32x32xf32>
    %cst_82 = arith.constant dense<0.000000e+00> : vector<64x32xf32>
    %132 = tpu.matmul %79, %131, %cst_82 {dimension_numbers = #tpu.dot_dimension_numbers<[1], [0], [0], [1], [0, 0, 1, 1], [], []>} : vector<64x32xf32>, vector<32x32xf32>, vector<64x32xf32> -> vector<64x32xf32>
    %c0_83 = arith.constant 0 : index
    %c2_84 = arith.constant 2 : index
    %c0_85 = arith.constant 0 : index
    %c0_86 = arith.constant 0 : index
    %133 = vector.load %arg9[%c0_83, %c2_84, %c0_85, %c0_86] : memref<2x4x1x32xf32, #tpu.memory_space<vmem>>, vector<1x1x1x32xf32>
    %134 = vector.shape_cast %133 : vector<1x1x1x32xf32> to vector<1x32xf32>
    %135 = vector.broadcast %134 : vector<1x32xf32> to vector<64x32xf32>
    %136 = arith.addf %132, %135 : vector<64x32xf32>
    %cst_87 = arith.constant dense<0.000000e+00> : vector<64x64xf32>
    %137 = tpu.matmul %136, %79, %cst_87 {dimension_numbers = #tpu.dot_dimension_numbers<[1], [1], [0], [0], [0, 0, 1, 0], [], []>} : vector<64x32xf32>, vector<64x32xf32>, vector<64x64xf32> -> vector<64x64xf32>
    %138 = arith.addf %137, %80 : vector<64x64xf32>
    %cst_88 = arith.constant dense<0xFF800000> : vector<64xf32>
    %139 = vector.multi_reduction <maximumf>, %138, %cst_88 [1] : vector<64x64xf32> to vector<64xf32>
    %140 = vector.shape_cast %139 : vector<64xf32> to vector<64x1xf32>
    %141 = vector.broadcast %140 : vector<64x1xf32> to vector<64x64xf32>
    %142 = arith.subf %138, %141 : vector<64x64xf32>
    %143 = math.exp %142 : vector<64x64xf32>
    %cst_89 = arith.constant dense<0.000000e+00> : vector<64xf32>
    %144 = vector.multi_reduction <add>, %143, %cst_89 [1] : vector<64x64xf32> to vector<64xf32>
    %145 = vector.shape_cast %144 : vector<64xf32> to vector<64x1xf32>
    %146 = tpu.reciprocal %145 {approx = true} : vector<64x1xf32> -> vector<64x1xf32>
    %147 = vector.broadcast %146 : vector<64x1xf32> to vector<64x64xf32>
    %148 = arith.mulf %143, %147 : vector<64x64xf32>
    %c0_90 = arith.constant 0 : index
    %c2_91 = arith.constant 2 : index
    %c0_92 = arith.constant 0 : index
    %c0_93 = arith.constant 0 : index
    %149 = vector.load %arg10[%c0_90, %c2_91, %c0_92, %c0_93] : memref<2x4x32x32xf32, #tpu.memory_space<vmem>>, vector<1x1x32x32xf32>
    %150 = vector.shape_cast %149 : vector<1x1x32x32xf32> to vector<32x32xf32>
    %cst_94 = arith.constant dense<0.000000e+00> : vector<64x32xf32>
    %151 = tpu.matmul %79, %150, %cst_94 {dimension_numbers = #tpu.dot_dimension_numbers<[1], [0], [0], [1], [0, 0, 1, 1], [], []>} : vector<64x32xf32>, vector<32x32xf32>, vector<64x32xf32> -> vector<64x32xf32>
    %cst_95 = arith.constant dense<0.000000e+00> : vector<64x32xf32>
    %152 = tpu.matmul %148, %151, %cst_95 {dimension_numbers = #tpu.dot_dimension_numbers<[1], [0], [0], [1], [0, 0, 1, 1], [], []>} : vector<64x64xf32>, vector<64x32xf32>, vector<64x32xf32> -> vector<64x32xf32>
    %153 = arith.addf %129, %152 : vector<64x32xf32>
    %c0_96 = arith.constant 0 : index
    %c3 = arith.constant 3 : index
    %c0_97 = arith.constant 0 : index
    %c0_98 = arith.constant 0 : index
    %154 = vector.load %arg8[%c0_96, %c3, %c0_97, %c0_98] : memref<2x4x32x32xf32, #tpu.memory_space<vmem>>, vector<1x1x32x32xf32>
    %155 = vector.shape_cast %154 : vector<1x1x32x32xf32> to vector<32x32xf32>
    %cst_99 = arith.constant dense<0.000000e+00> : vector<64x32xf32>
    %156 = tpu.matmul %79, %155, %cst_99 {dimension_numbers = #tpu.dot_dimension_numbers<[1], [0], [0], [1], [0, 0, 1, 1], [], []>} : vector<64x32xf32>, vector<32x32xf32>, vector<64x32xf32> -> vector<64x32xf32>
    %c0_100 = arith.constant 0 : index
    %c3_101 = arith.constant 3 : index
    %c0_102 = arith.constant 0 : index
    %c0_103 = arith.constant 0 : index
    %157 = vector.load %arg9[%c0_100, %c3_101, %c0_102, %c0_103] : memref<2x4x1x32xf32, #tpu.memory_space<vmem>>, vector<1x1x1x32xf32>
    %158 = vector.shape_cast %157 : vector<1x1x1x32xf32> to vector<1x32xf32>
    %159 = vector.broadcast %158 : vector<1x32xf32> to vector<64x32xf32>
    %160 = arith.addf %156, %159 : vector<64x32xf32>
    %cst_104 = arith.constant dense<0.000000e+00> : vector<64x64xf32>
    %161 = tpu.matmul %160, %79, %cst_104 {dimension_numbers = #tpu.dot_dimension_numbers<[1], [1], [0], [0], [0, 0, 1, 0], [], []>} : vector<64x32xf32>, vector<64x32xf32>, vector<64x64xf32> -> vector<64x64xf32>
    %162 = arith.addf %161, %80 : vector<64x64xf32>
    %cst_105 = arith.constant dense<0xFF800000> : vector<64xf32>
    %163 = vector.multi_reduction <maximumf>, %162, %cst_105 [1] : vector<64x64xf32> to vector<64xf32>
    %164 = vector.shape_cast %163 : vector<64xf32> to vector<64x1xf32>
    %165 = vector.broadcast %164 : vector<64x1xf32> to vector<64x64xf32>
    %166 = arith.subf %162, %165 : vector<64x64xf32>
    %167 = math.exp %166 : vector<64x64xf32>
    %cst_106 = arith.constant dense<0.000000e+00> : vector<64xf32>
    %168 = vector.multi_reduction <add>, %167, %cst_106 [1] : vector<64x64xf32> to vector<64xf32>
    %169 = vector.shape_cast %168 : vector<64xf32> to vector<64x1xf32>
    %170 = tpu.reciprocal %169 {approx = true} : vector<64x1xf32> -> vector<64x1xf32>
    %171 = vector.broadcast %170 : vector<64x1xf32> to vector<64x64xf32>
    %172 = arith.mulf %167, %171 : vector<64x64xf32>
    %c0_107 = arith.constant 0 : index
    %c3_108 = arith.constant 3 : index
    %c0_109 = arith.constant 0 : index
    %c0_110 = arith.constant 0 : index
    %173 = vector.load %arg10[%c0_107, %c3_108, %c0_109, %c0_110] : memref<2x4x32x32xf32, #tpu.memory_space<vmem>>, vector<1x1x32x32xf32>
    %174 = vector.shape_cast %173 : vector<1x1x32x32xf32> to vector<32x32xf32>
    %cst_111 = arith.constant dense<0.000000e+00> : vector<64x32xf32>
    %175 = tpu.matmul %79, %174, %cst_111 {dimension_numbers = #tpu.dot_dimension_numbers<[1], [0], [0], [1], [0, 0, 1, 1], [], []>} : vector<64x32xf32>, vector<32x32xf32>, vector<64x32xf32> -> vector<64x32xf32>
    %cst_112 = arith.constant dense<0.000000e+00> : vector<64x32xf32>
    %176 = tpu.matmul %172, %175, %cst_112 {dimension_numbers = #tpu.dot_dimension_numbers<[1], [0], [0], [1], [0, 0, 1, 1], [], []>} : vector<64x64xf32>, vector<64x32xf32>, vector<64x32xf32> -> vector<64x32xf32>
    %177 = arith.addf %153, %176 : vector<64x32xf32>
    %178 = arith.addf %79, %177 : vector<64x32xf32>
    %179 = vector.extract_strided_slice %82 {offsets = [0, 0], sizes = [1, 32], strides = [1, 1]} : vector<6x32xf32> to vector<1x32xf32>
    %180 = vector.broadcast %179 : vector<1x32xf32> to vector<64x32xf32>
    %181 = arith.addf %178, %180 : vector<64x32xf32>
    %182 = vector.extract_strided_slice %82 {offsets = [1, 0], sizes = [1, 32], strides = [1, 1]} : vector<6x32xf32> to vector<1x32xf32>
    %183 = vector.extract_strided_slice %82 {offsets = [2, 0], sizes = [1, 32], strides = [1, 1]} : vector<6x32xf32> to vector<1x32xf32>
    %cst_113 = arith.constant dense<0.000000e+00> : vector<64xf32>
    %184 = vector.multi_reduction <add>, %181, %cst_113 [1] : vector<64x32xf32> to vector<64xf32>
    %185 = vector.shape_cast %184 : vector<64xf32> to vector<64x1xf32>
    %cst_114 = arith.constant 3.200000e+01 : f32
    %186 = vector.broadcast %cst_114 : f32 to vector<64x1xf32>
    %187 = arith.divf %185, %186 : vector<64x1xf32>
    %188 = vector.broadcast %187 : vector<64x1xf32> to vector<64x32xf32>
    %189 = arith.subf %181, %188 : vector<64x32xf32>
    %190 = vector.broadcast %187 : vector<64x1xf32> to vector<64x32xf32>
    %191 = arith.subf %181, %190 : vector<64x32xf32>
    %192 = arith.mulf %189, %191 : vector<64x32xf32>
    %cst_115 = arith.constant dense<0.000000e+00> : vector<64xf32>
    %193 = vector.multi_reduction <add>, %192, %cst_115 [1] : vector<64x32xf32> to vector<64xf32>
    %194 = vector.shape_cast %193 : vector<64xf32> to vector<64x1xf32>
    %cst_116 = arith.constant 3.200000e+01 : f32
    %195 = vector.broadcast %cst_116 : f32 to vector<64x1xf32>
    %196 = arith.divf %194, %195 : vector<64x1xf32>
    %197 = vector.broadcast %187 : vector<64x1xf32> to vector<64x32xf32>
    %198 = arith.subf %181, %197 : vector<64x32xf32>
    %cst_117 = arith.constant 9.99999974E-6 : f32
    %199 = vector.broadcast %cst_117 : f32 to vector<64x1xf32>
    %200 = arith.addf %196, %199 : vector<64x1xf32>
    %201 = math.rsqrt %200 : vector<64x1xf32>
    %202 = vector.broadcast %201 : vector<64x1xf32> to vector<64x32xf32>
    %203 = arith.mulf %198, %202 : vector<64x32xf32>
    %204 = vector.broadcast %182 : vector<1x32xf32> to vector<64x32xf32>
    %205 = arith.mulf %203, %204 : vector<64x32xf32>
    %206 = vector.broadcast %183 : vector<1x32xf32> to vector<64x32xf32>
    %207 = arith.addf %205, %206 : vector<64x32xf32>
    %c0_118 = arith.constant 0 : index
    %c0_119 = arith.constant 0 : index
    %c0_120 = arith.constant 0 : index
    %208 = vector.load %arg12[%c0_118, %c0_119, %c0_120] : memref<2x32x64xf32, #tpu.memory_space<vmem>>, vector<1x32x64xf32>
    %209 = vector.shape_cast %208 : vector<1x32x64xf32> to vector<32x64xf32>
    %cst_121 = arith.constant dense<0.000000e+00> : vector<64x64xf32>
    %210 = tpu.matmul %207, %209, %cst_121 {dimension_numbers = #tpu.dot_dimension_numbers<[1], [0], [0], [1], [0, 0, 1, 1], [], []>} : vector<64x32xf32>, vector<32x64xf32>, vector<64x64xf32> -> vector<64x64xf32>
    %c0_122 = arith.constant 0 : index
    %c0_123 = arith.constant 0 : index
    %c0_124 = arith.constant 0 : index
    %211 = vector.load %arg13[%c0_122, %c0_123, %c0_124] : memref<2x1x64xf32, #tpu.memory_space<vmem>>, vector<1x1x64xf32>
    %212 = vector.shape_cast %211 : vector<1x1x64xf32> to vector<1x64xf32>
    %213 = vector.broadcast %212 : vector<1x64xf32> to vector<64x64xf32>
    %214 = arith.addf %210, %213 : vector<64x64xf32>
    %cst_125 = arith.constant 5.000000e-01 : f32
    %215 = vector.broadcast %cst_125 : f32 to vector<64x64xf32>
    %216 = arith.mulf %215, %214 : vector<64x64xf32>
    %cst_126 = arith.constant 4.471500e-02 : f32
    %217 = vector.broadcast %cst_126 : f32 to vector<64x64xf32>
    %218 = arith.mulf %217, %214 : vector<64x64xf32>
    %219 = arith.mulf %218, %214 : vector<64x64xf32>
    %220 = arith.mulf %219, %214 : vector<64x64xf32>
    %221 = arith.addf %214, %220 : vector<64x64xf32>
    %cst_127 = arith.constant 0.797884583 : f32
    %222 = vector.broadcast %cst_127 : f32 to vector<64x64xf32>
    %223 = arith.mulf %222, %221 : vector<64x64xf32>
    %224 = math.tanh %223 : vector<64x64xf32>
    %cst_128 = arith.constant 1.000000e+00 : f32
    %225 = vector.broadcast %cst_128 : f32 to vector<64x64xf32>
    %226 = arith.addf %225, %224 : vector<64x64xf32>
    %227 = arith.mulf %216, %226 : vector<64x64xf32>
    %c0_129 = arith.constant 0 : index
    %c0_130 = arith.constant 0 : index
    %c0_131 = arith.constant 0 : index
    %228 = vector.load %arg14[%c0_129, %c0_130, %c0_131] : memref<2x64x32xf32, #tpu.memory_space<vmem>>, vector<1x64x32xf32>
    %229 = vector.shape_cast %228 : vector<1x64x32xf32> to vector<64x32xf32>
    %cst_132 = arith.constant dense<0.000000e+00> : vector<64x32xf32>
    %230 = tpu.matmul %227, %229, %cst_132 {dimension_numbers = #tpu.dot_dimension_numbers<[1], [0], [0], [1], [0, 0, 1, 1], [], []>} : vector<64x64xf32>, vector<64x32xf32>, vector<64x32xf32> -> vector<64x32xf32>
    %231 = arith.addf %207, %230 : vector<64x32xf32>
    %232 = vector.extract_strided_slice %82 {offsets = [3, 0], sizes = [1, 32], strides = [1, 1]} : vector<6x32xf32> to vector<1x32xf32>
    %233 = vector.broadcast %232 : vector<1x32xf32> to vector<64x32xf32>
    %234 = arith.addf %231, %233 : vector<64x32xf32>
    %235 = vector.extract_strided_slice %82 {offsets = [4, 0], sizes = [1, 32], strides = [1, 1]} : vector<6x32xf32> to vector<1x32xf32>
    %236 = vector.extract_strided_slice %82 {offsets = [5, 0], sizes = [1, 32], strides = [1, 1]} : vector<6x32xf32> to vector<1x32xf32>
    %cst_133 = arith.constant dense<0.000000e+00> : vector<64xf32>
    %237 = vector.multi_reduction <add>, %234, %cst_133 [1] : vector<64x32xf32> to vector<64xf32>
    %238 = vector.shape_cast %237 : vector<64xf32> to vector<64x1xf32>
    %cst_134 = arith.constant 3.200000e+01 : f32
    %239 = vector.broadcast %cst_134 : f32 to vector<64x1xf32>
    %240 = arith.divf %238, %239 : vector<64x1xf32>
    %241 = vector.broadcast %240 : vector<64x1xf32> to vector<64x32xf32>
    %242 = arith.subf %234, %241 : vector<64x32xf32>
    %243 = vector.broadcast %240 : vector<64x1xf32> to vector<64x32xf32>
    %244 = arith.subf %234, %243 : vector<64x32xf32>
    %245 = arith.mulf %242, %244 : vector<64x32xf32>
    %cst_135 = arith.constant dense<0.000000e+00> : vector<64xf32>
    %246 = vector.multi_reduction <add>, %245, %cst_135 [1] : vector<64x32xf32> to vector<64xf32>
    %247 = vector.shape_cast %246 : vector<64xf32> to vector<64x1xf32>
    %cst_136 = arith.constant 3.200000e+01 : f32
    %248 = vector.broadcast %cst_136 : f32 to vector<64x1xf32>
    %249 = arith.divf %247, %248 : vector<64x1xf32>
    %250 = vector.broadcast %240 : vector<64x1xf32> to vector<64x32xf32>
    %251 = arith.subf %234, %250 : vector<64x32xf32>
    %cst_137 = arith.constant 9.99999974E-6 : f32
    %252 = vector.broadcast %cst_137 : f32 to vector<64x1xf32>
    %253 = arith.addf %249, %252 : vector<64x1xf32>
    %254 = math.rsqrt %253 : vector<64x1xf32>
    %255 = vector.broadcast %254 : vector<64x1xf32> to vector<64x32xf32>
    %256 = arith.mulf %251, %255 : vector<64x32xf32>
    %257 = vector.broadcast %235 : vector<1x32xf32> to vector<64x32xf32>
    %258 = arith.mulf %256, %257 : vector<64x32xf32>
    %259 = vector.broadcast %236 : vector<1x32xf32> to vector<64x32xf32>
    %260 = arith.addf %258, %259 : vector<64x32xf32>
    %c1_138 = arith.constant 1 : index
    %c0_139 = arith.constant 0 : index
    %c0_140 = arith.constant 0 : index
    %261 = vector.load %arg15[%c1_138, %c0_139, %c0_140] : memref<2x6x32xf32, #tpu.memory_space<vmem>>, vector<1x6x32xf32>
    %262 = vector.shape_cast %261 : vector<1x6x32xf32> to vector<6x32xf32>
    %c1_141 = arith.constant 1 : index
    %c0_142 = arith.constant 0 : index
    %c0_143 = arith.constant 0 : index
    %c0_144 = arith.constant 0 : index
    %263 = vector.load %arg8[%c1_141, %c0_142, %c0_143, %c0_144] : memref<2x4x32x32xf32, #tpu.memory_space<vmem>>, vector<1x1x32x32xf32>
    %264 = vector.shape_cast %263 : vector<1x1x32x32xf32> to vector<32x32xf32>
    %cst_145 = arith.constant dense<0.000000e+00> : vector<64x32xf32>
    %265 = tpu.matmul %260, %264, %cst_145 {dimension_numbers = #tpu.dot_dimension_numbers<[1], [0], [0], [1], [0, 0, 1, 1], [], []>} : vector<64x32xf32>, vector<32x32xf32>, vector<64x32xf32> -> vector<64x32xf32>
    %c1_146 = arith.constant 1 : index
    %c0_147 = arith.constant 0 : index
    %c0_148 = arith.constant 0 : index
    %c0_149 = arith.constant 0 : index
    %266 = vector.load %arg9[%c1_146, %c0_147, %c0_148, %c0_149] : memref<2x4x1x32xf32, #tpu.memory_space<vmem>>, vector<1x1x1x32xf32>
    %267 = vector.shape_cast %266 : vector<1x1x1x32xf32> to vector<1x32xf32>
    %268 = vector.broadcast %267 : vector<1x32xf32> to vector<64x32xf32>
    %269 = arith.addf %265, %268 : vector<64x32xf32>
    %cst_150 = arith.constant dense<0.000000e+00> : vector<64x64xf32>
    %270 = tpu.matmul %269, %260, %cst_150 {dimension_numbers = #tpu.dot_dimension_numbers<[1], [1], [0], [0], [0, 0, 1, 0], [], []>} : vector<64x32xf32>, vector<64x32xf32>, vector<64x64xf32> -> vector<64x64xf32>
    %271 = arith.addf %270, %80 : vector<64x64xf32>
    %cst_151 = arith.constant dense<0xFF800000> : vector<64xf32>
    %272 = vector.multi_reduction <maximumf>, %271, %cst_151 [1] : vector<64x64xf32> to vector<64xf32>
    %273 = vector.shape_cast %272 : vector<64xf32> to vector<64x1xf32>
    %274 = vector.broadcast %273 : vector<64x1xf32> to vector<64x64xf32>
    %275 = arith.subf %271, %274 : vector<64x64xf32>
    %276 = math.exp %275 : vector<64x64xf32>
    %cst_152 = arith.constant dense<0.000000e+00> : vector<64xf32>
    %277 = vector.multi_reduction <add>, %276, %cst_152 [1] : vector<64x64xf32> to vector<64xf32>
    %278 = vector.shape_cast %277 : vector<64xf32> to vector<64x1xf32>
    %279 = tpu.reciprocal %278 {approx = true} : vector<64x1xf32> -> vector<64x1xf32>
    %280 = vector.broadcast %279 : vector<64x1xf32> to vector<64x64xf32>
    %281 = arith.mulf %276, %280 : vector<64x64xf32>
    %c1_153 = arith.constant 1 : index
    %c0_154 = arith.constant 0 : index
    %c0_155 = arith.constant 0 : index
    %c0_156 = arith.constant 0 : index
    %282 = vector.load %arg10[%c1_153, %c0_154, %c0_155, %c0_156] : memref<2x4x32x32xf32, #tpu.memory_space<vmem>>, vector<1x1x32x32xf32>
    %283 = vector.shape_cast %282 : vector<1x1x32x32xf32> to vector<32x32xf32>
    %cst_157 = arith.constant dense<0.000000e+00> : vector<64x32xf32>
    %284 = tpu.matmul %260, %283, %cst_157 {dimension_numbers = #tpu.dot_dimension_numbers<[1], [0], [0], [1], [0, 0, 1, 1], [], []>} : vector<64x32xf32>, vector<32x32xf32>, vector<64x32xf32> -> vector<64x32xf32>
    %cst_158 = arith.constant dense<0.000000e+00> : vector<64x32xf32>
    %285 = tpu.matmul %281, %284, %cst_158 {dimension_numbers = #tpu.dot_dimension_numbers<[1], [0], [0], [1], [0, 0, 1, 1], [], []>} : vector<64x64xf32>, vector<64x32xf32>, vector<64x32xf32> -> vector<64x32xf32>
    %c1_159 = arith.constant 1 : index
    %c1_160 = arith.constant 1 : index
    %c0_161 = arith.constant 0 : index
    %c0_162 = arith.constant 0 : index
    %286 = vector.load %arg8[%c1_159, %c1_160, %c0_161, %c0_162] : memref<2x4x32x32xf32, #tpu.memory_space<vmem>>, vector<1x1x32x32xf32>
    %287 = vector.shape_cast %286 : vector<1x1x32x32xf32> to vector<32x32xf32>
    %cst_163 = arith.constant dense<0.000000e+00> : vector<64x32xf32>
    %288 = tpu.matmul %260, %287, %cst_163 {dimension_numbers = #tpu.dot_dimension_numbers<[1], [0], [0], [1], [0, 0, 1, 1], [], []>} : vector<64x32xf32>, vector<32x32xf32>, vector<64x32xf32> -> vector<64x32xf32>
    %c1_164 = arith.constant 1 : index
    %c1_165 = arith.constant 1 : index
    %c0_166 = arith.constant 0 : index
    %c0_167 = arith.constant 0 : index
    %289 = vector.load %arg9[%c1_164, %c1_165, %c0_166, %c0_167] : memref<2x4x1x32xf32, #tpu.memory_space<vmem>>, vector<1x1x1x32xf32>
    %290 = vector.shape_cast %289 : vector<1x1x1x32xf32> to vector<1x32xf32>
    %291 = vector.broadcast %290 : vector<1x32xf32> to vector<64x32xf32>
    %292 = arith.addf %288, %291 : vector<64x32xf32>
    %cst_168 = arith.constant dense<0.000000e+00> : vector<64x64xf32>
    %293 = tpu.matmul %292, %260, %cst_168 {dimension_numbers = #tpu.dot_dimension_numbers<[1], [1], [0], [0], [0, 0, 1, 0], [], []>} : vector<64x32xf32>, vector<64x32xf32>, vector<64x64xf32> -> vector<64x64xf32>
    %294 = arith.addf %293, %80 : vector<64x64xf32>
    %cst_169 = arith.constant dense<0xFF800000> : vector<64xf32>
    %295 = vector.multi_reduction <maximumf>, %294, %cst_169 [1] : vector<64x64xf32> to vector<64xf32>
    %296 = vector.shape_cast %295 : vector<64xf32> to vector<64x1xf32>
    %297 = vector.broadcast %296 : vector<64x1xf32> to vector<64x64xf32>
    %298 = arith.subf %294, %297 : vector<64x64xf32>
    %299 = math.exp %298 : vector<64x64xf32>
    %cst_170 = arith.constant dense<0.000000e+00> : vector<64xf32>
    %300 = vector.multi_reduction <add>, %299, %cst_170 [1] : vector<64x64xf32> to vector<64xf32>
    %301 = vector.shape_cast %300 : vector<64xf32> to vector<64x1xf32>
    %302 = tpu.reciprocal %301 {approx = true} : vector<64x1xf32> -> vector<64x1xf32>
    %303 = vector.broadcast %302 : vector<64x1xf32> to vector<64x64xf32>
    %304 = arith.mulf %299, %303 : vector<64x64xf32>
    %c1_171 = arith.constant 1 : index
    %c1_172 = arith.constant 1 : index
    %c0_173 = arith.constant 0 : index
    %c0_174 = arith.constant 0 : index
    %305 = vector.load %arg10[%c1_171, %c1_172, %c0_173, %c0_174] : memref<2x4x32x32xf32, #tpu.memory_space<vmem>>, vector<1x1x32x32xf32>
    %306 = vector.shape_cast %305 : vector<1x1x32x32xf32> to vector<32x32xf32>
    %cst_175 = arith.constant dense<0.000000e+00> : vector<64x32xf32>
    %307 = tpu.matmul %260, %306, %cst_175 {dimension_numbers = #tpu.dot_dimension_numbers<[1], [0], [0], [1], [0, 0, 1, 1], [], []>} : vector<64x32xf32>, vector<32x32xf32>, vector<64x32xf32> -> vector<64x32xf32>
    %cst_176 = arith.constant dense<0.000000e+00> : vector<64x32xf32>
    %308 = tpu.matmul %304, %307, %cst_176 {dimension_numbers = #tpu.dot_dimension_numbers<[1], [0], [0], [1], [0, 0, 1, 1], [], []>} : vector<64x64xf32>, vector<64x32xf32>, vector<64x32xf32> -> vector<64x32xf32>
    %309 = arith.addf %285, %308 : vector<64x32xf32>
    %c1_177 = arith.constant 1 : index
    %c2_178 = arith.constant 2 : index
    %c0_179 = arith.constant 0 : index
    %c0_180 = arith.constant 0 : index
    %310 = vector.load %arg8[%c1_177, %c2_178, %c0_179, %c0_180] : memref<2x4x32x32xf32, #tpu.memory_space<vmem>>, vector<1x1x32x32xf32>
    %311 = vector.shape_cast %310 : vector<1x1x32x32xf32> to vector<32x32xf32>
    %cst_181 = arith.constant dense<0.000000e+00> : vector<64x32xf32>
    %312 = tpu.matmul %260, %311, %cst_181 {dimension_numbers = #tpu.dot_dimension_numbers<[1], [0], [0], [1], [0, 0, 1, 1], [], []>} : vector<64x32xf32>, vector<32x32xf32>, vector<64x32xf32> -> vector<64x32xf32>
    %c1_182 = arith.constant 1 : index
    %c2_183 = arith.constant 2 : index
    %c0_184 = arith.constant 0 : index
    %c0_185 = arith.constant 0 : index
    %313 = vector.load %arg9[%c1_182, %c2_183, %c0_184, %c0_185] : memref<2x4x1x32xf32, #tpu.memory_space<vmem>>, vector<1x1x1x32xf32>
    %314 = vector.shape_cast %313 : vector<1x1x1x32xf32> to vector<1x32xf32>
    %315 = vector.broadcast %314 : vector<1x32xf32> to vector<64x32xf32>
    %316 = arith.addf %312, %315 : vector<64x32xf32>
    %cst_186 = arith.constant dense<0.000000e+00> : vector<64x64xf32>
    %317 = tpu.matmul %316, %260, %cst_186 {dimension_numbers = #tpu.dot_dimension_numbers<[1], [1], [0], [0], [0, 0, 1, 0], [], []>} : vector<64x32xf32>, vector<64x32xf32>, vector<64x64xf32> -> vector<64x64xf32>
    %318 = arith.addf %317, %80 : vector<64x64xf32>
    %cst_187 = arith.constant dense<0xFF800000> : vector<64xf32>
    %319 = vector.multi_reduction <maximumf>, %318, %cst_187 [1] : vector<64x64xf32> to vector<64xf32>
    %320 = vector.shape_cast %319 : vector<64xf32> to vector<64x1xf32>
    %321 = vector.broadcast %320 : vector<64x1xf32> to vector<64x64xf32>
    %322 = arith.subf %318, %321 : vector<64x64xf32>
    %323 = math.exp %322 : vector<64x64xf32>
    %cst_188 = arith.constant dense<0.000000e+00> : vector<64xf32>
    %324 = vector.multi_reduction <add>, %323, %cst_188 [1] : vector<64x64xf32> to vector<64xf32>
    %325 = vector.shape_cast %324 : vector<64xf32> to vector<64x1xf32>
    %326 = tpu.reciprocal %325 {approx = true} : vector<64x1xf32> -> vector<64x1xf32>
    %327 = vector.broadcast %326 : vector<64x1xf32> to vector<64x64xf32>
    %328 = arith.mulf %323, %327 : vector<64x64xf32>
    %c1_189 = arith.constant 1 : index
    %c2_190 = arith.constant 2 : index
    %c0_191 = arith.constant 0 : index
    %c0_192 = arith.constant 0 : index
    %329 = vector.load %arg10[%c1_189, %c2_190, %c0_191, %c0_192] : memref<2x4x32x32xf32, #tpu.memory_space<vmem>>, vector<1x1x32x32xf32>
    %330 = vector.shape_cast %329 : vector<1x1x32x32xf32> to vector<32x32xf32>
    %cst_193 = arith.constant dense<0.000000e+00> : vector<64x32xf32>
    %331 = tpu.matmul %260, %330, %cst_193 {dimension_numbers = #tpu.dot_dimension_numbers<[1], [0], [0], [1], [0, 0, 1, 1], [], []>} : vector<64x32xf32>, vector<32x32xf32>, vector<64x32xf32> -> vector<64x32xf32>
    %cst_194 = arith.constant dense<0.000000e+00> : vector<64x32xf32>
    %332 = tpu.matmul %328, %331, %cst_194 {dimension_numbers = #tpu.dot_dimension_numbers<[1], [0], [0], [1], [0, 0, 1, 1], [], []>} : vector<64x64xf32>, vector<64x32xf32>, vector<64x32xf32> -> vector<64x32xf32>
    %333 = arith.addf %309, %332 : vector<64x32xf32>
    %c1_195 = arith.constant 1 : index
    %c3_196 = arith.constant 3 : index
    %c0_197 = arith.constant 0 : index
    %c0_198 = arith.constant 0 : index
    %334 = vector.load %arg8[%c1_195, %c3_196, %c0_197, %c0_198] : memref<2x4x32x32xf32, #tpu.memory_space<vmem>>, vector<1x1x32x32xf32>
    %335 = vector.shape_cast %334 : vector<1x1x32x32xf32> to vector<32x32xf32>
    %cst_199 = arith.constant dense<0.000000e+00> : vector<64x32xf32>
    %336 = tpu.matmul %260, %335, %cst_199 {dimension_numbers = #tpu.dot_dimension_numbers<[1], [0], [0], [1], [0, 0, 1, 1], [], []>} : vector<64x32xf32>, vector<32x32xf32>, vector<64x32xf32> -> vector<64x32xf32>
    %c1_200 = arith.constant 1 : index
    %c3_201 = arith.constant 3 : index
    %c0_202 = arith.constant 0 : index
    %c0_203 = arith.constant 0 : index
    %337 = vector.load %arg9[%c1_200, %c3_201, %c0_202, %c0_203] : memref<2x4x1x32xf32, #tpu.memory_space<vmem>>, vector<1x1x1x32xf32>
    %338 = vector.shape_cast %337 : vector<1x1x1x32xf32> to vector<1x32xf32>
    %339 = vector.broadcast %338 : vector<1x32xf32> to vector<64x32xf32>
    %340 = arith.addf %336, %339 : vector<64x32xf32>
    %cst_204 = arith.constant dense<0.000000e+00> : vector<64x64xf32>
    %341 = tpu.matmul %340, %260, %cst_204 {dimension_numbers = #tpu.dot_dimension_numbers<[1], [1], [0], [0], [0, 0, 1, 0], [], []>} : vector<64x32xf32>, vector<64x32xf32>, vector<64x64xf32> -> vector<64x64xf32>
    %342 = arith.addf %341, %80 : vector<64x64xf32>
    %cst_205 = arith.constant dense<0xFF800000> : vector<64xf32>
    %343 = vector.multi_reduction <maximumf>, %342, %cst_205 [1] : vector<64x64xf32> to vector<64xf32>
    %344 = vector.shape_cast %343 : vector<64xf32> to vector<64x1xf32>
    %345 = vector.broadcast %344 : vector<64x1xf32> to vector<64x64xf32>
    %346 = arith.subf %342, %345 : vector<64x64xf32>
    %347 = math.exp %346 : vector<64x64xf32>
    %cst_206 = arith.constant dense<0.000000e+00> : vector<64xf32>
    %348 = vector.multi_reduction <add>, %347, %cst_206 [1] : vector<64x64xf32> to vector<64xf32>
    %349 = vector.shape_cast %348 : vector<64xf32> to vector<64x1xf32>
    %350 = tpu.reciprocal %349 {approx = true} : vector<64x1xf32> -> vector<64x1xf32>
    %351 = vector.broadcast %350 : vector<64x1xf32> to vector<64x64xf32>
    %352 = arith.mulf %347, %351 : vector<64x64xf32>
    %c1_207 = arith.constant 1 : index
    %c3_208 = arith.constant 3 : index
    %c0_209 = arith.constant 0 : index
    %c0_210 = arith.constant 0 : index
    %353 = vector.load %arg10[%c1_207, %c3_208, %c0_209, %c0_210] : memref<2x4x32x32xf32, #tpu.memory_space<vmem>>, vector<1x1x32x32xf32>
    %354 = vector.shape_cast %353 : vector<1x1x32x32xf32> to vector<32x32xf32>
    %cst_211 = arith.constant dense<0.000000e+00> : vector<64x32xf32>
    %355 = tpu.matmul %260, %354, %cst_211 {dimension_numbers = #tpu.dot_dimension_numbers<[1], [0], [0], [1], [0, 0, 1, 1], [], []>} : vector<64x32xf32>, vector<32x32xf32>, vector<64x32xf32> -> vector<64x32xf32>
    %cst_212 = arith.constant dense<0.000000e+00> : vector<64x32xf32>
    %356 = tpu.matmul %352, %355, %cst_212 {dimension_numbers = #tpu.dot_dimension_numbers<[1], [0], [0], [1], [0, 0, 1, 1], [], []>} : vector<64x64xf32>, vector<64x32xf32>, vector<64x32xf32> -> vector<64x32xf32>
    %357 = arith.addf %333, %356 : vector<64x32xf32>
    %358 = arith.addf %260, %357 : vector<64x32xf32>
    %359 = vector.extract_strided_slice %262 {offsets = [0, 0], sizes = [1, 32], strides = [1, 1]} : vector<6x32xf32> to vector<1x32xf32>
    %360 = vector.broadcast %359 : vector<1x32xf32> to vector<64x32xf32>
    %361 = arith.addf %358, %360 : vector<64x32xf32>
    %362 = vector.extract_strided_slice %262 {offsets = [1, 0], sizes = [1, 32], strides = [1, 1]} : vector<6x32xf32> to vector<1x32xf32>
    %363 = vector.extract_strided_slice %262 {offsets = [2, 0], sizes = [1, 32], strides = [1, 1]} : vector<6x32xf32> to vector<1x32xf32>
    %cst_213 = arith.constant dense<0.000000e+00> : vector<64xf32>
    %364 = vector.multi_reduction <add>, %361, %cst_213 [1] : vector<64x32xf32> to vector<64xf32>
    %365 = vector.shape_cast %364 : vector<64xf32> to vector<64x1xf32>
    %cst_214 = arith.constant 3.200000e+01 : f32
    %366 = vector.broadcast %cst_214 : f32 to vector<64x1xf32>
    %367 = arith.divf %365, %366 : vector<64x1xf32>
    %368 = vector.broadcast %367 : vector<64x1xf32> to vector<64x32xf32>
    %369 = arith.subf %361, %368 : vector<64x32xf32>
    %370 = vector.broadcast %367 : vector<64x1xf32> to vector<64x32xf32>
    %371 = arith.subf %361, %370 : vector<64x32xf32>
    %372 = arith.mulf %369, %371 : vector<64x32xf32>
    %cst_215 = arith.constant dense<0.000000e+00> : vector<64xf32>
    %373 = vector.multi_reduction <add>, %372, %cst_215 [1] : vector<64x32xf32> to vector<64xf32>
    %374 = vector.shape_cast %373 : vector<64xf32> to vector<64x1xf32>
    %cst_216 = arith.constant 3.200000e+01 : f32
    %375 = vector.broadcast %cst_216 : f32 to vector<64x1xf32>
    %376 = arith.divf %374, %375 : vector<64x1xf32>
    %377 = vector.broadcast %367 : vector<64x1xf32> to vector<64x32xf32>
    %378 = arith.subf %361, %377 : vector<64x32xf32>
    %cst_217 = arith.constant 9.99999974E-6 : f32
    %379 = vector.broadcast %cst_217 : f32 to vector<64x1xf32>
    %380 = arith.addf %376, %379 : vector<64x1xf32>
    %381 = math.rsqrt %380 : vector<64x1xf32>
    %382 = vector.broadcast %381 : vector<64x1xf32> to vector<64x32xf32>
    %383 = arith.mulf %378, %382 : vector<64x32xf32>
    %384 = vector.broadcast %362 : vector<1x32xf32> to vector<64x32xf32>
    %385 = arith.mulf %383, %384 : vector<64x32xf32>
    %386 = vector.broadcast %363 : vector<1x32xf32> to vector<64x32xf32>
    %387 = arith.addf %385, %386 : vector<64x32xf32>
    %c1_218 = arith.constant 1 : index
    %c0_219 = arith.constant 0 : index
    %c0_220 = arith.constant 0 : index
    %388 = vector.load %arg12[%c1_218, %c0_219, %c0_220] : memref<2x32x64xf32, #tpu.memory_space<vmem>>, vector<1x32x64xf32>
    %389 = vector.shape_cast %388 : vector<1x32x64xf32> to vector<32x64xf32>
    %cst_221 = arith.constant dense<0.000000e+00> : vector<64x64xf32>
    %390 = tpu.matmul %387, %389, %cst_221 {dimension_numbers = #tpu.dot_dimension_numbers<[1], [0], [0], [1], [0, 0, 1, 1], [], []>} : vector<64x32xf32>, vector<32x64xf32>, vector<64x64xf32> -> vector<64x64xf32>
    %c1_222 = arith.constant 1 : index
    %c0_223 = arith.constant 0 : index
    %c0_224 = arith.constant 0 : index
    %391 = vector.load %arg13[%c1_222, %c0_223, %c0_224] : memref<2x1x64xf32, #tpu.memory_space<vmem>>, vector<1x1x64xf32>
    %392 = vector.shape_cast %391 : vector<1x1x64xf32> to vector<1x64xf32>
    %393 = vector.broadcast %392 : vector<1x64xf32> to vector<64x64xf32>
    %394 = arith.addf %390, %393 : vector<64x64xf32>
    %cst_225 = arith.constant 5.000000e-01 : f32
    %395 = vector.broadcast %cst_225 : f32 to vector<64x64xf32>
    %396 = arith.mulf %395, %394 : vector<64x64xf32>
    %cst_226 = arith.constant 4.471500e-02 : f32
    %397 = vector.broadcast %cst_226 : f32 to vector<64x64xf32>
    %398 = arith.mulf %397, %394 : vector<64x64xf32>
    %399 = arith.mulf %398, %394 : vector<64x64xf32>
    %400 = arith.mulf %399, %394 : vector<64x64xf32>
    %401 = arith.addf %394, %400 : vector<64x64xf32>
    %cst_227 = arith.constant 0.797884583 : f32
    %402 = vector.broadcast %cst_227 : f32 to vector<64x64xf32>
    %403 = arith.mulf %402, %401 : vector<64x64xf32>
    %404 = math.tanh %403 : vector<64x64xf32>
    %cst_228 = arith.constant 1.000000e+00 : f32
    %405 = vector.broadcast %cst_228 : f32 to vector<64x64xf32>
    %406 = arith.addf %405, %404 : vector<64x64xf32>
    %407 = arith.mulf %396, %406 : vector<64x64xf32>
    %c1_229 = arith.constant 1 : index
    %c0_230 = arith.constant 0 : index
    %c0_231 = arith.constant 0 : index
    %408 = vector.load %arg14[%c1_229, %c0_230, %c0_231] : memref<2x64x32xf32, #tpu.memory_space<vmem>>, vector<1x64x32xf32>
    %409 = vector.shape_cast %408 : vector<1x64x32xf32> to vector<64x32xf32>
    %cst_232 = arith.constant dense<0.000000e+00> : vector<64x32xf32>
    %410 = tpu.matmul %407, %409, %cst_232 {dimension_numbers = #tpu.dot_dimension_numbers<[1], [0], [0], [1], [0, 0, 1, 1], [], []>} : vector<64x64xf32>, vector<64x32xf32>, vector<64x32xf32> -> vector<64x32xf32>
    %411 = arith.addf %387, %410 : vector<64x32xf32>
    %412 = vector.extract_strided_slice %262 {offsets = [3, 0], sizes = [1, 32], strides = [1, 1]} : vector<6x32xf32> to vector<1x32xf32>
    %413 = vector.broadcast %412 : vector<1x32xf32> to vector<64x32xf32>
    %414 = arith.addf %411, %413 : vector<64x32xf32>
    %415 = vector.extract_strided_slice %262 {offsets = [4, 0], sizes = [1, 32], strides = [1, 1]} : vector<6x32xf32> to vector<1x32xf32>
    %416 = vector.extract_strided_slice %262 {offsets = [5, 0], sizes = [1, 32], strides = [1, 1]} : vector<6x32xf32> to vector<1x32xf32>
    %cst_233 = arith.constant dense<0.000000e+00> : vector<64xf32>
    %417 = vector.multi_reduction <add>, %414, %cst_233 [1] : vector<64x32xf32> to vector<64xf32>
    %418 = vector.shape_cast %417 : vector<64xf32> to vector<64x1xf32>
    %cst_234 = arith.constant 3.200000e+01 : f32
    %419 = vector.broadcast %cst_234 : f32 to vector<64x1xf32>
    %420 = arith.divf %418, %419 : vector<64x1xf32>
    %421 = vector.broadcast %420 : vector<64x1xf32> to vector<64x32xf32>
    %422 = arith.subf %414, %421 : vector<64x32xf32>
    %423 = vector.broadcast %420 : vector<64x1xf32> to vector<64x32xf32>
    %424 = arith.subf %414, %423 : vector<64x32xf32>
    %425 = arith.mulf %422, %424 : vector<64x32xf32>
    %cst_235 = arith.constant dense<0.000000e+00> : vector<64xf32>
    %426 = vector.multi_reduction <add>, %425, %cst_235 [1] : vector<64x32xf32> to vector<64xf32>
    %427 = vector.shape_cast %426 : vector<64xf32> to vector<64x1xf32>
    %cst_236 = arith.constant 3.200000e+01 : f32
    %428 = vector.broadcast %cst_236 : f32 to vector<64x1xf32>
    %429 = arith.divf %427, %428 : vector<64x1xf32>
    %430 = vector.broadcast %420 : vector<64x1xf32> to vector<64x32xf32>
    %431 = arith.subf %414, %430 : vector<64x32xf32>
    %cst_237 = arith.constant 9.99999974E-6 : f32
    %432 = vector.broadcast %cst_237 : f32 to vector<64x1xf32>
    %433 = arith.addf %429, %432 : vector<64x1xf32>
    %434 = math.rsqrt %433 : vector<64x1xf32>
    %435 = vector.broadcast %434 : vector<64x1xf32> to vector<64x32xf32>
    %436 = arith.mulf %431, %435 : vector<64x32xf32>
    %437 = vector.broadcast %415 : vector<1x32xf32> to vector<64x32xf32>
    %438 = arith.mulf %436, %437 : vector<64x32xf32>
    %439 = vector.broadcast %416 : vector<1x32xf32> to vector<64x32xf32>
    %440 = arith.addf %438, %439 : vector<64x32xf32>
    %c0_238 = arith.constant 0 : index
    %c0_239 = arith.constant 0 : index
    %441 = vector.load %arg16[%c0_238, %c0_239] : memref<320x64xf32, #tpu.memory_space<vmem>>, vector<320x64xf32>
    %cst_240 = arith.constant dense<0.000000e+00> : vector<320x32xf32>
    %442 = tpu.matmul %441, %440, %cst_240 {dimension_numbers = #tpu.dot_dimension_numbers<[1], [0], [0], [1], [0, 0, 1, 1], [], []>} : vector<320x64xf32>, vector<64x32xf32>, vector<320x32xf32> -> vector<320x32xf32>
    %443 = vector.extract_strided_slice %442 {offsets = [0, 0], sizes = [64, 32], strides = [1, 1]} : vector<320x32xf32> to vector<64x32xf32>
    %c0_241 = arith.constant 0 : index
    %c0_242 = arith.constant 0 : index
    %c0_243 = arith.constant 0 : index
    %444 = vector.load %arg17[%c0_241, %c0_242, %c0_243] : memref<5x32x16xf32, #tpu.memory_space<vmem>>, vector<1x32x16xf32>
    %445 = vector.shape_cast %444 : vector<1x32x16xf32> to vector<32x16xf32>
    %cst_244 = arith.constant dense<0.000000e+00> : vector<64x16xf32>
    %446 = tpu.matmul %443, %445, %cst_244 {dimension_numbers = #tpu.dot_dimension_numbers<[1], [0], [0], [1], [0, 0, 1, 1], [], []>} : vector<64x32xf32>, vector<32x16xf32>, vector<64x16xf32> -> vector<64x16xf32>
    %447 = vector.extract_strided_slice %442 {offsets = [64, 0], sizes = [64, 32], strides = [1, 1]} : vector<320x32xf32> to vector<64x32xf32>
    %c1_245 = arith.constant 1 : index
    %c0_246 = arith.constant 0 : index
    %c0_247 = arith.constant 0 : index
    %448 = vector.load %arg17[%c1_245, %c0_246, %c0_247] : memref<5x32x16xf32, #tpu.memory_space<vmem>>, vector<1x32x16xf32>
    %449 = vector.shape_cast %448 : vector<1x32x16xf32> to vector<32x16xf32>
    %cst_248 = arith.constant dense<0.000000e+00> : vector<64x16xf32>
    %450 = tpu.matmul %447, %449, %cst_248 {dimension_numbers = #tpu.dot_dimension_numbers<[1], [0], [0], [1], [0, 0, 1, 1], [], []>} : vector<64x32xf32>, vector<32x16xf32>, vector<64x16xf32> -> vector<64x16xf32>
    %451 = arith.addf %446, %450 : vector<64x16xf32>
    %452 = vector.extract_strided_slice %442 {offsets = [128, 0], sizes = [64, 32], strides = [1, 1]} : vector<320x32xf32> to vector<64x32xf32>
    %c2_249 = arith.constant 2 : index
    %c0_250 = arith.constant 0 : index
    %c0_251 = arith.constant 0 : index
    %453 = vector.load %arg17[%c2_249, %c0_250, %c0_251] : memref<5x32x16xf32, #tpu.memory_space<vmem>>, vector<1x32x16xf32>
    %454 = vector.shape_cast %453 : vector<1x32x16xf32> to vector<32x16xf32>
    %cst_252 = arith.constant dense<0.000000e+00> : vector<64x16xf32>
    %455 = tpu.matmul %452, %454, %cst_252 {dimension_numbers = #tpu.dot_dimension_numbers<[1], [0], [0], [1], [0, 0, 1, 1], [], []>} : vector<64x32xf32>, vector<32x16xf32>, vector<64x16xf32> -> vector<64x16xf32>
    %456 = arith.addf %451, %455 : vector<64x16xf32>
    %457 = vector.extract_strided_slice %442 {offsets = [192, 0], sizes = [64, 32], strides = [1, 1]} : vector<320x32xf32> to vector<64x32xf32>
    %c3_253 = arith.constant 3 : index
    %c0_254 = arith.constant 0 : index
    %c0_255 = arith.constant 0 : index
    %458 = vector.load %arg17[%c3_253, %c0_254, %c0_255] : memref<5x32x16xf32, #tpu.memory_space<vmem>>, vector<1x32x16xf32>
    %459 = vector.shape_cast %458 : vector<1x32x16xf32> to vector<32x16xf32>
    %cst_256 = arith.constant dense<0.000000e+00> : vector<64x16xf32>
    %460 = tpu.matmul %457, %459, %cst_256 {dimension_numbers = #tpu.dot_dimension_numbers<[1], [0], [0], [1], [0, 0, 1, 1], [], []>} : vector<64x32xf32>, vector<32x16xf32>, vector<64x16xf32> -> vector<64x16xf32>
    %461 = arith.addf %456, %460 : vector<64x16xf32>
    %462 = vector.extract_strided_slice %442 {offsets = [256, 0], sizes = [64, 32], strides = [1, 1]} : vector<320x32xf32> to vector<64x32xf32>
    %c4 = arith.constant 4 : index
    %c0_257 = arith.constant 0 : index
    %c0_258 = arith.constant 0 : index
    %463 = vector.load %arg17[%c4, %c0_257, %c0_258] : memref<5x32x16xf32, #tpu.memory_space<vmem>>, vector<1x32x16xf32>
    %464 = vector.shape_cast %463 : vector<1x32x16xf32> to vector<32x16xf32>
    %cst_259 = arith.constant dense<0.000000e+00> : vector<64x16xf32>
    %465 = tpu.matmul %462, %464, %cst_259 {dimension_numbers = #tpu.dot_dimension_numbers<[1], [0], [0], [1], [0, 0, 1, 1], [], []>} : vector<64x32xf32>, vector<32x16xf32>, vector<64x16xf32> -> vector<64x16xf32>
    %466 = arith.addf %461, %465 : vector<64x16xf32>
    %c0_260 = arith.constant 0 : index
    %c0_261 = arith.constant 0 : index
    %467 = vector.load %arg18[%c0_260, %c0_261] : memref<1x16xf32, #tpu.memory_space<vmem>>, vector<1x16xf32>
    %468 = vector.broadcast %467 : vector<1x16xf32> to vector<64x16xf32>
    %469 = arith.addf %466, %468 : vector<64x16xf32>
    %c0_262 = arith.constant 0 : index
    %c0_263 = arith.constant 0 : index
    %470 = vector.load %arg19[%c0_262, %c0_263] : memref<64x16xf32, #tpu.memory_space<vmem>>, vector<64x16xf32>
    tpu.vector_store %arg19[%c0_262, %c0_263], %469 {strides = array<i32>} : memref<64x16xf32, #tpu.memory_space<vmem>>, vector<64x16xf32>,
    return
  }
  func.func @transform_0(%arg0: i32) -> (i32, i32) {
    %c0_i32 = arith.constant 0 : i32
    %c0_i32_0 = arith.constant 0 : i32
    return %arg0, %c0_i32 : i32, i32
  }
  func.func @transform_1(%arg0: i32) -> (i32, i32) {
    %c0_i32 = arith.constant 0 : i32
    %c0_i32_0 = arith.constant 0 : i32
    %c0_i32_1 = arith.constant 0 : i32
    return %c0_i32, %c0_i32_0 : i32, i32
  }
  func.func @transform_2(%arg0: i32) -> (i32, i32) {
    %c0_i32 = arith.constant 0 : i32
    %c0_i32_0 = arith.constant 0 : i32
    %c0_i32_1 = arith.constant 0 : i32
    return %c0_i32, %c0_i32_0 : i32, i32
  }
  func.func @transform_3(%arg0: i32) -> (i32, i32, i32, i32) {
    %c0_i32 = arith.constant 0 : i32
    %c0_i32_0 = arith.constant 0 : i32
    %c0_i32_1 = arith.constant 0 : i32
    %c0_i32_2 = arith.constant 0 : i32
    %c0_i32_3 = arith.constant 0 : i32
    return %c0_i32, %c0_i32_0, %c0_i32_1, %c0_i32_2 : i32, i32, i32, i32
  }
  func.func @transform_4(%arg0: i32) -> (i32, i32, i32) {
    %c0_i32 = arith.constant 0 : i32
    %c0_i32_0 = arith.constant 0 : i32
    %c0_i32_1 = arith.constant 0 : i32
    %c0_i32_2 = arith.constant 0 : i32
    return %c0_i32, %c0_i32_0, %c0_i32_1 : i32, i32, i32
  }
  func.func @transform_5(%arg0: i32) -> (i32, i32) {
    %c0_i32 = arith.constant 0 : i32
    %c0_i32_0 = arith.constant 0 : i32
    %c0_i32_1 = arith.constant 0 : i32
    return %c0_i32, %c0_i32_0 : i32, i32
  }
  func.func @transform_6(%arg0: i32) -> (i32, i32) {
    %c0_i32 = arith.constant 0 : i32
    %c0_i32_0 = arith.constant 0 : i32
    %c0_i32_1 = arith.constant 0 : i32
    return %c0_i32, %c0_i32_0 : i32, i32
  }
  func.func @transform_7(%arg0: i32) -> (i32, i32, i32, i32) {
    %c0_i32 = arith.constant 0 : i32
    %c0_i32_0 = arith.constant 0 : i32
    %c0_i32_1 = arith.constant 0 : i32
    %c0_i32_2 = arith.constant 0 : i32
    %c0_i32_3 = arith.constant 0 : i32
    return %c0_i32, %c0_i32_0, %c0_i32_1, %c0_i32_2 : i32, i32, i32, i32
  }
  func.func @transform_8(%arg0: i32) -> (i32, i32, i32, i32) {
    %c0_i32 = arith.constant 0 : i32
    %c0_i32_0 = arith.constant 0 : i32
    %c0_i32_1 = arith.constant 0 : i32
    %c0_i32_2 = arith.constant 0 : i32
    %c0_i32_3 = arith.constant 0 : i32
    return %c0_i32, %c0_i32_0, %c0_i32_1, %c0_i32_2 : i32, i32, i32, i32
  }
  func.func @transform_9(%arg0: i32) -> (i32, i32, i32, i32) {
    %c0_i32 = arith.constant 0 : i32
    %c0_i32_0 = arith.constant 0 : i32
    %c0_i32_1 = arith.constant 0 : i32
    %c0_i32_2 = arith.constant 0 : i32
    %c0_i32_3 = arith.constant 0 : i32
    return %c0_i32, %c0_i32_0, %c0_i32_1, %c0_i32_2 : i32, i32, i32, i32
  }
  func.func @transform_10(%arg0: i32) -> (i32, i32) {
    %c0_i32 = arith.constant 0 : i32
    %c0_i32_0 = arith.constant 0 : i32
    %c0_i32_1 = arith.constant 0 : i32
    return %c0_i32, %c0_i32_0 : i32, i32
  }
  func.func @transform_11(%arg0: i32) -> (i32, i32, i32) {
    %c0_i32 = arith.constant 0 : i32
    %c0_i32_0 = arith.constant 0 : i32
    %c0_i32_1 = arith.constant 0 : i32
    %c0_i32_2 = arith.constant 0 : i32
    return %c0_i32, %c0_i32_0, %c0_i32_1 : i32, i32, i32
  }
  func.func @transform_12(%arg0: i32) -> (i32, i32, i32) {
    %c0_i32 = arith.constant 0 : i32
    %c0_i32_0 = arith.constant 0 : i32
    %c0_i32_1 = arith.constant 0 : i32
    %c0_i32_2 = arith.constant 0 : i32
    return %c0_i32, %c0_i32_0, %c0_i32_1 : i32, i32, i32
  }
  func.func @transform_13(%arg0: i32) -> (i32, i32, i32) {
    %c0_i32 = arith.constant 0 : i32
    %c0_i32_0 = arith.constant 0 : i32
    %c0_i32_1 = arith.constant 0 : i32
    %c0_i32_2 = arith.constant 0 : i32
    return %c0_i32, %c0_i32_0, %c0_i32_1 : i32, i32, i32
  }
  func.func @transform_14(%arg0: i32) -> (i32, i32, i32) {
    %c0_i32 = arith.constant 0 : i32
    %c0_i32_0 = arith.constant 0 : i32
    %c0_i32_1 = arith.constant 0 : i32
    %c0_i32_2 = arith.constant 0 : i32
    return %c0_i32, %c0_i32_0, %c0_i32_1 : i32, i32, i32
  }
  func.func @transform_15(%arg0: i32) -> (i32, i32) {
    %c0_i32 = arith.constant 0 : i32
    %c0_i32_0 = arith.constant 0 : i32
    %c0_i32_1 = arith.constant 0 : i32
    return %c0_i32, %c0_i32_0 : i32, i32
  }
  func.func @transform_16(%arg0: i32) -> (i32, i32, i32) {
    %c0_i32 = arith.constant 0 : i32
    %c0_i32_0 = arith.constant 0 : i32
    %c0_i32_1 = arith.constant 0 : i32
    %c0_i32_2 = arith.constant 0 : i32
    return %c0_i32, %c0_i32_0, %c0_i32_1 : i32, i32, i32
  }
  func.func @transform_17(%arg0: i32) -> (i32, i32) {
    %c0_i32 = arith.constant 0 : i32
    %c0_i32_0 = arith.constant 0 : i32
    %c0_i32_1 = arith.constant 0 : i32
    return %c0_i32, %c0_i32_0 : i32, i32
  }
  func.func @transform_18(%arg0: i32) -> (i32, i32) {
    %c0_i32 = arith.constant 0 : i32
    %c0_i32_0 = arith.constant 0 : i32
    return %arg0, %c0_i32 : i32, i32
  }
}

</mosaic_0001>

<bundles_post_ra>
// kernel: transformer_decoder_forward.1
= control target key start
LH: loop header
LB: loop body
LE: loop exit
PB: predicated region body
PF: predicated region fallthrough
CT: control target
= control target key end

     0   :  { %vm101_vm0 = vcmask 130048   ;;  %vm327_vm1 = vcmask 261120   ;;  %vm2421_vm14 = vcmask 523264   ;;  %s15486_s0 = inlined_call_operand.vmem [shape: f32[16,32], index: 0, kind: input, shape index: {}]   ;;  %s15487_s1 = inlined_call_operand.vmem [shape: f32[160,16], index: 1, kind: input, shape index: {}]   ;;  %s15488_s3 = inlined_call_operand.vmem [shape: f32[2,5,32,32], index: 3, kind: input, shape index: {}]   ;;  %s15489_s2 = inlined_call_operand.vmem [shape: f32[320,32], index: 2, kind: input, shape index: {}]   ;;  %s15490_s4 = inlined_call_operand.vmem [shape: f32[2,1,32], index: 4, kind: input, shape index: {}]   ;;  %s15491_s5 = inlined_call_operand.vmem [shape: f32[32,32], index: 5, kind: input, shape index: {}]   ;;  %s15492_s7 = inlined_call_operand.vmem [shape: f32[2,4,32,32], index: 7, kind: input, shape index: {}]   ;;  %s15493_s9 = inlined_call_operand.vmem [shape: f32[2,4,32,32], index: 9, kind: input, shape index: {}]   ;;  %s15494_s6 = inlined_call_operand.vmem [shape: f32[1,32], index: 6, kind: input, shape index: {}]   ;;  %s15495_s8 = inlined_call_operand.vmem [shape: f32[2,4,1,32], index: 8, kind: input, shape index: {}]   ;;  %s15496_s10 = inlined_call_operand.vmem [shape: f32[64,64], index: 10, kind: input, shape index: {}]   ;;  %s15497_s14 = inlined_call_operand.vmem [shape: f32[2,6,32], index: 14, kind: input, shape index: {}]   ;;  %s15498_s11 = inlined_call_operand.vmem [shape: f32[2,32,64], index: 11, kind: input, shape index: {}]   ;;  %s15499_s13 = inlined_call_operand.vmem [shape: f32[2,64,32], index: 13, kind: input, shape index: {}]   ;;  %s15500_s12 = inlined_call_operand.vmem [shape: f32[2,1,64], index: 12, kind: input, shape index: {}]   ;;  %s15501_s15 = inlined_call_operand.vmem [shape: f32[320,64], index: 15, kind: input, shape index: {}]   ;;  %s15502_s16 = inlined_call_operand.vmem [shape: f32[5,32,16], index: 16, kind: input, shape index: {}]   ;;  %s15503_s17 = inlined_call_operand.vmem [shape: f32[1,16], index: 17, kind: input, shape index: {}]   ;;  %s15504_s18 = inlined_call_operand.vmem [shape: f32[64,16], index: 18, kind: output, shape index: {}]  }
   0x1   :  { %15508 = sst [smem:[#allocation2_spill]] %s15486_s0  ;;  %v848_v62 = vld [vmem:[%s15489_s2] sm:$0xff] }
   0x2   :  { %15509 = sst [smem:[#allocation3_spill]] %s15487_s1 }
   0x3   :  { %15510 = sst [smem:[#allocation4_spill]] %s15488_s3 }
   0x4   :  { %s15511_s29 = sld [smem:[#allocation2_spill]] }
   0x5   :  { %s15512_s20 = sld [smem:[#allocation3_spill]] }
   0x6   :  { %s15513_s19 = sld [smem:[#allocation4_spill]] }
   0xa   :  { %v60_v0 = vld [vmem:[%s15511_s29 + $0x8] sm:$0xff]  ;;  %v59_v1 = vld [vmem:[%s15511_s29] sm:$0xff] }
   0xb   :  { %v61_v2 = vld [vmem:[%s15512_s20] sm:$0xff]  ;;  %10741 = vmatprep.subr.mxu0 %v60_v0  ;;  %v62_v3 = vld [vmem:[%s15512_s20 + $0x8] sm:$0xff]  ;;  %12073 = vmatprep.subr.mxu1 %v60_v0  ;;  %v63_v4 = vld [vmem:[%s15512_s20 + $0x10] sm:$0xff] }
   0xc   :  { %10745 = vmatprep.mubr.msk.f32.mxu0 %vm101_vm0, %v61_v2  ;;  %10742 = vmatpush3.msra.mxu0 %v60_v0  ;;  %v64_v5 = vld [vmem:[%s15512_s20 + $0x18] sm:$0xff]  ;;  %v77_v6 = vld [vmem:[%s15512_s20 + $0x80] sm:$0xff]  ;;  %v78_v7 = vld [vmem:[%s15512_s20 + $0x88] sm:$0xff] }
   0xd   :  { %10743 = vmatprep.subr.mxu0 %v59_v1  ;;  %12075 = vmatpush3.msra.mxu1 %v60_v0  ;;  %v79_v8 = vld [vmem:[%s15512_s20 + $0x90] sm:$0xff]  ;;  %v65_v9 = vld [vmem:[%s15512_s20 + $0x20] sm:$0xff]  ;;  %v80_v10 = vld [vmem:[%s15512_s20 + $0x98] sm:$0xff] }
   0xe   :  { %10744 = vmatpush3.msra.mxu0 %v59_v1  ;;  %12074 = vmatprep.subr.mxu1 %v59_v1  ;;  %v66_v11 = vld [vmem:[%s15512_s20 + $0x28] sm:$0xff]  ;;  %v67_v12 = vld [vmem:[%s15512_s20 + $0x30] sm:$0xff]  ;;  %v68_v13 = vld [vmem:[%s15512_s20 + $0x38] sm:$0xff] }
   0xf   :  { %10746 = vmatmul.mubr.msk.f32.vlgmr.msra.gmra.mxu0 %vm101_vm0, %v62_v3  ;;  %12076 = vmatpush3.msra.mxu1 %v59_v1  ;;  %v69_v14 = vld [vmem:[%s15512_s20 + $0x40] sm:$0xff]  ;;  %v70_v15 = vld [vmem:[%s15512_s20 + $0x48] sm:$0xff]  ;;  %v71_v16 = vld [vmem:[%s15512_s20 + $0x50] sm:$0xff] }
  0x10   :  { %10748 = vmatprep.mubr.msk.f32.mxu0 %vm101_vm0, %v63_v4  ;;  %10769 = vmatprep.mubr.msk.f32.mxu1 %vm101_vm0, %v77_v6  ;;  %v72_v17 = vld [vmem:[%s15512_s20 + $0x58] sm:$0xff]  ;;  %v73_v18 = vld [vmem:[%s15512_s20 + $0x60] sm:$0xff]  ;;  %v74_v19 = vld [vmem:[%s15512_s20 + $0x68] sm:$0xff] }
  0x11   :  { %10770 = vmatmul.mubr.msk.f32.vlgmr.msra.gmra.mxu1 %vm101_vm0, %v78_v7  ;;  %v75_v20 = vld [vmem:[%s15512_s20 + $0x70] sm:$0xff]  ;;  %v76_v21 = vld [vmem:[%s15512_s20 + $0x78] sm:$0xff]  ;;  %v86_v24 = vld [vmem:[%s15513_s19 + $0x28] sm:$0xff] }
  0x12   :  { %10772 = vmatprep.mubr.msk.f32.mxu1 %vm101_vm0, %v79_v8  ;;  %v88_v22 = vld [vmem:[%s15513_s19 + $0x38] sm:$0xff]  ;;  %v87_v23 = vld [vmem:[%s15513_s19 + $0x30] sm:$0xff]  ;;  %v85_v25 = vld [vmem:[%s15513_s19 + $0x20] sm:$0xff] }
  0x13   :  { %10749 = vmatmul.mubr.msk.f32.gmra.mxu0 %vm101_vm0, %v64_v5  ;;  %10775 = vmatprep.subr.mxu1 %v88_v22  ;;  %v84_v26 = vld [vmem:[%s15513_s19 + $0x18] sm:$0xff]  ;;  %v83_v33 = vld [vmem:[%s15513_s19 + $0x10] sm:$0xff]  ;;  %v82_v35 = vld [vmem:[%s15513_s19 + $0x8] sm:$0xff] }
  0x14   :  { %10751 = vmatprep.mubr.msk.f32.mxu0 %vm101_vm0, %v65_v9  ;;  %10776 = vmatpush3.msra.mxu1 %v88_v22  ;;  %v81_v37 = vld [vmem:[%s15513_s19] sm:$0xff]  ;;  %v92_v39 = vld [vmem:[%s15513_s19 + $0x58] sm:$0xff]  ;;  %v91_v41 = vld [vmem:[%s15513_s19 + $0x50] sm:$0xff] }
  0x15   :  { %10773 = vmatmul.mubr.msk.f32.gmra.mxu1 %vm101_vm0, %v80_v10  ;;  %10777 = vmatprep.subr.mxu1 %v87_v23  ;;  %v90_v43 = vld [vmem:[%s15513_s19 + $0x48] sm:$0xff]  ;;  %v89_v45 = vld [vmem:[%s15513_s19 + $0x40] sm:$0xff]  ;;  %v96_v47 = vld [vmem:[%s15513_s19 + $0x78] sm:$0xff] }
  0x16   :  { %10778 = vmatpush3.msra.mxu1 %v87_v23  ;;  %v95_v49 = vld [vmem:[%s15513_s19 + $0x70] sm:$0xff]  ;;  %v94_v50 = vld [vmem:[%s15513_s19 + $0x68] sm:$0xff]  ;;  %v93_v53 = vld [vmem:[%s15513_s19 + $0x60] sm:$0xff] }
  0x17   :  { %10752 = vmatmul.mubr.msk.f32.gmra.mxu0 %vm101_vm0, %v66_v11  ;;  %10779 = vmatprep.subr.mxu1 %v86_v24  ;;  %v100_v54 = vld [vmem:[%s15513_s19 + $0x98] sm:$0xff]  ;;  %v99_v57 = vld [vmem:[%s15513_s19 + $0x90] sm:$0xff]  ;;  %v98_v58 = vld [vmem:[%s15513_s19 + $0x88] sm:$0xff] }
  0x18   :  { %10754 = vmatprep.mubr.msk.f32.mxu0 %vm101_vm0, %v67_v12  ;;  %10780 = vmatpush3.msra.mxu1 %v86_v24  ;;  %v97_v60 = vld [vmem:[%s15513_s19 + $0x80] sm:$0xff] }
  0x19   :  { %10781 = vmatprep.subr.mxu1 %v85_v25 }
  0x1a   :  { %10782 = vmatpush3.msra.mxu1 %v85_v25 }
  0x1b   :  { %10755 = vmatmul.mubr.msk.f32.gmra.mxu0 %vm101_vm0, %v68_v13  ;;  %10789 = vmatprep.subr.mxu1 %v84_v26 }
  0x1c   :  { %10757 = vmatprep.mubr.msk.f32.mxu0 %vm101_vm0, %v69_v14 }
  0x1f   :  { %10758 = vmatmul.mubr.msk.f32.gmra.mxu0 %vm101_vm0, %v70_v15 }
  0x20   :  { %10760 = vmatprep.mubr.msk.f32.mxu0 %vm101_vm0, %v71_v16 }
  0x23   :  { %10761 = vmatmul.mubr.msk.f32.gmra.mxu0 %vm101_vm0, %v72_v17 }
  0x24   :  { %10763 = vmatprep.mubr.msk.f32.mxu0 %vm101_vm0, %v73_v18 }
  0x27   :  { %10764 = vmatmul.mubr.msk.f32.gmra.mxu0 %vm101_vm0, %v74_v19 }
  0x28   :  { %10766 = vmatprep.mubr.msk.f32.mxu0 %vm101_vm0, %v75_v20 }
  0x2b   :  { %10767 = vmatmul.mubr.msk.f32.gmra.mxu0 %vm101_vm0, %v76_v21 }
  0x2c   :  { %10853 = vmatprep.mubr.msk.f32.mxu0 %vm327_vm1, %v848_v62  ;;  %v863_v62 = vld [vmem:[%s15489_s2 + $0x78] sm:$0xff] }
  0xcf   :  { %v10747_v27 = vpop.f32.mrf.mxu0 }
  0xd1   :  { %v228_v28 = vpop.f32.mrf.mxu0  ;;  %v10771_v52 = vpop.f32.mrf.mxu1 }
  0xd3   :  { %v10750_v29 = vpop.f32.mrf.mxu0  ;;  %v308_v56 = vpop.f32.mrf.mxu1 }
  0xd5   :  { %v238_v30 = vpop.f32.mrf.mxu0  ;;  %v10774_v59 = vpop.f32.mrf.mxu1 }
  0xd7   :  { %v10753_v31 = vpop.f32.mrf.mxu0  ;;  %v318_v61 = vpop.f32.mrf.mxu1 }
  0xd9   :  { %v248_v32 = vpop.f32.mrf.mxu0 }
  0xda   :  { %10783 = vmatprep.mubr.msk.f32.mxu1 %vm327_vm1, %v248_v32 }
  0xdb   :  { %v10756_v34 = vpop.f32.mrf.mxu0  ;;  %10784 = vmatmul.mubr.msk.f32.vlgmr.msra.gmra.mxu1 %vm327_vm1, %v10753_v31 }
  0xdc   :  { %10790 = vmatpush3.msra.mxu1 %v84_v26 }
  0xdd   :  { %v258_v36 = vpop.f32.mrf.mxu0  ;;  %10791 = vmatprep.subr.mxu1 %v83_v33 }
  0xde   :  { %10786 = vmatprep.mubr.msk.f32.mxu1 %vm327_vm1, %v258_v36  ;;  %10792 = vmatpush3.msra.mxu1 %v83_v33 }
  0xdf   :  { %10787 = vmatmul.mubr.msk.f32.gmra.mxu1 %vm327_vm1, %v10756_v34  ;;  %10793 = vmatprep.subr.mxu1 %v82_v35  ;;  %v10759_v38 = vpop.f32.mrf.mxu0 }
  0xe0   :  { %10794 = vmatpush3.msra.mxu1 %v82_v35  ;;  %10797 = vmatprep.mubr.msk.f32.mxu1 %vm327_vm1, %v228_v28 }
  0xe1   :  { %10795 = vmatprep.subr.mxu1 %v81_v37  ;;  %v268_v40 = vpop.f32.mrf.mxu0 }
  0xe2   :  { %10796 = vmatpush3.msra.mxu1 %v81_v37 }
  0xe3   :  { %10798 = vmatmul.mubr.msk.f32.vlgmr.msra.gmra.mxu1 %vm327_vm1, %v10747_v27  ;;  %10803 = vmatprep.subr.mxu1 %v92_v39  ;;  %v10762_v42 = vpop.f32.mrf.mxu0 }
  0xe4   :  { %10800 = vmatprep.mubr.msk.f32.mxu1 %vm327_vm1, %v238_v30  ;;  %10804 = vmatpush3.msra.mxu1 %v92_v39 }
  0xe5   :  { %10805 = vmatprep.subr.mxu1 %v91_v41  ;;  %v278_v44 = vpop.f32.mrf.mxu0 }
  0xe6   :  { %10806 = vmatpush3.msra.mxu1 %v91_v41 }
  0xe7   :  { %10801 = vmatmul.mubr.msk.f32.gmra.mxu1 %vm327_vm1, %v10750_v29  ;;  %10807 = vmatprep.subr.mxu1 %v90_v43  ;;  %v10765_v46 = vpop.f32.mrf.mxu0  ;;  %v9303_v29 = vld [vmem:[%s15490_s4] ss:$0 sm:$0xff] }
  0xe8   :  { %10808 = vmatpush3.msra.mxu1 %v90_v43  ;;  %10811 = vmatprep.mubr.msk.f32.mxu1 %vm327_vm1, %v268_v40 }
  0xe9   :  { %10809 = vmatprep.subr.mxu1 %v89_v45  ;;  %v288_v48 = vpop.f32.mrf.mxu0 }
  0xea   :  { %10810 = vmatpush3.msra.mxu1 %v89_v45 }
  0xeb   :  { %10812 = vmatmul.mubr.msk.f32.vlgmr.msra.gmra.mxu1 %vm327_vm1, %v10759_v38  ;;  %10817 = vmatprep.subr.mxu1 %v96_v47  ;;  %v10768_v51 = vpop.f32.mrf.mxu0 }
  0xec   :  { %10814 = vmatprep.mubr.msk.f32.mxu1 %vm327_vm1, %v278_v44  ;;  %10818 = vmatpush3.msra.mxu1 %v96_v47 }
  0xed   :  { %10819 = vmatprep.subr.mxu1 %v95_v49  ;;  %v298_v55 = vpop.f32.mrf.mxu0 }
  0xee   :  { %10820 = vmatpush3.msra.mxu1 %v95_v49  ;;  %v850_v49 = vld [vmem:[%s15489_s2 + $0x10] sm:$0xff] }
  0xef   :  { %10815 = vmatmul.mubr.msk.f32.gmra.mxu1 %vm327_vm1, %v10762_v42  ;;  %10821 = vmatprep.subr.mxu1 %v94_v50 }
  0xf0   :  { %10822 = vmatpush3.msra.mxu1 %v94_v50  ;;  %10825 = vmatprep.mubr.msk.f32.mxu1 %vm327_vm1, %v288_v48  ;;  %v849_v48 = vld [vmem:[%s15489_s2 + $0x8] sm:$0xff]  ;;  %v851_v50 = vld [vmem:[%s15489_s2 + $0x18] sm:$0xff] }
  0xf1   :  { %10823 = vmatprep.subr.mxu1 %v93_v53 }
  0xf2   :  { %10824 = vmatpush3.msra.mxu1 %v93_v53  ;;  %v854_v53 = vld [vmem:[%s15489_s2 + $0x30] sm:$0xff] }
  0xf3   :  { %10826 = vmatmul.mubr.msk.f32.vlgmr.msra.gmra.mxu1 %vm327_vm1, %v10765_v46  ;;  %10831 = vmatprep.subr.mxu1 %v100_v54 }
  0xf4   :  { %10828 = vmatprep.mubr.msk.f32.mxu1 %vm327_vm1, %v298_v55  ;;  %10832 = vmatpush3.msra.mxu1 %v100_v54  ;;  %v855_v54 = vld [vmem:[%s15489_s2 + $0x38] sm:$0xff]  ;;  %v856_v55 = vld [vmem:[%s15489_s2 + $0x40] sm:$0xff] }
  0xf5   :  { %10833 = vmatprep.subr.mxu1 %v99_v57 }
  0xf6   :  { %10834 = vmatpush3.msra.mxu1 %v99_v57  ;;  %v858_v57 = vld [vmem:[%s15489_s2 + $0x50] sm:$0xff] }
  0xf7   :  { %10829 = vmatmul.mubr.msk.f32.gmra.mxu1 %vm327_vm1, %v10768_v51  ;;  %10835 = vmatprep.subr.mxu1 %v98_v58  ;;  %v852_v51 = vld [vmem:[%s15489_s2 + $0x20] sm:$0xff] }
  0xf8   :  { %10836 = vmatpush3.msra.mxu1 %v98_v58  ;;  %10839 = vmatprep.mubr.msk.f32.mxu1 %vm327_vm1, %v308_v56  ;;  %v857_v56 = vld [vmem:[%s15489_s2 + $0x48] sm:$0xff]  ;;  %v859_v58 = vld [vmem:[%s15489_s2 + $0x58] sm:$0xff] }
  0xf9   :  { %10837 = vmatprep.subr.mxu1 %v97_v60 }
  0xfa   :  { %10838 = vmatpush3.msra.mxu1 %v97_v60  ;;  %v861_v60 = vld [vmem:[%s15489_s2 + $0x68] sm:$0xff] }
  0xfb   :  { %10840 = vmatmul.mubr.msk.f32.vlgmr.msra.gmra.mxu1 %vm327_vm1, %v10771_v52  ;;  %v853_v52 = vld [vmem:[%s15489_s2 + $0x28] sm:$0xff] }
  0xfc   :  { %10842 = vmatprep.mubr.msk.f32.mxu1 %vm327_vm1, %v318_v61  ;;  %v862_v61 = vld [vmem:[%s15489_s2 + $0x70] sm:$0xff] }
  0xff   :  { %10843 = vmatmul.mubr.msk.f32.gmra.mxu1 %vm327_vm1, %v10774_v59  ;;  %v860_v59 = vld [vmem:[%s15489_s2 + $0x60] sm:$0xff] }
 0x19b   :  { %v10785_v63 = vpop.f32.mrf.mxu1 }
 0x19d   :  { %v406_v0 = vpop.f32.mrf.mxu1 }
 0x19f   :  { %v10788_v1 = vpop.f32.mrf.mxu1 }
 0x1a1   :  { %v416_v2 = vpop.f32.mrf.mxu1 }
 0x1a3   :  { %v10799_v3 = vpop.f32.mrf.mxu1 }
 0x1a4   :  { %v509_v14 = vadd.f32 %v10799_v3, %v10785_v63  ;;  %v864_v63 = vld [vmem:[%s15489_s2 + $0x80] sm:$0xff] }
 0x1a5   :  { %v503_v4 = vpop.f32.mrf.mxu1  ;;  %v868_v3 = vld [vmem:[%s15489_s2 + $0xa0] sm:$0xff] }
 0x1a6   :  { %v504_v16 = vadd.f32 %v503_v4, %v406_v0  ;;  %v865_v0 = vld [vmem:[%s15489_s2 + $0x88] sm:$0xff] }
 0x1a7   :  { %v10802_v5 = vpop.f32.mrf.mxu1  ;;  %v869_v4 = vld [vmem:[%s15489_s2 + $0xa8] sm:$0xff] }
 0x1a8   :  { %v519_v17 = vadd.f32 %v10802_v5, %v10788_v1  ;;  %v866_v1 = vld [vmem:[%s15489_s2 + $0x90] sm:$0xff] }
 0x1a9   :  { %v513_v6 = vpop.f32.mrf.mxu1  ;;  %v870_v5 = vld [vmem:[%s15489_s2 + $0xb0] sm:$0xff] }
 0x1aa   :  { %v514_v20 = vadd.f32 %v513_v6, %v416_v2  ;;  %v867_v2 = vld [vmem:[%s15489_s2 + $0x98] sm:$0xff] }
 0x1ab   :  { %v10813_v7 = vpop.f32.mrf.mxu1  ;;  %v871_v6 = vld [vmem:[%s15489_s2 + $0xb8] sm:$0xff] }
 0x1ac   :  { %v620_v18 = vadd.f32 %v10813_v7, %v509_v14  ;;  %v872_v7 = vld [vmem:[%s15489_s2 + $0xc0] sm:$0xff]  ;;  %v879_v14 = vld [vmem:[%s15489_s2 + $0xf8] sm:$0xff] }
 0x1ad   :  { %v600_v8 = vpop.f32.mrf.mxu1 }
 0x1ae   :  { %v619_v21 = vadd.f32 %v600_v8, %v504_v16  ;;  %v873_v8 = vld [vmem:[%s15489_s2 + $0xc8] sm:$0xff] }
 0x1af   :  { %v10816_v9 = vpop.f32.mrf.mxu1  ;;  %v881_v16 = vld [vmem:[%s15489_s2 + $0x108] sm:$0xff] }
 0x1b0   :  { %v622_v22 = vadd.f32 %v10816_v9, %v519_v17  ;;  %v874_v9 = vld [vmem:[%s15489_s2 + $0xd0] sm:$0xff] }
 0x1b1   :  { %v610_v10 = vpop.f32.mrf.mxu1  ;;  %v882_v17 = vld [vmem:[%s15489_s2 + $0x110] sm:$0xff] }
 0x1b2   :  { %v621_v25 = vadd.f32 %v610_v10, %v514_v20  ;;  %v875_v10 = vld [vmem:[%s15489_s2 + $0xd8] sm:$0xff]  ;;  %v885_v20 = vld [vmem:[%s15489_s2 + $0x128] sm:$0xff] }
 0x1b3   :  { %v10827_v11 = vpop.f32.mrf.mxu1 }
 0x1b4   :  { %v721_v23 = vadd.f32 %v10827_v11, %v620_v18  ;;  %v876_v11 = vld [vmem:[%s15489_s2 + $0xe0] sm:$0xff]  ;;  %v883_v18 = vld [vmem:[%s15489_s2 + $0x118] sm:$0xff] }
 0x1b5   :  { %v701_v12 = vpop.f32.mrf.mxu1 }
 0x1b6   :  { %v720_v26 = vadd.f32 %v701_v12, %v619_v21  ;;  %v877_v12 = vld [vmem:[%s15489_s2 + $0xe8] sm:$0xff]  ;;  %v886_v21 = vld [vmem:[%s15489_s2 + $0x130] sm:$0xff] }
 0x1b7   :  { %v10830_v13 = vpop.f32.mrf.mxu1 }
 0x1b8   :  { %v723_v27 = vadd.f32 %v10830_v13, %v622_v22  ;;  %v878_v13 = vld [vmem:[%s15489_s2 + $0xf0] sm:$0xff]  ;;  %v887_v22 = vld [vmem:[%s15489_s2 + $0x138] sm:$0xff] }
 0x1b9   :  { %v711_v15 = vpop.f32.mrf.mxu1 }
 0x1ba   :  { %v722_v31 = vadd.f32 %v711_v15, %v621_v25  ;;  %v880_v15 = vld [vmem:[%s15489_s2 + $0x100] sm:$0xff]  ;;  %v9309_v25 = vld [vmem:[%s15513_s19 + $0xc8] sm:$0xff] }
 0x1bb   :  { %v10841_v19 = vpop.f32.mrf.mxu1 }
 0x1bc   :  { %v822_v28 = vadd.f32 %v10841_v19, %v721_v23  ;;  %v884_v19 = vld [vmem:[%s15489_s2 + $0x120] sm:$0xff]  ;;  %v9311_v23 = vld [vmem:[%s15513_s19 + $0xd8] sm:$0xff] }
 0x1bd   :  { %v802_v24 = vpop.f32.mrf.mxu1  ;;  %10913 = vmatprep.subr.mxu1 %v9311_v23 }
 0x1be   :  { %v821_v32 = vadd.f32 %v802_v24, %v720_v26  ;;  %v833_v35 = vadd.f32 %v9303_v29, %v822_v28  ;;  %10914 = vmatpush3.msra.mxu1 %v9311_v23  ;;  %v9310_v24 = vld [vmem:[%s15513_s19 + $0xd0] sm:$0xff]  ;;  %v9308_v26 = vld [vmem:[%s15513_s19 + $0xc0] sm:$0xff]  ;;  %v2155_v23 = vld [vmem:[%s15492_s7 + $0x18] sm:$0xff] }
 0x1bf   :  { %v10844_v30 = vpop.f32.mrf.mxu1  ;;  %10915 = vmatprep.subr.mxu1 %v9310_v24 }
 0x1c0   :  { %v824_v33 = vadd.f32 %v10844_v30, %v723_v27  ;;  %v832_v38 = vadd.f32 %v9303_v29, %v821_v32  ;;  %v841_v43 = vmul.f32 0.2, %v833_v35  ;;  %vm837_vm4 = vcmp.ge.f32.partialorder %v833_v35, 0.0  ;;  %10916 = vmatpush3.msra.mxu1 %v9310_v24  ;;  %v9307_v27 = vld [vmem:[%s15513_s19 + $0xb8] sm:$0xff] }
 0x1c1   :  { %v812_v34 = vpop.f32.mrf.mxu1  ;;  %10917 = vmatprep.subr.mxu1 %v9309_v25 }
 0x1c2   :  { %v835_v36 = vadd.f32 %v9303_v29, %v824_v33  ;;  %v823_v37 = vadd.f32 %v812_v34, %v722_v31  ;;  %v840_v45 = vmul.f32 0.2, %v832_v38  ;;  %vm836_vm5 = vcmp.ge.f32.partialorder %v832_v38, 0.0  ;;  %10918 = vmatpush3.msra.mxu1 %v9309_v25 }
 0x1c3   :  { %v845_v46 = vsel %vm837_vm4, %v833_v35, %v841_v43  ;;  %10919 = vmatprep.subr.mxu1 %v9308_v26 }
 0x1c4   :  { %v834_v39 = vadd.f32 %v9303_v29, %v823_v37  ;;  %vm839_vm2 = vcmp.ge.f32.partialorder %v835_v36, 0.0  ;;  %v843_v40 = vmul.f32 0.2, %v835_v36  ;;  %v844_v47 = vsel %vm836_vm5, %v832_v38, %v840_v45  ;;  %10920 = vmatpush3.msra.mxu1 %v9308_v26  ;;  %v9306_v38 = vld [vmem:[%s15513_s19 + $0xb0] sm:$0xff] }
 0x1c5   :  { %10933 = vmatprep.subr.mxu1 %v9307_v27 }
 0x1c6   :  { %v847_v41 = vsel %vm839_vm2, %v835_v36, %v843_v40  ;;  %vm838_vm3 = vcmp.ge.f32.partialorder %v834_v39, 0.0  ;;  %v842_v42 = vmul.f32 0.2, %v834_v39  ;;  %v9305_v40 = vld [vmem:[%s15513_s19 + $0xa8] sm:$0xff] }
 0x1c7   :  { %10845 = vmatprep.subr.mxu0 %v847_v41 }
 0x1c8   :  { %10846 = vmatpush3.msra.mxu0 %v847_v41  ;;  %v846_v44 = vsel %vm838_vm3, %v834_v39, %v842_v42  ;;  %v9304_v42 = vld [vmem:[%s15513_s19 + $0xa0] sm:$0xff] }
 0x1c9   :  { %10847 = vmatprep.subr.mxu0 %v846_v44 }
 0x1ca   :  { %10848 = vmatpush3.msra.mxu0 %v846_v44  ;;  %v9315_v44 = vld [vmem:[%s15513_s19 + $0xf8] sm:$0xff] }
 0x1cb   :  { %10849 = vmatprep.subr.mxu0 %v845_v46 }
 0x1cc   :  { %10850 = vmatpush3.msra.mxu0 %v845_v46 }
 0x1cd   :  { %10851 = vmatprep.subr.mxu0 %v844_v47 }
 0x1ce   :  { %10852 = vmatpush3.msra.mxu0 %v844_v47 }
 0x1cf   :  { %10854 = vmatmul.mubr.msk.f32.vlgmr.msra.gmra.mxu0 %vm327_vm1, %v849_v48 }
 0x1d0   :  { %10856 = vmatprep.mubr.msk.f32.mxu0 %vm327_vm1, %v850_v49 }
 0x1d3   :  { %10857 = vmatmul.mubr.msk.f32.gmra.mxu0 %vm327_vm1, %v851_v50  ;;  %v9314_v50 = vld [vmem:[%s15513_s19 + $0xf0] sm:$0xff] }
 0x1d4   :  { %10859 = vmatprep.mubr.msk.f32.mxu0 %vm327_vm1, %v852_v51 }
 0x1d7   :  { %10860 = vmatmul.mubr.msk.f32.gmra.mxu0 %vm327_vm1, %v853_v52  ;;  %v9313_v52 = vld [vmem:[%s15513_s19 + $0xe8] sm:$0xff] }
 0x1d8   :  { %10862 = vmatprep.mubr.msk.f32.mxu0 %vm327_vm1, %v854_v53 }
 0x1db   :  { %10863 = vmatmul.mubr.msk.f32.gmra.mxu0 %vm327_vm1, %v855_v54  ;;  %v9312_v54 = vld [vmem:[%s15513_s19 + $0xe0] sm:$0xff] }
 0x1dc   :  { %10865 = vmatprep.mubr.msk.f32.mxu0 %vm327_vm1, %v856_v55 }
 0x1df   :  { %10866 = vmatmul.mubr.msk.f32.gmra.mxu0 %vm327_vm1, %v857_v56  ;;  %v9319_v56 = vld [vmem:[%s15513_s19 + $0x118] sm:$0xff] }
 0x1e0   :  { %10868 = vmatprep.mubr.msk.f32.mxu0 %vm327_vm1, %v858_v57 }
 0x1e3   :  { %10869 = vmatmul.mubr.msk.f32.gmra.mxu0 %vm327_vm1, %v859_v58 }
 0x1e4   :  { %10871 = vmatprep.mubr.msk.f32.mxu0 %vm327_vm1, %v860_v59 }
 0x1e7   :  { %10872 = vmatmul.mubr.msk.f32.gmra.mxu0 %vm327_vm1, %v861_v60 }
 0x1e8   :  { %10874 = vmatprep.mubr.msk.f32.mxu0 %vm327_vm1, %v862_v61 }
 0x1eb   :  { %10875 = vmatmul.mubr.msk.f32.gmra.mxu0 %vm327_vm1, %v863_v62  ;;  %v9318_v62 = vld [vmem:[%s15513_s19 + $0x110] sm:$0xff] }
 0x1ec   :  { %10877 = vmatprep.mubr.msk.f32.mxu0 %vm327_vm1, %v864_v63 }
 0x1ef   :  { %10878 = vmatmul.mubr.msk.f32.gmra.mxu0 %vm327_vm1, %v865_v0  ;;  %v9317_v0 = vld [vmem:[%s15513_s19 + $0x108] sm:$0xff] }
 0x1f0   :  { %10880 = vmatprep.mubr.msk.f32.mxu0 %vm327_vm1, %v866_v1 }
 0x1f3   :  { %10881 = vmatmul.mubr.msk.f32.gmra.mxu0 %vm327_vm1, %v867_v2  ;;  %v9316_v2 = vld [vmem:[%s15513_s19 + $0x100] sm:$0xff] }
 0x1f4   :  { %10883 = vmatprep.mubr.msk.f32.mxu0 %vm327_vm1, %v868_v3 }
 0x1f7   :  { %10884 = vmatmul.mubr.msk.f32.gmra.mxu0 %vm327_vm1, %v869_v4  ;;  %v9323_v4 = vld [vmem:[%s15513_s19 + $0x138] sm:$0xff] }
 0x1f8   :  { %10886 = vmatprep.mubr.msk.f32.mxu0 %vm327_vm1, %v870_v5 }
 0x1fb   :  { %10887 = vmatmul.mubr.msk.f32.gmra.mxu0 %vm327_vm1, %v871_v6 }
 0x1fc   :  { %10889 = vmatprep.mubr.msk.f32.mxu0 %vm327_vm1, %v872_v7 }
 0x1ff   :  { %10890 = vmatmul.mubr.msk.f32.gmra.mxu0 %vm327_vm1, %v873_v8 }
 0x200   :  { %10892 = vmatprep.mubr.msk.f32.mxu0 %vm327_vm1, %v874_v9 }
 0x203   :  { %10893 = vmatmul.mubr.msk.f32.gmra.mxu0 %vm327_vm1, %v875_v10  ;;  %v9322_v10 = vld [vmem:[%s15513_s19 + $0x130] sm:$0xff] }
 0x204   :  { %10895 = vmatprep.mubr.msk.f32.mxu0 %vm327_vm1, %v876_v11  ;;  %v9321_v11 = vld [vmem:[%s15513_s19 + $0x128] sm:$0xff] }
 0x207   :  { %10896 = vmatmul.mubr.msk.f32.gmra.mxu0 %vm327_vm1, %v877_v12 }
 0x208   :  { %10898 = vmatprep.mubr.msk.f32.mxu0 %vm327_vm1, %v878_v13  ;;  %v9320_v13 = vld [vmem:[%s15513_s19 + $0x120] sm:$0xff] }
 0x20b   :  { %10899 = vmatmul.mubr.msk.f32.gmra.mxu0 %vm327_vm1, %v879_v14 }
 0x20c   :  { %10901 = vmatprep.mubr.msk.f32.mxu0 %vm327_vm1, %v880_v15 }
 0x20f   :  { %10902 = vmatmul.mubr.msk.f32.gmra.mxu0 %vm327_vm1, %v881_v16 }
 0x210   :  { %10904 = vmatprep.mubr.msk.f32.mxu0 %vm327_vm1, %v882_v17 }
 0x213   :  { %10905 = vmatmul.mubr.msk.f32.gmra.mxu0 %vm327_vm1, %v883_v18 }
 0x214   :  { %10907 = vmatprep.mubr.msk.f32.mxu0 %vm327_vm1, %v884_v19  ;;  %v2006_v19 = vld [vmem:[%s15491_s5 + $0x18] sm:$0xff] }
 0x215   :  { %11013 = vmatprep.subr.mxu0 %v2006_v19 }
 0x216   :  { %11014 = vmatpush3.msra.mxu0 %v2006_v19 }
 0x217   :  { %10908 = vmatmul.mubr.msk.f32.gmra.mxu0 %vm327_vm1, %v885_v20  ;;  %v2005_v20 = vld [vmem:[%s15491_s5 + $0x10] sm:$0xff] }
 0x218   :  { %10910 = vmatprep.mubr.msk.f32.mxu0 %vm327_vm1, %v886_v21  ;;  %11015 = vmatprep.subr.mxu0 %v2005_v20  ;;  %v2004_v21 = vld [vmem:[%s15491_s5 + $0x8] sm:$0xff] }
 0x219   :  { %11016 = vmatpush3.msra.mxu0 %v2005_v20 }
 0x21a   :  { %11017 = vmatprep.subr.mxu0 %v2004_v21 }
 0x21b   :  { %10911 = vmatmul.mubr.msk.f32.gmra.mxu0 %vm327_vm1, %v887_v22  ;;  %v2003_v22 = vld [vmem:[%s15491_s5] sm:$0xff] }
 0x21c   :  { %11018 = vmatpush3.msra.mxu0 %v2004_v21 }
 0x21d   :  { %11019 = vmatprep.subr.mxu0 %v2003_v22 }
 0x21e   :  { %11020 = vmatpush3.msra.mxu0 %v2003_v22 }
 0x28f   :  { %v10855_v28 = vpop.f32.mrf.mxu0 }
 0x291   :  { %v1095_v29 = vpop.f32.mrf.mxu0 }
 0x293   :  { %v10858_v30 = vpop.f32.mrf.mxu0 }
 0x295   :  { %v1105_v31 = vpop.f32.mrf.mxu0 }
 0x297   :  { %v10861_v32 = vpop.f32.mrf.mxu0 }
 0x299   :  { %v1115_v33 = vpop.f32.mrf.mxu0 }
 0x29b   :  { %v10864_v34 = vpop.f32.mrf.mxu0 }
 0x29d   :  { %v1125_v35 = vpop.f32.mrf.mxu0 }
 0x29f   :  { %v10867_v36 = vpop.f32.mrf.mxu0 }
 0x2a1   :  { %v1135_v37 = vpop.f32.mrf.mxu0 }
 0x2a2   :  { %10921 = vmatprep.mubr.msk.f32.mxu1 %vm327_vm1, %v1135_v37 }
 0x2a3   :  { %v10870_v39 = vpop.f32.mrf.mxu0  ;;  %10922 = vmatmul.mubr.msk.f32.vlgmr.msra.gmra.mxu1 %vm327_vm1, %v10867_v36 }
 0x2a4   :  { %10934 = vmatpush3.msra.mxu1 %v9307_v27 }
 0x2a5   :  { %v1145_v41 = vpop.f32.mrf.mxu0  ;;  %10935 = vmatprep.subr.mxu1 %v9306_v38 }
 0x2a6   :  { %10924 = vmatprep.mubr.msk.f32.mxu1 %vm327_vm1, %v1145_v41  ;;  %10936 = vmatpush3.msra.mxu1 %v9306_v38 }
 0x2a7   :  { %v10873_v43 = vpop.f32.mrf.mxu0  ;;  %10925 = vmatmul.mubr.msk.f32.gmra.mxu1 %vm327_vm1, %v10870_v39  ;;  %10937 = vmatprep.subr.mxu1 %v9305_v40 }
 0x2a8   :  { %10938 = vmatpush3.msra.mxu1 %v9305_v40 }
 0x2a9   :  { %v1155_v45 = vpop.f32.mrf.mxu0  ;;  %10939 = vmatprep.subr.mxu1 %v9304_v42 }
 0x2aa   :  { %10927 = vmatprep.mubr.msk.f32.mxu1 %vm327_vm1, %v1155_v45  ;;  %10940 = vmatpush3.msra.mxu1 %v9304_v42 }
 0x2ab   :  { %v10876_v46 = vpop.f32.mrf.mxu0  ;;  %10928 = vmatmul.mubr.msk.f32.gmra.mxu1 %vm327_vm1, %v10873_v43  ;;  %10953 = vmatprep.subr.mxu1 %v9315_v44 }
 0x2ad   :  { %v1165_v47 = vpop.f32.mrf.mxu0 }
 0x2ae   :  { %10930 = vmatprep.mubr.msk.f32.mxu1 %vm327_vm1, %v1165_v47 }
 0x2af   :  { %10931 = vmatmul.mubr.msk.f32.gmra.mxu1 %vm327_vm1, %v10876_v46  ;;  %v10879_v48 = vpop.f32.mrf.mxu0 }
 0x2b0   :  { %10941 = vmatprep.mubr.msk.f32.mxu1 %vm327_vm1, %v1095_v29 }
 0x2b1   :  { %v1175_v49 = vpop.f32.mrf.mxu0 }
 0x2b3   :  { %10942 = vmatmul.mubr.msk.f32.vlgmr.msra.gmra.mxu1 %vm327_vm1, %v10855_v28  ;;  %v10882_v51 = vpop.f32.mrf.mxu0 }
 0x2b4   :  { %10944 = vmatprep.mubr.msk.f32.mxu1 %vm327_vm1, %v1105_v31  ;;  %10954 = vmatpush3.msra.mxu1 %v9315_v44 }
 0x2b5   :  { %10955 = vmatprep.subr.mxu1 %v9314_v50  ;;  %v1185_v53 = vpop.f32.mrf.mxu0 }
 0x2b6   :  { %10956 = vmatpush3.msra.mxu1 %v9314_v50 }
 0x2b7   :  { %10945 = vmatmul.mubr.msk.f32.gmra.mxu1 %vm327_vm1, %v10858_v30  ;;  %10957 = vmatprep.subr.mxu1 %v9313_v52  ;;  %v10885_v55 = vpop.f32.mrf.mxu0 }
 0x2b8   :  { %10947 = vmatprep.mubr.msk.f32.mxu1 %vm327_vm1, %v1115_v33  ;;  %10958 = vmatpush3.msra.mxu1 %v9313_v52 }
 0x2b9   :  { %10959 = vmatprep.subr.mxu1 %v9312_v54  ;;  %v1195_v57 = vpop.f32.mrf.mxu0 }
 0x2ba   :  { %10960 = vmatpush3.msra.mxu1 %v9312_v54 }
 0x2bb   :  { %10948 = vmatmul.mubr.msk.f32.gmra.mxu1 %vm327_vm1, %v10861_v32  ;;  %v10888_v58 = vpop.f32.mrf.mxu0  ;;  %10973 = vmatprep.subr.mxu1 %v9319_v56 }
 0x2bc   :  { %10950 = vmatprep.mubr.msk.f32.mxu1 %vm327_vm1, %v1125_v35 }
 0x2bd   :  { %v1205_v59 = vpop.f32.mrf.mxu0 }
 0x2bf   :  { %10951 = vmatmul.mubr.msk.f32.gmra.mxu1 %vm327_vm1, %v10864_v34  ;;  %v10891_v60 = vpop.f32.mrf.mxu0 }
 0x2c0   :  { %10961 = vmatprep.mubr.msk.f32.mxu1 %vm327_vm1, %v1175_v49 }
 0x2c1   :  { %v1215_v61 = vpop.f32.mrf.mxu0 }
 0x2c3   :  { %10962 = vmatmul.mubr.msk.f32.vlgmr.msra.gmra.mxu1 %vm327_vm1, %v10879_v48  ;;  %v10894_v63 = vpop.f32.mrf.mxu0 }
 0x2c4   :  { %10964 = vmatprep.mubr.msk.f32.mxu1 %vm327_vm1, %v1185_v53  ;;  %10974 = vmatpush3.msra.mxu1 %v9319_v56 }
 0x2c5   :  { %10975 = vmatprep.subr.mxu1 %v9318_v62  ;;  %v1225_v1 = vpop.f32.mrf.mxu0 }
 0x2c6   :  { %10976 = vmatpush3.msra.mxu1 %v9318_v62  ;;  %v9405_v62 = vld [vmem:[%s15490_s4 + $0x1] ss:$0 sm:$0xff] }
 0x2c7   :  { %10965 = vmatmul.mubr.msk.f32.gmra.mxu1 %vm327_vm1, %v10882_v51  ;;  %10977 = vmatprep.subr.mxu1 %v9317_v0  ;;  %v10897_v3 = vpop.f32.mrf.mxu0 }
 0x2c8   :  { %10967 = vmatprep.mubr.msk.f32.mxu1 %vm327_vm1, %v1195_v57  ;;  %10978 = vmatpush3.msra.mxu1 %v9317_v0 }
 0x2c9   :  { %10979 = vmatprep.subr.mxu1 %v9316_v2  ;;  %v1235_v5 = vpop.f32.mrf.mxu0 }
 0x2ca   :  { %10980 = vmatpush3.msra.mxu1 %v9316_v2 }
 0x2cb   :  { %10968 = vmatmul.mubr.msk.f32.gmra.mxu1 %vm327_vm1, %v10885_v55  ;;  %v10900_v6 = vpop.f32.mrf.mxu0  ;;  %10993 = vmatprep.subr.mxu1 %v9323_v4 }
 0x2cc   :  { %10970 = vmatprep.mubr.msk.f32.mxu1 %vm327_vm1, %v1205_v59 }
 0x2cd   :  { %v1245_v7 = vpop.f32.mrf.mxu0 }
 0x2cf   :  { %10971 = vmatmul.mubr.msk.f32.gmra.mxu1 %vm327_vm1, %v10888_v58  ;;  %v10903_v8 = vpop.f32.mrf.mxu0 }
 0x2d0   :  { %10981 = vmatprep.mubr.msk.f32.mxu1 %vm327_vm1, %v1215_v61 }
 0x2d1   :  { %v1255_v9 = vpop.f32.mrf.mxu0 }
 0x2d3   :  { %10982 = vmatmul.mubr.msk.f32.vlgmr.msra.gmra.mxu1 %vm327_vm1, %v10891_v60  ;;  %v10906_v12 = vpop.f32.mrf.mxu0 }
 0x2d4   :  { %10984 = vmatprep.mubr.msk.f32.mxu1 %vm327_vm1, %v1225_v1  ;;  %10994 = vmatpush3.msra.mxu1 %v9323_v4 }
 0x2d5   :  { %10995 = vmatprep.subr.mxu1 %v9322_v10  ;;  %v1265_v14 = vpop.f32.mrf.mxu0 }
 0x2d6   :  { %10996 = vmatpush3.msra.mxu1 %v9322_v10 }
 0x2d7   :  { %10985 = vmatmul.mubr.msk.f32.gmra.mxu1 %vm327_vm1, %v10894_v63  ;;  %10997 = vmatprep.subr.mxu1 %v9321_v11  ;;  %v10909_v15 = vpop.f32.mrf.mxu0 }
 0x2d8   :  { %10987 = vmatprep.mubr.msk.f32.mxu1 %vm327_vm1, %v1235_v5  ;;  %10998 = vmatpush3.msra.mxu1 %v9321_v11 }
 0x2d9   :  { %10999 = vmatprep.subr.mxu1 %v9320_v13  ;;  %v1275_v16 = vpop.f32.mrf.mxu0 }
 0x2da   :  { %11000 = vmatpush3.msra.mxu1 %v9320_v13 }
 0x2db   :  { %10988 = vmatmul.mubr.msk.f32.gmra.mxu1 %vm327_vm1, %v10897_v3  ;;  %v10912_v17 = vpop.f32.mrf.mxu0  ;;  %11033 = vmatprep.subr.mxu1 %v2155_v23 }
 0x2dc   :  { %10990 = vmatprep.mubr.msk.f32.mxu1 %vm327_vm1, %v1245_v7 }
 0x2dd   :  { %v1285_v18 = vpop.f32.mrf.mxu0 }
 0x2df   :  { %10991 = vmatmul.mubr.msk.f32.gmra.mxu1 %vm327_vm1, %v10900_v6 }
 0x2e0   :  { %11001 = vmatprep.mubr.msk.f32.mxu1 %vm327_vm1, %v1255_v9 }
 0x2e3   :  { %11002 = vmatmul.mubr.msk.f32.vlgmr.msra.gmra.mxu1 %vm327_vm1, %v10903_v8 }
 0x2e4   :  { %11004 = vmatprep.mubr.msk.f32.mxu1 %vm327_vm1, %v1265_v14  ;;  %11034 = vmatpush3.msra.mxu1 %v2155_v23 }
 0x2e7   :  { %11005 = vmatmul.mubr.msk.f32.gmra.mxu1 %vm327_vm1, %v10906_v12 }
 0x2e8   :  { %11007 = vmatprep.mubr.msk.f32.mxu1 %vm327_vm1, %v1275_v16 }
 0x2eb   :  { %11008 = vmatmul.mubr.msk.f32.gmra.mxu1 %vm327_vm1, %v10909_v15 }
 0x2ec   :  { %11010 = vmatprep.mubr.msk.f32.mxu1 %vm327_vm1, %v1285_v18 }
 0x2ef   :  { %11011 = vmatmul.mubr.msk.f32.gmra.mxu1 %vm327_vm1, %v10912_v17 }
 0x363   :  { %v10923_v24 = vpop.f32.mrf.mxu1 }
 0x365   :  { %v1384_v25 = vpop.f32.mrf.mxu1 }
 0x367   :  { %v10926_v26 = vpop.f32.mrf.mxu1 }
 0x369   :  { %v1394_v27 = vpop.f32.mrf.mxu1 }
 0x36b   :  { %v10929_v28 = vpop.f32.mrf.mxu1 }
 0x36d   :  { %v1404_v29 = vpop.f32.mrf.mxu1 }
 0x36f   :  { %v10932_v30 = vpop.f32.mrf.mxu1 }
 0x371   :  { %v1414_v31 = vpop.f32.mrf.mxu1 }
 0x373   :  { %v10943_v32 = vpop.f32.mrf.mxu1 }
 0x374   :  { %v1519_v54 = vadd.f32 %v10943_v32, %v10923_v24 }
 0x375   :  { %v1513_v33 = vpop.f32.mrf.mxu1 }
 0x376   :  { %v1514_v56 = vadd.f32 %v1513_v33, %v1384_v25 }
 0x377   :  { %v10946_v34 = vpop.f32.mrf.mxu1 }
 0x378   :  { %v1529_v59 = vadd.f32 %v10946_v34, %v10926_v26 }
 0x379   :  { %v1523_v35 = vpop.f32.mrf.mxu1 }
 0x37a   :  { %v1524_v0 = vadd.f32 %v1523_v35, %v1394_v27 }
 0x37b   :  { %v10949_v36 = vpop.f32.mrf.mxu1 }
 0x37c   :  { %v1539_v4 = vadd.f32 %v10949_v36, %v10929_v28 }
 0x37d   :  { %v1533_v37 = vpop.f32.mrf.mxu1 }
 0x37e   :  { %v1534_v10 = vadd.f32 %v1533_v37, %v1404_v29 }
 0x37f   :  { %v10952_v38 = vpop.f32.mrf.mxu1 }
 0x380   :  { %v1549_v11 = vadd.f32 %v10952_v38, %v10932_v30 }
 0x381   :  { %v1543_v39 = vpop.f32.mrf.mxu1 }
 0x382   :  { %v1544_v14 = vadd.f32 %v1543_v39, %v1414_v31 }
 0x383   :  { %v10963_v40 = vpop.f32.mrf.mxu1 }
 0x384   :  { %v1682_v57 = vadd.f32 %v10963_v40, %v1519_v54 }
 0x385   :  { %v1642_v41 = vpop.f32.mrf.mxu1 }
 0x386   :  { %v1681_v60 = vadd.f32 %v1642_v41, %v1514_v56 }
 0x387   :  { %v10966_v42 = vpop.f32.mrf.mxu1 }
 0x388   :  { %v1684_v1 = vadd.f32 %v10966_v42, %v1529_v59  ;;  %v2152_v59 = vld [vmem:[%s15492_s7] sm:$0xff] }
 0x389   :  { %v1652_v43 = vpop.f32.mrf.mxu1 }
 0x38a   :  { %v1683_v6 = vadd.f32 %v1652_v43, %v1524_v0 }
 0x38b   :  { %v10969_v44 = vpop.f32.mrf.mxu1 }
 0x38c   :  { %v1686_v12 = vadd.f32 %v10969_v44, %v1539_v4 }
 0x38d   :  { %v1662_v45 = vpop.f32.mrf.mxu1 }
 0x38e   :  { %v1685_v18 = vadd.f32 %v1662_v45, %v1534_v10 }
 0x38f   :  { %v10972_v46 = vpop.f32.mrf.mxu1 }
 0x390   :  { %v1688_v19 = vadd.f32 %v10972_v46, %v1549_v11 }
 0x391   :  { %v1672_v47 = vpop.f32.mrf.mxu1 }
 0x392   :  { %v1687_v25 = vadd.f32 %v1672_v47, %v1544_v14 }
 0x393   :  { %v10983_v48 = vpop.f32.mrf.mxu1 }
 0x394   :  { %v1819_v61 = vadd.f32 %v10983_v48, %v1682_v57  ;;  %v2154_v57 = vld [vmem:[%s15492_s7 + $0x10] sm:$0xff] }
 0x395   :  { %v1779_v49 = vpop.f32.mrf.mxu1  ;;  %11035 = vmatprep.subr.mxu1 %v2154_v57 }
 0x396   :  { %v1818_v2 = vadd.f32 %v1779_v49, %v1681_v60  ;;  %11036 = vmatpush3.msra.mxu1 %v2154_v57  ;;  %v2513_v60 = vld [vmem:[%s15493_s9 + $0x18] sm:$0xff] }
 0x397   :  { %v10986_v50 = vpop.f32.mrf.mxu1 }
 0x398   :  { %v1821_v7 = vadd.f32 %v10986_v50, %v1684_v1 }
 0x399   :  { %v1789_v51 = vpop.f32.mrf.mxu1 }
 0x39a   :  { %v1820_v15 = vadd.f32 %v1789_v51, %v1683_v6  ;;  %v2511_v6 = vld [vmem:[%s15493_s9 + $0x8] sm:$0xff] }
 0x39b   :  { %v10989_v52 = vpop.f32.mrf.mxu1 }
 0x39c   :  { %v1823_v20 = vadd.f32 %v10989_v52, %v1686_v12  ;;  %v9451_v12 = vld [vmem:[%s15492_s7 + $0x38] sm:$0xff] }
 0x39d   :  { %v1799_v53 = vpop.f32.mrf.mxu1 }
 0x39e   :  { %v1822_v28 = vadd.f32 %v1799_v53, %v1685_v18  ;;  %v9450_v18 = vld [vmem:[%s15492_s7 + $0x30] sm:$0xff] }
 0x39f   :  { %v10992_v55 = vpop.f32.mrf.mxu1 }
 0x3a0   :  { %v1825_v29 = vadd.f32 %v10992_v55, %v1688_v19  ;;  %v9449_v19 = vld [vmem:[%s15492_s7 + $0x28] sm:$0xff] }
 0x3a1   :  { %v1809_v58 = vpop.f32.mrf.mxu1 }
 0x3a2   :  { %v1824_v40 = vadd.f32 %v1809_v58, %v1687_v25  ;;  %v2153_v58 = vld [vmem:[%s15492_s7 + $0x8] sm:$0xff] }
 0x3a3   :  { %v11003_v63 = vpop.f32.mrf.mxu1  ;;  %11037 = vmatprep.subr.mxu1 %v2153_v58 }
 0x3a4   :  { %v1956_v3 = vadd.f32 %v11003_v63, %v1819_v61  ;;  %11038 = vmatpush3.msra.mxu1 %v2153_v58 }
 0x3a5   :  { %v1916_v5 = vpop.f32.mrf.mxu1  ;;  %11039 = vmatprep.subr.mxu1 %v2152_v59 }
 0x3a6   :  { %v1972_v8 = vadd.f32 %v9405_v62, %v1956_v3  ;;  %v1955_v9 = vadd.f32 %v1916_v5, %v1818_v2  ;;  %11040 = vmatpush3.msra.mxu1 %v2152_v59  ;;  %v2512_v3 = vld [vmem:[%s15493_s9 + $0x10] sm:$0xff] }
 0x3a7   :  { %v11006_v13 = vpop.f32.mrf.mxu1  ;;  %11081 = vmatprep.subr.mxu1 %v2513_v60 }
 0x3a8   :  { %v1971_v16 = vadd.f32 %v9405_v62, %v1955_v9  ;;  %v1958_v17 = vadd.f32 %v11006_v13, %v1821_v7  ;;  %v1988_v21 = vmul.f32 0.2, %v1972_v8  ;;  %vm1980_vm6 = vcmp.ge.f32.partialorder %v1972_v8, 0.0  ;;  %v2510_v9 = vld [vmem:[%s15493_s9] sm:$0xff] }
 0x3a9   :  { %v1926_v22 = vpop.f32.mrf.mxu1 }
 0x3aa   :  { %v1974_v23 = vadd.f32 %v9405_v62, %v1958_v17  ;;  %v1957_v24 = vadd.f32 %v1926_v22, %v1820_v15  ;;  %vm1979_vm7 = vcmp.ge.f32.partialorder %v1971_v16, 0.0  ;;  %v1987_v27 = vmul.f32 0.2, %v1971_v16  ;;  %v9480_v22 = vld [vmem:[%s15493_s9 + $0x30] sm:$0xff] }
 0x3ab   :  { %v11009_v26 = vpop.f32.mrf.mxu1  ;;  %v1996_v31 = vsel %vm1980_vm6, %v1972_v8, %v1988_v21  ;;  %v9481_v21 = vld [vmem:[%s15493_s9 + $0x38] sm:$0xff] }
 0x3ac   :  { %v1973_v30 = vadd.f32 %v9405_v62, %v1957_v24  ;;  %v1960_v32 = vadd.f32 %v11009_v26, %v1823_v20  ;;  %v1990_v33 = vmul.f32 0.2, %v1974_v23  ;;  %v1995_v35 = vsel %vm1979_vm7, %v1971_v16, %v1987_v27  ;;  %v9448_v20 = vld [vmem:[%s15492_s7 + $0x20] sm:$0xff] }
 0x3ad   :  { %v1936_v34 = vpop.f32.mrf.mxu1  ;;  %vm1982_vm8 = vcmp.ge.f32.partialorder %v1974_v23, 0.0  ;;  %11021 = vmatprep.mubr.msk.f32.mxu0 %vm327_vm1, %v1995_v35  ;;  %v9478_v24 = vld [vmem:[%s15493_s9 + $0x20] sm:$0xff] }
 0x3ae   :  { %v1976_v36 = vadd.f32 %v9405_v62, %v1960_v32  ;;  %v1959_v37 = vadd.f32 %v1936_v34, %v1822_v28  ;;  %vm1981_vm9 = vcmp.ge.f32.partialorder %v1973_v30, 0.0  ;;  %v1989_v38 = vmul.f32 0.2, %v1973_v30  ;;  %11022 = vmatmul.mubr.msk.f32.vlgmr.msra.gmra.mxu0 %vm327_vm1, %v1996_v31  ;;  %v9415_v26 = vld [vmem:[%s15495_s8] ss:$0 sm:$0xff] }
 0x3af   :  { %v11012_v39 = vpop.f32.mrf.mxu1  ;;  %v1998_v46 = vsel %vm1982_vm8, %v1974_v23, %v1990_v33  ;;  %v9479_v23 = vld [vmem:[%s15493_s9 + $0x28] sm:$0xff] }
 0x3b0   :  { %v1975_v41 = vadd.f32 %v9405_v62, %v1959_v37  ;;  %v1962_v42 = vadd.f32 %v11012_v39, %v1825_v29  ;;  %v1997_v43 = vsel %vm1981_vm9, %v1973_v30, %v1989_v38  ;;  %v1992_v44 = vmul.f32 0.2, %v1976_v36 }
 0x3b1   :  { %v1946_v45 = vpop.f32.mrf.mxu1  ;;  %11024 = vmatprep.mubr.msk.f32.mxu0 %vm327_vm1, %v1997_v43  ;;  %vm1984_vm11 = vcmp.ge.f32.partialorder %v1976_v36, 0.0 }
 0x3b2   :  { %v1978_v47 = vadd.f32 %v9405_v62, %v1962_v42  ;;  %v1961_v48 = vadd.f32 %v1946_v45, %v1824_v40  ;;  %vm1983_vm10 = vcmp.ge.f32.partialorder %v1975_v41, 0.0  ;;  %v1991_v49 = vmul.f32 0.2, %v1975_v41  ;;  %11025 = vmatmul.mubr.msk.f32.gmra.mxu0 %vm327_vm1, %v1998_v46 }
 0x3b3   :  { %v2000_v53 = vsel %vm1984_vm11, %v1976_v36, %v1992_v44 }
 0x3b4   :  { %v1977_v50 = vadd.f32 %v9405_v62, %v1961_v48  ;;  %v1999_v51 = vsel %vm1983_vm10, %v1975_v41, %v1991_v49  ;;  %v1994_v52 = vmul.f32 0.2, %v1978_v47  ;;  %vm1986_vm13 = vcmp.ge.f32.partialorder %v1978_v47, 0.0  ;;  %v9406_v62 = vld [vmem:[%s15494_s6] ss:$0 sm:$0xff] }
 0x3b5   :  { %11027 = vmatprep.mubr.msk.f32.mxu0 %vm327_vm1, %v1999_v51  ;;  %v9453_v51 = vld [vmem:[%s15495_s8 + $0x1] ss:$0 sm:$0xff] }
 0x3b6   :  { %vm1985_vm12 = vcmp.ge.f32.partialorder %v1977_v50, 0.0  ;;  %v1993_v54 = vmul.f32 0.2, %v1977_v50  ;;  %11028 = vmatmul.mubr.msk.f32.gmra.mxu0 %vm327_vm1, %v2000_v53  ;;  %v2002_v56 = vsel %vm1986_vm13, %v1978_v47, %v1994_v52 }
 0x3b8   :  { %v2001_v55 = vsel %vm1985_vm12, %v1977_v50, %v1993_v54 }
 0x3b9   :  { %11030 = vmatprep.mubr.msk.f32.mxu0 %vm327_vm1, %v2001_v55 }
 0x3ba   :  { %11031 = vmatmul.mubr.msk.f32.gmra.mxu0 %vm327_vm1, %v2002_v56 }
 0x46e   :  { %v11023_v61 = vpop.f32.mrf.mxu0 }
 0x46f   :  { %v13020_v1 = vadd.f32 %v11023_v61, %v9406_v62 }
 0x470   :  { %v2104_v63 = vpop.f32.mrf.mxu0 }
 0x471   :  { %v13018_v0 = vadd.f32 %v9406_v62, %v2104_v63 }
 0x472   :  { %v11026_v2 = vpop.f32.mrf.mxu0 }
 0x473   :  { %11041 = vmatprep.mubr.msk.f32.mxu1 %vm327_vm1, %v13018_v0  ;;  %v13034_v7 = vadd.f32 %v11026_v2, %v9406_v62 }
 0x474   :  { %v2114_v4 = vpop.f32.mrf.mxu0  ;;  %11042 = vmatmul.mubr.msk.f32.vlgmr.msra.gmra.mxu1 %vm327_vm1, %v13020_v1 }
 0x475   :  { %v13029_v5 = vadd.f32 %v9406_v62, %v2114_v4  ;;  %11082 = vmatpush3.msra.mxu1 %v2513_v60 }
 0x476   :  { %v11029_v8 = vpop.f32.mrf.mxu0  ;;  %11083 = vmatprep.subr.mxu1 %v2512_v3 }
 0x477   :  { %11044 = vmatprep.mubr.msk.f32.mxu1 %vm327_vm1, %v13029_v5  ;;  %11084 = vmatpush3.msra.mxu1 %v2512_v3  ;;  %v13048_v13 = vadd.f32 %v11029_v8, %v9406_v62 }
 0x478   :  { %v2124_v10 = vpop.f32.mrf.mxu0  ;;  %11045 = vmatmul.mubr.msk.f32.gmra.mxu1 %vm327_vm1, %v13034_v7  ;;  %11085 = vmatprep.subr.mxu1 %v2511_v6 }
 0x479   :  { %v13043_v11 = vadd.f32 %v9406_v62, %v2124_v10  ;;  %11086 = vmatpush3.msra.mxu1 %v2511_v6 }
 0x47a   :  { %v11032_v14 = vpop.f32.mrf.mxu0  ;;  %11087 = vmatprep.subr.mxu1 %v2510_v9 }
 0x47b   :  { %v13050_v15 = vadd.f32 %v11032_v14, %v9406_v62  ;;  %11047 = vmatprep.mubr.msk.f32.mxu1 %vm327_vm1, %v13043_v11  ;;  %11088 = vmatpush3.msra.mxu1 %v2510_v9 }
 0x47c   :  { %v2134_v16 = vpop.f32.mrf.mxu0  ;;  %11048 = vmatmul.mubr.msk.f32.gmra.mxu1 %vm327_vm1, %v13048_v13  ;;  %11101 = vmatprep.subr.mxu1 %v9451_v12 }
 0x47d   :  { %v13056_v17 = vadd.f32 %v9406_v62, %v2134_v16  ;;  %11053 = vmatprep.subr.msk.mxu0 %vm327_vm1, %v13050_v15 }
 0x47e   :  { %11054 = vmatpush3.xpose.msk.msra.mxu0 %vm327_vm1, %v13050_v15 }
 0x47f   :  { %11050 = vmatprep.mubr.msk.f32.mxu1 %vm327_vm1, %v13056_v17  ;;  %11055 = vmatprep.subr.msk.mxu0 %vm327_vm1, %v13056_v17 }
 0x480   :  { %11051 = vmatmul.mubr.msk.f32.gmra.mxu1 %vm327_vm1, %v13050_v15 }
 0x481   :  { %11089 = vmatprep.mubr.msk.f32.mxu1 %vm327_vm1, %v13018_v0 }
 0x482   :  { %11056 = vmatpush3.xpose.msk.msra.mxu0 %vm327_vm1, %v13056_v17 }
 0x483   :  { %11057 = vmatprep.subr.msk.mxu0 %vm327_vm1, %v13048_v13 }
 0x484   :  { %11090 = vmatmul.mubr.msk.f32.vlgmr.msra.gmra.mxu1 %vm327_vm1, %v13020_v1 }
 0x485   :  { %11092 = vmatprep.mubr.msk.f32.mxu1 %vm327_vm1, %v13029_v5  ;;  %11102 = vmatpush3.msra.mxu1 %v9451_v12 }
 0x486   :  { %11058 = vmatpush3.xpose.msk.msra.mxu0 %vm327_vm1, %v13048_v13  ;;  %11103 = vmatprep.subr.mxu1 %v9450_v18 }
 0x487   :  { %11059 = vmatprep.subr.msk.mxu0 %vm327_vm1, %v13043_v11  ;;  %11104 = vmatpush3.msra.mxu1 %v9450_v18 }
 0x488   :  { %11093 = vmatmul.mubr.msk.f32.gmra.mxu1 %vm327_vm1, %v13034_v7  ;;  %11105 = vmatprep.subr.mxu1 %v9449_v19 }
 0x489   :  { %11095 = vmatprep.mubr.msk.f32.mxu1 %vm327_vm1, %v13043_v11  ;;  %11106 = vmatpush3.msra.mxu1 %v9449_v19 }
 0x48a   :  { %11060 = vmatpush3.xpose.msk.msra.mxu0 %vm327_vm1, %v13043_v11  ;;  %11107 = vmatprep.subr.mxu1 %v9448_v20 }
 0x48b   :  { %11061 = vmatprep.subr.msk.mxu0 %vm327_vm1, %v13034_v7  ;;  %11108 = vmatpush3.msra.mxu1 %v9448_v20 }
 0x48c   :  { %11096 = vmatmul.mubr.msk.f32.gmra.mxu1 %vm327_vm1, %v13048_v13  ;;  %11149 = vmatprep.subr.mxu1 %v9481_v21 }
 0x48d   :  { %11098 = vmatprep.mubr.msk.f32.mxu1 %vm327_vm1, %v13056_v17 }
 0x48e   :  { %11062 = vmatpush3.xpose.msk.msra.mxu0 %vm327_vm1, %v13034_v7 }
 0x48f   :  { %11063 = vmatprep.subr.msk.mxu0 %vm327_vm1, %v13029_v5 }
 0x490   :  { %11099 = vmatmul.mubr.msk.f32.gmra.mxu1 %vm327_vm1, %v13050_v15 }
 0x491   :  { %11109 = vmatprep.mubr.msk.f32.mxu1 %vm327_vm1, %v13018_v0 }
 0x492   :  { %11064 = vmatpush3.xpose.msk.msra.mxu0 %vm327_vm1, %v13029_v5 }
 0x493   :  { %11065 = vmatprep.subr.msk.mxu0 %vm327_vm1, %v13020_v1 }
 0x494   :  { %11110 = vmatmul.mubr.msk.f32.vlgmr.msra.gmra.mxu1 %vm327_vm1, %v13020_v1 }
 0x495   :  { %11112 = vmatprep.mubr.msk.f32.mxu1 %vm327_vm1, %v13029_v5  ;;  %11150 = vmatpush3.msra.mxu1 %v9481_v21 }
 0x496   :  { %11066 = vmatpush3.xpose.msk.msra.mxu0 %vm327_vm1, %v13020_v1  ;;  %11151 = vmatprep.subr.mxu1 %v9480_v22 }
 0x497   :  { %11067 = vmatprep.subr.msk.mxu0 %vm327_vm1, %v13018_v0  ;;  %11152 = vmatpush3.msra.mxu1 %v9480_v22 }
 0x498   :  { %11113 = vmatmul.mubr.msk.f32.gmra.mxu1 %vm327_vm1, %v13034_v7  ;;  %11153 = vmatprep.subr.mxu1 %v9479_v23 }
 0x499   :  { %11115 = vmatprep.mubr.msk.f32.mxu1 %vm327_vm1, %v13043_v11  ;;  %11154 = vmatpush3.msra.mxu1 %v9479_v23 }
 0x49a   :  { %11068 = vmatpush3.xpose.msk.msra.mxu0 %vm327_vm1, %v13018_v0  ;;  %11155 = vmatprep.subr.mxu1 %v9478_v24 }
 0x49b   :  { %11121 = vmatprep.subr.msk.mxu0 %vm327_vm1, %v13050_v15  ;;  %11156 = vmatpush3.msra.mxu1 %v9478_v24 }
 0x49c   :  { %11116 = vmatmul.mubr.msk.f32.gmra.mxu1 %vm327_vm1, %v13048_v13 }
 0x49d   :  { %11118 = vmatprep.mubr.msk.f32.mxu1 %vm327_vm1, %v13056_v17 }
 0x4a0   :  { %11119 = vmatmul.mubr.msk.f32.gmra.mxu1 %vm327_vm1, %v13050_v15 }
 0x4a1   :  { %11157 = vmatprep.mubr.msk.f32.mxu1 %vm327_vm1, %v13018_v0 }
 0x4a4   :  { %11158 = vmatmul.mubr.msk.f32.vlgmr.msra.gmra.mxu1 %vm327_vm1, %v13020_v1 }
 0x4a5   :  { %11160 = vmatprep.mubr.msk.f32.mxu1 %vm327_vm1, %v13029_v5 }
 0x4a8   :  { %11161 = vmatmul.mubr.msk.f32.gmra.mxu1 %vm327_vm1, %v13034_v7 }
 0x4a9   :  { %11163 = vmatprep.mubr.msk.f32.mxu1 %vm327_vm1, %v13043_v11 }
 0x4ac   :  { %11164 = vmatmul.mubr.msk.f32.gmra.mxu1 %vm327_vm1, %v13048_v13 }
 0x4ad   :  { %11166 = vmatprep.mubr.msk.f32.mxu1 %vm327_vm1, %v13056_v17 }
 0x4b0   :  { %11167 = vmatmul.mubr.msk.f32.gmra.mxu1 %vm327_vm1, %v13050_v15 }
 0x534   :  { %v11043_v25 = vpop.f32.mrf.mxu1 }
 0x535   :  { %v2259_v29 = vadd.f32 %v11043_v25, %v9415_v26 }
 0x536   :  { %v2253_v27 = vpop.f32.mrf.mxu1 }
 0x537   :  { %v2254_v28 = vadd.f32 %v9415_v26, %v2253_v27 }
 0x538   :  { %v11046_v30 = vpop.f32.mrf.mxu1 }
 0x539   :  { %11069 = vmatprep.mubr.msk.f32.mxu0 %vm327_vm1, %v2254_v28  ;;  %v2269_v33 = vadd.f32 %v11046_v30, %v9415_v26  ;;  %v13238_v28 = vld [vmem:[%s15496_s10] sm:$0xff] }
 0x53a   :  { %v2263_v32 = vpop.f32.mrf.mxu1  ;;  %11070 = vmatmul.mubr.msk.f32.vlgmr.msra.gmra.mxu0 %vm327_vm1, %v2259_v29 }
 0x53b   :  { %v2264_v31 = vadd.f32 %v9415_v26, %v2263_v32  ;;  %11122 = vmatpush3.xpose.msk.msra.mxu0 %vm327_vm1, %v13050_v15  ;;  %v13244_v32 = vld [vmem:[%s15496_s10 + $0x8] sm:$0xff] }
 0x53c   :  { %11123 = vmatprep.subr.msk.mxu0 %vm327_vm1, %v13056_v17  ;;  %v11049_v34 = vpop.f32.mrf.mxu1 }
 0x53d   :  { %11072 = vmatprep.mubr.msk.f32.mxu0 %vm327_vm1, %v2264_v31  ;;  %v2279_v37 = vadd.f32 %v11049_v34, %v9415_v26 }
 0x53e   :  { %v2273_v35 = vpop.f32.mrf.mxu1  ;;  %11073 = vmatmul.mubr.msk.f32.gmra.mxu0 %vm327_vm1, %v2269_v33 }
 0x53f   :  { %v2274_v36 = vadd.f32 %v9415_v26, %v2273_v35  ;;  %11124 = vmatpush3.xpose.msk.msra.mxu0 %vm327_vm1, %v13056_v17  ;;  %v13251_v35 = vld [vmem:[%s15496_s10 + $0x10] sm:$0xff] }
 0x540   :  { %11125 = vmatprep.subr.msk.mxu0 %vm327_vm1, %v13048_v13  ;;  %v11052_v38 = vpop.f32.mrf.mxu1 }
 0x541   :  { %11075 = vmatprep.mubr.msk.f32.mxu0 %vm327_vm1, %v2274_v36  ;;  %v2289_v41 = vadd.f32 %v11052_v38, %v9415_v26  ;;  %v13257_v38 = vld [vmem:[%s15496_s10 + $0x18] sm:$0xff] }
 0x542   :  { %v2283_v39 = vpop.f32.mrf.mxu1  ;;  %11076 = vmatmul.mubr.msk.f32.gmra.mxu0 %vm327_vm1, %v2279_v37 }
 0x543   :  { %v2284_v40 = vadd.f32 %v9415_v26, %v2283_v39  ;;  %11126 = vmatpush3.xpose.msk.msra.mxu0 %vm327_vm1, %v13048_v13 }
 0x544   :  { %11127 = vmatprep.subr.msk.mxu0 %vm327_vm1, %v13043_v11  ;;  %v11091_v42 = vpop.f32.mrf.mxu1 }
 0x545   :  { %11078 = vmatprep.mubr.msk.f32.mxu0 %vm327_vm1, %v2284_v40 }
 0x546   :  { %11079 = vmatmul.mubr.msk.f32.gmra.mxu0 %vm327_vm1, %v2289_v41  ;;  %v2580_v43 = vpop.f32.mrf.mxu1 }
 0x547   :  { %11128 = vmatpush3.xpose.msk.msra.mxu0 %vm327_vm1, %v13043_v11 }
 0x548   :  { %11129 = vmatprep.subr.msk.mxu0 %vm327_vm1, %v13034_v7  ;;  %v11094_v44 = vpop.f32.mrf.mxu1 }
 0x54a   :  { %v2590_v45 = vpop.f32.mrf.mxu1 }
 0x54b   :  { %11130 = vmatpush3.xpose.msk.msra.mxu0 %vm327_vm1, %v13034_v7 }
 0x54c   :  { %11131 = vmatprep.subr.msk.mxu0 %vm327_vm1, %v13029_v5  ;;  %v11097_v46 = vpop.f32.mrf.mxu1 }
 0x54e   :  { %v2600_v47 = vpop.f32.mrf.mxu1 }
 0x54f   :  { %11132 = vmatpush3.xpose.msk.msra.mxu0 %vm327_vm1, %v13029_v5 }
 0x550   :  { %11133 = vmatprep.subr.msk.mxu0 %vm327_vm1, %v13020_v1  ;;  %v11100_v48 = vpop.f32.mrf.mxu1 }
 0x552   :  { %v2610_v49 = vpop.f32.mrf.mxu1 }
 0x553   :  { %11134 = vmatpush3.xpose.msk.msra.mxu0 %vm327_vm1, %v13020_v1 }
 0x554   :  { %11135 = vmatprep.subr.msk.mxu0 %vm327_vm1, %v13018_v0  ;;  %v11111_v50 = vpop.f32.mrf.mxu1 }
 0x555   :  { %v2704_v54 = vadd.f32 %v11111_v50, %v9453_v51 }
 0x556   :  { %v2698_v52 = vpop.f32.mrf.mxu1 }
 0x557   :  { %v2699_v53 = vadd.f32 %v9453_v51, %v2698_v52  ;;  %11136 = vmatpush3.xpose.msk.msra.mxu0 %vm327_vm1, %v13018_v0 }
 0x558   :  { %11197 = vmatprep.subr.mxu0 %v11100_v48  ;;  %v11114_v55 = vpop.f32.mrf.mxu1 }
 0x559   :  { %11137 = vmatprep.mubr.msk.f32.mxu0 %vm327_vm1, %v2699_v53  ;;  %v2714_v58 = vadd.f32 %v11114_v55, %v9453_v51 }
 0x55a   :  { %v2708_v56 = vpop.f32.mrf.mxu1  ;;  %11138 = vmatmul.mubr.msk.f32.vlgmr.msra.gmra.mxu0 %vm327_vm1, %v2704_v54  ;;  %v13285_v54 = vld [vmem:[%s15496_s10 + $0x38] sm:$0xff] }
 0x55b   :  { %v2709_v57 = vadd.f32 %v9453_v51, %v2708_v56  ;;  %11198 = vmatpush3.msra.mxu0 %v11100_v48 }
 0x55c   :  { %11199 = vmatprep.subr.mxu0 %v2610_v49  ;;  %v11117_v59 = vpop.f32.mrf.mxu1 }
 0x55d   :  { %11200 = vmatpush3.msra.mxu0 %v2610_v49  ;;  %11140 = vmatprep.mubr.msk.f32.mxu0 %vm327_vm1, %v2709_v57  ;;  %v2724_v62 = vadd.f32 %v11117_v59, %v9453_v51 }
 0x55e   :  { %11201 = vmatprep.subr.mxu0 %v11097_v46  ;;  %v2718_v60 = vpop.f32.mrf.mxu1  ;;  %11141 = vmatmul.mubr.msk.f32.gmra.mxu0 %vm327_vm1, %v2714_v58 }
 0x55f   :  { %v2719_v61 = vadd.f32 %v9453_v51, %v2718_v60  ;;  %11202 = vmatpush3.msra.mxu0 %v11097_v46  ;;  %v13271_v46 = vld [vmem:[%s15496_s10 + $0x28] sm:$0xff] }
 0x560   :  { %11203 = vmatprep.subr.mxu0 %v2600_v47  ;;  %v11120_v63 = vpop.f32.mrf.mxu1 }
 0x561   :  { %11204 = vmatpush3.msra.mxu0 %v2600_v47  ;;  %11143 = vmatprep.mubr.msk.f32.mxu0 %vm327_vm1, %v2719_v61  ;;  %v2734_v4 = vadd.f32 %v11120_v63, %v9453_v51 }
 0x562   :  { %11205 = vmatprep.subr.mxu0 %v11094_v44  ;;  %v2728_v2 = vpop.f32.mrf.mxu1  ;;  %11144 = vmatmul.mubr.msk.f32.gmra.mxu0 %vm327_vm1, %v2724_v62 }
 0x563   :  { %v2729_v3 = vadd.f32 %v9453_v51, %v2728_v2  ;;  %11206 = vmatpush3.msra.mxu0 %v11094_v44  ;;  %v13279_v51 = vld [vmem:[%s15496_s10 + $0x30] sm:$0xff] }
 0x564   :  { %11207 = vmatprep.subr.mxu0 %v2590_v45  ;;  %v11159_v6 = vpop.f32.mrf.mxu1 }
 0x565   :  { %11208 = vmatpush3.msra.mxu0 %v2590_v45  ;;  %11146 = vmatprep.mubr.msk.f32.mxu0 %vm327_vm1, %v2729_v3 }
 0x566   :  { %11209 = vmatprep.subr.mxu0 %v11091_v42  ;;  %11147 = vmatmul.mubr.msk.f32.gmra.mxu0 %vm327_vm1, %v2734_v4  ;;  %v3025_v8 = vpop.f32.mrf.mxu1 }
 0x567   :  { %11210 = vmatpush3.msra.mxu0 %v11091_v42 }
 0x568   :  { %11211 = vmatprep.subr.mxu0 %v2580_v43  ;;  %v11162_v9 = vpop.f32.mrf.mxu1 }
 0x569   :  { %11212 = vmatpush3.msra.mxu0 %v2580_v43  ;;  %v13265_v43 = vld [vmem:[%s15496_s10 + $0x20] sm:$0xff] }
 0x56a   :  { %11245 = vmatprep.subr.msk.mxu0 %vm327_vm1, %v13050_v15  ;;  %v3035_v10 = vpop.f32.mrf.mxu1 }
 0x56c   :  { %v11165_v12 = vpop.f32.mrf.mxu1 }
 0x56e   :  { %v3045_v14 = vpop.f32.mrf.mxu1 }
 0x570   :  { %v11168_v16 = vpop.f32.mrf.mxu1 }
 0x571   :  { %11169 = vmatprep.subr.mxu1 %v11168_v16 }
 0x572   :  { %v3055_v18 = vpop.f32.mrf.mxu1  ;;  %11170 = vmatpush3.msra.mxu1 %v11168_v16 }
 0x573   :  { %11171 = vmatprep.subr.mxu1 %v3055_v18 }
 0x574   :  { %11172 = vmatpush3.msra.mxu1 %v3055_v18 }
 0x575   :  { %11173 = vmatprep.subr.mxu1 %v11165_v12 }
 0x576   :  { %11174 = vmatpush3.msra.mxu1 %v11165_v12 }
 0x577   :  { %11175 = vmatprep.subr.mxu1 %v3045_v14 }
 0x578   :  { %11176 = vmatpush3.msra.mxu1 %v3045_v14 }
 0x579   :  { %11177 = vmatprep.subr.mxu1 %v11162_v9 }
 0x57a   :  { %11178 = vmatpush3.msra.mxu1 %v11162_v9 }
 0x57b   :  { %11179 = vmatprep.subr.mxu1 %v3035_v10 }
 0x57c   :  { %11180 = vmatpush3.msra.mxu1 %v3035_v10 }
 0x57d   :  { %11181 = vmatprep.subr.mxu1 %v11159_v6 }
 0x57e   :  { %11182 = vmatpush3.msra.mxu1 %v11159_v6 }
 0x57f   :  { %11183 = vmatprep.subr.mxu1 %v3025_v8 }
 0x580   :  { %11184 = vmatpush3.msra.mxu1 %v3025_v8 }
 0x5fa   :  { %v13219_v19 = vpop.f32.mrf.mxu0 }
 0x5fc   :  { %v13221_v20 = vpop.f32.mrf.mxu0 }
 0x5fe   :  { %v13223_v21 = vpop.f32.mrf.mxu0 }
 0x600   :  { %v13225_v22 = vpop.f32.mrf.mxu0 }
 0x602   :  { %v13227_v23 = vpop.f32.mrf.mxu0 }
 0x604   :  { %v13229_v24 = vpop.f32.mrf.mxu0 }
 0x606   :  { %v13231_v25 = vpop.f32.mrf.mxu0 }
 0x608   :  { %v13233_v26 = vpop.f32.mrf.mxu0 }
 0x61a   :  { %v11139_v27 = vpop.f32.mrf.mxu0 }
 0x61b   :  { %v2833_v33 = vadd.f32 %v11139_v27, %v13244_v32 }
 0x61c   :  { %v2827_v29 = vpop.f32.mrf.mxu0 }
 0x61d   :  { %v2828_v30 = vadd.f32 %v2827_v29, %v13238_v28  ;;  %v2869_v42 = vsel %vm2421_vm14, %v2833_v33, -inf }
 0x61e   :  { %v11142_v31 = vpop.f32.mrf.mxu0 }
 0x61f   :  { %v2866_v34 = vsel %vm2421_vm14, %v2828_v30, -inf  ;;  %v2843_v40 = vadd.f32 %v11142_v31, %v13257_v38 }
 0x620   :  { %v2837_v36 = vpop.f32.mrf.mxu0  ;;  %2867 = vmax.xlane.f32.xlu0 %v2866_v34 }
 0x621   :  { %v2838_v37 = vadd.f32 %v2837_v36, %v13251_v35  ;;  %v2875_v49 = vsel %vm2421_vm14, %v2843_v40, -inf }
 0x622   :  { %v11145_v39 = vpop.f32.mrf.mxu0 }
 0x623   :  { %v2872_v41 = vsel %vm2421_vm14, %v2838_v37, -inf  ;;  %v2853_v48 = vadd.f32 %v11145_v39, %v13271_v46 }
 0x624   :  { %v2847_v44 = vpop.f32.mrf.mxu0  ;;  %2873 = vmax.xlane.f32.xlu1 %v2872_v41  ;;  %2870 = vmax.xlane.f32.xlu0 %v2869_v42 }
 0x625   :  { %v2848_v45 = vadd.f32 %v2847_v44, %v13265_v43  ;;  %v2881_v56 = vsel %vm2421_vm14, %v2853_v48, -inf }
 0x626   :  { %v11148_v47 = vpop.f32.mrf.mxu0 }
 0x627   :  { %v2878_v50 = vsel %vm2421_vm14, %v2848_v45, -inf  ;;  %v2863_v55 = vadd.f32 %v11148_v47, %v13285_v54 }
 0x628   :  { %v2857_v52 = vpop.f32.mrf.mxu0  ;;  %2876 = vmax.xlane.f32.xlu1 %v2875_v49  ;;  %2879 = vmax.xlane.f32.xlu0 %v2878_v50 }
 0x629   :  { %v2858_v53 = vadd.f32 %v2857_v52, %v13279_v51  ;;  %v2887_v58 = vsel %vm2421_vm14, %v2863_v55, -inf }
 0x62b   :  { %v2884_v57 = vsel %vm2421_vm14, %v2858_v53, -inf }
 0x62c   :  { %2882 = vmax.xlane.f32.xlu1 %v2881_v56  ;;  %2885 = vmax.xlane.f32.xlu0 %v2884_v57  ;;  %v2383_v56 = vadd.f32 %v13221_v20, %v13238_v28 }
 0x62e   :  { %v2422_v20 = vsel %vm2421_vm14, %v2383_v56, -inf }
 0x630   :  { %2888 = vmax.xlane.f32.xlu1 %v2887_v58 }
 0x6a9   :  { %v2868_v59 = vpop.xlane.xlu0 %2867 }
 0x6aa   :  { %v2890_v60 = vsub.f32 %v2828_v30, %v2868_v59 }
 0x6ac   :  { %v2898_v61 = vmul.f32 1.442695, %v2890_v60  ;;  %v13327_v60 = vadd.f32 %v13219_v19, %v13244_v32 }
 0x6ad   :  { %v2874_v62 = vpop.xlane.xlu1 %2873  ;;  %v2871_v63 = vpop.xlane.xlu0 %2870 }
 0x6ae   :  { %12077 = vpow2.f32 %v2898_v61  ;;  %v2892_v2 = vsub.f32 %v2838_v37, %v2874_v62  ;;  %v2891_v3 = vsub.f32 %v2833_v33, %v2871_v63  ;;  %v13331_v61 = vadd.f32 %v13225_v22, %v13251_v35 }
 0x6af   :  { %v13336_v62 = vadd.f32 %v13223_v21, %v13257_v38  ;;  %v13340_v63 = vadd.f32 %v13229_v24, %v13265_v43  ;;  %v2425_v19 = vsel %vm2421_vm14, %v13327_v60, -inf  ;;  %v13348_v22 = vadd.f32 %v13227_v23, %v13271_v46 }
 0x6b0   :  { %v2902_v4 = vmul.f32 1.442695, %v2892_v2  ;;  %v2900_v6 = vmul.f32 1.442695, %v2891_v3  ;;  %v2428_v2 = vsel %vm2421_vm14, %v13331_v61, -inf  ;;  %v13352_v21 = vadd.f32 %v13233_v26, %v13279_v51 }
 0x6b1   :  { %v2877_v8 = vpop.xlane.xlu1 %2876  ;;  %v2880_v9 = vpop.xlane.xlu0 %2879  ;;  %v2431_v24 = vsel %vm2421_vm14, %v13336_v62, -inf  ;;  %v2434_v3 = vsel %vm2421_vm14, %v13340_v63, -inf  ;;  %v2437_v23 = vsel %vm2421_vm14, %v13348_v22, -inf }
 0x6b2   :  { %12079 = vpow2.f32 %v2902_v4  ;;  %v2893_v10 = vsub.f32 %v2843_v40, %v2877_v8  ;;  %v2894_v12 = vsub.f32 %v2848_v45, %v2880_v9  ;;  %v13360_v4 = vadd.f32 %v13231_v25, %v13285_v54  ;;  %v9509_v8 = vld [vmem:[%s15492_s7 + $0x58] sm:$0xff] }
 0x6b3   :  { %12081 = vpow2.f32 %v2900_v6  ;;  %v2440_v6 = vsel %vm2421_vm14, %v13352_v21, -inf  ;;  %11225 = vmatprep.subr.mxu1 %v9509_v8 }
 0x6b4   :  { %v2904_v14 = vmul.f32 1.442695, %v2893_v10  ;;  %v2906_v16 = vmul.f32 1.442695, %v2894_v12  ;;  %v2443_v26 = vsel %vm2421_vm14, %v13360_v4, -inf }
 0x6b5   :  { %v2883_v18 = vpop.xlane.xlu1 %2882  ;;  %v2886_v27 = vpop.xlane.xlu0 %2885 }
 0x6b6   :  { %12083 = vpow2.f32 %v2904_v14  ;;  %v2895_v29 = vsub.f32 %v2853_v48, %v2883_v18  ;;  %v2896_v30 = vsub.f32 %v2858_v53, %v2886_v27 }
 0x6b7   :  { %12085 = vpow2.f32 %v2906_v16 }
 0x6b8   :  { %v2908_v31 = vmul.f32 1.442695, %v2895_v29  ;;  %v2910_v34 = vmul.f32 1.442695, %v2896_v30 }
 0x6b9   :  { %v2889_v36 = vpop.xlane.xlu1 %2888 }
 0x6ba   :  { %12087 = vpow2.f32 %v2908_v31  ;;  %v2897_v33 = vsub.f32 %v2863_v55, %v2889_v36 }
 0x6bb   :  { %v13291_v37 = vpop.eup %12077  ;;  %12089 = vpow2.f32 %v2910_v34 }
 0x6bc   :  { %v2912_v39 = vmul.f32 1.442695, %v2897_v33  ;;  %v2914_v40 = vsel %vm2421_vm14, %v13291_v37, 0.0 }
 0x6bd   :  { %2915 = vadd.xlane.f32.xlu0 %v2914_v40 }
 0x6be   :  { %12091 = vpow2.f32 %v2912_v39 }
 0x6bf   :  { %v13295_v41 = vpop.eup %12079 }
 0x6c0   :  { %v13297_v42 = vpop.eup %12081  ;;  %v2920_v44 = vsel %vm2421_vm14, %v13295_v41, 0.0 }
 0x6c1   :  { %2921 = vadd.xlane.f32.xlu0 %v2920_v44  ;;  %v2917_v45 = vsel %vm2421_vm14, %v13297_v42, 0.0 }
 0x6c2   :  { %2918 = vadd.xlane.f32.xlu1 %v2917_v45 }
 0x6c3   :  { %v13303_v47 = vpop.eup %12083 }
 0x6c4   :  { %v13305_v48 = vpop.eup %12085  ;;  %v2923_v49 = vsel %vm2421_vm14, %v13303_v47, 0.0 }
 0x6c5   :  { %v2926_v50 = vsel %vm2421_vm14, %v13305_v48, 0.0 }
 0x6c6   :  { %2924 = vadd.xlane.f32.xlu1 %v2923_v49  ;;  %2927 = vadd.xlane.f32.xlu0 %v2926_v50  ;;  %v9508_v50 = vld [vmem:[%s15492_s7 + $0x50] sm:$0xff] }
 0x6c7   :  { %v13311_v52 = vpop.eup %12087 }
 0x6c8   :  { %v13313_v53 = vpop.eup %12089  ;;  %v2929_v55 = vsel %vm2421_vm14, %v13311_v52, 0.0 }
 0x6c9   :  { %v2932_v57 = vsel %vm2421_vm14, %v13313_v53, 0.0 }
 0x6ca   :  { %2930 = vadd.xlane.f32.xlu1 %v2929_v55  ;;  %2933 = vadd.xlane.f32.xlu0 %v2932_v57 }
 0x6cb   :  { %v13321_v58 = vpop.eup %12091 }
 0x6cc   :  { %v2935_v59 = vsel %vm2421_vm14, %v13321_v58, 0.0 }
 0x6ce   :  { %2936 = vadd.xlane.f32.xlu1 %v2935_v59  ;;  %2423 = vmax.xlane.f32.xlu0 %v2422_v20 }
 0x6d2   :  { %2426 = vmax.xlane.f32.xlu1 %v2425_v19  ;;  %2429 = vmax.xlane.f32.xlu0 %v2428_v2  ;;  %v9506_v2 = vld [vmem:[%s15492_s7 + $0x40] sm:$0xff] }
 0x6d6   :  { %2432 = vmax.xlane.f32.xlu1 %v2431_v24  ;;  %2435 = vmax.xlane.f32.xlu0 %v2434_v3 }
 0x6da   :  { %2438 = vmax.xlane.f32.xlu1 %v2437_v23  ;;  %2441 = vmax.xlane.f32.xlu0 %v2440_v6 }
 0x6de   :  { %2444 = vmax.xlane.f32.xlu1 %v2443_v26 }
 0x746   :  { %v2916_v9 = vpop.xlane.xlu0 %2915 }
 0x747   :  { %12093 = vrcp.f32 %v2916_v9 }
 0x74a   :  { %v2922_v25 = vpop.xlane.xlu0 %2921 }
 0x74b   :  { %v2919_v10 = vpop.xlane.xlu1 %2918  ;;  %12095 = vrcp.f32 %v2922_v25 }
 0x74c   :  { %12097 = vrcp.f32 %v2919_v10 }
 0x74f   :  { %v2925_v12 = vpop.xlane.xlu1 %2924  ;;  %v2928_v14 = vpop.xlane.xlu0 %2927 }
 0x750   :  { %12099 = vrcp.f32 %v2925_v12 }
 0x751   :  { %12101 = vrcp.f32 %v2928_v14 }
 0x753   :  { %v2931_v16 = vpop.xlane.xlu1 %2930  ;;  %v2934_v18 = vpop.xlane.xlu0 %2933 }
 0x754   :  { %v12094_v27 = vpop.eup %12093  ;;  %12103 = vrcp.f32 %v2931_v16 }
 0x755   :  { %12105 = vrcp.f32 %v2934_v18  ;;  %v2946_v29 = vmul.f32 %v12094_v27, %v13291_v37 }
 0x757   :  { %v2937_v30 = vpop.xlane.xlu1 %2936  ;;  %v2424_v31 = vpop.xlane.xlu0 %2423  ;;  %11185 = vmatprep.mubr.msk.f32.mxu1 %vm2421_vm14, %v2946_v29 }
 0x758   :  { %v12096_v34 = vpop.eup %12095  ;;  %12107 = vrcp.f32 %v2937_v30  ;;  %v2446_v36 = vsub.f32 %v2383_v56, %v2424_v31  ;;  %v9537_v31 = vld [vmem:[%s15493_s9 + $0x48] sm:$0xff] }
 0x759   :  { %v12098_v33 = vpop.eup %12097  ;;  %v2948_v39 = vmul.f32 %v12096_v34, %v13295_v41  ;;  %v9507_v41 = vld [vmem:[%s15492_s7 + $0x48] sm:$0xff] }
 0x75a   :  { %v2947_v40 = vmul.f32 %v12098_v33, %v13297_v42  ;;  %v2454_v44 = vmul.f32 1.442695, %v2446_v36  ;;  %v9536_v36 = vld [vmem:[%s15493_s9 + $0x40] sm:$0xff] }
 0x75b   :  { %v2427_v45 = vpop.xlane.xlu1 %2426  ;;  %v2430_v49 = vpop.xlane.xlu0 %2429 }
 0x75c   :  { %12109 = vpow2.f32 %v2454_v44  ;;  %v2447_v37 = vsub.f32 %v13327_v60, %v2427_v45  ;;  %v2448_v55 = vsub.f32 %v13331_v61, %v2430_v49  ;;  %11186 = vmatmul.mubr.msk.f32.vlgmr.msra.gmra.mxu1 %vm2421_vm14, %v2947_v40 }
 0x75d   :  { %v12100_v56 = vpop.eup %12099  ;;  %11188 = vmatprep.mubr.msk.f32.mxu1 %vm2421_vm14, %v2948_v39  ;;  %11226 = vmatpush3.msra.mxu1 %v9509_v8 }
 0x75e   :  { %v12102_v42 = vpop.eup %12101  ;;  %v2456_v57 = vmul.f32 1.442695, %v2447_v37  ;;  %v2458_v59 = vmul.f32 1.442695, %v2448_v55  ;;  %v2949_v20 = vmul.f32 %v12100_v56, %v13303_v47  ;;  %11227 = vmatprep.subr.mxu1 %v9508_v50  ;;  %v9539_v47 = vld [vmem:[%s15493_s9 + $0x58] sm:$0xff] }
 0x75f   :  { %v2433_v19 = vpop.xlane.xlu1 %2432  ;;  %v2436_v60 = vpop.xlane.xlu0 %2435  ;;  %v2950_v61 = vmul.f32 %v12102_v42, %v13305_v48  ;;  %11228 = vmatpush3.msra.mxu1 %v9508_v50 }
 0x760   :  { %12111 = vpow2.f32 %v2456_v57  ;;  %v2449_v24 = vsub.f32 %v13336_v62, %v2433_v19  ;;  %v2450_v3 = vsub.f32 %v13340_v63, %v2436_v60  ;;  %11189 = vmatmul.mubr.msk.f32.gmra.mxu1 %vm2421_vm14, %v2949_v20  ;;  %11229 = vmatprep.subr.mxu1 %v9507_v41 }
 0x761   :  { %v12104_v23 = vpop.eup %12103  ;;  %12113 = vpow2.f32 %v2458_v59  ;;  %11191 = vmatprep.mubr.msk.f32.mxu1 %vm2421_vm14, %v2950_v61  ;;  %11230 = vmatpush3.msra.mxu1 %v9507_v41 }
 0x762   :  { %v12106_v48 = vpop.eup %12105  ;;  %v2460_v6 = vmul.f32 1.442695, %v2449_v24  ;;  %v2462_v26 = vmul.f32 1.442695, %v2450_v3  ;;  %v2951_v8 = vmul.f32 %v12104_v23, %v13311_v52  ;;  %11231 = vmatprep.subr.mxu1 %v9506_v2 }
 0x763   :  { %v2439_v62 = vpop.xlane.xlu1 %2438  ;;  %v2442_v63 = vpop.xlane.xlu0 %2441  ;;  %v2952_v9 = vmul.f32 %v12106_v48, %v13313_v53  ;;  %11232 = vmatpush3.msra.mxu1 %v9506_v2 }
 0x764   :  { %12115 = vpow2.f32 %v2460_v6  ;;  %v2451_v25 = vsub.f32 %v13348_v22, %v2439_v62  ;;  %v2452_v10 = vsub.f32 %v13352_v21, %v2442_v63  ;;  %11192 = vmatmul.mubr.msk.f32.gmra.mxu1 %vm2421_vm14, %v2951_v8  ;;  %11273 = vmatprep.subr.mxu1 %v9539_v47 }
 0x765   :  { %v12108_v12 = vpop.eup %12107  ;;  %12117 = vpow2.f32 %v2462_v26  ;;  %11194 = vmatprep.mubr.msk.f32.mxu1 %vm2421_vm14, %v2952_v9 }
 0x766   :  { %v2464_v14 = vmul.f32 1.442695, %v2451_v25  ;;  %v2466_v52 = vmul.f32 1.442695, %v2452_v10  ;;  %v2953_v16 = vmul.f32 %v12108_v12, %v13321_v58  ;;  %v9538_v58 = vld [vmem:[%s15493_s9 + $0x50] sm:$0xff] }
 0x767   :  { %v2445_v18 = vpop.xlane.xlu1 %2444 }
 0x768   :  { %12119 = vpow2.f32 %v2464_v14  ;;  %v2453_v53 = vsub.f32 %v13360_v4, %v2445_v18  ;;  %11195 = vmatmul.mubr.msk.f32.gmra.mxu1 %vm2421_vm14, %v2953_v16 }
 0x769   :  { %v13406_v22 = vpop.eup %12109  ;;  %12121 = vpow2.f32 %v2466_v52  ;;  %11233 = vmatprep.mubr.msk.f32.mxu1 %vm327_vm1, %v13018_v0 }
 0x76a   :  { %v2468_v21 = vmul.f32 1.442695, %v2453_v53  ;;  %v2470_v27 = vsel %vm2421_vm14, %v13406_v22, 0.0 }
 0x76b   :  { %2471 = vadd.xlane.f32.xlu0 %v2470_v27 }
 0x76c   :  { %12123 = vpow2.f32 %v2468_v21  ;;  %11234 = vmatmul.mubr.msk.f32.vlgmr.msra.gmra.mxu1 %vm327_vm1, %v13020_v1  ;;  %v9559_v21 = vld [vmem:[%s15492_s7 + $0x78] sm:$0xff] }
 0x76d   :  { %v13417_v4 = vpop.eup %12111  ;;  %11236 = vmatprep.mubr.msk.f32.mxu1 %vm327_vm1, %v13029_v5  ;;  %11274 = vmatpush3.msra.mxu1 %v9539_v47 }
 0x76e   :  { %v13421_v29 = vpop.eup %12113  ;;  %v2473_v30 = vsel %vm2421_vm14, %v13417_v4, 0.0  ;;  %11275 = vmatprep.subr.mxu1 %v9538_v58 }
 0x76f   :  { %2474 = vadd.xlane.f32.xlu1 %v2473_v30  ;;  %v2476_v34 = vsel %vm2421_vm14, %v13421_v29, 0.0  ;;  %11276 = vmatpush3.msra.mxu1 %v9538_v58  ;;  %v9511_v30 = vld [vmem:[%s15495_s8 + $0x2] ss:$0 sm:$0xff] }
 0x770   :  { %2477 = vadd.xlane.f32.xlu0 %v2476_v34  ;;  %11237 = vmatmul.mubr.msk.f32.gmra.mxu1 %vm327_vm1, %v13034_v7 }
 0x771   :  { %v12116_v33 = vpop.eup %12115  ;;  %11239 = vmatprep.mubr.msk.f32.mxu1 %vm327_vm1, %v13043_v11  ;;  %11277 = vmatprep.subr.mxu1 %v9537_v31 }
 0x772   :  { %v12118_v39 = vpop.eup %12117  ;;  %v2479_v40 = vsel %vm2421_vm14, %v12116_v33, 0.0  ;;  %11278 = vmatpush3.msra.mxu1 %v9537_v31 }
 0x773   :  { %2480 = vadd.xlane.f32.xlu1 %v2479_v40  ;;  %v2482_v44 = vsel %vm2421_vm14, %v12118_v39, 0.0  ;;  %11279 = vmatprep.subr.mxu1 %v9536_v36 }
 0x774   :  { %2483 = vadd.xlane.f32.xlu0 %v2482_v44  ;;  %11240 = vmatmul.mubr.msk.f32.gmra.mxu1 %vm327_vm1, %v13048_v13 }
 0x775   :  { %v12120_v45 = vpop.eup %12119  ;;  %11242 = vmatprep.mubr.msk.f32.mxu1 %vm327_vm1, %v13056_v17  ;;  %11280 = vmatpush3.msra.mxu1 %v9536_v36 }
 0x776   :  { %v12122_v49 = vpop.eup %12121  ;;  %v2485_v50 = vsel %vm2421_vm14, %v12120_v45, 0.0 }
 0x777   :  { %2486 = vadd.xlane.f32.xlu1 %v2485_v50  ;;  %v2488_v37 = vsel %vm2421_vm14, %v12122_v49, 0.0 }
 0x778   :  { %2489 = vadd.xlane.f32.xlu0 %v2488_v37  ;;  %11243 = vmatmul.mubr.msk.f32.gmra.mxu1 %vm327_vm1, %v13050_v15  ;;  %v9556_v37 = vld [vmem:[%s15492_s7 + $0x60] sm:$0xff] }
 0x779   :  { %v12124_v55 = vpop.eup %12123  ;;  %11281 = vmatprep.mubr.msk.f32.mxu1 %vm327_vm1, %v13018_v0 }
 0x77a   :  { %v2491_v56 = vsel %vm2421_vm14, %v12124_v55, 0.0 }
 0x77b   :  { %2492 = vadd.xlane.f32.xlu1 %v2491_v56 }
 0x77c   :  { %11282 = vmatmul.mubr.msk.f32.vlgmr.msra.gmra.mxu1 %vm327_vm1, %v13020_v1 }
 0x77d   :  { %11284 = vmatprep.mubr.msk.f32.mxu1 %vm327_vm1, %v13029_v5 }
 0x780   :  { %11285 = vmatmul.mubr.msk.f32.gmra.mxu1 %vm327_vm1, %v13034_v7 }
 0x781   :  { %11287 = vmatprep.mubr.msk.f32.mxu1 %vm327_vm1, %v13043_v11 }
 0x784   :  { %11288 = vmatmul.mubr.msk.f32.gmra.mxu1 %vm327_vm1, %v13048_v13 }
 0x785   :  { %11290 = vmatprep.mubr.msk.f32.mxu1 %vm327_vm1, %v13056_v17 }
 0x788   :  { %11291 = vmatmul.mubr.msk.f32.gmra.mxu1 %vm327_vm1, %v13050_v15 }
 0x7f4   :  { %v2472_v41 = vpop.xlane.xlu0 %2471 }
 0x7f5   :  { %12125 = vrcp.f32 %v2472_v41  ;;  %v9589_v41 = vld [vmem:[%s15493_s9 + $0x78] sm:$0xff] }
 0x7f8   :  { %v2475_v42 = vpop.xlane.xlu1 %2474 }
 0x7f9   :  { %12127 = vrcp.f32 %v2475_v42  ;;  %v2478_v57 = vpop.xlane.xlu0 %2477 }
 0x7fa   :  { %12129 = vrcp.f32 %v2478_v57 }
 0x7fc   :  { %v2481_v59 = vpop.xlane.xlu1 %2480 }
 0x7fd   :  { %12131 = vrcp.f32 %v2481_v59  ;;  %v2484_v20 = vpop.xlane.xlu0 %2483 }
 0x7fe   :  { %12133 = vrcp.f32 %v2484_v20 }
 0x800   :  { %v2487_v19 = vpop.xlane.xlu1 %2486 }
 0x801   :  { %12135 = vrcp.f32 %v2487_v19  ;;  %v2490_v60 = vpop.xlane.xlu0 %2489 }
 0x802   :  { %v12126_v61 = vpop.eup %12125  ;;  %12137 = vrcp.f32 %v2490_v60 }
 0x803   :  { %v2502_v2 = vmul.f32 %v12126_v61, %v13406_v22 }
 0x804   :  { %v2493_v24 = vpop.xlane.xlu1 %2492 }
 0x805   :  { %12139 = vrcp.f32 %v2493_v24  ;;  %11213 = vmatprep.mubr.msk.f32.mxu0 %vm2421_vm14, %v2502_v2  ;;  %v9588_v24 = vld [vmem:[%s15493_s9 + $0x70] sm:$0xff] }
 0x806   :  { %v12128_v3 = vpop.eup %12127 }
 0x807   :  { %v12130_v23 = vpop.eup %12129  ;;  %v2503_v47 = vmul.f32 %v12128_v3, %v13417_v4 }
 0x808   :  { %v2504_v48 = vmul.f32 %v12130_v23, %v13421_v29  ;;  %v9587_v23 = vld [vmem:[%s15493_s9 + $0x68] sm:$0xff] }
 0x809   :  { %11214 = vmatmul.mubr.msk.f32.vlgmr.msra.gmra.mxu0 %vm2421_vm14, %v2503_v47 }
 0x80a   :  { %v12132_v6 = vpop.eup %12131  ;;  %11246 = vmatpush3.xpose.msk.msra.mxu0 %vm327_vm1, %v13050_v15  ;;  %11216 = vmatprep.mubr.msk.f32.mxu0 %vm2421_vm14, %v2504_v48  ;;  %v9586_v48 = vld [vmem:[%s15493_s9 + $0x60] sm:$0xff] }
 0x80b   :  { %v12134_v26 = vpop.eup %12133  ;;  %11247 = vmatprep.subr.msk.mxu0 %vm327_vm1, %v13056_v17  ;;  %v2505_v8 = vmul.f32 %v12132_v6, %v12116_v33 }
 0x80c   :  { %v2506_v62 = vmul.f32 %v12134_v26, %v12118_v39  ;;  %v9558_v39 = vld [vmem:[%s15492_s7 + $0x70] sm:$0xff] }
 0x80d   :  { %11217 = vmatmul.mubr.msk.f32.gmra.mxu0 %vm2421_vm14, %v2505_v8 }
 0x80e   :  { %v12136_v63 = vpop.eup %12135  ;;  %11248 = vmatpush3.xpose.msk.msra.mxu0 %vm327_vm1, %v13056_v17  ;;  %11219 = vmatprep.mubr.msk.f32.mxu0 %vm2421_vm14, %v2506_v62 }
 0x80f   :  { %v12138_v9 = vpop.eup %12137  ;;  %11249 = vmatprep.subr.msk.mxu0 %vm327_vm1, %v13048_v13  ;;  %v2507_v25 = vmul.f32 %v12136_v63, %v12120_v45  ;;  %v9557_v45 = vld [vmem:[%s15492_s7 + $0x68] sm:$0xff] }
 0x810   :  { %v2508_v10 = vmul.f32 %v12138_v9, %v12122_v49 }
 0x811   :  { %11220 = vmatmul.mubr.msk.f32.gmra.mxu0 %vm2421_vm14, %v2507_v25 }
 0x812   :  { %v12140_v12 = vpop.eup %12139  ;;  %11250 = vmatpush3.xpose.msk.msra.mxu0 %vm327_vm1, %v13048_v13  ;;  %11222 = vmatprep.mubr.msk.f32.mxu0 %vm2421_vm14, %v2508_v10 }
 0x813   :  { %11251 = vmatprep.subr.msk.mxu0 %vm327_vm1, %v13043_v11  ;;  %v2509_v14 = vmul.f32 %v12140_v12, %v12124_v55 }
 0x815   :  { %11223 = vmatmul.mubr.msk.f32.gmra.mxu0 %vm2421_vm14, %v2509_v14 }
 0x816   :  { %11252 = vmatpush3.xpose.msk.msra.mxu0 %vm327_vm1, %v13043_v11 }
 0x817   :  { %11253 = vmatprep.subr.msk.mxu0 %vm327_vm1, %v13034_v7 }
 0x81a   :  { %11254 = vmatpush3.xpose.msk.msra.mxu0 %vm327_vm1, %v13034_v7 }
 0x81b   :  { %11255 = vmatprep.subr.msk.mxu0 %vm327_vm1, %v13029_v5 }
 0x81c   :  { %v13495_v52 = vpop.f32.mrf.mxu1 }
 0x81e   :  { %11256 = vmatpush3.xpose.msk.msra.mxu0 %vm327_vm1, %v13029_v5  ;;  %v13499_v16 = vpop.f32.mrf.mxu1 }
 0x81f   :  { %11257 = vmatprep.subr.msk.mxu0 %vm327_vm1, %v13020_v1 }
 0x820   :  { %v13503_v18 = vpop.f32.mrf.mxu1 }
 0x822   :  { %11258 = vmatpush3.xpose.msk.msra.mxu0 %vm327_vm1, %v13020_v1  ;;  %v13507_v53 = vpop.f32.mrf.mxu1 }
 0x823   :  { %11259 = vmatprep.subr.msk.mxu0 %vm327_vm1, %v13018_v0 }
 0x824   :  { %v13511_v22 = vpop.f32.mrf.mxu1 }
 0x826   :  { %11260 = vmatpush3.xpose.msk.msra.mxu0 %vm327_vm1, %v13018_v0  ;;  %v13518_v27 = vpop.f32.mrf.mxu1 }
 0x827   :  { %11321 = vmatprep.subr.mxu0 %v9559_v21 }
 0x828   :  { %v13520_v58 = vpop.f32.mrf.mxu1 }
 0x82a   :  { %v13522_v4 = vpop.f32.mrf.mxu1 }
 0x82c   :  { %v11235_v29 = vpop.f32.mrf.mxu1 }
 0x82d   :  { %v3407_v36 = vadd.f32 %v11235_v29, %v9511_v30 }
 0x82e   :  { %v3401_v31 = vpop.f32.mrf.mxu1 }
 0x82f   :  { %v3402_v34 = vadd.f32 %v9511_v30, %v3401_v31 }
 0x830   :  { %v11238_v33 = vpop.f32.mrf.mxu1 }
 0x831   :  { %11261 = vmatprep.mubr.msk.f32.mxu0 %vm327_vm1, %v3402_v34  ;;  %v3417_v49 = vadd.f32 %v11238_v33, %v9511_v30 }
 0x832   :  { %v3411_v40 = vpop.f32.mrf.mxu1  ;;  %11262 = vmatmul.mubr.msk.f32.vlgmr.msra.gmra.mxu0 %vm327_vm1, %v3407_v36 }
 0x833   :  { %v3412_v44 = vadd.f32 %v9511_v30, %v3411_v40  ;;  %11322 = vmatpush3.msra.mxu0 %v9559_v21 }
 0x834   :  { %v11241_v50 = vpop.f32.mrf.mxu1  ;;  %11323 = vmatprep.subr.mxu0 %v9558_v39 }
 0x835   :  { %11264 = vmatprep.mubr.msk.f32.mxu0 %vm327_vm1, %v3412_v44  ;;  %11324 = vmatpush3.msra.mxu0 %v9558_v39  ;;  %v3427_v42 = vadd.f32 %v11241_v50, %v9511_v30 }
 0x836   :  { %v3421_v55 = vpop.f32.mrf.mxu1  ;;  %11265 = vmatmul.mubr.msk.f32.gmra.mxu0 %vm327_vm1, %v3417_v49  ;;  %11325 = vmatprep.subr.mxu0 %v9557_v45 }
 0x837   :  { %v3422_v56 = vadd.f32 %v9511_v30, %v3421_v55  ;;  %11326 = vmatpush3.msra.mxu0 %v9557_v45 }
 0x838   :  { %v11244_v57 = vpop.f32.mrf.mxu1  ;;  %11327 = vmatprep.subr.mxu0 %v9556_v37 }
 0x839   :  { %11267 = vmatprep.mubr.msk.f32.mxu0 %vm327_vm1, %v3422_v56  ;;  %11328 = vmatpush3.msra.mxu0 %v9556_v37  ;;  %v3437_v19 = vadd.f32 %v11244_v57, %v9511_v30 }
 0x83a   :  { %v3431_v59 = vpop.f32.mrf.mxu1  ;;  %11268 = vmatmul.mubr.msk.f32.gmra.mxu0 %vm327_vm1, %v3427_v42  ;;  %11369 = vmatprep.subr.mxu0 %v9589_v41 }
 0x83b   :  { %v3432_v20 = vadd.f32 %v9511_v30, %v3431_v59 }
 0x83c   :  { %v11283_v60 = vpop.f32.mrf.mxu1 }
 0x83d   :  { %11270 = vmatprep.mubr.msk.f32.mxu0 %vm327_vm1, %v3432_v20 }
 0x83e   :  { %11271 = vmatmul.mubr.msk.f32.gmra.mxu0 %vm327_vm1, %v3437_v19  ;;  %v3728_v61 = vpop.f32.mrf.mxu1 }
 0x83f   :  { %11329 = vmatprep.mubr.msk.f32.mxu0 %vm327_vm1, %v13018_v0 }
 0x840   :  { %v11286_v2 = vpop.f32.mrf.mxu1 }
 0x842   :  { %v3738_v3 = vpop.f32.mrf.mxu1  ;;  %11330 = vmatmul.mubr.msk.f32.vlgmr.msra.gmra.mxu0 %vm327_vm1, %v13020_v1 }
 0x843   :  { %11332 = vmatprep.mubr.msk.f32.mxu0 %vm327_vm1, %v13029_v5  ;;  %11370 = vmatpush3.msra.mxu0 %v9589_v41 }
 0x844   :  { %v11289_v47 = vpop.f32.mrf.mxu1  ;;  %11371 = vmatprep.subr.mxu0 %v9588_v24 }
 0x845   :  { %11372 = vmatpush3.msra.mxu0 %v9588_v24 }
 0x846   :  { %v3748_v6 = vpop.f32.mrf.mxu1  ;;  %11333 = vmatmul.mubr.msk.f32.gmra.mxu0 %vm327_vm1, %v13034_v7  ;;  %11373 = vmatprep.subr.mxu0 %v9587_v23 }
 0x847   :  { %11335 = vmatprep.mubr.msk.f32.mxu0 %vm327_vm1, %v13043_v11  ;;  %11374 = vmatpush3.msra.mxu0 %v9587_v23 }
 0x848   :  { %v11292_v26 = vpop.f32.mrf.mxu1  ;;  %11375 = vmatprep.subr.mxu0 %v9586_v48 }
 0x849   :  { %11293 = vmatprep.subr.mxu1 %v11292_v26  ;;  %11376 = vmatpush3.msra.mxu0 %v9586_v48 }
 0x84a   :  { %v3758_v8 = vpop.f32.mrf.mxu1  ;;  %11294 = vmatpush3.msra.mxu1 %v11292_v26  ;;  %11336 = vmatmul.mubr.msk.f32.gmra.mxu0 %vm327_vm1, %v13048_v13 }
 0x84b   :  { %11295 = vmatprep.subr.mxu1 %v3758_v8  ;;  %11338 = vmatprep.mubr.msk.f32.mxu0 %vm327_vm1, %v13056_v17 }
 0x84c   :  { %11296 = vmatpush3.msra.mxu1 %v3758_v8 }
 0x84d   :  { %11297 = vmatprep.subr.mxu1 %v11289_v47 }
 0x84e   :  { %11298 = vmatpush3.msra.mxu1 %v11289_v47  ;;  %11339 = vmatmul.mubr.msk.f32.gmra.mxu0 %vm327_vm1, %v13050_v15 }
 0x84f   :  { %11299 = vmatprep.subr.mxu1 %v3748_v6  ;;  %11377 = vmatprep.mubr.msk.f32.mxu0 %vm327_vm1, %v13018_v0 }
 0x850   :  { %11300 = vmatpush3.msra.mxu1 %v3748_v6 }
 0x851   :  { %11301 = vmatprep.subr.mxu1 %v11286_v2 }
 0x852   :  { %11302 = vmatpush3.msra.mxu1 %v11286_v2  ;;  %11378 = vmatmul.mubr.msk.f32.vlgmr.msra.gmra.mxu0 %vm327_vm1, %v13020_v1 }
 0x853   :  { %11303 = vmatprep.subr.mxu1 %v3738_v3  ;;  %11380 = vmatprep.mubr.msk.f32.mxu0 %vm327_vm1, %v13029_v5 }
 0x854   :  { %11304 = vmatpush3.msra.mxu1 %v3738_v3 }
 0x855   :  { %11305 = vmatprep.subr.mxu1 %v11283_v60 }
 0x856   :  { %11306 = vmatpush3.msra.mxu1 %v11283_v60  ;;  %11381 = vmatmul.mubr.msk.f32.gmra.mxu0 %vm327_vm1, %v13034_v7 }
 0x857   :  { %11307 = vmatprep.subr.mxu1 %v3728_v61  ;;  %11383 = vmatprep.mubr.msk.f32.mxu0 %vm327_vm1, %v13043_v11 }
 0x858   :  { %11308 = vmatpush3.msra.mxu1 %v3728_v61 }
 0x859   :  { %11341 = vmatprep.subr.msk.mxu1 %vm327_vm1, %v13050_v15 }
 0x85a   :  { %11384 = vmatmul.mubr.msk.f32.gmra.mxu0 %vm327_vm1, %v13048_v13 }
 0x85b   :  { %11386 = vmatprep.mubr.msk.f32.mxu0 %vm327_vm1, %v13056_v17 }
 0x85e   :  { %11387 = vmatmul.mubr.msk.f32.gmra.mxu0 %vm327_vm1, %v13050_v15 }
 0x8c9   :  { %v13590_v62 = vpop.f32.mrf.mxu0 }
 0x8cb   :  { %v13592_v63 = vpop.f32.mrf.mxu0 }
 0x8cd   :  { %v13594_v9 = vpop.f32.mrf.mxu0 }
 0x8cf   :  { %v13596_v25 = vpop.f32.mrf.mxu0 }
 0x8d1   :  { %v13598_v10 = vpop.f32.mrf.mxu0 }
 0x8d3   :  { %v13600_v12 = vpop.f32.mrf.mxu0 }
 0x8d5   :  { %v13602_v14 = vpop.f32.mrf.mxu0 }
 0x8d7   :  { %v13604_v21 = vpop.f32.mrf.mxu0 }
 0x8f2   :  { %v11263_v29 = vpop.f32.mrf.mxu0 }
 0x8f3   :  { %v13607_v30 = vadd.f32 %v11263_v29, %v13244_v32 }
 0x8f4   :  { %v3530_v31 = vpop.f32.mrf.mxu0 }
 0x8f5   :  { %v13610_v34 = vadd.f32 %v3530_v31, %v13238_v28  ;;  %v3572_v36 = vsel %vm2421_vm14, %v13607_v30, -inf }
 0x8f6   :  { %3573 = vmax.xlane.f32.xlu1 %v3572_v36  ;;  %v11266_v33 = vpop.f32.mrf.mxu0 }
 0x8f7   :  { %v13615_v39 = vadd.f32 %v11266_v33, %v13257_v38  ;;  %v3569_v40 = vsel %vm2421_vm14, %v13610_v34, -inf }
 0x8f8   :  { %v3540_v44 = vpop.f32.mrf.mxu0  ;;  %3570 = vmax.xlane.f32.xlu0 %v3569_v40 }
 0x8f9   :  { %v13620_v32 = vadd.f32 %v3540_v44, %v13251_v35  ;;  %v3578_v28 = vsel %vm2421_vm14, %v13615_v39, -inf }
 0x8fa   :  { %3579 = vmax.xlane.f32.xlu1 %v3578_v28  ;;  %v11269_v45 = vpop.f32.mrf.mxu0 }
 0x8fb   :  { %v13625_v49 = vadd.f32 %v11269_v45, %v13271_v46  ;;  %v3575_v38 = vsel %vm2421_vm14, %v13620_v32, -inf }
 0x8fc   :  { %v3550_v50 = vpop.f32.mrf.mxu0  ;;  %3576 = vmax.xlane.f32.xlu0 %v3575_v38 }
 0x8fd   :  { %v13630_v37 = vadd.f32 %v3550_v50, %v13265_v43  ;;  %v3584_v35 = vsel %vm2421_vm14, %v13625_v49, -inf }
 0x8fe   :  { %3585 = vmax.xlane.f32.xlu1 %v3584_v35  ;;  %v11272_v55 = vpop.f32.mrf.mxu0 }
 0x8ff   :  { %v13635_v56 = vadd.f32 %v11272_v55, %v13285_v54  ;;  %v3581_v46 = vsel %vm2421_vm14, %v13630_v37, -inf }
 0x900   :  { %v3560_v41 = vpop.f32.mrf.mxu0  ;;  %3582 = vmax.xlane.f32.xlu0 %v3581_v46 }
 0x901   :  { %v13640_v42 = vadd.f32 %v3560_v41, %v13279_v51  ;;  %v3590_v43 = vsel %vm2421_vm14, %v13635_v56, -inf }
 0x902   :  { %3591 = vmax.xlane.f32.xlu1 %v3590_v43  ;;  %v13644_v57 = vpop.f32.mrf.mxu0 }
 0x903   :  { %v3587_v59 = vsel %vm2421_vm14, %v13640_v42, -inf }
 0x904   :  { %v13648_v20 = vpop.f32.mrf.mxu0  ;;  %3588 = vmax.xlane.f32.xlu0 %v3587_v59 }
 0x906   :  { %v13650_v54 = vpop.f32.mrf.mxu0 }
 0x908   :  { %v13652_v19 = vpop.f32.mrf.mxu0 }
 0x90a   :  { %v13654_v60 = vpop.f32.mrf.mxu0 }
 0x90c   :  { %v13656_v51 = vpop.f32.mrf.mxu0 }
 0x90e   :  { %v13658_v61 = vpop.f32.mrf.mxu0 }
 0x910   :  { %v13660_v2 = vpop.f32.mrf.mxu0 }
 0x912   :  { %v11379_v24 = vpop.f32.mrf.mxu0 }
 0x914   :  { %v4310_v3 = vpop.f32.mrf.mxu0 }
 0x916   :  { %v11382_v23 = vpop.f32.mrf.mxu0 }
 0x918   :  { %v4320_v47 = vpop.f32.mrf.mxu0 }
 0x91a   :  { %v11385_v48 = vpop.f32.mrf.mxu0 }
 0x91c   :  { %v4330_v6 = vpop.f32.mrf.mxu0 }
 0x91e   :  { %v11388_v26 = vpop.f32.mrf.mxu0 }
 0x91f   :  { %11389 = vmatprep.subr.mxu0 %v11388_v26 }
 0x920   :  { %v4340_v8 = vpop.f32.mrf.mxu0  ;;  %11390 = vmatpush3.msra.mxu0 %v11388_v26 }
 0x921   :  { %11391 = vmatprep.subr.mxu0 %v4340_v8 }
 0x922   :  { %11392 = vmatpush3.msra.mxu0 %v4340_v8 }
 0x923   :  { %11393 = vmatprep.subr.mxu0 %v11385_v48 }
 0x924   :  { %11394 = vmatpush3.msra.mxu0 %v11385_v48 }
 0x925   :  { %11395 = vmatprep.subr.mxu0 %v4330_v6 }
 0x926   :  { %11396 = vmatpush3.msra.mxu0 %v4330_v6 }
 0x927   :  { %11397 = vmatprep.subr.mxu0 %v11382_v23 }
 0x928   :  { %11398 = vmatpush3.msra.mxu0 %v11382_v23 }
 0x929   :  { %11399 = vmatprep.subr.mxu0 %v4320_v47 }
 0x92a   :  { %11400 = vmatpush3.msra.mxu0 %v4320_v47 }
 0x92b   :  { %11401 = vmatprep.subr.mxu0 %v11379_v24 }
 0x92c   :  { %11402 = vmatpush3.msra.mxu0 %v11379_v24 }
 0x92d   :  { %11403 = vmatprep.subr.mxu0 %v4310_v3 }
 0x92e   :  { %11404 = vmatpush3.msra.mxu0 %v4310_v3 }
 0x97f   :  { %v3574_v29 = vpop.xlane.xlu1 %3573 }
 0x980   :  { %v3594_v31 = vsub.f32 %v13607_v30, %v3574_v29 }
 0x981   :  { %v3571_v36 = vpop.xlane.xlu0 %3570 }
 0x982   :  { %v3603_v33 = vmul.f32 1.442695, %v3594_v31  ;;  %v3593_v40 = vsub.f32 %v13610_v34, %v3571_v36 }
 0x983   :  { %v3580_v44 = vpop.xlane.xlu1 %3579 }
 0x984   :  { %12141 = vpow2.f32 %v3603_v33  ;;  %v3601_v28 = vmul.f32 1.442695, %v3593_v40  ;;  %v3596_v45 = vsub.f32 %v13615_v39, %v3580_v44 }
 0x985   :  { %v3577_v38 = vpop.xlane.xlu0 %3576 }
 0x986   :  { %12143 = vpow2.f32 %v3601_v28  ;;  %v3607_v50 = vmul.f32 1.442695, %v3596_v45  ;;  %v3595_v35 = vsub.f32 %v13620_v32, %v3577_v38 }
 0x987   :  { %v3586_v55 = vpop.xlane.xlu1 %3585 }
 0x988   :  { %12145 = vpow2.f32 %v3607_v50  ;;  %v3605_v46 = vmul.f32 1.442695, %v3595_v35  ;;  %v3598_v41 = vsub.f32 %v13625_v49, %v3586_v55 }
 0x989   :  { %v3583_v30 = vpop.xlane.xlu0 %3582 }
 0x98a   :  { %12147 = vpow2.f32 %v3605_v46  ;;  %v3611_v43 = vmul.f32 1.442695, %v3598_v41  ;;  %v3597_v34 = vsub.f32 %v13630_v37, %v3583_v30 }
 0x98b   :  { %v3592_v59 = vpop.xlane.xlu1 %3591 }
 0x98c   :  { %12149 = vpow2.f32 %v3611_v43  ;;  %v3609_v24 = vmul.f32 1.442695, %v3597_v34  ;;  %v3600_v39 = vsub.f32 %v13635_v56, %v3592_v59 }
 0x98d   :  { %v3589_v3 = vpop.xlane.xlu0 %3588 }
 0x98e   :  { %12151 = vpow2.f32 %v3609_v24  ;;  %v3615_v23 = vmul.f32 1.442695, %v3600_v39  ;;  %v3599_v32 = vsub.f32 %v13640_v42, %v3589_v3 }
 0x990   :  { %12153 = vpow2.f32 %v3615_v23  ;;  %v3613_v47 = vmul.f32 1.442695, %v3599_v32 }
 0x991   :  { %v12142_v48 = vpop.eup %12141 }
 0x992   :  { %12155 = vpow2.f32 %v3613_v47  ;;  %v3620_v49 = vsel %vm2421_vm14, %v12142_v48, 0.0 }
 0x993   :  { %v12144_v6 = vpop.eup %12143  ;;  %3621 = vadd.xlane.f32.xlu1 %v3620_v49 }
 0x994   :  { %v3617_v37 = vsel %vm2421_vm14, %v12144_v6, 0.0 }
 0x995   :  { %v12146_v26 = vpop.eup %12145  ;;  %3618 = vadd.xlane.f32.xlu0 %v3617_v37 }
 0x996   :  { %v3626_v8 = vsel %vm2421_vm14, %v12146_v26, 0.0 }
 0x997   :  { %v12148_v56 = vpop.eup %12147  ;;  %3627 = vadd.xlane.f32.xlu1 %v3626_v8 }
 0x998   :  { %v3623_v29 = vsel %vm2421_vm14, %v12148_v56, 0.0 }
 0x999   :  { %v12150_v31 = vpop.eup %12149  ;;  %3624 = vadd.xlane.f32.xlu0 %v3623_v29  ;;  %v9561_v29 = vld [vmem:[%s15495_s8 + $0x3] ss:$0 sm:$0xff] }
 0x99a   :  { %v3632_v42 = vsel %vm2421_vm14, %v12150_v31, 0.0 }
 0x99b   :  { %v12152_v36 = vpop.eup %12151  ;;  %3633 = vadd.xlane.f32.xlu1 %v3632_v42 }
 0x99c   :  { %v3629_v33 = vsel %vm2421_vm14, %v12152_v36, 0.0 }
 0x99d   :  { %v12154_v40 = vpop.eup %12153  ;;  %3630 = vadd.xlane.f32.xlu0 %v3629_v33  ;;  %v3999_v33 = vadd.f32 %v13650_v54, %v9561_v29  ;;  %v3289_v54 = vadd.f32 %v13590_v62, %v13495_v52  ;;  %v3319_v62 = vadd.f32 %v13602_v14, %v13520_v58  ;;  %v12431_v14 = vld [vmem:[%s15496_s10 + $0x18] sm:$0xff] }
 0x99e   :  { %v3638_v44 = vsel %vm2421_vm14, %v12154_v40, 0.0 }
 0x99f   :  { %v12156_v28 = vpop.eup %12155  ;;  %3639 = vadd.xlane.f32.xlu1 %v3638_v44  ;;  %v4009_v44 = vadd.f32 %v13654_v60, %v9561_v29  ;;  %v3299_v60 = vadd.f32 %v13594_v9, %v13503_v18 }
 0x9a0   :  { %v3635_v45 = vsel %vm2421_vm14, %v12156_v28, 0.0 }
 0x9a1   :  { %3636 = vadd.xlane.f32.xlu0 %v3635_v45 }
 0xa1c   :  { %v3622_v38 = vpop.xlane.xlu1 %3621 }
 0xa1d   :  { %12157 = vrcp.f32 %v3622_v38 }
 0xa1e   :  { %v3619_v50 = vpop.xlane.xlu0 %3618 }
 0xa1f   :  { %12159 = vrcp.f32 %v3619_v50 }
 0xa20   :  { %v3628_v35 = vpop.xlane.xlu1 %3627 }
 0xa21   :  { %12161 = vrcp.f32 %v3628_v35 }
 0xa22   :  { %v3625_v55 = vpop.xlane.xlu0 %3624 }
 0xa23   :  { %12163 = vrcp.f32 %v3625_v55 }
 0xa24   :  { %v3634_v46 = vpop.xlane.xlu1 %3633 }
 0xa25   :  { %12165 = vrcp.f32 %v3634_v46 }
 0xa26   :  { %v3631_v41 = vpop.xlane.xlu0 %3630 }
 0xa27   :  { %12167 = vrcp.f32 %v3631_v41 }
 0xa28   :  { %v3640_v30 = vpop.xlane.xlu1 %3639 }
 0xa29   :  { %12169 = vrcp.f32 %v3640_v30  ;;  %v12429_v30 = vld [vmem:[%s15496_s10 + $0x8] sm:$0xff] }
 0xa2a   :  { %v3637_v43 = vpop.xlane.xlu0 %3636  ;;  %v12158_v34 = vpop.eup %12157 }
 0xa2b   :  { %12171 = vrcp.f32 %v3637_v43  ;;  %v3650_v39 = vmul.f32 %v12158_v34, %v12142_v48 }
 0xa2c   :  { %v12160_v59 = vpop.eup %12159 }
 0xa2d   :  { %v3649_v24 = vmul.f32 %v12160_v59, %v12144_v6 }
 0xa2e   :  { %v12162_v3 = vpop.eup %12161 }
 0xa2f   :  { %11309 = vmatprep.mubr.msk.f32.mxu1 %vm2421_vm14, %v3649_v24  ;;  %v3652_v47 = vmul.f32 %v12162_v3, %v12146_v26 }
 0xa30   :  { %v12164_v23 = vpop.eup %12163  ;;  %11310 = vmatmul.mubr.msk.f32.vlgmr.msra.gmra.mxu1 %vm2421_vm14, %v3650_v39 }
 0xa31   :  { %11342 = vmatpush3.xpose.msk.msra.mxu1 %vm327_vm1, %v13050_v15  ;;  %v3651_v32 = vmul.f32 %v12164_v23, %v12148_v56  ;;  %v12432_v23 = vld [vmem:[%s15496_s10 + $0x10] sm:$0xff] }
 0xa32   :  { %11343 = vmatprep.subr.msk.mxu1 %vm327_vm1, %v13056_v17  ;;  %v12166_v49 = vpop.eup %12165 }
 0xa33   :  { %11312 = vmatprep.mubr.msk.f32.mxu1 %vm2421_vm14, %v3651_v32  ;;  %v3654_v6 = vmul.f32 %v12166_v49, %v12150_v31  ;;  %v3984_v31 = vadd.f32 %v9561_v29, %v13648_v20  ;;  %v3989_v20 = vadd.f32 %v13644_v57, %v9561_v29  ;;  %v4019_v57 = vadd.f32 %v13658_v61, %v9561_v29 }
 0xa34   :  { %v12168_v37 = vpop.eup %12167  ;;  %11313 = vmatmul.mubr.msk.f32.gmra.mxu1 %vm2421_vm14, %v3652_v47  ;;  %v3309_v61 = vadd.f32 %v13598_v10, %v13511_v22  ;;  %v12430_v10 = vld [vmem:[%s15496_s10] sm:$0xff] }
 0xa35   :  { %11344 = vmatpush3.xpose.msk.msra.mxu1 %vm327_vm1, %v13056_v17  ;;  %v3653_v48 = vmul.f32 %v12168_v37, %v12152_v36  ;;  %v3994_v36 = vadd.f32 %v9561_v29, %v13652_v19  ;;  %v12433_v37 = vld [vmem:[%s15496_s10 + $0x28] sm:$0xff] }
 0xa36   :  { %11345 = vmatprep.subr.msk.mxu1 %vm327_vm1, %v13048_v13  ;;  %v12170_v8 = vpop.eup %12169 }
 0xa37   :  { %11315 = vmatprep.mubr.msk.f32.mxu1 %vm2421_vm14, %v3653_v48  ;;  %v3656_v42 = vmul.f32 %v12170_v8, %v12154_v40  ;;  %v4004_v40 = vadd.f32 %v9561_v29, %v13656_v51 }
 0xa38   :  { %v12172_v56 = vpop.eup %12171  ;;  %11316 = vmatmul.mubr.msk.f32.gmra.mxu1 %vm2421_vm14, %v3654_v6 }
 0xa39   :  { %11346 = vmatpush3.xpose.msk.msra.mxu1 %vm327_vm1, %v13048_v13  ;;  %v3655_v26 = vmul.f32 %v12172_v56, %v12156_v28  ;;  %v4014_v28 = vadd.f32 %v9561_v29, %v13660_v2  ;;  %v12434_v56 = vld [vmem:[%s15496_s10 + $0x20] sm:$0xff] }
 0xa3a   :  { %11347 = vmatprep.subr.msk.mxu1 %vm327_vm1, %v13043_v11 }
 0xa3b   :  { %11318 = vmatprep.mubr.msk.f32.mxu1 %vm2421_vm14, %v3655_v26 }
 0xa3c   :  { %11319 = vmatmul.mubr.msk.f32.gmra.mxu1 %vm2421_vm14, %v3656_v42 }
 0xa3d   :  { %11348 = vmatpush3.xpose.msk.msra.mxu1 %vm327_vm1, %v13043_v11  ;;  %11357 = vmatprep.mubr.msk.f32.mxu1 %vm327_vm1, %v3984_v31  ;;  %v12435_v31 = vld [vmem:[%s15496_s10 + $0x38] sm:$0xff] }
 0xa3e   :  { %11349 = vmatprep.subr.msk.mxu1 %vm327_vm1, %v13034_v7 }
 0xa41   :  { %11350 = vmatpush3.xpose.msk.msra.mxu1 %vm327_vm1, %v13034_v7 }
 0xa42   :  { %11351 = vmatprep.subr.msk.mxu1 %vm327_vm1, %v13029_v5 }
 0xa45   :  { %11352 = vmatpush3.xpose.msk.msra.mxu1 %vm327_vm1, %v13029_v5 }
 0xa46   :  { %11353 = vmatprep.subr.msk.mxu1 %vm327_vm1, %v13020_v1 }
 0xa49   :  { %11354 = vmatpush3.xpose.msk.msra.mxu1 %vm327_vm1, %v13020_v1 }
 0xa4a   :  { %11355 = vmatprep.subr.msk.mxu1 %vm327_vm1, %v13018_v0 }
 0xa4d   :  { %11356 = vmatpush3.xpose.msk.msra.mxu1 %vm327_vm1, %v13018_v0 }
 0xa50   :  { %11358 = vmatmul.mubr.msk.f32.vlgmr.msra.gmra.mxu1 %vm327_vm1, %v3989_v20 }
 0xa51   :  { %11360 = vmatprep.mubr.msk.f32.mxu1 %vm327_vm1, %v3994_v36 }
 0xa54   :  { %11361 = vmatmul.mubr.msk.f32.gmra.mxu1 %vm327_vm1, %v3999_v33 }
 0xa55   :  { %11363 = vmatprep.mubr.msk.f32.mxu1 %vm327_vm1, %v4004_v40  ;;  %v12436_v40 = vld [vmem:[%s15496_s10 + $0x30] sm:$0xff] }
 0xa58   :  { %11364 = vmatmul.mubr.msk.f32.gmra.mxu1 %vm327_vm1, %v4009_v44 }
 0xa59   :  { %11366 = vmatprep.mubr.msk.f32.mxu1 %vm327_vm1, %v4014_v28 }
 0xa5c   :  { %11367 = vmatmul.mubr.msk.f32.gmra.mxu1 %vm327_vm1, %v4019_v57 }
 0xaf0   :  { %v11311_v19 = vpop.f32.mrf.mxu1 }
 0xaf1   :  { %v13737_v51 = vadd.f32 %v11311_v19, %v3289_v54 }
 0xaf2   :  { %v13739_v45 = vpop.f32.mrf.mxu1 }
 0xaf4   :  { %v11314_v2 = vpop.f32.mrf.mxu1 }
 0xaf5   :  { %v13743_v38 = vadd.f32 %v11314_v2, %v3299_v60 }
 0xaf6   :  { %v13745_v50 = vpop.f32.mrf.mxu1 }
 0xaf8   :  { %v11317_v35 = vpop.f32.mrf.mxu1 }
 0xaf9   :  { %v13749_v55 = vadd.f32 %v11317_v35, %v3309_v61 }
 0xafa   :  { %v13751_v52 = vpop.f32.mrf.mxu1 }
 0xafc   :  { %v11320_v46 = vpop.f32.mrf.mxu1 }
 0xafd   :  { %v13755_v41 = vadd.f32 %v11320_v46, %v3319_v62 }
 0xafe   :  { %v13757_v18 = vpop.f32.mrf.mxu1 }
 0xb10   :  { %v11359_v9 = vpop.f32.mrf.mxu1 }
 0xb11   :  { %v4118_v43 = vadd.f32 %v12429_v30, %v11359_v9 }
 0xb12   :  { %v4112_v22 = vpop.f32.mrf.mxu1 }
 0xb13   :  { %v4113_v34 = vadd.f32 %v12430_v10, %v4112_v22  ;;  %v4154_v59 = vsel %vm2421_vm14, %v4118_v43, -inf }
 0xb14   :  { %4155 = vmax.xlane.f32.xlu1 %v4154_v59  ;;  %v11362_v58 = vpop.f32.mrf.mxu1 }
 0xb15   :  { %v4128_v24 = vadd.f32 %v12431_v14, %v11362_v58  ;;  %v4151_v39 = vsel %vm2421_vm14, %v4113_v34, -inf }
 0xb16   :  { %v4122_v3 = vpop.f32.mrf.mxu1  ;;  %4152 = vmax.xlane.f32.xlu0 %v4151_v39 }
 0xb17   :  { %v4123_v32 = vadd.f32 %v12432_v23, %v4122_v3  ;;  %v4160_v47 = vsel %vm2421_vm14, %v4128_v24, -inf }
 0xb18   :  { %4161 = vmax.xlane.f32.xlu1 %v4160_v47  ;;  %v11365_v49 = vpop.f32.mrf.mxu1 }
 0xb19   :  { %v4138_v48 = vadd.f32 %v12433_v37, %v11365_v49  ;;  %v4157_v6 = vsel %vm2421_vm14, %v4123_v32, -inf }
 0xb1a   :  { %v4132_v8 = vpop.f32.mrf.mxu1  ;;  %4158 = vmax.xlane.f32.xlu0 %v4157_v6 }
 0xb1b   :  { %v4133_v26 = vadd.f32 %v12434_v56, %v4132_v8  ;;  %v4166_v29 = vsel %vm2421_vm14, %v4138_v48, -inf }
 0xb1c   :  { %4167 = vmax.xlane.f32.xlu1 %v4166_v29  ;;  %v11368_v42 = vpop.f32.mrf.mxu1 }
 0xb1d   :  { %v4148_v20 = vadd.f32 %v12435_v31, %v11368_v42  ;;  %v4163_v36 = vsel %vm2421_vm14, %v4133_v26, -inf }
 0xb1e   :  { %v4142_v33 = vpop.f32.mrf.mxu1  ;;  %4164 = vmax.xlane.f32.xlu0 %v4163_v36 }
 0xb1f   :  { %v4143_v44 = vadd.f32 %v12436_v40, %v4142_v33  ;;  %v4172_v28 = vsel %vm2421_vm14, %v4148_v20, -inf }
 0xb20   :  { %4173 = vmax.xlane.f32.xlu1 %v4172_v28 }
 0xb21   :  { %v4169_v57 = vsel %vm2421_vm14, %v4143_v44, -inf }
 0xb22   :  { %4170 = vmax.xlane.f32.xlu0 %v4169_v57 }
 0xb9d   :  { %v4156_v54 = vpop.xlane.xlu1 %4155 }
 0xb9e   :  { %v4176_v19 = vsub.f32 %v4118_v43, %v4156_v54 }
 0xb9f   :  { %v4153_v60 = vpop.xlane.xlu0 %4152 }
 0xba0   :  { %v4185_v2 = vmul.f32 1.442695, %v4176_v19  ;;  %v4175_v61 = vsub.f32 %v4113_v34, %v4153_v60 }
 0xba1   :  { %v4162_v35 = vpop.xlane.xlu1 %4161 }
 0xba2   :  { %12173 = vpow2.f32 %v4185_v2  ;;  %v4183_v62 = vmul.f32 1.442695, %v4175_v61  ;;  %v4178_v46 = vsub.f32 %v4128_v24, %v4162_v35 }
 0xba3   :  { %v4159_v9 = vpop.xlane.xlu0 %4158 }
 0xba4   :  { %12175 = vpow2.f32 %v4183_v62  ;;  %v4189_v30 = vmul.f32 1.442695, %v4178_v46  ;;  %v4177_v22 = vsub.f32 %v4123_v32, %v4159_v9 }
 0xba5   :  { %v4168_v10 = vpop.xlane.xlu1 %4167 }
 0xba6   :  { %12177 = vpow2.f32 %v4189_v30  ;;  %v4187_v59 = vmul.f32 1.442695, %v4177_v22  ;;  %v4180_v58 = vsub.f32 %v4138_v48, %v4168_v10 }
 0xba7   :  { %v4165_v14 = vpop.xlane.xlu0 %4164 }
 0xba8   :  { %12179 = vpow2.f32 %v4187_v59  ;;  %v4193_v39 = vmul.f32 1.442695, %v4180_v58  ;;  %v4179_v3 = vsub.f32 %v4133_v26, %v4165_v14 }
 0xba9   :  { %v4174_v43 = vpop.xlane.xlu1 %4173 }
 0xbaa   :  { %12181 = vpow2.f32 %v4193_v39  ;;  %v4191_v23 = vmul.f32 1.442695, %v4179_v3  ;;  %v4182_v34 = vsub.f32 %v4148_v20, %v4174_v43 }
 0xbab   :  { %v4171_v47 = vpop.xlane.xlu0 %4170 }
 0xbac   :  { %12183 = vpow2.f32 %v4191_v23  ;;  %v4197_v49 = vmul.f32 1.442695, %v4182_v34  ;;  %v4181_v24 = vsub.f32 %v4143_v44, %v4171_v47 }
 0xbae   :  { %12185 = vpow2.f32 %v4197_v49  ;;  %v4195_v37 = vmul.f32 1.442695, %v4181_v24 }
 0xbaf   :  { %v12174_v6 = vpop.eup %12173 }
 0xbb0   :  { %12187 = vpow2.f32 %v4195_v37  ;;  %v4202_v32 = vsel %vm2421_vm14, %v12174_v6, 0.0 }
 0xbb1   :  { %v12176_v8 = vpop.eup %12175  ;;  %4203 = vadd.xlane.f32.xlu1 %v4202_v32 }
 0xbb2   :  { %v4199_v48 = vsel %vm2421_vm14, %v12176_v8, 0.0 }
 0xbb3   :  { %v12178_v56 = vpop.eup %12177  ;;  %4200 = vadd.xlane.f32.xlu0 %v4199_v48  ;;  %v13813_v48 = vld [vmem:[%s15497_s14] sm:$0x3f] }
 0xbb4   :  { %v4208_v26 = vsel %vm2421_vm14, %v12178_v56, 0.0 }
 0xbb5   :  { %v12180_v29 = vpop.eup %12179  ;;  %4209 = vadd.xlane.f32.xlu1 %v4208_v26 }
 0xbb6   :  { %v4205_v42 = vsel %vm2421_vm14, %v12180_v29, 0.0 }
 0xbb7   :  { %v12182_v31 = vpop.eup %12181  ;;  %4206 = vadd.xlane.f32.xlu0 %v4205_v42 }
 0xbb8   :  { %v4214_v20 = vsel %vm2421_vm14, %v12182_v31, 0.0 }
 0xbb9   :  { %v12184_v36 = vpop.eup %12183  ;;  %4215 = vadd.xlane.f32.xlu1 %v4214_v20 }
 0xbba   :  { %v4211_v33 = vsel %vm2421_vm14, %v12184_v36, 0.0 }
 0xbbb   :  { %v12186_v40 = vpop.eup %12185  ;;  %4212 = vadd.xlane.f32.xlu0 %v4211_v33 }
 0xbbc   :  { %v4220_v44 = vsel %vm2421_vm14, %v12186_v40, 0.0 }
 0xbbd   :  { %v12188_v28 = vpop.eup %12187  ;;  %4221 = vadd.xlane.f32.xlu1 %v4220_v44 }
 0xbbe   :  { %v4217_v57 = vsel %vm2421_vm14, %v12188_v28, 0.0 }
 0xbbf   :  { %4218 = vadd.xlane.f32.xlu0 %v4217_v57 }
 0xc3a   :  { %v4204_v54 = vpop.xlane.xlu1 %4203 }
 0xc3b   :  { %12189 = vrcp.f32 %v4204_v54 }
 0xc3c   :  { %v4201_v19 = vpop.xlane.xlu0 %4200 }
 0xc3d   :  { %12191 = vrcp.f32 %v4201_v19 }
 0xc3e   :  { %v4210_v60 = vpop.xlane.xlu1 %4209 }
 0xc3f   :  { %12193 = vrcp.f32 %v4210_v60 }
 0xc40   :  { %v4207_v2 = vpop.xlane.xlu0 %4206 }
 0xc41   :  { %12195 = vrcp.f32 %v4207_v2 }
 0xc42   :  { %v4216_v61 = vpop.xlane.xlu1 %4215 }
 0xc43   :  { %12197 = vrcp.f32 %v4216_v61 }
 0xc44   :  { %v4213_v35 = vpop.xlane.xlu0 %4212 }
 0xc45   :  { %12199 = vrcp.f32 %v4213_v35 }
 0xc46   :  { %v4222_v62 = vpop.xlane.xlu1 %4221 }
 0xc47   :  { %12201 = vrcp.f32 %v4222_v62 }
 0xc48   :  { %v4219_v46 = vpop.xlane.xlu0 %4218  ;;  %v12190_v9 = vpop.eup %12189 }
 0xc49   :  { %12203 = vrcp.f32 %v4219_v46  ;;  %v4232_v10 = vmul.f32 %v12190_v9, %v12174_v6  ;;  %v4494_v6 = vlaneseq }
 0xc4a   :  { %v12192_v30 = vpop.eup %12191 }
 0xc4b   :  { %v4231_v22 = vmul.f32 %v12192_v30, %v12176_v8  ;;  %v13807_v32 = vshrl.u32 %v4494_v6, 7 }
 0xc4c   :  { %v12194_v59 = vpop.eup %12193 }
 0xc4d   :  { %11405 = vmatprep.mubr.msk.f32.mxu0 %vm2421_vm14, %v4231_v22  ;;  %v4234_v39 = vmul.f32 %v12194_v59, %v12178_v56  ;;  %v4496_v8 = vsub.s32 0, %v13807_v32  ;;  %v3284_v56 = vadd.f32 %v13592_v63, %v13499_v16 }
 0xc4e   :  { %v12196_v58 = vpop.eup %12195  ;;  %11406 = vmatmul.mubr.msk.f32.vlgmr.msra.gmra.mxu0 %vm2421_vm14, %v4232_v10 }
 0xc4f   :  { %v4233_v14 = vmul.f32 %v12196_v58, %v12180_v29  ;;  %v3896_v29 = vadd.f32 %v13739_v45, %v3284_v56 }
 0xc50   :  { %v12198_v3 = vpop.eup %12197 }
 0xc51   :  { %11408 = vmatprep.mubr.msk.f32.mxu0 %vm2421_vm14, %v4233_v14  ;;  %v4236_v34 = vmul.f32 %v12198_v3, %v12182_v31  ;;  %v4497_v31 = vrot.slane %v13813_v48, %v4496_v8 }
 0xc52   :  { %v12200_v43 = vpop.eup %12199  ;;  %11409 = vmatmul.mubr.msk.f32.gmra.mxu0 %vm2421_vm14, %v4234_v39 }
 0xc53   :  { %v4235_v23 = vmul.f32 %v12200_v43, %v12184_v36  ;;  %v3294_v36 = vadd.f32 %v13596_v25, %v13507_v53 }
 0xc54   :  { %v12202_v47 = vpop.eup %12201 }
 0xc55   :  { %11411 = vmatprep.mubr.msk.f32.mxu0 %vm2421_vm14, %v4235_v23  ;;  %v4238_v37 = vmul.f32 %v12202_v47, %v12186_v40 }
 0xc56   :  { %v12204_v49 = vpop.eup %12203  ;;  %11412 = vmatmul.mubr.msk.f32.gmra.mxu0 %vm2421_vm14, %v4236_v34 }
 0xc57   :  { %v4237_v24 = vmul.f32 %v12204_v49, %v12188_v28  ;;  %v3898_v28 = vadd.f32 %v13745_v50, %v3294_v36 }
 0xc59   :  { %11414 = vmatprep.mubr.msk.f32.mxu0 %vm2421_vm14, %v4237_v24 }
 0xc5a   :  { %11415 = vmatmul.mubr.msk.f32.gmra.mxu0 %vm2421_vm14, %v4238_v37 }
 0xd0e   :  { %v11407_v26 = vpop.f32.mrf.mxu0 }
 0xd0f   :  { %v4479_v42 = vadd.f32 %v11407_v26, %v13737_v51  ;;  %v3304_v51 = vadd.f32 %v13600_v12, %v13518_v27  ;;  %v3314_v27 = vadd.f32 %v13604_v21, %v13522_v4 }
 0xd10   :  { %v4439_v20 = vpop.f32.mrf.mxu0 }
 0xd11   :  { %v4487_v33 = vadd.f32 %v4479_v42, %v13020_v1  ;;  %v4478_v40 = vadd.f32 %v4439_v20, %v3896_v29  ;;  %v3900_v1 = vadd.f32 %v13751_v52, %v3304_v51  ;;  %v3902_v62 = vadd.f32 %v13757_v18, %v3314_v27 }
 0xd12   :  { %v11410_v44 = vpop.f32.mrf.mxu0 }
 0xd13   :  { %v4486_v16 = vadd.f32 %v4478_v40, %v13018_v0  ;;  %v4481_v63 = vadd.f32 %v11410_v44, %v13743_v38  ;;  %v4499_v45 = vadd.f32 %v4497_v31, %v4487_v33 }
 0xd14   :  { %v4449_v57 = vpop.f32.mrf.mxu0 }
 0xd15   :  { %v4489_v54 = vadd.f32 %v4481_v63, %v13034_v7  ;;  %v4480_v19 = vadd.f32 %v4449_v57, %v3898_v28  ;;  %v4509_v53 = vsel %vm327_vm1, %v4499_v45, 0.0  ;;  %v4498_v25 = vadd.f32 %v4497_v31, %v4486_v16 }
 0xd16   :  { %4510 = vadd.xlane.f32.xlu1 %v4509_v53  ;;  %v11413_v60 = vpop.f32.mrf.mxu0 }
 0xd17   :  { %v4488_v50 = vadd.f32 %v4480_v19, %v13029_v5  ;;  %v4483_v0 = vadd.f32 %v11413_v60, %v13749_v55  ;;  %v4506_v38 = vsel %vm327_vm1, %v4498_v25, 0.0  ;;  %v4501_v2 = vadd.f32 %v4497_v31, %v4489_v54 }
 0xd18   :  { %4507 = vadd.xlane.f32.xlu0 %v4506_v38  ;;  %v4459_v7 = vpop.f32.mrf.mxu0 }
 0xd19   :  { %v4491_v12 = vadd.f32 %v4483_v0, %v13048_v13  ;;  %v4482_v61 = vadd.f32 %v4459_v7, %v3900_v1  ;;  %v4515_v35 = vsel %vm327_vm1, %v4501_v2, 0.0  ;;  %v4500_v52 = vadd.f32 %v4497_v31, %v4488_v50 }
 0xd1a   :  { %4516 = vadd.xlane.f32.xlu1 %v4515_v35  ;;  %v11416_v5 = vpop.f32.mrf.mxu0  ;;  %v4636_v35 = vld [vmem:[%s15498_s11 + $0x8] sm:$0xff] }
 0xd1b   :  { %v4490_v55 = vadd.f32 %v4482_v61, %v13043_v11  ;;  %v4485_v46 = vadd.f32 %v11416_v5, %v13755_v41  ;;  %v4512_v9 = vsel %vm327_vm1, %v4500_v52, 0.0  ;;  %v4503_v30 = vadd.f32 %v4497_v31, %v4491_v12  ;;  %v4638_v12 = vld [vmem:[%s15498_s11 + $0x18] sm:$0xff]  ;;  %v4637_v61 = vld [vmem:[%s15498_s11 + $0x10] sm:$0xff] }
 0xd1c   :  { %4513 = vadd.xlane.f32.xlu0 %v4512_v9  ;;  %v4469_v4 = vpop.f32.mrf.mxu0  ;;  %11417 = vmatprep.subr.mxu1 %v4638_v12 }
 0xd1d   :  { %v4493_v21 = vadd.f32 %v4485_v46, %v13050_v15  ;;  %v4484_v13 = vadd.f32 %v4469_v4, %v3902_v62  ;;  %v4521_v22 = vsel %vm327_vm1, %v4503_v30, 0.0  ;;  %v4502_v10 = vadd.f32 %v4497_v31, %v4490_v55  ;;  %11418 = vmatpush3.msra.mxu1 %v4638_v12 }
 0xd1e   :  { %4522 = vadd.xlane.f32.xlu1 %v4521_v22  ;;  %11419 = vmatprep.subr.mxu1 %v4637_v61 }
 0xd1f   :  { %v4492_v18 = vadd.f32 %v4484_v13, %v13056_v17  ;;  %v4518_v59 = vsel %vm327_vm1, %v4502_v10, 0.0  ;;  %v4505_v58 = vadd.f32 %v4497_v31, %v4493_v21  ;;  %11420 = vmatpush3.msra.mxu1 %v4637_v61 }
 0xd20   :  { %4519 = vadd.xlane.f32.xlu0 %v4518_v59  ;;  %11421 = vmatprep.subr.mxu1 %v4636_v35 }
 0xd21   :  { %v4527_v11 = vsel %vm327_vm1, %v4505_v58, 0.0  ;;  %v4504_v41 = vadd.f32 %v4497_v31, %v4492_v18  ;;  %11422 = vmatpush3.msra.mxu1 %v4636_v35 }
 0xd22   :  { %4528 = vadd.xlane.f32.xlu1 %v4527_v11 }
 0xd23   :  { %v4524_v14 = vsel %vm327_vm1, %v4504_v41, 0.0 }
 0xd24   :  { %4525 = vadd.xlane.f32.xlu0 %v4524_v14 }
 0xd9f   :  { %v4511_v39 = vpop.xlane.xlu1 %4510 }
 0xda0   :  { %v4532_v15 = vmul.f32 0.03125, %v4511_v39 }
 0xda1   :  { %v4508_v3 = vpop.xlane.xlu0 %4507 }
 0xda2   :  { %v13850_v43 = vsub.f32 %v4499_v45, %v4532_v15  ;;  %v4531_v23 = vmul.f32 0.03125, %v4508_v3 }
 0xda3   :  { %v4517_v34 = vpop.xlane.xlu1 %4516 }
 0xda4   :  { %v13852_v47 = vsub.f32 %v4498_v25, %v4531_v23  ;;  %v4534_v17 = vmul.f32 0.03125, %v4517_v34  ;;  %v4548_v49 = vmul.f32 %v13850_v43, %v13850_v43  ;;  %v4613_v23 = vsub.s32 1, %v13807_v32 }
 0xda5   :  { %v4514_v24 = vpop.xlane.xlu0 %4513 }
 0xda6   :  { %v13856_v37 = vsub.f32 %v4501_v2, %v4534_v17  ;;  %v4533_v6 = vmul.f32 0.03125, %v4514_v24  ;;  %v4558_v56 = vsel %vm327_vm1, %v4548_v49, 0.0  ;;  %v4547_v26 = vmul.f32 %v13852_v47, %v13852_v47 }
 0xda7   :  { %v4523_v29 = vpop.xlane.xlu1 %4522  ;;  %4559 = vadd.xlane.f32.xlu1 %v4558_v56  ;;  %v4614_v56 = vrot.slane %v13813_v48, %v4613_v23 }
 0xda8   :  { %v13861_v42 = vsub.f32 %v4500_v52, %v4533_v6  ;;  %v4536_v31 = vmul.f32 0.03125, %v4523_v29  ;;  %v4555_v20 = vsel %vm327_vm1, %v4547_v26, 0.0  ;;  %v4550_v36 = vmul.f32 %v13856_v37, %v13856_v37  ;;  %v4635_v52 = vld [vmem:[%s15498_s11] sm:$0xff] }
 0xda9   :  { %v4520_v33 = vpop.xlane.xlu0 %4519  ;;  %4556 = vadd.xlane.f32.xlu0 %v4555_v20  ;;  %11423 = vmatprep.subr.mxu1 %v4635_v52  ;;  %v4625_v26 = vsub.s32 2, %v13807_v32 }
 0xdaa   :  { %v13866_v40 = vsub.f32 %v4503_v30, %v4536_v31  ;;  %v4535_v44 = vmul.f32 0.03125, %v4520_v33  ;;  %v4564_v28 = vsel %vm327_vm1, %v4550_v36, 0.0  ;;  %v4549_v16 = vmul.f32 %v13861_v42, %v13861_v42  ;;  %11424 = vmatpush3.msra.mxu1 %v4635_v52 }
 0xdab   :  { %4565 = vadd.xlane.f32.xlu1 %v4564_v28  ;;  %v4529_v63 = vpop.xlane.xlu1 %4528  ;;  %v4626_v33 = vrot.slane %v13813_v48, %v4625_v26 }
 0xdac   :  { %v13871_v45 = vsub.f32 %v4502_v10, %v4535_v44  ;;  %v4538_v51 = vmul.f32 0.03125, %v4529_v63  ;;  %v4561_v57 = vsel %vm327_vm1, %v4549_v16, 0.0  ;;  %v4552_v54 = vmul.f32 %v13866_v40, %v13866_v40 }
 0xdad   :  { %4562 = vadd.xlane.f32.xlu0 %v4561_v57  ;;  %v4526_v19 = vpop.xlane.xlu0 %4525 }
 0xdae   :  { %v13876_v53 = vsub.f32 %v4505_v58, %v4538_v51  ;;  %v4537_v25 = vmul.f32 0.03125, %v4526_v19  ;;  %v4570_v1 = vsel %vm327_vm1, %v4552_v54, 0.0  ;;  %v4551_v60 = vmul.f32 %v13871_v45, %v13871_v45 }
 0xdaf   :  { %4571 = vadd.xlane.f32.xlu1 %v4570_v1 }
 0xdb0   :  { %v13881_v50 = vsub.f32 %v4504_v41, %v4537_v25  ;;  %v4567_v0 = vsel %vm327_vm1, %v4551_v60, 0.0  ;;  %v4554_v38 = vmul.f32 %v13876_v53, %v13876_v53 }
 0xdb1   :  { %4568 = vadd.xlane.f32.xlu0 %v4567_v0 }
 0xdb2   :  { %v4576_v2 = vsel %vm327_vm1, %v4554_v38, 0.0  ;;  %v4553_v27 = vmul.f32 %v13881_v50, %v13881_v50 }
 0xdb3   :  { %4577 = vadd.xlane.f32.xlu1 %v4576_v2 }
 0xdb4   :  { %v4573_v7 = vsel %vm327_vm1, %v4553_v27, 0.0 }
 0xdb5   :  { %4574 = vadd.xlane.f32.xlu0 %v4573_v7 }
 0xe30   :  { %v4560_v62 = vpop.xlane.xlu1 %4559 }
 0xe31   :  { %v4580_v5 = vmul.f32 0.03125, %v4560_v62  ;;  %v4853_v62 = vld [vmem:[%s15499_s13 + $0x30] sm:$0xff] }
 0xe32   :  { %v4557_v55 = vpop.xlane.xlu0 %4556 }
 0xe33   :  { %v4588_v46 = vadd.f32 1e-05, %v4580_v5  ;;  %v4579_v9 = vmul.f32 0.03125, %v4557_v55  ;;  %v4852_v5 = vld [vmem:[%s15499_s13 + $0x28] sm:$0xff]  ;;  %v4851_v55 = vld [vmem:[%s15499_s13 + $0x20] sm:$0xff] }
 0xe34   :  { %v4566_v30 = vpop.xlane.xlu1 %4565 }
 0xe35   :  { %12205 = vrsqrt.f32 %v4588_v46  ;;  %v4587_v4 = vadd.f32 1e-05, %v4579_v9  ;;  %v4582_v21 = vmul.f32 0.03125, %v4566_v30  ;;  %v4850_v46 = vld [vmem:[%s15499_s13 + $0x18] sm:$0xff]  ;;  %v4849_v9 = vld [vmem:[%s15499_s13 + $0x10] sm:$0xff]  ;;  %v4848_v30 = vld [vmem:[%s15499_s13 + $0x8] sm:$0xff] }
 0xe36   :  { %v4563_v13 = vpop.xlane.xlu0 %4562 }
 0xe37   :  { %12207 = vrsqrt.f32 %v4587_v4  ;;  %v4590_v22 = vadd.f32 1e-05, %v4582_v21  ;;  %v4581_v10 = vmul.f32 0.03125, %v4563_v13  ;;  %v4847_v4 = vld [vmem:[%s15499_s13] sm:$0xff] }
 0xe38   :  { %v4572_v18 = vpop.xlane.xlu1 %4571  ;;  %v9606_v21 = vld [vmem:[%s15500_s12] ss:$0 sm:$0xff] }
 0xe39   :  { %12209 = vrsqrt.f32 %v4590_v22  ;;  %v4589_v59 = vadd.f32 1e-05, %v4581_v10  ;;  %v4584_v58 = vmul.f32 0.03125, %v4572_v18 }
 0xe3a   :  { %v4569_v11 = vpop.xlane.xlu0 %4568 }
 0xe3b   :  { %12211 = vrsqrt.f32 %v4589_v59  ;;  %v4592_v41 = vadd.f32 1e-05, %v4584_v58  ;;  %v4583_v14 = vmul.f32 0.03125, %v4569_v11 }
 0xe3c   :  { %v4578_v39 = vpop.xlane.xlu1 %4577 }
 0xe3d   :  { %12213 = vrsqrt.f32 %v4592_v41  ;;  %v4591_v15 = vadd.f32 1e-05, %v4583_v14  ;;  %v4586_v3 = vmul.f32 0.03125, %v4578_v39 }
 0xe3e   :  { %v4575_v34 = vpop.xlane.xlu0 %4574 }
 0xe3f   :  { %12215 = vrsqrt.f32 %v4591_v15  ;;  %v4594_v17 = vadd.f32 1e-05, %v4586_v3  ;;  %v4585_v49 = vmul.f32 0.03125, %v4575_v34 }
 0xe41   :  { %12217 = vrsqrt.f32 %v4594_v17  ;;  %v4593_v24 = vadd.f32 1e-05, %v4585_v49 }
 0xe42   :  { %v12206_v6 = vpop.eup %12205 }
 0xe43   :  { %v4604_v29 = vmul.f32 %v12206_v6, %v13850_v43  ;;  %12219 = vrsqrt.f32 %v4593_v24 }
 0xe44   :  { %v12208_v31 = vpop.eup %12207 }
 0xe45   :  { %v4603_v20 = vmul.f32 %v12208_v31, %v13852_v47  ;;  %v4616_v44 = vmul.f32 %v4614_v56, %v4604_v29 }
 0xe46   :  { %v12210_v36 = vpop.eup %12209 }
 0xe47   :  { %v4615_v28 = vmul.f32 %v4614_v56, %v4603_v20  ;;  %v4606_v16 = vmul.f32 %v12210_v36, %v13856_v37  ;;  %v13916_v43 = vadd.f32 %v4626_v33, %v4616_v44 }
 0xe48   :  { %v12212_v63 = vpop.eup %12211 }
 0xe49   :  { %v13913_v51 = vadd.f32 %v4626_v33, %v4615_v28  ;;  %v4605_v57 = vmul.f32 %v12212_v63, %v13861_v42  ;;  %v4618_v19 = vmul.f32 %v4614_v56, %v4606_v16 }
 0xe4a   :  { %v12214_v54 = vpop.eup %12213 }
 0xe4b   :  { %11425 = vmatprep.mubr.msk.f32.mxu1 %vm327_vm1, %v13913_v51  ;;  %v4617_v47 = vmul.f32 %v4614_v56, %v4605_v57  ;;  %v4608_v25 = vmul.f32 %v12214_v54, %v13866_v40  ;;  %v13926_v42 = vadd.f32 %v4626_v33, %v4618_v19 }
 0xe4c   :  { %v12216_v1 = vpop.eup %12215  ;;  %11426 = vmatmul.mubr.msk.f32.vlgmr.msra.gmra.mxu1 %vm327_vm1, %v13916_v43 }
 0xe4d   :  { %v13923_v37 = vadd.f32 %v4626_v33, %v4617_v47  ;;  %v4607_v60 = vmul.f32 %v12216_v1, %v13871_v45  ;;  %v4620_v38 = vmul.f32 %v4614_v56, %v4608_v25 }
 0xe4e   :  { %v12218_v0 = vpop.eup %12217 }
 0xe4f   :  { %11428 = vmatprep.mubr.msk.f32.mxu1 %vm327_vm1, %v13923_v37  ;;  %v4619_v2 = vmul.f32 %v4614_v56, %v4607_v60  ;;  %v4610_v27 = vmul.f32 %v12218_v0, %v13876_v53  ;;  %v13936_v61 = vadd.f32 %v4626_v33, %v4620_v38 }
 0xe50   :  { %v12220_v7 = vpop.eup %12219  ;;  %11429 = vmatmul.mubr.msk.f32.gmra.mxu1 %vm327_vm1, %v13926_v42 }
 0xe51   :  { %v13933_v40 = vadd.f32 %v4626_v33, %v4619_v2  ;;  %v4609_v12 = vmul.f32 %v12220_v7, %v13881_v50  ;;  %v4622_v45 = vmul.f32 %v4614_v56, %v4610_v27  ;;  %v4854_v50 = vld [vmem:[%s15499_s13 + $0x38] sm:$0xff] }
 0xe52   :  { %11437 = vmatprep.subr.mxu0 %v4854_v50 }
 0xe53   :  { %11431 = vmatprep.mubr.msk.f32.mxu1 %vm327_vm1, %v13933_v40  ;;  %v4621_v35 = vmul.f32 %v4614_v56, %v4609_v12  ;;  %v13944_v53 = vadd.f32 %v4626_v33, %v4622_v45  ;;  %11438 = vmatpush3.msra.mxu0 %v4854_v50 }
 0xe54   :  { %11432 = vmatmul.mubr.msk.f32.gmra.mxu1 %vm327_vm1, %v13936_v61  ;;  %11439 = vmatprep.subr.mxu0 %v4853_v62 }
 0xe55   :  { %v13942_v52 = vadd.f32 %v4626_v33, %v4621_v35  ;;  %11440 = vmatpush3.msra.mxu0 %v4853_v62 }
 0xe56   :  { %11441 = vmatprep.subr.mxu0 %v4852_v5 }
 0xe57   :  { %11434 = vmatprep.mubr.msk.f32.mxu1 %vm327_vm1, %v13942_v52  ;;  %11442 = vmatpush3.msra.mxu0 %v4852_v5 }
 0xe58   :  { %11435 = vmatmul.mubr.msk.f32.gmra.mxu1 %vm327_vm1, %v13944_v53  ;;  %11443 = vmatprep.subr.mxu0 %v4851_v55 }
 0xe59   :  { %11444 = vmatpush3.msra.mxu0 %v4851_v55 }
 0xe5a   :  { %11445 = vmatprep.subr.mxu0 %v4850_v46 }
 0xe5b   :  { %11446 = vmatpush3.msra.mxu0 %v4850_v46 }
 0xe5c   :  { %11447 = vmatprep.subr.mxu0 %v4849_v9 }
 0xe5d   :  { %11448 = vmatpush3.msra.mxu0 %v4849_v9 }
 0xe5e   :  { %11449 = vmatprep.subr.mxu0 %v4848_v30 }
 0xe5f   :  { %11450 = vmatpush3.msra.mxu0 %v4848_v30 }
 0xe60   :  { %11451 = vmatprep.subr.mxu0 %v4847_v4 }
 0xe61   :  { %11452 = vmatpush3.msra.mxu0 %v4847_v4 }
 0xf0c   :  { %v11427_v13 = vpop.f32.mrf.mxu1 }
 0xf0d   :  { %v13977_v22 = vadd.f32 %v11427_v13, %v9606_v21 }
 0xf0e   :  { %v4736_v10 = vpop.f32.mrf.mxu1 }
 0xf0f   :  { %v4784_v18 = vmul.f32 0.044715, %v13977_v22  ;;  %v13980_v59 = vadd.f32 %v9606_v21, %v4736_v10 }
 0xf10   :  { %v11430_v58 = vpop.f32.mrf.mxu1 }
 0xf11   :  { %v4792_v11 = vmul.f32 %v4784_v18, %v13977_v22  ;;  %v4783_v41 = vmul.f32 0.044715, %v13980_v59  ;;  %v13984_v14 = vadd.f32 %v11430_v58, %v9606_v21 }
 0xf12   :  { %v4746_v39 = vpop.f32.mrf.mxu1 }
 0xf13   :  { %v4800_v15 = vmul.f32 %v4792_v11, %v13977_v22  ;;  %v4791_v3 = vmul.f32 %v4783_v41, %v13980_v59  ;;  %v4786_v34 = vmul.f32 0.044715, %v13984_v14  ;;  %v13989_v17 = vadd.f32 %v9606_v21, %v4746_v39 }
 0xf14   :  { %v11433_v49 = vpop.f32.mrf.mxu1 }
 0xf15   :  { %v4808_v24 = vadd.f32 %v4800_v15, %v13977_v22  ;;  %v4799_v6 = vmul.f32 %v4791_v3, %v13980_v59  ;;  %v4794_v56 = vmul.f32 %v4786_v34, %v13984_v14  ;;  %v13994_v29 = vadd.f32 %v11433_v49, %v9606_v21 }
 0xf16   :  { %v4785_v31 = vmul.f32 0.044715, %v13989_v17  ;;  %v4756_v20 = vpop.f32.mrf.mxu1  ;;  %v4775_v34 = vmul.f32 0.5, %v13980_v59 }
 0xf17   :  { %v4816_v36 = vmul.f32 0.7978846, %v4808_v24  ;;  %v4802_v33 = vmul.f32 %v4794_v56, %v13984_v14  ;;  %v4788_v44 = vmul.f32 0.044715, %v13994_v29  ;;  %v4757_v16 = vadd.f32 %v9606_v21, %v4756_v20 }
 0xf18   :  { %v4793_v28 = vmul.f32 %v4785_v31, %v13989_v17  ;;  %v11436_v63 = vpop.f32.mrf.mxu1  ;;  %v4807_v57 = vadd.f32 %v4799_v6, %v13980_v59  ;;  %v4776_v24 = vmul.f32 0.5, %v13977_v22 }
 0xf19   :  { %12221 = vtanh.f32 %v4816_v36  ;;  %v4810_v54 = vadd.f32 %v4802_v33, %v13984_v14  ;;  %v4796_v19 = vmul.f32 %v4788_v44, %v13994_v29  ;;  %v14003_v47 = vadd.f32 %v11436_v63, %v9606_v21 }
 0xf1a   :  { %v4801_v25 = vmul.f32 %v4793_v28, %v13989_v17  ;;  %v4787_v1 = vmul.f32 0.044715, %v4757_v16  ;;  %v4766_v60 = vpop.f32.mrf.mxu1  ;;  %v4815_v0 = vmul.f32 0.7978846, %v4807_v57  ;;  %v4777_v33 = vmul.f32 0.5, %v13989_v17 }
 0xf1b   :  { %v4818_v38 = vmul.f32 0.7978846, %v4810_v54  ;;  %v4804_v2 = vmul.f32 %v4796_v19, %v13994_v29  ;;  %v4790_v27 = vmul.f32 0.044715, %v14003_v47  ;;  %v4767_v12 = vadd.f32 %v9606_v21, %v4766_v60 }
 0xf1c   :  { %v4795_v7 = vmul.f32 %v4787_v1, %v4757_v16  ;;  %12223 = vtanh.f32 %v4815_v0  ;;  %v4809_v45 = vadd.f32 %v4801_v25, %v13989_v17  ;;  %v4778_v28 = vmul.f32 0.5, %v13984_v14 }
 0xf1d   :  { %12225 = vtanh.f32 %v4818_v38  ;;  %v4812_v35 = vadd.f32 %v4804_v2, %v13994_v29  ;;  %v4798_v50 = vmul.f32 %v4790_v27, %v14003_v47  ;;  %v4789_v5 = vmul.f32 0.044715, %v4767_v12 }
 0xf1e   :  { %v4803_v62 = vmul.f32 %v4795_v7, %v4757_v16  ;;  %v4817_v55 = vmul.f32 0.7978846, %v4809_v45  ;;  %v4779_v22 = vmul.f32 0.5, %v4757_v16  ;;  %v4780_v1 = vmul.f32 0.5, %v13994_v29 }
 0xf1f   :  { %v4820_v46 = vmul.f32 0.7978846, %v4812_v35  ;;  %v4806_v9 = vmul.f32 %v4798_v50, %v14003_v47  ;;  %v4797_v30 = vmul.f32 %v4789_v5, %v4767_v12  ;;  %v4781_v14 = vmul.f32 0.5, %v4767_v12 }
 0xf20   :  { %12227 = vtanh.f32 %v4817_v55  ;;  %v4811_v4 = vadd.f32 %v4803_v62, %v4757_v16  ;;  %v4782_v27 = vmul.f32 0.5, %v14003_v47  ;;  %v4994_v29 = vsub.s32 3, %v13807_v32 }
 0xf21   :  { %12229 = vtanh.f32 %v4820_v46  ;;  %v4814_v21 = vadd.f32 %v4806_v9, %v14003_v47  ;;  %v4805_v13 = vmul.f32 %v4797_v30, %v4767_v12 }
 0xf22   :  { %v4819_v10 = vmul.f32 0.7978846, %v4811_v4  ;;  %v4995_v16 = vrot.slane %v13813_v48, %v4994_v29 }
 0xf23   :  { %v4822_v18 = vmul.f32 0.7978846, %v4814_v21  ;;  %v4813_v58 = vadd.f32 %v4805_v13, %v4767_v12 }
 0xf24   :  { %12231 = vtanh.f32 %v4819_v10 }
 0xf25   :  { %12233 = vtanh.f32 %v4822_v18  ;;  %v4821_v41 = vmul.f32 0.7978846, %v4813_v58 }
 0xf26   :  { %v12222_v11 = vpop.eup %12221 }
 0xf27   :  { %12235 = vtanh.f32 %v4821_v41  ;;  %v4832_v15 = vadd.f32 1.0, %v12222_v11 }
 0xf29   :  { %v12224_v39 = vpop.eup %12223  ;;  %v4840_v31 = vmul.f32 %v4832_v15, %v4776_v24 }
 0xf2a   :  { %v12226_v3 = vpop.eup %12225  ;;  %v4831_v49 = vadd.f32 1.0, %v12224_v39 }
 0xf2b   :  { %v4834_v20 = vadd.f32 1.0, %v12226_v3 }
 0xf2c   :  { %v4839_v6 = vmul.f32 %v4831_v49, %v4775_v34 }
 0xf2d   :  { %v12228_v56 = vpop.eup %12227  ;;  %v4842_v59 = vmul.f32 %v4834_v20, %v4778_v28 }
 0xf2e   :  { %v12230_v36 = vpop.eup %12229  ;;  %11453 = vmatprep.mubr.msk.f32.mxu0 %vm2421_vm14, %v4839_v6  ;;  %v4833_v44 = vadd.f32 1.0, %v12228_v56 }
 0xf2f   :  { %11454 = vmatmul.mubr.msk.f32.vlgmr.msra.gmra.mxu0 %vm2421_vm14, %v4840_v31  ;;  %v4836_v54 = vadd.f32 1.0, %v12230_v36 }
 0xf30   :  { %v4841_v63 = vmul.f32 %v4833_v44, %v4777_v33 }
 0xf31   :  { %v12232_v57 = vpop.eup %12231  ;;  %v4844_v0 = vmul.f32 %v4836_v54, %v4780_v1 }
 0xf32   :  { %v12234_v19 = vpop.eup %12233  ;;  %11456 = vmatprep.mubr.msk.f32.mxu0 %vm2421_vm14, %v4841_v63  ;;  %v4835_v25 = vadd.f32 1.0, %v12232_v57 }
 0xf33   :  { %11457 = vmatmul.mubr.msk.f32.gmra.mxu0 %vm2421_vm14, %v4842_v59  ;;  %v4838_v38 = vadd.f32 1.0, %v12234_v19 }
 0xf34   :  { %v4843_v60 = vmul.f32 %v4835_v25, %v4779_v22  ;;  %v12236_v17 = vpop.eup %12235 }
 0xf35   :  { %v4837_v2 = vadd.f32 1.0, %v12236_v17  ;;  %v4846_v45 = vmul.f32 %v4838_v38, %v4782_v27 }
 0xf36   :  { %11459 = vmatprep.mubr.msk.f32.mxu0 %vm2421_vm14, %v4843_v60 }
 0xf37   :  { %11460 = vmatmul.mubr.msk.f32.gmra.mxu0 %vm2421_vm14, %v4844_v0  ;;  %v4845_v7 = vmul.f32 %v4837_v2, %v4781_v14 }
 0xf39   :  { %11462 = vmatprep.mubr.msk.f32.mxu0 %vm2421_vm14, %v4845_v7 }
 0xf3b   :  { %11463 = vmatmul.mubr.msk.f32.gmra.mxu0 %vm2421_vm14, %v4846_v45 }
 0xfef   :  { %v11455_v35 = vpop.f32.mrf.mxu0 }
 0xff0   :  { %v4985_v12 = vadd.f32 %v11455_v35, %v13916_v43 }
 0xff1   :  { %v4945_v50 = vpop.f32.mrf.mxu0 }
 0xff2   :  { %v4984_v47 = vadd.f32 %v4945_v50, %v13913_v51  ;;  %v4997_v62 = vadd.f32 %v4995_v16, %v4985_v12 }
 0xff3   :  { %v11458_v5 = vpop.f32.mrf.mxu0 }
 0xff4   :  { %v4987_v55 = vadd.f32 %v11458_v5, %v13926_v42  ;;  %v5007_v46 = vsel %vm327_vm1, %v4997_v62, 0.0  ;;  %v4996_v9 = vadd.f32 %v4995_v16, %v4984_v47 }
 0xff5   :  { %5008 = vadd.xlane.f32.xlu1 %v5007_v46  ;;  %v4955_v30 = vpop.f32.mrf.mxu0 }
 0xff6   :  { %v4986_v4 = vadd.f32 %v4955_v30, %v13923_v37  ;;  %v5004_v21 = vsel %vm327_vm1, %v4996_v9, 0.0  ;;  %v4999_v13 = vadd.f32 %v4995_v16, %v4987_v55 }
 0xff7   :  { %5005 = vadd.xlane.f32.xlu0 %v5004_v21  ;;  %v11461_v10 = vpop.f32.mrf.mxu0 }
 0xff8   :  { %v4989_v43 = vadd.f32 %v11461_v10, %v13936_v61  ;;  %v5013_v51 = vsel %vm327_vm1, %v4999_v13, 0.0  ;;  %v4998_v18 = vadd.f32 %v4995_v16, %v4986_v4 }
 0xff9   :  { %5014 = vadd.xlane.f32.xlu1 %v5013_v51  ;;  %v4965_v58 = vpop.f32.mrf.mxu0  ;;  %v9626_v51 = vld [vmem:[%s15492_s7 + $0x90] sm:$0xff] }
 0xffa   :  { %v4988_v42 = vadd.f32 %v4965_v58, %v13933_v40  ;;  %v5010_v11 = vsel %vm327_vm1, %v4998_v18, 0.0  ;;  %v5001_v41 = vadd.f32 %v4995_v16, %v4989_v43  ;;  %v9627_v43 = vld [vmem:[%s15492_s7 + $0x98] sm:$0xff]  ;;  %v9624_v58 = vld [vmem:[%s15492_s7 + $0x80] sm:$0xff] }
 0xffb   :  { %5011 = vadd.xlane.f32.xlu0 %v5010_v11  ;;  %v11464_v39 = vpop.f32.mrf.mxu0  ;;  %11465 = vmatprep.subr.mxu1 %v9627_v43 }
 0xffc   :  { %v4991_v37 = vadd.f32 %v11464_v39, %v13944_v53  ;;  %v5019_v15 = vsel %vm327_vm1, %v5001_v41, 0.0  ;;  %v5000_v3 = vadd.f32 %v4995_v16, %v4988_v42  ;;  %11466 = vmatpush3.msra.mxu1 %v9627_v43  ;;  %v9657_v42 = vld [vmem:[%s15493_s9 + $0x98] sm:$0xff] }
 0xffd   :  { %5020 = vadd.xlane.f32.xlu1 %v5019_v15  ;;  %v4975_v34 = vpop.f32.mrf.mxu0  ;;  %11467 = vmatprep.subr.mxu1 %v9626_v51 }
 0xffe   :  { %v4990_v61 = vadd.f32 %v4975_v34, %v13942_v52  ;;  %v5016_v49 = vsel %vm327_vm1, %v5000_v3, 0.0  ;;  %v5003_v24 = vadd.f32 %v4995_v16, %v4991_v37  ;;  %11468 = vmatpush3.msra.mxu1 %v9626_v51 }
 0xfff   :  { %5017 = vadd.xlane.f32.xlu0 %v5016_v49 }
0x1000   :  { %v5025_v40 = vsel %vm327_vm1, %v5003_v24, 0.0  ;;  %v5002_v6 = vadd.f32 %v4995_v16, %v4990_v61 }
0x1001   :  { %5026 = vadd.xlane.f32.xlu1 %v5025_v40 }
0x1002   :  { %v5022_v56 = vsel %vm327_vm1, %v5002_v6, 0.0 }
0x1003   :  { %5023 = vadd.xlane.f32.xlu0 %v5022_v56 }
0x107e   :  { %v5009_v31 = vpop.xlane.xlu1 %5008 }
0x107f   :  { %v5029_v53 = vmul.f32 0.03125, %v5009_v31 }
0x1080   :  { %v5006_v20 = vpop.xlane.xlu0 %5005 }
0x1081   :  { %v14047_v36 = vsub.f32 %v4997_v62, %v5029_v53  ;;  %v5028_v33 = vmul.f32 0.03125, %v5006_v20 }
0x1082   :  { %v5015_v44 = vpop.xlane.xlu1 %5014 }
0x1083   :  { %v14049_v28 = vsub.f32 %v4996_v9, %v5028_v33  ;;  %v5031_v52 = vmul.f32 0.03125, %v5015_v44  ;;  %v5045_v63 = vmul.f32 %v14047_v36, %v14047_v36 }
0x1084   :  { %v5012_v57 = vpop.xlane.xlu0 %5011 }
0x1085   :  { %v14053_v59 = vsub.f32 %v4999_v13, %v5031_v52  ;;  %v5030_v54 = vmul.f32 0.03125, %v5012_v57  ;;  %v5055_v19 = vsel %vm327_vm1, %v5045_v63, 0.0  ;;  %v5044_v22 = vmul.f32 %v14049_v28, %v14049_v28 }
0x1086   :  { %v5021_v25 = vpop.xlane.xlu1 %5020  ;;  %5056 = vadd.xlane.f32.xlu1 %v5055_v19  ;;  %v5110_v57 = vsub.s32 4, %v13807_v32 }
0x1087   :  { %v14058_v1 = vsub.f32 %v4998_v18, %v5030_v54  ;;  %v5033_v60 = vmul.f32 0.03125, %v5021_v25  ;;  %v5052_v17 = vsel %vm327_vm1, %v5044_v22, 0.0  ;;  %v5047_v0 = vmul.f32 %v14053_v59, %v14053_v59  ;;  %v9625_v18 = vld [vmem:[%s15492_s7 + $0x88] sm:$0xff] }
0x1088   :  { %5053 = vadd.xlane.f32.xlu0 %v5052_v17  ;;  %v5018_v38 = vpop.xlane.xlu0 %5017  ;;  %11469 = vmatprep.subr.mxu1 %v9625_v18  ;;  %v5122_v17 = vsub.s32 5, %v13807_v32 }
0x1089   :  { %v14063_v14 = vsub.f32 %v5001_v41, %v5033_v60  ;;  %v5032_v2 = vmul.f32 0.03125, %v5018_v38  ;;  %v5061_v27 = vsel %vm327_vm1, %v5047_v0, 0.0  ;;  %v5046_v7 = vmul.f32 %v14058_v1, %v14058_v1  ;;  %11470 = vmatpush3.msra.mxu1 %v9625_v18 }
0x108a   :  { %5062 = vadd.xlane.f32.xlu1 %v5061_v27  ;;  %v5027_v45 = vpop.xlane.xlu1 %5026  ;;  %11471 = vmatprep.subr.mxu1 %v9624_v58  ;;  %v5111_v0 = vrot.slane %v13813_v48, %v5110_v57 }
0x108b   :  { %v14068_v16 = vsub.f32 %v5000_v3, %v5032_v2  ;;  %v5035_v35 = vmul.f32 0.03125, %v5027_v45  ;;  %v5058_v12 = vsel %vm327_vm1, %v5046_v7, 0.0  ;;  %v5049_v50 = vmul.f32 %v14063_v14, %v14063_v14  ;;  %11472 = vmatpush3.msra.mxu1 %v9624_v58 }
0x108c   :  { %5059 = vadd.xlane.f32.xlu0 %v5058_v12  ;;  %v5024_v47 = vpop.xlane.xlu0 %5023  ;;  %11513 = vmatprep.subr.mxu1 %v9657_v42  ;;  %v5123_v45 = vrot.slane %v13813_v48, %v5122_v17  ;;  %v9656_v48 = vld [vmem:[%s15493_s9 + $0x90] sm:$0xff] }
0x108d   :  { %v14073_v62 = vsub.f32 %v5003_v24, %v5035_v35  ;;  %v5034_v5 = vmul.f32 0.03125, %v5024_v47  ;;  %v5067_v55 = vsel %vm327_vm1, %v5049_v50, 0.0  ;;  %v5048_v46 = vmul.f32 %v14068_v16, %v14068_v16 }
0x108e   :  { %5068 = vadd.xlane.f32.xlu1 %v5067_v55 }
0x108f   :  { %v14078_v9 = vsub.f32 %v5002_v6, %v5034_v5  ;;  %v5064_v30 = vsel %vm327_vm1, %v5048_v46, 0.0  ;;  %v5051_v4 = vmul.f32 %v14073_v62, %v14073_v62 }
0x1090   :  { %5065 = vadd.xlane.f32.xlu0 %v5064_v30 }
0x1091   :  { %v5073_v21 = vsel %vm327_vm1, %v5051_v4, 0.0  ;;  %v5050_v13 = vmul.f32 %v14078_v9, %v14078_v9 }
0x1092   :  { %5074 = vadd.xlane.f32.xlu1 %v5073_v21 }
0x1093   :  { %v5070_v10 = vsel %vm327_vm1, %v5050_v13, 0.0 }
0x1094   :  { %5071 = vadd.xlane.f32.xlu0 %v5070_v10 }
0x110f   :  { %v5057_v11 = vpop.xlane.xlu1 %5056 }
0x1110   :  { %v5077_v41 = vmul.f32 0.03125, %v5057_v11 }
0x1111   :  { %v5054_v39 = vpop.xlane.xlu0 %5053 }
0x1112   :  { %v5085_v37 = vadd.f32 1e-05, %v5077_v41  ;;  %v5076_v15 = vmul.f32 0.03125, %v5054_v39 }
0x1113   :  { %v5063_v3 = vpop.xlane.xlu1 %5062 }
0x1114   :  { %12237 = vrsqrt.f32 %v5085_v37  ;;  %v5084_v34 = vadd.f32 1e-05, %v5076_v15  ;;  %v5079_v61 = vmul.f32 0.03125, %v5063_v3  ;;  %v9668_v3 = vld [vmem:[%s15492_s7 + $0xb0] sm:$0xff] }
0x1115   :  { %v5060_v49 = vpop.xlane.xlu0 %5059 }
0x1116   :  { %12239 = vrsqrt.f32 %v5084_v34  ;;  %v5087_v24 = vadd.f32 1e-05, %v5079_v61  ;;  %v5078_v40 = vmul.f32 0.03125, %v5060_v49  ;;  %v9667_v34 = vld [vmem:[%s15492_s7 + $0xa8] sm:$0xff]  ;;  %v9666_v61 = vld [vmem:[%s15492_s7 + $0xa0] sm:$0xff]  ;;  %v9699_v49 = vld [vmem:[%s15493_s9 + $0xb8] sm:$0xff] }
0x1117   :  { %v5069_v6 = vpop.xlane.xlu1 %5068 }
0x1118   :  { %12241 = vrsqrt.f32 %v5087_v24  ;;  %v5086_v56 = vadd.f32 1e-05, %v5078_v40  ;;  %v5081_v31 = vmul.f32 0.03125, %v5069_v6  ;;  %v9698_v24 = vld [vmem:[%s15493_s9 + $0xb0] sm:$0xff]  ;;  %v9697_v40 = vld [vmem:[%s15493_s9 + $0xa8] sm:$0xff]  ;;  %v9696_v6 = vld [vmem:[%s15493_s9 + $0xa0] sm:$0xff] }
0x1119   :  { %v5066_v53 = vpop.xlane.xlu0 %5065 }
0x111a   :  { %12243 = vrsqrt.f32 %v5086_v56  ;;  %v5089_v20 = vadd.f32 1e-05, %v5081_v31  ;;  %v5080_v33 = vmul.f32 0.03125, %v5066_v53  ;;  %v9629_v31 = vld [vmem:[%s15495_s8 + $0x4] ss:$0 sm:$0xff] }
0x111b   :  { %v5075_v44 = vpop.xlane.xlu1 %5074 }
0x111c   :  { %12245 = vrsqrt.f32 %v5089_v20  ;;  %v5088_v52 = vadd.f32 1e-05, %v5080_v33  ;;  %v5083_v63 = vmul.f32 0.03125, %v5075_v44 }
0x111d   :  { %v5072_v54 = vpop.xlane.xlu0 %5071 }
0x111e   :  { %12247 = vrsqrt.f32 %v5088_v52  ;;  %v5091_v19 = vadd.f32 1e-05, %v5083_v63  ;;  %v5082_v22 = vmul.f32 0.03125, %v5072_v54 }
0x1120   :  { %12249 = vrsqrt.f32 %v5091_v19  ;;  %v5090_v25 = vadd.f32 1e-05, %v5082_v22 }
0x1121   :  { %v12238_v60 = vpop.eup %12237 }
0x1122   :  { %v5101_v38 = vmul.f32 %v12238_v60, %v14047_v36  ;;  %12251 = vrsqrt.f32 %v5090_v25 }
0x1123   :  { %v12240_v2 = vpop.eup %12239 }
0x1124   :  { %v5100_v27 = vmul.f32 %v12240_v2, %v14049_v28  ;;  %v5113_v35 = vmul.f32 %v5111_v0, %v5101_v38 }
0x1125   :  { %v12242_v7 = vpop.eup %12241 }
0x1126   :  { %v5112_v12 = vmul.f32 %v5111_v0, %v5100_v27  ;;  %v5103_v50 = vmul.f32 %v12242_v7, %v14053_v59  ;;  %v14116_v36 = vadd.f32 %v5123_v45, %v5113_v35 }
0x1127   :  { %v12244_v47 = vpop.eup %12243 }
0x1128   :  { %v14113_v5 = vadd.f32 %v5123_v45, %v5112_v12  ;;  %v5102_v55 = vmul.f32 %v12244_v47, %v14058_v1  ;;  %v5115_v30 = vmul.f32 %v5111_v0, %v5103_v50 }
0x1129   :  { %v12246_v46 = vpop.eup %12245 }
0x112a   :  { %v5114_v4 = vmul.f32 %v5111_v0, %v5102_v55  ;;  %v5105_v28 = vmul.f32 %v12246_v46, %v14063_v14  ;;  %11473 = vmatprep.mubr.msk.f32.mxu1 %vm327_vm1, %v14113_v5  ;;  %v9655_v14 = vld [vmem:[%s15493_s9 + $0x88] sm:$0xff]  ;;  %v14132_v10 = vadd.f32 %v5123_v45, %v5115_v30 }
0x112b   :  { %v12248_v59 = vpop.eup %12247  ;;  %11474 = vmatmul.mubr.msk.f32.vlgmr.msra.gmra.mxu1 %vm327_vm1, %v14116_v36 }
0x112c   :  { %v14126_v21 = vadd.f32 %v5123_v45, %v5114_v4  ;;  %v5104_v1 = vmul.f32 %v12248_v59, %v14068_v16  ;;  %11514 = vmatpush3.msra.mxu1 %v9657_v42  ;;  %v5117_v43 = vmul.f32 %v5111_v0, %v5105_v28  ;;  %v9654_v16 = vld [vmem:[%s15493_s9 + $0x80] sm:$0xff] }
0x112d   :  { %v12250_v13 = vpop.eup %12249  ;;  %11515 = vmatprep.subr.mxu1 %v9656_v48  ;;  %v9671_v4 = vld [vmem:[%s15495_s8 + $0x5] ss:$0 sm:$0xff] }
0x112e   :  { %v5116_v51 = vmul.f32 %v5111_v0, %v5104_v1  ;;  %v5107_v18 = vmul.f32 %v12250_v13, %v14073_v62  ;;  %11476 = vmatprep.mubr.msk.f32.mxu1 %vm327_vm1, %v14126_v21  ;;  %11516 = vmatpush3.msra.mxu1 %v9656_v48  ;;  %v9669_v62 = vld [vmem:[%s15492_s7 + $0xb8] sm:$0xff]  ;;  %v14148_v39 = vadd.f32 %v5123_v45, %v5117_v43 }
0x112f   :  { %v12252_v58 = vpop.eup %12251  ;;  %11477 = vmatmul.mubr.msk.f32.gmra.mxu1 %vm327_vm1, %v14132_v10  ;;  %11517 = vmatprep.subr.mxu1 %v9655_v14 }
0x1130   :  { %v14142_v42 = vadd.f32 %v5123_v45, %v5116_v51  ;;  %v5119_v11 = vmul.f32 %v5111_v0, %v5107_v18  ;;  %v5106_v41 = vmul.f32 %v12252_v58, %v14078_v9  ;;  %11518 = vmatpush3.msra.mxu1 %v9655_v14 }
0x1131   :  { %11519 = vmatprep.subr.mxu1 %v9654_v16 }
0x1132   :  { %v14150_v37 = vadd.f32 %v5123_v45, %v5119_v11  ;;  %v5118_v15 = vmul.f32 %v5111_v0, %v5106_v41  ;;  %11479 = vmatprep.mubr.msk.f32.mxu1 %vm327_vm1, %v14142_v42  ;;  %11520 = vmatpush3.msra.mxu1 %v9654_v16 }
0x1133   :  { %11480 = vmatmul.mubr.msk.f32.gmra.mxu1 %vm327_vm1, %v14148_v39  ;;  %11533 = vmatprep.subr.mxu1 %v9669_v62 }
0x1134   :  { %v14156_v9 = vadd.f32 %v5123_v45, %v5118_v15  ;;  %11485 = vmatprep.subr.msk.mxu0 %vm327_vm1, %v14150_v37 }
0x1135   :  { %11486 = vmatpush3.xpose.msk.msra.mxu0 %vm327_vm1, %v14150_v37 }
0x1136   :  { %11482 = vmatprep.mubr.msk.f32.mxu1 %vm327_vm1, %v14156_v9  ;;  %11487 = vmatprep.subr.msk.mxu0 %vm327_vm1, %v14156_v9 }
0x1137   :  { %11483 = vmatmul.mubr.msk.f32.gmra.mxu1 %vm327_vm1, %v14150_v37 }
0x1138   :  { %11521 = vmatprep.mubr.msk.f32.mxu1 %vm327_vm1, %v14113_v5 }
0x1139   :  { %11488 = vmatpush3.xpose.msk.msra.mxu0 %vm327_vm1, %v14156_v9 }
0x113a   :  { %11489 = vmatprep.subr.msk.mxu0 %vm327_vm1, %v14148_v39 }
0x113b   :  { %11522 = vmatmul.mubr.msk.f32.vlgmr.msra.gmra.mxu1 %vm327_vm1, %v14116_v36 }
0x113c   :  { %11524 = vmatprep.mubr.msk.f32.mxu1 %vm327_vm1, %v14126_v21  ;;  %11534 = vmatpush3.msra.mxu1 %v9669_v62 }
0x113d   :  { %11490 = vmatpush3.xpose.msk.msra.mxu0 %vm327_vm1, %v14148_v39  ;;  %11535 = vmatprep.subr.mxu1 %v9668_v3 }
0x113e   :  { %11491 = vmatprep.subr.msk.mxu0 %vm327_vm1, %v14142_v42  ;;  %11536 = vmatpush3.msra.mxu1 %v9668_v3 }
0x113f   :  { %11525 = vmatmul.mubr.msk.f32.gmra.mxu1 %vm327_vm1, %v14132_v10  ;;  %11537 = vmatprep.subr.mxu1 %v9667_v34 }
0x1140   :  { %11527 = vmatprep.mubr.msk.f32.mxu1 %vm327_vm1, %v14142_v42  ;;  %11538 = vmatpush3.msra.mxu1 %v9667_v34 }
0x1141   :  { %11492 = vmatpush3.xpose.msk.msra.mxu0 %vm327_vm1, %v14142_v42  ;;  %11539 = vmatprep.subr.mxu1 %v9666_v61 }
0x1142   :  { %11493 = vmatprep.subr.msk.mxu0 %vm327_vm1, %v14132_v10  ;;  %11540 = vmatpush3.msra.mxu1 %v9666_v61 }
0x1143   :  { %11528 = vmatmul.mubr.msk.f32.gmra.mxu1 %vm327_vm1, %v14148_v39  ;;  %11581 = vmatprep.subr.mxu1 %v9699_v49 }
0x1144   :  { %11530 = vmatprep.mubr.msk.f32.mxu1 %vm327_vm1, %v14156_v9 }
0x1145   :  { %11494 = vmatpush3.xpose.msk.msra.mxu0 %vm327_vm1, %v14132_v10 }
0x1146   :  { %11495 = vmatprep.subr.msk.mxu0 %vm327_vm1, %v14126_v21 }
0x1147   :  { %11531 = vmatmul.mubr.msk.f32.gmra.mxu1 %vm327_vm1, %v14150_v37 }
0x1148   :  { %11541 = vmatprep.mubr.msk.f32.mxu1 %vm327_vm1, %v14113_v5 }
0x1149   :  { %11496 = vmatpush3.xpose.msk.msra.mxu0 %vm327_vm1, %v14126_v21 }
0x114a   :  { %11497 = vmatprep.subr.msk.mxu0 %vm327_vm1, %v14116_v36 }
0x114b   :  { %11542 = vmatmul.mubr.msk.f32.vlgmr.msra.gmra.mxu1 %vm327_vm1, %v14116_v36 }
0x114c   :  { %11544 = vmatprep.mubr.msk.f32.mxu1 %vm327_vm1, %v14126_v21  ;;  %11582 = vmatpush3.msra.mxu1 %v9699_v49 }
0x114d   :  { %11498 = vmatpush3.xpose.msk.msra.mxu0 %vm327_vm1, %v14116_v36  ;;  %11583 = vmatprep.subr.mxu1 %v9698_v24 }
0x114e   :  { %11499 = vmatprep.subr.msk.mxu0 %vm327_vm1, %v14113_v5  ;;  %11584 = vmatpush3.msra.mxu1 %v9698_v24 }
0x114f   :  { %11545 = vmatmul.mubr.msk.f32.gmra.mxu1 %vm327_vm1, %v14132_v10  ;;  %11585 = vmatprep.subr.mxu1 %v9697_v40 }
0x1150   :  { %11547 = vmatprep.mubr.msk.f32.mxu1 %vm327_vm1, %v14142_v42  ;;  %11586 = vmatpush3.msra.mxu1 %v9697_v40 }
0x1151   :  { %11500 = vmatpush3.xpose.msk.msra.mxu0 %vm327_vm1, %v14113_v5  ;;  %11587 = vmatprep.subr.mxu1 %v9696_v6 }
0x1152   :  { %11553 = vmatprep.subr.msk.mxu0 %vm327_vm1, %v14150_v37  ;;  %11588 = vmatpush3.msra.mxu1 %v9696_v6 }
0x1153   :  { %11548 = vmatmul.mubr.msk.f32.gmra.mxu1 %vm327_vm1, %v14148_v39 }
0x1154   :  { %11550 = vmatprep.mubr.msk.f32.mxu1 %vm327_vm1, %v14156_v9 }
0x1157   :  { %11551 = vmatmul.mubr.msk.f32.gmra.mxu1 %vm327_vm1, %v14150_v37 }
0x1158   :  { %11589 = vmatprep.mubr.msk.f32.mxu1 %vm327_vm1, %v14113_v5 }
0x115b   :  { %11590 = vmatmul.mubr.msk.f32.vlgmr.msra.gmra.mxu1 %vm327_vm1, %v14116_v36 }
0x115c   :  { %11592 = vmatprep.mubr.msk.f32.mxu1 %vm327_vm1, %v14126_v21 }
0x115f   :  { %11593 = vmatmul.mubr.msk.f32.gmra.mxu1 %vm327_vm1, %v14132_v10 }
0x1160   :  { %11595 = vmatprep.mubr.msk.f32.mxu1 %vm327_vm1, %v14142_v42 }
0x1163   :  { %11596 = vmatmul.mubr.msk.f32.gmra.mxu1 %vm327_vm1, %v14148_v39 }
0x1164   :  { %11598 = vmatprep.mubr.msk.f32.mxu1 %vm327_vm1, %v14156_v9 }
0x1167   :  { %11599 = vmatmul.mubr.msk.f32.gmra.mxu1 %vm327_vm1, %v14150_v37 }
0x11eb   :  { %v11475_v56 = vpop.f32.mrf.mxu1 }
0x11ec   :  { %v5243_v33 = vadd.f32 %v11475_v56, %v9629_v31 }
0x11ed   :  { %v5237_v53 = vpop.f32.mrf.mxu1 }
0x11ee   :  { %v5238_v20 = vadd.f32 %v9629_v31, %v5237_v53 }
0x11ef   :  { %v11478_v44 = vpop.f32.mrf.mxu1 }
0x11f0   :  { %11501 = vmatprep.mubr.msk.f32.mxu0 %vm327_vm1, %v5238_v20  ;;  %v5253_v54 = vadd.f32 %v11478_v44, %v9629_v31 }
0x11f1   :  { %v5247_v52 = vpop.f32.mrf.mxu1  ;;  %11502 = vmatmul.mubr.msk.f32.vlgmr.msra.gmra.mxu0 %vm327_vm1, %v5243_v33 }
0x11f2   :  { %v5248_v63 = vadd.f32 %v9629_v31, %v5247_v52  ;;  %11554 = vmatpush3.xpose.msk.msra.mxu0 %vm327_vm1, %v14150_v37 }
0x11f3   :  { %11555 = vmatprep.subr.msk.mxu0 %vm327_vm1, %v14156_v9  ;;  %v11481_v19 = vpop.f32.mrf.mxu1 }
0x11f4   :  { %11504 = vmatprep.mubr.msk.f32.mxu0 %vm327_vm1, %v5248_v63  ;;  %v5263_v60 = vadd.f32 %v11481_v19, %v9629_v31 }
0x11f5   :  { %v5257_v22 = vpop.f32.mrf.mxu1  ;;  %11505 = vmatmul.mubr.msk.f32.gmra.mxu0 %vm327_vm1, %v5253_v54 }
0x11f6   :  { %v5258_v25 = vadd.f32 %v9629_v31, %v5257_v22  ;;  %11556 = vmatpush3.xpose.msk.msra.mxu0 %vm327_vm1, %v14156_v9  ;;  %v14338_v22 = vld [vmem:[%s15496_s10 + $0x8] sm:$0xff] }
0x11f7   :  { %11557 = vmatprep.subr.msk.mxu0 %vm327_vm1, %v14148_v39  ;;  %v11484_v0 = vpop.f32.mrf.mxu1 }
0x11f8   :  { %11507 = vmatprep.mubr.msk.f32.mxu0 %vm327_vm1, %v5258_v25  ;;  %v5273_v27 = vadd.f32 %v11484_v0, %v9629_v31  ;;  %v14344_v0 = vld [vmem:[%s15496_s10] sm:$0xff] }
0x11f9   :  { %v5267_v38 = vpop.f32.mrf.mxu1  ;;  %11508 = vmatmul.mubr.msk.f32.gmra.mxu0 %vm327_vm1, %v5263_v60 }
0x11fa   :  { %v5268_v2 = vadd.f32 %v9629_v31, %v5267_v38  ;;  %11558 = vmatpush3.xpose.msk.msra.mxu0 %vm327_vm1, %v14148_v39 }
0x11fb   :  { %11559 = vmatprep.subr.msk.mxu0 %vm327_vm1, %v14142_v42  ;;  %v11523_v7 = vpop.f32.mrf.mxu1 }
0x11fc   :  { %11510 = vmatprep.mubr.msk.f32.mxu0 %vm327_vm1, %v5268_v2 }
0x11fd   :  { %11511 = vmatmul.mubr.msk.f32.gmra.mxu0 %vm327_vm1, %v5273_v27  ;;  %v5564_v45 = vpop.f32.mrf.mxu1 }
0x11fe   :  { %11560 = vmatpush3.xpose.msk.msra.mxu0 %vm327_vm1, %v14142_v42 }
0x11ff   :  { %11561 = vmatprep.subr.msk.mxu0 %vm327_vm1, %v14132_v10  ;;  %v11526_v35 = vpop.f32.mrf.mxu1 }
0x1201   :  { %v5574_v12 = vpop.f32.mrf.mxu1 }
0x1202   :  { %11562 = vmatpush3.xpose.msk.msra.mxu0 %vm327_vm1, %v14132_v10 }
0x1203   :  { %11563 = vmatprep.subr.msk.mxu0 %vm327_vm1, %v14126_v21  ;;  %v11529_v50 = vpop.f32.mrf.mxu1 }
0x1205   :  { %v5584_v47 = vpop.f32.mrf.mxu1 }
0x1206   :  { %11564 = vmatpush3.xpose.msk.msra.mxu0 %vm327_vm1, %v14126_v21 }
0x1207   :  { %11565 = vmatprep.subr.msk.mxu0 %vm327_vm1, %v14116_v36  ;;  %v11532_v55 = vpop.f32.mrf.mxu1 }
0x1209   :  { %v5594_v46 = vpop.f32.mrf.mxu1 }
0x120a   :  { %11566 = vmatpush3.xpose.msk.msra.mxu0 %vm327_vm1, %v14116_v36 }
0x120b   :  { %11567 = vmatprep.subr.msk.mxu0 %vm327_vm1, %v14113_v5  ;;  %v11543_v30 = vpop.f32.mrf.mxu1 }
0x120c   :  { %v5688_v59 = vadd.f32 %v11543_v30, %v9671_v4  ;;  %v14365_v30 = vld [vmem:[%s15496_s10 + $0x28] sm:$0xff] }
0x120d   :  { %v5682_v28 = vpop.f32.mrf.mxu1 }
0x120e   :  { %v5683_v48 = vadd.f32 %v9671_v4, %v5682_v28  ;;  %11568 = vmatpush3.xpose.msk.msra.mxu0 %vm327_vm1, %v14113_v5 }
0x120f   :  { %11629 = vmatprep.subr.mxu0 %v11532_v55  ;;  %v11546_v1 = vpop.f32.mrf.mxu1 }
0x1210   :  { %11569 = vmatprep.mubr.msk.f32.mxu0 %vm327_vm1, %v5683_v48  ;;  %v5698_v43 = vadd.f32 %v11546_v1, %v9671_v4 }
0x1211   :  { %v5692_v14 = vpop.f32.mrf.mxu1  ;;  %11570 = vmatmul.mubr.msk.f32.vlgmr.msra.gmra.mxu0 %vm327_vm1, %v5688_v59  ;;  %v14372_v59 = vld [vmem:[%s15496_s10 + $0x20] sm:$0xff] }
0x1212   :  { %v5693_v13 = vadd.f32 %v9671_v4, %v5692_v14  ;;  %11630 = vmatpush3.msra.mxu0 %v11532_v55 }
0x1213   :  { %11631 = vmatprep.subr.mxu0 %v5594_v46  ;;  %v11549_v51 = vpop.f32.mrf.mxu1 }
0x1214   :  { %11632 = vmatpush3.msra.mxu0 %v5594_v46  ;;  %11572 = vmatprep.mubr.msk.f32.mxu0 %vm327_vm1, %v5693_v13  ;;  %v5708_v58 = vadd.f32 %v11549_v51, %v9671_v4 }
0x1215   :  { %11633 = vmatprep.subr.mxu0 %v11529_v50  ;;  %v5702_v18 = vpop.f32.mrf.mxu1  ;;  %11573 = vmatmul.mubr.msk.f32.gmra.mxu0 %vm327_vm1, %v5698_v43  ;;  %v14379_v43 = vld [vmem:[%s15496_s10 + $0x38] sm:$0xff] }
0x1216   :  { %v5703_v16 = vadd.f32 %v9671_v4, %v5702_v18  ;;  %11634 = vmatpush3.msra.mxu0 %v11529_v50  ;;  %v14358_v50 = vld [vmem:[%s15496_s10 + $0x10] sm:$0xff] }
0x1217   :  { %11635 = vmatprep.subr.mxu0 %v5584_v47  ;;  %v11552_v11 = vpop.f32.mrf.mxu1 }
0x1218   :  { %11636 = vmatpush3.msra.mxu0 %v5584_v47  ;;  %11575 = vmatprep.mubr.msk.f32.mxu0 %vm327_vm1, %v5703_v16  ;;  %v5718_v15 = vadd.f32 %v11552_v11, %v9671_v4 }
0x1219   :  { %11637 = vmatprep.subr.mxu0 %v11526_v35  ;;  %v5712_v41 = vpop.f32.mrf.mxu1  ;;  %11576 = vmatmul.mubr.msk.f32.gmra.mxu0 %vm327_vm1, %v5708_v58  ;;  %v14386_v58 = vld [vmem:[%s15496_s10 + $0x30] sm:$0xff] }
0x121a   :  { %v5713_v62 = vadd.f32 %v9671_v4, %v5712_v41  ;;  %11638 = vmatpush3.msra.mxu0 %v11526_v35 }
0x121b   :  { %11639 = vmatprep.subr.mxu0 %v5574_v12  ;;  %v11591_v3 = vpop.f32.mrf.mxu1 }
0x121c   :  { %11640 = vmatpush3.msra.mxu0 %v5574_v12  ;;  %11578 = vmatprep.mubr.msk.f32.mxu0 %vm327_vm1, %v5713_v62 }
0x121d   :  { %11641 = vmatprep.subr.mxu0 %v11523_v7  ;;  %11579 = vmatmul.mubr.msk.f32.gmra.mxu0 %vm327_vm1, %v5718_v15  ;;  %v6009_v34 = vpop.f32.mrf.mxu1 }
0x121e   :  { %11642 = vmatpush3.msra.mxu0 %v11523_v7  ;;  %v14351_v7 = vld [vmem:[%s15496_s10 + $0x18] sm:$0xff] }
0x121f   :  { %11643 = vmatprep.subr.mxu0 %v5564_v45  ;;  %v11594_v61 = vpop.f32.mrf.mxu1 }
0x1220   :  { %11644 = vmatpush3.msra.mxu0 %v5564_v45 }
0x1221   :  { %11677 = vmatprep.subr.msk.mxu0 %vm327_vm1, %v14150_v37  ;;  %v6019_v49 = vpop.f32.mrf.mxu1 }
0x1223   :  { %v11597_v24 = vpop.f32.mrf.mxu1 }
0x1225   :  { %v6029_v40 = vpop.f32.mrf.mxu1 }
0x1227   :  { %v11600_v6 = vpop.f32.mrf.mxu1 }
0x1228   :  { %11601 = vmatprep.subr.mxu1 %v11600_v6 }
0x1229   :  { %v6039_v56 = vpop.f32.mrf.mxu1  ;;  %11602 = vmatpush3.msra.mxu1 %v11600_v6 }
0x122a   :  { %11603 = vmatprep.subr.mxu1 %v6039_v56 }
0x122b   :  { %11604 = vmatpush3.msra.mxu1 %v6039_v56 }
0x122c   :  { %11605 = vmatprep.subr.mxu1 %v11597_v24 }
0x122d   :  { %11606 = vmatpush3.msra.mxu1 %v11597_v24 }
0x122e   :  { %11607 = vmatprep.subr.mxu1 %v6029_v40 }
0x122f   :  { %11608 = vmatpush3.msra.mxu1 %v6029_v40 }
0x1230   :  { %11609 = vmatprep.subr.mxu1 %v11594_v61 }
0x1231   :  { %11610 = vmatpush3.msra.mxu1 %v11594_v61 }
0x1232   :  { %11611 = vmatprep.subr.mxu1 %v6019_v49 }
0x1233   :  { %11612 = vmatpush3.msra.mxu1 %v6019_v49 }
0x1234   :  { %11613 = vmatprep.subr.mxu1 %v11591_v3 }
0x1235   :  { %11614 = vmatpush3.msra.mxu1 %v11591_v3 }
0x1236   :  { %11615 = vmatprep.subr.mxu1 %v6009_v34 }
0x1237   :  { %11616 = vmatpush3.msra.mxu1 %v6009_v34 }
0x12b1   :  { %v14319_v31 = vpop.f32.mrf.mxu0 }
0x12b3   :  { %v14321_v53 = vpop.f32.mrf.mxu0 }
0x12b5   :  { %v14323_v20 = vpop.f32.mrf.mxu0 }
0x12b7   :  { %v14325_v33 = vpop.f32.mrf.mxu0 }
0x12b9   :  { %v14327_v44 = vpop.f32.mrf.mxu0 }
0x12bb   :  { %v14329_v52 = vpop.f32.mrf.mxu0 }
0x12bd   :  { %v14331_v63 = vpop.f32.mrf.mxu0 }
0x12bf   :  { %v14333_v54 = vpop.f32.mrf.mxu0 }
0x12d1   :  { %v11571_v19 = vpop.f32.mrf.mxu0 }
0x12d2   :  { %v5817_v25 = vadd.f32 %v14338_v22, %v11571_v19 }
0x12d3   :  { %v5811_v60 = vpop.f32.mrf.mxu0 }
0x12d4   :  { %v5812_v38 = vadd.f32 %v14344_v0, %v5811_v60  ;;  %v5853_v2 = vsel %vm2421_vm14, %v5817_v25, -inf }
0x12d5   :  { %5854 = vmax.xlane.f32.xlu1 %v5853_v2  ;;  %v11574_v27 = vpop.f32.mrf.mxu0 }
0x12d6   :  { %v5827_v45 = vadd.f32 %v14351_v7, %v11574_v27  ;;  %v5850_v35 = vsel %vm2421_vm14, %v5812_v38, -inf }
0x12d7   :  { %v5821_v12 = vpop.f32.mrf.mxu0  ;;  %5851 = vmax.xlane.f32.xlu0 %v5850_v35 }
0x12d8   :  { %v5822_v47 = vadd.f32 %v14358_v50, %v5821_v12  ;;  %v5859_v55 = vsel %vm2421_vm14, %v5827_v45, -inf }
0x12d9   :  { %5860 = vmax.xlane.f32.xlu1 %v5859_v55  ;;  %v11577_v46 = vpop.f32.mrf.mxu0 }
0x12da   :  { %v5837_v4 = vadd.f32 %v14365_v30, %v11577_v46  ;;  %v5856_v28 = vsel %vm2421_vm14, %v5822_v47, -inf }
0x12db   :  { %v5831_v48 = vpop.f32.mrf.mxu0  ;;  %5857 = vmax.xlane.f32.xlu0 %v5856_v28 }
0x12dc   :  { %v5832_v1 = vadd.f32 %v14372_v59, %v5831_v48  ;;  %v5865_v14 = vsel %vm2421_vm14, %v5837_v4, -inf }
0x12dd   :  { %5866 = vmax.xlane.f32.xlu1 %v5865_v14  ;;  %v11580_v13 = vpop.f32.mrf.mxu0 }
0x12de   :  { %v5847_v51 = vadd.f32 %v14379_v43, %v11580_v13  ;;  %v5862_v18 = vsel %vm2421_vm14, %v5832_v1, -inf }
0x12df   :  { %v5841_v16 = vpop.f32.mrf.mxu0  ;;  %5863 = vmax.xlane.f32.xlu0 %v5862_v18 }
0x12e0   :  { %v5842_v11 = vadd.f32 %v14386_v58, %v5841_v16  ;;  %v5871_v41 = vsel %vm2421_vm14, %v5847_v51, -inf }
0x12e1   :  { %5872 = vmax.xlane.f32.xlu1 %v5871_v41 }
0x12e2   :  { %v5868_v62 = vsel %vm2421_vm14, %v5842_v11, -inf }
0x12e3   :  { %5869 = vmax.xlane.f32.xlu0 %v5868_v62 }
0x135e   :  { %v5855_v15 = vpop.xlane.xlu1 %5854 }
0x135f   :  { %v5875_v3 = vsub.f32 %v5817_v25, %v5855_v15 }
0x1360   :  { %v5852_v34 = vpop.xlane.xlu0 %5851 }
0x1361   :  { %v5884_v61 = vmul.f32 1.442695, %v5875_v3  ;;  %v5874_v49 = vsub.f32 %v5812_v38, %v5852_v34 }
0x1362   :  { %v5861_v24 = vpop.xlane.xlu1 %5860 }
0x1363   :  { %12253 = vpow2.f32 %v5884_v61  ;;  %v5882_v40 = vmul.f32 1.442695, %v5874_v49  ;;  %v5877_v6 = vsub.f32 %v5827_v45, %v5861_v24  ;;  %v5372_v49 = vadd.f32 %v14338_v22, %v14319_v31 }
0x1364   :  { %v5858_v56 = vpop.xlane.xlu0 %5857  ;;  %v14434_v31 = vadd.f32 %v14358_v50, %v14325_v33  ;;  %v14451_v33 = vadd.f32 %v14379_v43, %v14331_v63 }
0x1365   :  { %12255 = vpow2.f32 %v5882_v40  ;;  %v5888_v19 = vmul.f32 1.442695, %v5877_v6  ;;  %v5876_v60 = vsub.f32 %v5822_v47, %v5858_v56  ;;  %v5367_v6 = vadd.f32 %v14344_v0, %v14321_v53 }
0x1366   :  { %v5867_v2 = vpop.xlane.xlu1 %5866  ;;  %v14439_v53 = vadd.f32 %v14365_v30, %v14327_v44 }
0x1367   :  { %12257 = vpow2.f32 %v5888_v19  ;;  %v5886_v27 = vmul.f32 1.442695, %v5876_v60  ;;  %v5879_v35 = vsub.f32 %v5837_v4, %v5867_v2  ;;  %v14429_v19 = vadd.f32 %v14351_v7, %v14323_v20 }
0x1368   :  { %v5864_v12 = vpop.xlane.xlu0 %5863  ;;  %v5408_v60 = vsel %vm2421_vm14, %v5372_v49, -inf  ;;  %v5405_v2 = vsel %vm2421_vm14, %v5367_v6, -inf  ;;  %v14445_v20 = vadd.f32 %v14372_v59, %v14329_v52  ;;  %v5420_v44 = vsel %vm2421_vm14, %v14439_v53, -inf }
0x1369   :  { %12259 = vpow2.f32 %v5886_v27  ;;  %v5892_v55 = vmul.f32 1.442695, %v5879_v35  ;;  %v5878_v46 = vsub.f32 %v5832_v1, %v5864_v12  ;;  %v5414_v27 = vsel %vm2421_vm14, %v14429_v19, -inf }
0x136a   :  { %v5873_v25 = vpop.xlane.xlu1 %5872  ;;  %v5411_v35 = vsel %vm2421_vm14, %v14434_v31, -inf  ;;  %v14457_v12 = vadd.f32 %v14386_v58, %v14333_v54  ;;  %v5417_v52 = vsel %vm2421_vm14, %v14445_v20, -inf }
0x136b   :  { %12261 = vpow2.f32 %v5892_v55  ;;  %v5890_v28 = vmul.f32 1.442695, %v5878_v46  ;;  %v5881_v38 = vsub.f32 %v5847_v51, %v5873_v25  ;;  %v5426_v55 = vsel %vm2421_vm14, %v14451_v33, -inf  ;;  %v9727_v46 = vld [vmem:[%s15492_s7 + $0xd8] sm:$0xff] }
0x136c   :  { %v5870_v48 = vpop.xlane.xlu0 %5869  ;;  %v5423_v63 = vsel %vm2421_vm14, %v14457_v12, -inf  ;;  %11657 = vmatprep.subr.mxu1 %v9727_v46 }
0x136d   :  { %12263 = vpow2.f32 %v5890_v28  ;;  %v5896_v14 = vmul.f32 1.442695, %v5881_v38  ;;  %v5880_v45 = vsub.f32 %v5842_v11, %v5870_v48 }
0x136f   :  { %12265 = vpow2.f32 %v5896_v14  ;;  %v5894_v13 = vmul.f32 1.442695, %v5880_v45 }
0x1370   :  { %v14391_v18 = vpop.eup %12253 }
0x1371   :  { %12267 = vpow2.f32 %v5894_v13  ;;  %v5901_v47 = vsel %vm2421_vm14, %v14391_v18, 0.0 }
0x1372   :  { %v14395_v4 = vpop.eup %12255  ;;  %5902 = vadd.xlane.f32.xlu1 %v5901_v47 }
0x1373   :  { %v5898_v1 = vsel %vm2421_vm14, %v14395_v4, 0.0 }
0x1374   :  { %v14399_v16 = vpop.eup %12257  ;;  %5899 = vadd.xlane.f32.xlu0 %v5898_v1 }
0x1375   :  { %v5907_v51 = vsel %vm2421_vm14, %v14399_v16, 0.0 }
0x1376   :  { %v14403_v11 = vpop.eup %12259  ;;  %5908 = vadd.xlane.f32.xlu1 %v5907_v51 }
0x1377   :  { %v5904_v41 = vsel %vm2421_vm14, %v14403_v11, 0.0 }
0x1378   :  { %v14407_v62 = vpop.eup %12261  ;;  %5905 = vadd.xlane.f32.xlu0 %v5904_v41 }
0x1379   :  { %v5913_v15 = vsel %vm2421_vm14, %v14407_v62, 0.0 }
0x137a   :  { %v14411_v3 = vpop.eup %12263  ;;  %5914 = vadd.xlane.f32.xlu1 %v5913_v15 }
0x137b   :  { %v5910_v34 = vsel %vm2421_vm14, %v14411_v3, 0.0 }
0x137c   :  { %v14415_v61 = vpop.eup %12265  ;;  %5911 = vadd.xlane.f32.xlu0 %v5910_v34 }
0x137d   :  { %v5919_v24 = vsel %vm2421_vm14, %v14415_v61, 0.0 }
0x137e   :  { %v14421_v40 = vpop.eup %12267  ;;  %5920 = vadd.xlane.f32.xlu1 %v5919_v24 }
0x137f   :  { %v5916_v56 = vsel %vm2421_vm14, %v14421_v40, 0.0 }
0x1380   :  { %5917 = vadd.xlane.f32.xlu0 %v5916_v56 }
0x1382   :  { %5409 = vmax.xlane.f32.xlu1 %v5408_v60 }
0x1384   :  { %5406 = vmax.xlane.f32.xlu0 %v5405_v2 }
0x1386   :  { %5415 = vmax.xlane.f32.xlu1 %v5414_v27  ;;  %v9726_v27 = vld [vmem:[%s15492_s7 + $0xd0] sm:$0xff] }
0x1388   :  { %5412 = vmax.xlane.f32.xlu0 %v5411_v35 }
0x138a   :  { %5421 = vmax.xlane.f32.xlu1 %v5420_v44 }
0x138c   :  { %5418 = vmax.xlane.f32.xlu0 %v5417_v52 }
0x138e   :  { %5427 = vmax.xlane.f32.xlu1 %v5426_v55 }
0x1390   :  { %5424 = vmax.xlane.f32.xlu0 %v5423_v63 }
0x13fb   :  { %v5903_v25 = vpop.xlane.xlu1 %5902 }
0x13fc   :  { %12269 = vrcp.f32 %v5903_v25 }
0x13fd   :  { %v5900_v54 = vpop.xlane.xlu0 %5899 }
0x13fe   :  { %12271 = vrcp.f32 %v5900_v54 }
0x13ff   :  { %v5909_v28 = vpop.xlane.xlu1 %5908 }
0x1400   :  { %12273 = vrcp.f32 %v5909_v28 }
0x1401   :  { %v5906_v38 = vpop.xlane.xlu0 %5905 }
0x1402   :  { %12275 = vrcp.f32 %v5906_v38 }
0x1403   :  { %v5915_v48 = vpop.xlane.xlu1 %5914 }
0x1404   :  { %12277 = vrcp.f32 %v5915_v48 }
0x1405   :  { %v5912_v14 = vpop.xlane.xlu0 %5911 }
0x1406   :  { %12279 = vrcp.f32 %v5912_v14 }
0x1407   :  { %v5921_v45 = vpop.xlane.xlu1 %5920 }
0x1408   :  { %12281 = vrcp.f32 %v5921_v45 }
0x1409   :  { %v5918_v13 = vpop.xlane.xlu0 %5917  ;;  %v12270_v47 = vpop.eup %12269 }
0x140a   :  { %12283 = vrcp.f32 %v5918_v13  ;;  %v5931_v34 = vmul.f32 %v12270_v47, %v14391_v18 }
0x140b   :  { %v12272_v1 = vpop.eup %12271  ;;  %v5410_v51 = vpop.xlane.xlu1 %5409 }
0x140c   :  { %v5430_v41 = vsub.f32 %v5372_v49, %v5410_v51  ;;  %v5930_v15 = vmul.f32 %v12272_v1, %v14395_v4 }
0x140d   :  { %v5407_v24 = vpop.xlane.xlu0 %5406  ;;  %v12274_v56 = vpop.eup %12273 }
0x140e   :  { %v5439_v60 = vmul.f32 1.442695, %v5430_v41  ;;  %v5429_v2 = vsub.f32 %v5367_v6, %v5407_v24  ;;  %11617 = vmatprep.mubr.msk.f32.mxu1 %vm2421_vm14, %v5930_v15  ;;  %v9725_v6 = vld [vmem:[%s15492_s7 + $0xc8] sm:$0xff]  ;;  %v5933_v55 = vmul.f32 %v12274_v56, %v14399_v16 }
0x140f   :  { %v12276_v35 = vpop.eup %12275  ;;  %v5416_v44 = vpop.xlane.xlu1 %5415  ;;  %11618 = vmatmul.mubr.msk.f32.vlgmr.msra.gmra.mxu1 %vm2421_vm14, %v5931_v34 }
0x1410   :  { %12285 = vpow2.f32 %v5439_v60  ;;  %v5437_v49 = vmul.f32 1.442695, %v5429_v2  ;;  %v5432_v4 = vsub.f32 %v14429_v19, %v5416_v44  ;;  %v5932_v18 = vmul.f32 %v12276_v35, %v14403_v11  ;;  %11658 = vmatpush3.msra.mxu1 %v9727_v46  ;;  %v9724_v11 = vld [vmem:[%s15492_s7 + $0xc0] sm:$0xff]  ;;  %v9755_v2 = vld [vmem:[%s15493_s9 + $0xc8] sm:$0xff] }
0x1411   :  { %v5413_v52 = vpop.xlane.xlu0 %5412  ;;  %11659 = vmatprep.subr.mxu1 %v9726_v27  ;;  %v12278_v63 = vpop.eup %12277  ;;  %v9754_v44 = vld [vmem:[%s15493_s9 + $0xc0] sm:$0xff] }
0x1412   :  { %12287 = vpow2.f32 %v5437_v49  ;;  %v5443_v25 = vmul.f32 1.442695, %v5432_v4  ;;  %v5431_v54 = vsub.f32 %v14434_v31, %v5413_v52  ;;  %11620 = vmatprep.mubr.msk.f32.mxu1 %vm2421_vm14, %v5932_v18  ;;  %11660 = vmatpush3.msra.mxu1 %v9726_v27  ;;  %v9757_v31 = vld [vmem:[%s15493_s9 + $0xd8] sm:$0xff]  ;;  %v5935_v14 = vmul.f32 %v12278_v63, %v14407_v62 }
0x1413   :  { %v12280_v19 = vpop.eup %12279  ;;  %v5422_v46 = vpop.xlane.xlu1 %5421  ;;  %11621 = vmatmul.mubr.msk.f32.gmra.mxu1 %vm2421_vm14, %v5933_v55  ;;  %11661 = vmatprep.subr.mxu1 %v9725_v6 }
0x1414   :  { %12289 = vpow2.f32 %v5443_v25  ;;  %v5441_v16 = vmul.f32 1.442695, %v5431_v54  ;;  %v5434_v28 = vsub.f32 %v14439_v53, %v5422_v46  ;;  %v5934_v38 = vmul.f32 %v12280_v19, %v14411_v3  ;;  %11662 = vmatpush3.msra.mxu1 %v9725_v6 }
0x1415   :  { %v5419_v48 = vpop.xlane.xlu0 %5418  ;;  %11663 = vmatprep.subr.mxu1 %v9724_v11  ;;  %v12282_v45 = vpop.eup %12281 }
0x1416   :  { %12291 = vpow2.f32 %v5441_v16  ;;  %v5447_v13 = vmul.f32 1.442695, %v5434_v28  ;;  %v5433_v47 = vsub.f32 %v14445_v20, %v5419_v48  ;;  %11623 = vmatprep.mubr.msk.f32.mxu1 %vm2421_vm14, %v5934_v38  ;;  %11664 = vmatpush3.msra.mxu1 %v9724_v11  ;;  %v5937_v15 = vmul.f32 %v12282_v45, %v14415_v61  ;;  %v9756_v61 = vld [vmem:[%s15493_s9 + $0xd0] sm:$0xff] }
0x1417   :  { %v12284_v53 = vpop.eup %12283  ;;  %v5428_v1 = vpop.xlane.xlu1 %5427  ;;  %11624 = vmatmul.mubr.msk.f32.gmra.mxu1 %vm2421_vm14, %v5935_v14  ;;  %11705 = vmatprep.subr.mxu1 %v9757_v31 }
0x1418   :  { %12293 = vpow2.f32 %v5447_v13  ;;  %v5445_v3 = vmul.f32 1.442695, %v5433_v47  ;;  %v5436_v51 = vsub.f32 %v14451_v33, %v5428_v1  ;;  %v5936_v62 = vmul.f32 %v12284_v53, %v14421_v40 }
0x1419   :  { %v5425_v41 = vpop.xlane.xlu0 %5424 }
0x141a   :  { %12295 = vpow2.f32 %v5445_v3  ;;  %v5451_v34 = vmul.f32 1.442695, %v5436_v51  ;;  %v5435_v20 = vsub.f32 %v14457_v12, %v5425_v41  ;;  %11626 = vmatprep.mubr.msk.f32.mxu1 %vm2421_vm14, %v5936_v62 }
0x141b   :  { %11627 = vmatmul.mubr.msk.f32.gmra.mxu1 %vm2421_vm14, %v5937_v15 }
0x141c   :  { %12297 = vpow2.f32 %v5451_v34  ;;  %v5449_v24 = vmul.f32 1.442695, %v5435_v20  ;;  %11665 = vmatprep.mubr.msk.f32.mxu1 %vm327_vm1, %v14113_v5 }
0x141d   :  { %v14504_v56 = vpop.eup %12285 }
0x141e   :  { %12299 = vpow2.f32 %v5449_v24  ;;  %v5456_v40 = vsel %vm2421_vm14, %v14504_v56, 0.0 }
0x141f   :  { %v14511_v33 = vpop.eup %12287  ;;  %5457 = vadd.xlane.f32.xlu1 %v5456_v40  ;;  %11666 = vmatmul.mubr.msk.f32.vlgmr.msra.gmra.mxu1 %vm327_vm1, %v14116_v36 }
0x1420   :  { %11668 = vmatprep.mubr.msk.f32.mxu1 %vm327_vm1, %v14126_v21  ;;  %v5453_v12 = vsel %vm2421_vm14, %v14511_v33, 0.0  ;;  %11706 = vmatpush3.msra.mxu1 %v9757_v31 }
0x1421   :  { %v14519_v60 = vpop.eup %12289  ;;  %5454 = vadd.xlane.f32.xlu0 %v5453_v12  ;;  %11707 = vmatprep.subr.mxu1 %v9756_v61 }
0x1422   :  { %v5462_v27 = vsel %vm2421_vm14, %v14519_v60, 0.0  ;;  %11708 = vmatpush3.msra.mxu1 %v9756_v61 }
0x1423   :  { %v12292_v35 = vpop.eup %12291  ;;  %5463 = vadd.xlane.f32.xlu1 %v5462_v27  ;;  %11669 = vmatmul.mubr.msk.f32.gmra.mxu1 %vm327_vm1, %v14132_v10  ;;  %v9777_v27 = vld [vmem:[%s15492_s7 + $0xf8] sm:$0xff] }
0x1424   :  { %11671 = vmatprep.mubr.msk.f32.mxu1 %vm327_vm1, %v14142_v42  ;;  %v5459_v49 = vsel %vm2421_vm14, %v12292_v35, 0.0  ;;  %11709 = vmatprep.subr.mxu1 %v9755_v2 }
0x1425   :  { %v12294_v4 = vpop.eup %12293  ;;  %5460 = vadd.xlane.f32.xlu0 %v5459_v49  ;;  %11710 = vmatpush3.msra.mxu1 %v9755_v2 }
0x1426   :  { %v5468_v18 = vsel %vm2421_vm14, %v12294_v4, 0.0  ;;  %11711 = vmatprep.subr.mxu1 %v9754_v44 }
0x1427   :  { %v12296_v6 = vpop.eup %12295  ;;  %5469 = vadd.xlane.f32.xlu1 %v5468_v18  ;;  %11672 = vmatmul.mubr.msk.f32.gmra.mxu1 %vm327_vm1, %v14148_v39  ;;  %v9729_v18 = vld [vmem:[%s15495_s8 + $0x6] ss:$0 sm:$0xff] }
0x1428   :  { %11674 = vmatprep.mubr.msk.f32.mxu1 %vm327_vm1, %v14156_v9  ;;  %v5465_v52 = vsel %vm2421_vm14, %v12296_v6, 0.0  ;;  %11712 = vmatpush3.msra.mxu1 %v9754_v44 }
0x1429   :  { %v12298_v55 = vpop.eup %12297  ;;  %5466 = vadd.xlane.f32.xlu0 %v5465_v52 }
0x142a   :  { %v5474_v63 = vsel %vm2421_vm14, %v12298_v55, 0.0 }
0x142b   :  { %v12300_v25 = vpop.eup %12299  ;;  %5475 = vadd.xlane.f32.xlu1 %v5474_v63  ;;  %11675 = vmatmul.mubr.msk.f32.gmra.mxu1 %vm327_vm1, %v14150_v37 }
0x142c   :  { %11713 = vmatprep.mubr.msk.f32.mxu1 %vm327_vm1, %v14113_v5  ;;  %v5471_v54 = vsel %vm2421_vm14, %v12300_v25, 0.0 }
0x142d   :  { %5472 = vadd.xlane.f32.xlu0 %v5471_v54 }
0x142f   :  { %11714 = vmatmul.mubr.msk.f32.vlgmr.msra.gmra.mxu1 %vm327_vm1, %v14116_v36 }
0x1430   :  { %11716 = vmatprep.mubr.msk.f32.mxu1 %vm327_vm1, %v14126_v21 }
0x1433   :  { %11717 = vmatmul.mubr.msk.f32.gmra.mxu1 %vm327_vm1, %v14132_v10 }
0x1434   :  { %11719 = vmatprep.mubr.msk.f32.mxu1 %vm327_vm1, %v14142_v42 }
0x1437   :  { %11720 = vmatmul.mubr.msk.f32.gmra.mxu1 %vm327_vm1, %v14148_v39 }
0x1438   :  { %11722 = vmatprep.mubr.msk.f32.mxu1 %vm327_vm1, %v14156_v9 }
0x143b   :  { %11723 = vmatmul.mubr.msk.f32.gmra.mxu1 %vm327_vm1, %v14150_v37 }
0x14a8   :  { %v5458_v11 = vpop.xlane.xlu1 %5457 }
0x14a9   :  { %12301 = vrcp.f32 %v5458_v11 }
0x14aa   :  { %v5455_v19 = vpop.xlane.xlu0 %5454 }
0x14ab   :  { %12303 = vrcp.f32 %v5455_v19  ;;  %v9775_v19 = vld [vmem:[%s15492_s7 + $0xe8] sm:$0xff] }
0x14ac   :  { %v5464_v46 = vpop.xlane.xlu1 %5463 }
0x14ad   :  { %12305 = vrcp.f32 %v5464_v46 }
0x14ae   :  { %v5461_v16 = vpop.xlane.xlu0 %5460 }
0x14af   :  { %12307 = vrcp.f32 %v5461_v16 }
0x14b0   :  { %v5470_v28 = vpop.xlane.xlu1 %5469 }
0x14b1   :  { %12309 = vrcp.f32 %v5470_v28  ;;  %v9774_v28 = vld [vmem:[%s15492_s7 + $0xe0] sm:$0xff] }
0x14b2   :  { %v5467_v38 = vpop.xlane.xlu0 %5466 }
0x14b3   :  { %12311 = vrcp.f32 %v5467_v38 }
0x14b4   :  { %v5476_v31 = vpop.xlane.xlu1 %5475 }
0x14b5   :  { %12313 = vrcp.f32 %v5476_v31 }
0x14b6   :  { %v5473_v48 = vpop.xlane.xlu0 %5472  ;;  %v12302_v14 = vpop.eup %12301 }
0x14b7   :  { %12315 = vrcp.f32 %v5473_v48  ;;  %v5486_v47 = vmul.f32 %v12302_v14, %v14504_v56  ;;  %v9807_v48 = vld [vmem:[%s15493_s9 + $0xf8] sm:$0xff] }
0x14b8   :  { %v12304_v45 = vpop.eup %12303 }
0x14b9   :  { %v5485_v13 = vmul.f32 %v12304_v45, %v14511_v33 }
0x14ba   :  { %v12306_v53 = vpop.eup %12305 }
0x14bb   :  { %11645 = vmatprep.mubr.msk.f32.mxu0 %vm2421_vm14, %v5485_v13  ;;  %v5488_v51 = vmul.f32 %v12306_v53, %v14519_v60 }
0x14bc   :  { %v12308_v1 = vpop.eup %12307  ;;  %11646 = vmatmul.mubr.msk.f32.vlgmr.msra.gmra.mxu0 %vm2421_vm14, %v5486_v47 }
0x14bd   :  { %11678 = vmatpush3.xpose.msk.msra.mxu0 %vm327_vm1, %v14150_v37  ;;  %v5487_v3 = vmul.f32 %v12308_v1, %v12292_v35 }
0x14be   :  { %11679 = vmatprep.subr.msk.mxu0 %vm327_vm1, %v14156_v9  ;;  %v12310_v62 = vpop.eup %12309 }
0x14bf   :  { %11648 = vmatprep.mubr.msk.f32.mxu0 %vm2421_vm14, %v5487_v3  ;;  %v5490_v34 = vmul.f32 %v12310_v62, %v12294_v4  ;;  %v9806_v62 = vld [vmem:[%s15493_s9 + $0xf0] sm:$0xff] }
0x14c0   :  { %v12312_v41 = vpop.eup %12311  ;;  %11649 = vmatmul.mubr.msk.f32.gmra.mxu0 %vm2421_vm14, %v5488_v51 }
0x14c1   :  { %11680 = vmatpush3.xpose.msk.msra.mxu0 %vm327_vm1, %v14156_v9  ;;  %v5489_v15 = vmul.f32 %v12312_v41, %v12296_v6 }
0x14c2   :  { %11681 = vmatprep.subr.msk.mxu0 %vm327_vm1, %v14148_v39  ;;  %v12314_v20 = vpop.eup %12313 }
0x14c3   :  { %11651 = vmatprep.mubr.msk.f32.mxu0 %vm2421_vm14, %v5489_v15  ;;  %v5492_v40 = vmul.f32 %v12314_v20, %v12298_v55  ;;  %v9805_v15 = vld [vmem:[%s15493_s9 + $0xe8] sm:$0xff]  ;;  %v9804_v20 = vld [vmem:[%s15493_s9 + $0xe0] sm:$0xff] }
0x14c4   :  { %v12316_v24 = vpop.eup %12315  ;;  %11652 = vmatmul.mubr.msk.f32.gmra.mxu0 %vm2421_vm14, %v5490_v34 }
0x14c5   :  { %11682 = vmatpush3.xpose.msk.msra.mxu0 %vm327_vm1, %v14148_v39  ;;  %v5491_v56 = vmul.f32 %v12316_v24, %v12300_v25  ;;  %v9776_v25 = vld [vmem:[%s15492_s7 + $0xf0] sm:$0xff] }
0x14c6   :  { %11683 = vmatprep.subr.msk.mxu0 %vm327_vm1, %v14142_v42 }
0x14c7   :  { %11654 = vmatprep.mubr.msk.f32.mxu0 %vm2421_vm14, %v5491_v56 }
0x14c8   :  { %11655 = vmatmul.mubr.msk.f32.gmra.mxu0 %vm2421_vm14, %v5492_v40 }
0x14c9   :  { %11684 = vmatpush3.xpose.msk.msra.mxu0 %vm327_vm1, %v14142_v42 }
0x14ca   :  { %11685 = vmatprep.subr.msk.mxu0 %vm327_vm1, %v14132_v10 }
0x14cd   :  { %11686 = vmatpush3.xpose.msk.msra.mxu0 %vm327_vm1, %v14132_v10 }
0x14ce   :  { %11687 = vmatprep.subr.msk.mxu0 %vm327_vm1, %v14126_v21 }
0x14cf   :  { %v14591_v61 = vpop.f32.mrf.mxu1 }
0x14d1   :  { %11688 = vmatpush3.xpose.msk.msra.mxu0 %vm327_vm1, %v14126_v21  ;;  %v14595_v33 = vpop.f32.mrf.mxu1 }
0x14d2   :  { %11689 = vmatprep.subr.msk.mxu0 %vm327_vm1, %v14116_v36 }
0x14d3   :  { %v14599_v12 = vpop.f32.mrf.mxu1 }
0x14d5   :  { %11690 = vmatpush3.xpose.msk.msra.mxu0 %vm327_vm1, %v14116_v36  ;;  %v14603_v60 = vpop.f32.mrf.mxu1 }
0x14d6   :  { %11691 = vmatprep.subr.msk.mxu0 %vm327_vm1, %v14113_v5 }
0x14d7   :  { %v14607_v2 = vpop.f32.mrf.mxu1 }
0x14d9   :  { %11692 = vmatpush3.xpose.msk.msra.mxu0 %vm327_vm1, %v14113_v5  ;;  %v14614_v35 = vpop.f32.mrf.mxu1 }
0x14da   :  { %11753 = vmatprep.subr.mxu0 %v9777_v27 }
0x14db   :  { %v14616_v44 = vpop.f32.mrf.mxu1 }
0x14dd   :  { %v14618_v49 = vpop.f32.mrf.mxu1 }
0x14df   :  { %v11667_v4 = vpop.f32.mrf.mxu1 }
0x14e0   :  { %v6391_v55 = vadd.f32 %v11667_v4, %v9729_v18 }
0x14e1   :  { %v6385_v6 = vpop.f32.mrf.mxu1 }
0x14e2   :  { %v6386_v52 = vadd.f32 %v9729_v18, %v6385_v6 }
0x14e3   :  { %v11670_v63 = vpop.f32.mrf.mxu1 }
0x14e4   :  { %11693 = vmatprep.mubr.msk.f32.mxu0 %vm327_vm1, %v6386_v52  ;;  %v6401_v46 = vadd.f32 %v11670_v63, %v9729_v18 }
0x14e5   :  { %v6395_v54 = vpop.f32.mrf.mxu1  ;;  %11694 = vmatmul.mubr.msk.f32.vlgmr.msra.gmra.mxu0 %vm327_vm1, %v6391_v55 }
0x14e6   :  { %v6396_v11 = vadd.f32 %v9729_v18, %v6395_v54  ;;  %11754 = vmatpush3.msra.mxu0 %v9777_v27 }
0x14e7   :  { %v11673_v16 = vpop.f32.mrf.mxu1  ;;  %11755 = vmatprep.subr.mxu0 %v9776_v25 }
0x14e8   :  { %11696 = vmatprep.mubr.msk.f32.mxu0 %vm327_vm1, %v6396_v11  ;;  %11756 = vmatpush3.msra.mxu0 %v9776_v25  ;;  %v6411_v14 = vadd.f32 %v11673_v16, %v9729_v18 }
0x14e9   :  { %v6405_v38 = vpop.f32.mrf.mxu1  ;;  %11697 = vmatmul.mubr.msk.f32.gmra.mxu0 %vm327_vm1, %v6401_v46  ;;  %11757 = vmatprep.subr.mxu0 %v9775_v19 }
0x14ea   :  { %v6406_v31 = vadd.f32 %v9729_v18, %v6405_v38  ;;  %11758 = vmatpush3.msra.mxu0 %v9775_v19 }
0x14eb   :  { %v11676_v45 = vpop.f32.mrf.mxu1  ;;  %11759 = vmatprep.subr.mxu0 %v9774_v28 }
0x14ec   :  { %11699 = vmatprep.mubr.msk.f32.mxu0 %vm327_vm1, %v6406_v31  ;;  %11760 = vmatpush3.msra.mxu0 %v9774_v28  ;;  %v6421_v53 = vadd.f32 %v11676_v45, %v9729_v18 }
0x14ed   :  { %v6415_v13 = vpop.f32.mrf.mxu1  ;;  %11700 = vmatmul.mubr.msk.f32.gmra.mxu0 %vm327_vm1, %v6411_v14  ;;  %11801 = vmatprep.subr.mxu0 %v9807_v48 }
0x14ee   :  { %v6416_v47 = vadd.f32 %v9729_v18, %v6415_v13 }
0x14ef   :  { %v11715_v1 = vpop.f32.mrf.mxu1 }
0x14f0   :  { %11702 = vmatprep.mubr.msk.f32.mxu0 %vm327_vm1, %v6416_v47 }
0x14f1   :  { %11703 = vmatmul.mubr.msk.f32.gmra.mxu0 %vm327_vm1, %v6421_v53  ;;  %v6712_v3 = vpop.f32.mrf.mxu1 }
0x14f2   :  { %11761 = vmatprep.mubr.msk.f32.mxu0 %vm327_vm1, %v14113_v5 }
0x14f3   :  { %v11718_v51 = vpop.f32.mrf.mxu1 }
0x14f5   :  { %v6722_v41 = vpop.f32.mrf.mxu1  ;;  %11762 = vmatmul.mubr.msk.f32.vlgmr.msra.gmra.mxu0 %vm327_vm1, %v14116_v36 }
0x14f6   :  { %11764 = vmatprep.mubr.msk.f32.mxu0 %vm327_vm1, %v14126_v21  ;;  %11802 = vmatpush3.msra.mxu0 %v9807_v48 }
0x14f7   :  { %v11721_v34 = vpop.f32.mrf.mxu1  ;;  %11803 = vmatprep.subr.mxu0 %v9806_v62 }
0x14f8   :  { %11804 = vmatpush3.msra.mxu0 %v9806_v62 }
0x14f9   :  { %v6732_v24 = vpop.f32.mrf.mxu1  ;;  %11765 = vmatmul.mubr.msk.f32.gmra.mxu0 %vm327_vm1, %v14132_v10  ;;  %11805 = vmatprep.subr.mxu0 %v9805_v15 }
0x14fa   :  { %11767 = vmatprep.mubr.msk.f32.mxu0 %vm327_vm1, %v14142_v42  ;;  %11806 = vmatpush3.msra.mxu0 %v9805_v15 }
0x14fb   :  { %v11724_v56 = vpop.f32.mrf.mxu1  ;;  %11807 = vmatprep.subr.mxu0 %v9804_v20 }
0x14fc   :  { %11725 = vmatprep.subr.mxu1 %v11724_v56  ;;  %11808 = vmatpush3.msra.mxu0 %v9804_v20 }
0x14fd   :  { %v6742_v40 = vpop.f32.mrf.mxu1  ;;  %11726 = vmatpush3.msra.mxu1 %v11724_v56  ;;  %11768 = vmatmul.mubr.msk.f32.gmra.mxu0 %vm327_vm1, %v14148_v39 }
0x14fe   :  { %11727 = vmatprep.subr.mxu1 %v6742_v40  ;;  %11770 = vmatprep.mubr.msk.f32.mxu0 %vm327_vm1, %v14156_v9 }
0x14ff   :  { %11728 = vmatpush3.msra.mxu1 %v6742_v40 }
0x1500   :  { %11729 = vmatprep.subr.mxu1 %v11721_v34 }
0x1501   :  { %11730 = vmatpush3.msra.mxu1 %v11721_v34  ;;  %11771 = vmatmul.mubr.msk.f32.gmra.mxu0 %vm327_vm1, %v14150_v37 }
0x1502   :  { %11731 = vmatprep.subr.mxu1 %v6732_v24  ;;  %11809 = vmatprep.mubr.msk.f32.mxu0 %vm327_vm1, %v14113_v5 }
0x1503   :  { %11732 = vmatpush3.msra.mxu1 %v6732_v24 }
0x1504   :  { %11733 = vmatprep.subr.mxu1 %v11718_v51 }
0x1505   :  { %11734 = vmatpush3.msra.mxu1 %v11718_v51  ;;  %11810 = vmatmul.mubr.msk.f32.vlgmr.msra.gmra.mxu0 %vm327_vm1, %v14116_v36 }
0x1506   :  { %11735 = vmatprep.subr.mxu1 %v6722_v41  ;;  %11812 = vmatprep.mubr.msk.f32.mxu0 %vm327_vm1, %v14126_v21 }
0x1507   :  { %11736 = vmatpush3.msra.mxu1 %v6722_v41 }
0x1508   :  { %11737 = vmatprep.subr.mxu1 %v11715_v1 }
0x1509   :  { %11738 = vmatpush3.msra.mxu1 %v11715_v1  ;;  %11813 = vmatmul.mubr.msk.f32.gmra.mxu0 %vm327_vm1, %v14132_v10 }
0x150a   :  { %11739 = vmatprep.subr.mxu1 %v6712_v3  ;;  %11815 = vmatprep.mubr.msk.f32.mxu0 %vm327_vm1, %v14142_v42 }
0x150b   :  { %11740 = vmatpush3.msra.mxu1 %v6712_v3 }
0x150c   :  { %11773 = vmatprep.subr.msk.mxu1 %vm327_vm1, %v14150_v37 }
0x150d   :  { %11816 = vmatmul.mubr.msk.f32.gmra.mxu0 %vm327_vm1, %v14148_v39 }
0x150e   :  { %11818 = vmatprep.mubr.msk.f32.mxu0 %vm327_vm1, %v14156_v9 }
0x1511   :  { %11819 = vmatmul.mubr.msk.f32.gmra.mxu0 %vm327_vm1, %v14150_v37 }
0x157c   :  { %v14686_v27 = vpop.f32.mrf.mxu0 }
0x157e   :  { %v14688_v4 = vpop.f32.mrf.mxu0 }
0x1580   :  { %v14690_v18 = vpop.f32.mrf.mxu0 }
0x1582   :  { %v14692_v6 = vpop.f32.mrf.mxu0 }
0x1584   :  { %v14694_v52 = vpop.f32.mrf.mxu0 }
0x1586   :  { %v14696_v55 = vpop.f32.mrf.mxu0 }
0x1588   :  { %v14698_v63 = vpop.f32.mrf.mxu0 }
0x158a   :  { %v14700_v25 = vpop.f32.mrf.mxu0 }
0x15a5   :  { %v11695_v54 = vpop.f32.mrf.mxu0 }
0x15a6   :  { %v14703_v11 = vadd.f32 %v14338_v22, %v11695_v54 }
0x15a7   :  { %v6514_v19 = vpop.f32.mrf.mxu0 }
0x15a8   :  { %v14706_v46 = vadd.f32 %v14344_v0, %v6514_v19  ;;  %v6556_v16 = vsel %vm2421_vm14, %v14703_v11, -inf }
0x15a9   :  { %6557 = vmax.xlane.f32.xlu1 %v6556_v16  ;;  %v11698_v28 = vpop.f32.mrf.mxu0 }
0x15aa   :  { %v14711_v38 = vadd.f32 %v14351_v7, %v11698_v28  ;;  %v6553_v31 = vsel %vm2421_vm14, %v14706_v46, -inf }
0x15ab   :  { %v6524_v48 = vpop.f32.mrf.mxu0  ;;  %6554 = vmax.xlane.f32.xlu0 %v6553_v31 }
0x15ac   :  { %v14716_v22 = vadd.f32 %v14358_v50, %v6524_v48  ;;  %v6562_v0 = vsel %vm2421_vm14, %v14711_v38, -inf }
0x15ad   :  { %6563 = vmax.xlane.f32.xlu1 %v6562_v0  ;;  %v11701_v14 = vpop.f32.mrf.mxu0 }
0x15ae   :  { %v14721_v45 = vadd.f32 %v14365_v30, %v11701_v14  ;;  %v6559_v7 = vsel %vm2421_vm14, %v14716_v22, -inf }
0x15af   :  { %v6534_v13 = vpop.f32.mrf.mxu0  ;;  %6560 = vmax.xlane.f32.xlu0 %v6559_v7 }
0x15b0   :  { %v14726_v47 = vadd.f32 %v14372_v59, %v6534_v13  ;;  %v6568_v50 = vsel %vm2421_vm14, %v14721_v45, -inf }
0x15b1   :  { %6569 = vmax.xlane.f32.xlu1 %v6568_v50  ;;  %v11704_v53 = vpop.f32.mrf.mxu0 }
0x15b2   :  { %v14731_v1 = vadd.f32 %v14379_v43, %v11704_v53  ;;  %v6565_v30 = vsel %vm2421_vm14, %v14726_v47, -inf }
0x15b3   :  { %v6544_v3 = vpop.f32.mrf.mxu0  ;;  %6566 = vmax.xlane.f32.xlu0 %v6565_v30 }
0x15b4   :  { %v14736_v51 = vadd.f32 %v14386_v58, %v6544_v3  ;;  %v6574_v59 = vsel %vm2421_vm14, %v14731_v1, -inf }
0x15b5   :  { %6575 = vmax.xlane.f32.xlu1 %v6574_v59  ;;  %v14740_v62 = vpop.f32.mrf.mxu0 }
0x15b6   :  { %v6571_v41 = vsel %vm2421_vm14, %v14736_v51, -inf }
0x15b7   :  { %v14744_v15 = vpop.f32.mrf.mxu0  ;;  %6572 = vmax.xlane.f32.xlu0 %v6571_v41 }
0x15b9   :  { %v14746_v43 = vpop.f32.mrf.mxu0 }
0x15bb   :  { %v14748_v34 = vpop.f32.mrf.mxu0 }
0x15bd   :  { %v14750_v20 = vpop.f32.mrf.mxu0 }
0x15bf   :  { %v14752_v58 = vpop.f32.mrf.mxu0 }
0x15c1   :  { %v14754_v24 = vpop.f32.mrf.mxu0 }
0x15c3   :  { %v14756_v56 = vpop.f32.mrf.mxu0 }
0x15c5   :  { %v11811_v40 = vpop.f32.mrf.mxu0 }
0x15c7   :  { %v7294_v54 = vpop.f32.mrf.mxu0 }
0x15c9   :  { %v11814_v19 = vpop.f32.mrf.mxu0 }
0x15cb   :  { %v7304_v16 = vpop.f32.mrf.mxu0 }
0x15cd   :  { %v11817_v28 = vpop.f32.mrf.mxu0 }
0x15cf   :  { %v7314_v31 = vpop.f32.mrf.mxu0 }
0x15d1   :  { %v11820_v48 = vpop.f32.mrf.mxu0 }
0x15d2   :  { %11821 = vmatprep.subr.mxu0 %v11820_v48 }
0x15d3   :  { %v7324_v0 = vpop.f32.mrf.mxu0  ;;  %11822 = vmatpush3.msra.mxu0 %v11820_v48 }
0x15d4   :  { %11823 = vmatprep.subr.mxu0 %v7324_v0 }
0x15d5   :  { %11824 = vmatpush3.msra.mxu0 %v7324_v0 }
0x15d6   :  { %11825 = vmatprep.subr.mxu0 %v11817_v28 }
0x15d7   :  { %11826 = vmatpush3.msra.mxu0 %v11817_v28 }
0x15d8   :  { %11827 = vmatprep.subr.mxu0 %v7314_v31 }
0x15d9   :  { %11828 = vmatpush3.msra.mxu0 %v7314_v31 }
0x15da   :  { %11829 = vmatprep.subr.mxu0 %v11814_v19 }
0x15db   :  { %11830 = vmatpush3.msra.mxu0 %v11814_v19 }
0x15dc   :  { %11831 = vmatprep.subr.mxu0 %v7304_v16 }
0x15dd   :  { %11832 = vmatpush3.msra.mxu0 %v7304_v16 }
0x15de   :  { %11833 = vmatprep.subr.mxu0 %v11811_v40 }
0x15df   :  { %11834 = vmatpush3.msra.mxu0 %v11811_v40 }
0x15e0   :  { %11835 = vmatprep.subr.mxu0 %v7294_v54 }
0x15e1   :  { %11836 = vmatpush3.msra.mxu0 %v7294_v54 }
0x1632   :  { %v6558_v14 = vpop.xlane.xlu1 %6557 }
0x1633   :  { %v6578_v7 = vsub.f32 %v14703_v11, %v6558_v14 }
0x1634   :  { %v6555_v13 = vpop.xlane.xlu0 %6554 }
0x1635   :  { %v6587_v50 = vmul.f32 1.442695, %v6578_v7  ;;  %v6577_v53 = vsub.f32 %v14706_v46, %v6555_v13 }
0x1636   :  { %v6564_v30 = vpop.xlane.xlu1 %6563 }
0x1637   :  { %12317 = vpow2.f32 %v6587_v50  ;;  %v6585_v3 = vmul.f32 1.442695, %v6577_v53  ;;  %v6580_v59 = vsub.f32 %v14711_v38, %v6564_v30 }
0x1638   :  { %v6561_v41 = vpop.xlane.xlu0 %6560 }
0x1639   :  { %12319 = vpow2.f32 %v6585_v3  ;;  %v6591_v19 = vmul.f32 1.442695, %v6580_v59  ;;  %v6579_v16 = vsub.f32 %v14716_v22, %v6561_v41 }
0x163a   :  { %v6570_v40 = vpop.xlane.xlu1 %6569 }
0x163b   :  { %12321 = vpow2.f32 %v6591_v19  ;;  %v6589_v54 = vmul.f32 1.442695, %v6579_v16  ;;  %v6582_v28 = vsub.f32 %v14721_v45, %v6570_v40 }
0x163c   :  { %v6567_v11 = vpop.xlane.xlu0 %6566 }
0x163d   :  { %12323 = vpow2.f32 %v6589_v54  ;;  %v6595_v31 = vmul.f32 1.442695, %v6582_v28  ;;  %v6581_v46 = vsub.f32 %v14726_v47, %v6567_v11 }
0x163e   :  { %v6576_v48 = vpop.xlane.xlu1 %6575 }
0x163f   :  { %12325 = vpow2.f32 %v6595_v31  ;;  %v6593_v0 = vmul.f32 1.442695, %v6581_v46  ;;  %v6584_v38 = vsub.f32 %v14731_v1, %v6576_v48 }
0x1640   :  { %v6573_v14 = vpop.xlane.xlu0 %6572 }
0x1641   :  { %12327 = vpow2.f32 %v6593_v0  ;;  %v6599_v7 = vmul.f32 1.442695, %v6584_v38  ;;  %v6583_v22 = vsub.f32 %v14736_v51, %v6573_v14 }
0x1643   :  { %12329 = vpow2.f32 %v6599_v7  ;;  %v6597_v13 = vmul.f32 1.442695, %v6583_v22 }
0x1644   :  { %v12318_v50 = vpop.eup %12317 }
0x1645   :  { %12331 = vpow2.f32 %v6597_v13  ;;  %v6604_v45 = vsel %vm2421_vm14, %v12318_v50, 0.0 }
0x1646   :  { %v12320_v53 = vpop.eup %12319  ;;  %6605 = vadd.xlane.f32.xlu1 %v6604_v45 }
0x1647   :  { %v6601_v47 = vsel %vm2421_vm14, %v12320_v53, 0.0 }
0x1648   :  { %v12322_v30 = vpop.eup %12321  ;;  %6602 = vadd.xlane.f32.xlu0 %v6601_v47 }
0x1649   :  { %v6610_v3 = vsel %vm2421_vm14, %v12322_v30, 0.0 }
0x164a   :  { %v12324_v1 = vpop.eup %12323  ;;  %6611 = vadd.xlane.f32.xlu1 %v6610_v3 }
0x164b   :  { %v6607_v59 = vsel %vm2421_vm14, %v12324_v1, 0.0 }
0x164c   :  { %v12326_v41 = vpop.eup %12325  ;;  %6608 = vadd.xlane.f32.xlu0 %v6607_v59 }
0x164d   :  { %v6616_v51 = vsel %vm2421_vm14, %v12326_v41, 0.0 }
0x164e   :  { %v12328_v19 = vpop.eup %12327  ;;  %6617 = vadd.xlane.f32.xlu1 %v6616_v51 }
0x164f   :  { %v6613_v16 = vsel %vm2421_vm14, %v12328_v19, 0.0 }
0x1650   :  { %v12330_v40 = vpop.eup %12329  ;;  %6614 = vadd.xlane.f32.xlu0 %v6613_v16 }
0x1651   :  { %v6622_v54 = vsel %vm2421_vm14, %v12330_v40, 0.0 }
0x1652   :  { %v12332_v28 = vpop.eup %12331  ;;  %6623 = vadd.xlane.f32.xlu1 %v6622_v54 }
0x1653   :  { %v6619_v11 = vsel %vm2421_vm14, %v12332_v28, 0.0 }
0x1654   :  { %6620 = vadd.xlane.f32.xlu0 %v6619_v11 }
0x16cf   :  { %v6606_v31 = vpop.xlane.xlu1 %6605 }
0x16d0   :  { %12333 = vrcp.f32 %v6606_v31 }
0x16d1   :  { %v6603_v46 = vpop.xlane.xlu0 %6602 }
0x16d2   :  { %12335 = vrcp.f32 %v6603_v46 }
0x16d3   :  { %v6612_v48 = vpop.xlane.xlu1 %6611 }
0x16d4   :  { %12337 = vrcp.f32 %v6612_v48  ;;  %v9779_v48 = vld [vmem:[%s15495_s8 + $0x7] ss:$0 sm:$0xff] }
0x16d5   :  { %v6609_v0 = vpop.xlane.xlu0 %6608 }
0x16d6   :  { %12339 = vrcp.f32 %v6609_v0  ;;  %v6988_v0 = vadd.f32 %v9779_v48, %v14752_v58  ;;  %v6268_v58 = vadd.f32 %v14688_v4, %v14595_v33  ;;  %v6288_v4 = vadd.f32 %v14696_v55, %v14614_v35  ;;  %v12445_v35 = vld [vmem:[%s15496_s10 + $0x8] sm:$0xff] }
0x16d7   :  { %v6618_v38 = vpop.xlane.xlu1 %6617 }
0x16d8   :  { %12341 = vrcp.f32 %v6618_v38  ;;  %v6993_v38 = vadd.f32 %v14750_v20, %v9779_v48 }
0x16d9   :  { %v6615_v14 = vpop.xlane.xlu0 %6614 }
0x16da   :  { %12343 = vrcp.f32 %v6615_v14  ;;  %v6998_v14 = vadd.f32 %v9779_v48, %v14756_v56  ;;  %v6283_v56 = vadd.f32 %v14690_v18, %v14599_v12  ;;  %v6303_v18 = vadd.f32 %v14698_v63, %v14616_v44  ;;  %v12446_v44 = vld [vmem:[%s15496_s10] sm:$0xff] }
0x16db   :  { %v6624_v7 = vpop.xlane.xlu1 %6623 }
0x16dc   :  { %12345 = vrcp.f32 %v6624_v7 }
0x16dd   :  { %v6621_v22 = vpop.xlane.xlu0 %6620  ;;  %v12334_v13 = vpop.eup %12333 }
0x16de   :  { %12347 = vrcp.f32 %v6621_v22  ;;  %v6634_v3 = vmul.f32 %v12334_v13, %v12318_v50 }
0x16df   :  { %v12336_v45 = vpop.eup %12335 }
0x16e0   :  { %v6633_v47 = vmul.f32 %v12336_v45, %v12320_v53 }
0x16e1   :  { %v12338_v59 = vpop.eup %12337 }
0x16e2   :  { %11741 = vmatprep.mubr.msk.f32.mxu1 %vm2421_vm14, %v6633_v47  ;;  %v6636_v54 = vmul.f32 %v12338_v59, %v12322_v30 }
0x16e3   :  { %v12340_v51 = vpop.eup %12339  ;;  %11742 = vmatmul.mubr.msk.f32.vlgmr.msra.gmra.mxu1 %vm2421_vm14, %v6634_v3 }
0x16e4   :  { %11774 = vmatpush3.xpose.msk.msra.mxu1 %vm327_vm1, %v14150_v37  ;;  %v6635_v16 = vmul.f32 %v12340_v51, %v12324_v1 }
0x16e5   :  { %11775 = vmatprep.subr.msk.mxu1 %vm327_vm1, %v14156_v9  ;;  %v12342_v11 = vpop.eup %12341 }
0x16e6   :  { %11744 = vmatprep.mubr.msk.f32.mxu1 %vm2421_vm14, %v6635_v16  ;;  %v6638_v53 = vmul.f32 %v12342_v11, %v12326_v41  ;;  %v6968_v41 = vadd.f32 %v9779_v48, %v14744_v15  ;;  %v6973_v15 = vadd.f32 %v14740_v62, %v9779_v48  ;;  %v7003_v62 = vadd.f32 %v14754_v24, %v9779_v48 }
0x16e7   :  { %v12344_v31 = vpop.eup %12343  ;;  %11745 = vmatmul.mubr.msk.f32.gmra.mxu1 %vm2421_vm14, %v6636_v54  ;;  %v6278_v24 = vadd.f32 %v14692_v6, %v14603_v60  ;;  %v6298_v6 = vadd.f32 %v14700_v25, %v14618_v49  ;;  %v12447_v25 = vld [vmem:[%s15496_s10 + $0x18] sm:$0xff] }
0x16e8   :  { %11776 = vmatpush3.xpose.msk.msra.mxu1 %vm327_vm1, %v14156_v9  ;;  %v6637_v50 = vmul.f32 %v12344_v31, %v12328_v19 }
0x16e9   :  { %11777 = vmatprep.subr.msk.mxu1 %vm327_vm1, %v14148_v39  ;;  %v12346_v46 = vpop.eup %12345 }
0x16ea   :  { %11747 = vmatprep.mubr.msk.f32.mxu1 %vm2421_vm14, %v6637_v50  ;;  %v6640_v19 = vmul.f32 %v12346_v46, %v12330_v40  ;;  %v6978_v40 = vadd.f32 %v9779_v48, %v14748_v34  ;;  %v12448_v46 = vld [vmem:[%s15496_s10 + $0x10] sm:$0xff] }
0x16eb   :  { %v12348_v1 = vpop.eup %12347  ;;  %11748 = vmatmul.mubr.msk.f32.gmra.mxu1 %vm2421_vm14, %v6638_v53 }
0x16ec   :  { %11778 = vmatpush3.xpose.msk.msra.mxu1 %vm327_vm1, %v14148_v39  ;;  %v6639_v30 = vmul.f32 %v12348_v1, %v12332_v28  ;;  %v6983_v28 = vadd.f32 %v14746_v43, %v9779_v48  ;;  %v6273_v43 = vadd.f32 %v14686_v27, %v14591_v61  ;;  %v6293_v61 = vadd.f32 %v14694_v52, %v14607_v2 }
0x16ed   :  { %11779 = vmatprep.subr.msk.mxu1 %vm327_vm1, %v14142_v42 }
0x16ee   :  { %11750 = vmatprep.mubr.msk.f32.mxu1 %vm2421_vm14, %v6639_v30 }
0x16ef   :  { %11751 = vmatmul.mubr.msk.f32.gmra.mxu1 %vm2421_vm14, %v6640_v19  ;;  %v12449_v19 = vld [vmem:[%s15496_s10 + $0x28] sm:$0xff] }
0x16f0   :  { %11780 = vmatpush3.xpose.msk.msra.mxu1 %vm327_vm1, %v14142_v42  ;;  %11789 = vmatprep.mubr.msk.f32.mxu1 %vm327_vm1, %v6968_v41 }
0x16f1   :  { %11781 = vmatprep.subr.msk.mxu1 %vm327_vm1, %v14132_v10 }
0x16f4   :  { %11782 = vmatpush3.xpose.msk.msra.mxu1 %vm327_vm1, %v14132_v10 }
0x16f5   :  { %11783 = vmatprep.subr.msk.mxu1 %vm327_vm1, %v14126_v21 }
0x16f8   :  { %11784 = vmatpush3.xpose.msk.msra.mxu1 %vm327_vm1, %v14126_v21 }
0x16f9   :  { %11785 = vmatprep.subr.msk.mxu1 %vm327_vm1, %v14116_v36 }
0x16fc   :  { %11786 = vmatpush3.xpose.msk.msra.mxu1 %vm327_vm1, %v14116_v36 }
0x16fd   :  { %11787 = vmatprep.subr.msk.mxu1 %vm327_vm1, %v14113_v5 }
0x1700   :  { %11788 = vmatpush3.xpose.msk.msra.mxu1 %vm327_vm1, %v14113_v5 }
0x1703   :  { %11790 = vmatmul.mubr.msk.f32.vlgmr.msra.gmra.mxu1 %vm327_vm1, %v6973_v15 }
0x1704   :  { %11792 = vmatprep.mubr.msk.f32.mxu1 %vm327_vm1, %v6978_v40 }
0x1707   :  { %11793 = vmatmul.mubr.msk.f32.gmra.mxu1 %vm327_vm1, %v6983_v28  ;;  %v12450_v28 = vld [vmem:[%s15496_s10 + $0x20] sm:$0xff] }
0x1708   :  { %11795 = vmatprep.mubr.msk.f32.mxu1 %vm327_vm1, %v6988_v0 }
0x170b   :  { %11796 = vmatmul.mubr.msk.f32.gmra.mxu1 %vm327_vm1, %v6993_v38 }
0x170c   :  { %11798 = vmatprep.mubr.msk.f32.mxu1 %vm327_vm1, %v6998_v14 }
0x170f   :  { %11799 = vmatmul.mubr.msk.f32.gmra.mxu1 %vm327_vm1, %v7003_v62  ;;  %v12451_v62 = vld [vmem:[%s15496_s10 + $0x38] sm:$0xff] }
0x17a3   :  { %v11743_v34 = vpop.f32.mrf.mxu1 }
0x17a4   :  { %v14835_v7 = vadd.f32 %v11743_v34, %v6273_v43 }
0x17a5   :  { %v6841_v20 = vpop.f32.mrf.mxu1 }
0x17a6   :  { %v14839_v22 = vadd.f32 %v6841_v20, %v6268_v58  ;;  %v12452_v20 = vld [vmem:[%s15496_s10 + $0x30] sm:$0xff] }
0x17a7   :  { %v11746_v13 = vpop.f32.mrf.mxu1 }
0x17a8   :  { %v14843_v45 = vadd.f32 %v11746_v13, %v6283_v56 }
0x17a9   :  { %v6851_v47 = vpop.f32.mrf.mxu1 }
0x17aa   :  { %v14847_v27 = vadd.f32 %v6851_v47, %v6278_v24 }
0x17ab   :  { %v11749_v33 = vpop.f32.mrf.mxu1 }
0x17ac   :  { %v14851_v3 = vadd.f32 %v11749_v33, %v6293_v61 }
0x17ad   :  { %v6861_v12 = vpop.f32.mrf.mxu1 }
0x17ae   :  { %v14855_v59 = vadd.f32 %v6861_v12, %v6288_v4 }
0x17af   :  { %v11752_v60 = vpop.f32.mrf.mxu1 }
0x17b0   :  { %v14859_v51 = vadd.f32 %v11752_v60, %v6303_v18 }
0x17b1   :  { %v6871_v2 = vpop.f32.mrf.mxu1 }
0x17b2   :  { %v14861_v52 = vadd.f32 %v6871_v2, %v6298_v6 }
0x17c3   :  { %v11791_v16 = vpop.f32.mrf.mxu1 }
0x17c4   :  { %v7102_v55 = vadd.f32 %v12445_v35, %v11791_v16 }
0x17c5   :  { %v7096_v54 = vpop.f32.mrf.mxu1 }
0x17c6   :  { %v7097_v63 = vadd.f32 %v12446_v44, %v7096_v54  ;;  %v7138_v11 = vsel %vm2421_vm14, %v7102_v55, -inf }
0x17c7   :  { %7139 = vmax.xlane.f32.xlu1 %v7138_v11  ;;  %v11794_v49 = vpop.f32.mrf.mxu1 }
0x17c8   :  { %v7112_v31 = vadd.f32 %v12447_v25, %v11794_v49  ;;  %v7135_v50 = vsel %vm2421_vm14, %v7097_v63, -inf }
0x17c9   :  { %v7106_v53 = vpop.f32.mrf.mxu1  ;;  %7136 = vmax.xlane.f32.xlu0 %v7135_v50 }
0x17ca   :  { %v7107_v1 = vadd.f32 %v12448_v46, %v7106_v53  ;;  %v7144_v30 = vsel %vm2421_vm14, %v7112_v31, -inf }
0x17cb   :  { %7145 = vmax.xlane.f32.xlu1 %v7144_v30  ;;  %v11797_v48 = vpop.f32.mrf.mxu1 }
0x17cc   :  { %v7122_v41 = vadd.f32 %v12449_v19, %v11797_v48  ;;  %v7141_v15 = vsel %vm2421_vm14, %v7107_v1, -inf }
0x17cd   :  { %v7116_v40 = vpop.f32.mrf.mxu1  ;;  %7142 = vmax.xlane.f32.xlu0 %v7141_v15 }
0x17ce   :  { %v7117_v0 = vadd.f32 %v12450_v28, %v7116_v40  ;;  %v7150_v38 = vsel %vm2421_vm14, %v7122_v41, -inf }
0x17cf   :  { %7151 = vmax.xlane.f32.xlu1 %v7150_v38  ;;  %v11800_v14 = vpop.f32.mrf.mxu1 }
0x17d0   :  { %v7132_v43 = vadd.f32 %v12451_v62, %v11800_v14  ;;  %v7147_v34 = vsel %vm2421_vm14, %v7117_v0, -inf }
0x17d1   :  { %v7126_v58 = vpop.f32.mrf.mxu1  ;;  %7148 = vmax.xlane.f32.xlu0 %v7147_v34 }
0x17d2   :  { %v7127_v56 = vadd.f32 %v12452_v20, %v7126_v58  ;;  %v7156_v13 = vsel %vm2421_vm14, %v7132_v43, -inf }
0x17d3   :  { %7157 = vmax.xlane.f32.xlu1 %v7156_v13 }
0x17d4   :  { %v7153_v24 = vsel %vm2421_vm14, %v7127_v56, -inf }
0x17d5   :  { %7154 = vmax.xlane.f32.xlu0 %v7153_v24 }
0x1850   :  { %v7140_v47 = vpop.xlane.xlu1 %7139 }
0x1851   :  { %v7160_v61 = vsub.f32 %v7102_v55, %v7140_v47 }
0x1852   :  { %v7137_v33 = vpop.xlane.xlu0 %7136 }
0x1853   :  { %v7169_v4 = vmul.f32 1.442695, %v7160_v61  ;;  %v7159_v12 = vsub.f32 %v7097_v63, %v7137_v33 }
0x1854   :  { %v7146_v18 = vpop.xlane.xlu1 %7145 }
0x1855   :  { %12349 = vpow2.f32 %v7169_v4  ;;  %v7167_v60 = vmul.f32 1.442695, %v7159_v12  ;;  %v7162_v6 = vsub.f32 %v7112_v31, %v7146_v18 }
0x1856   :  { %v7143_v2 = vpop.xlane.xlu0 %7142 }
0x1857   :  { %12351 = vpow2.f32 %v7167_v60  ;;  %v7173_v16 = vmul.f32 1.442695, %v7162_v6  ;;  %v7161_v35 = vsub.f32 %v7107_v1, %v7143_v2 }
0x1858   :  { %v7152_v54 = vpop.xlane.xlu1 %7151 }
0x1859   :  { %12353 = vpow2.f32 %v7173_v16  ;;  %v7171_v44 = vmul.f32 1.442695, %v7161_v35  ;;  %v7164_v11 = vsub.f32 %v7122_v41, %v7152_v54 }
0x185a   :  { %v7149_v49 = vpop.xlane.xlu0 %7148 }
0x185b   :  { %12355 = vpow2.f32 %v7171_v44  ;;  %v7177_v25 = vmul.f32 1.442695, %v7164_v11  ;;  %v7163_v50 = vsub.f32 %v7117_v0, %v7149_v49 }
0x185c   :  { %v7158_v55 = vpop.xlane.xlu1 %7157 }
0x185d   :  { %12357 = vpow2.f32 %v7177_v25  ;;  %v7175_v53 = vmul.f32 1.442695, %v7163_v50  ;;  %v7166_v63 = vsub.f32 %v7132_v43, %v7158_v55 }
0x185e   :  { %v7155_v46 = vpop.xlane.xlu0 %7154 }
0x185f   :  { %12359 = vpow2.f32 %v7175_v53  ;;  %v7181_v30 = vmul.f32 1.442695, %v7166_v63  ;;  %v7165_v31 = vsub.f32 %v7127_v56, %v7155_v46 }
0x1861   :  { %12361 = vpow2.f32 %v7181_v30  ;;  %v7179_v48 = vmul.f32 1.442695, %v7165_v31 }
0x1862   :  { %v12350_v19 = vpop.eup %12349 }
0x1863   :  { %12363 = vpow2.f32 %v7179_v48  ;;  %v7186_v1 = vsel %vm2421_vm14, %v12350_v19, 0.0  ;;  %v14914_v48 = vld [vmem:[%s15497_s14 + $0x8] sm:$0x3f] }
0x1864   :  { %v12352_v15 = vpop.eup %12351  ;;  %7187 = vadd.xlane.f32.xlu1 %v7186_v1 }
0x1865   :  { %v7183_v41 = vsel %vm2421_vm14, %v12352_v15, 0.0 }
0x1866   :  { %v12354_v40 = vpop.eup %12353  ;;  %7184 = vadd.xlane.f32.xlu0 %v7183_v41 }
0x1867   :  { %v7192_v28 = vsel %vm2421_vm14, %v12354_v40, 0.0 }
0x1868   :  { %v12356_v0 = vpop.eup %12355  ;;  %7193 = vadd.xlane.f32.xlu1 %v7192_v28 }
0x1869   :  { %v7189_v38 = vsel %vm2421_vm14, %v12356_v0, 0.0 }
0x186a   :  { %v12358_v14 = vpop.eup %12357  ;;  %7190 = vadd.xlane.f32.xlu0 %v7189_v38 }
0x186b   :  { %v7198_v62 = vsel %vm2421_vm14, %v12358_v14, 0.0 }
0x186c   :  { %v12360_v43 = vpop.eup %12359  ;;  %7199 = vadd.xlane.f32.xlu1 %v7198_v62 }
0x186d   :  { %v7195_v34 = vsel %vm2421_vm14, %v12360_v43, 0.0 }
0x186e   :  { %v12362_v58 = vpop.eup %12361  ;;  %7196 = vadd.xlane.f32.xlu0 %v7195_v34 }
0x186f   :  { %v7204_v20 = vsel %vm2421_vm14, %v12362_v58, 0.0 }
0x1870   :  { %v12364_v56 = vpop.eup %12363  ;;  %7205 = vadd.xlane.f32.xlu1 %v7204_v20 }
0x1871   :  { %v7201_v13 = vsel %vm2421_vm14, %v12364_v56, 0.0 }
0x1872   :  { %7202 = vadd.xlane.f32.xlu0 %v7201_v13 }
0x18ed   :  { %v7188_v24 = vpop.xlane.xlu1 %7187 }
0x18ee   :  { %12365 = vrcp.f32 %v7188_v24 }
0x18ef   :  { %v7185_v47 = vpop.xlane.xlu0 %7184 }
0x18f0   :  { %12367 = vrcp.f32 %v7185_v47 }
0x18f1   :  { %v7194_v61 = vpop.xlane.xlu1 %7193 }
0x18f2   :  { %12369 = vrcp.f32 %v7194_v61 }
0x18f3   :  { %v7191_v33 = vpop.xlane.xlu0 %7190 }
0x18f4   :  { %12371 = vrcp.f32 %v7191_v33 }
0x18f5   :  { %v7200_v4 = vpop.xlane.xlu1 %7199 }
0x18f6   :  { %12373 = vrcp.f32 %v7200_v4 }
0x18f7   :  { %v7197_v12 = vpop.xlane.xlu0 %7196 }
0x18f8   :  { %12375 = vrcp.f32 %v7197_v12 }
0x18f9   :  { %v7206_v18 = vpop.xlane.xlu1 %7205 }
0x18fa   :  { %12377 = vrcp.f32 %v7206_v18 }
0x18fb   :  { %v7203_v60 = vpop.xlane.xlu0 %7202  ;;  %v12366_v6 = vpop.eup %12365 }
0x18fc   :  { %12379 = vrcp.f32 %v7203_v60  ;;  %v7216_v35 = vmul.f32 %v12366_v6, %v12350_v19 }
0x18fd   :  { %v12368_v2 = vpop.eup %12367 }
0x18fe   :  { %v7215_v16 = vmul.f32 %v12368_v2, %v12352_v15  ;;  %v7481_v15 = vrot.slane %v14914_v48, %v4496_v8 }
0x18ff   :  { %v12370_v54 = vpop.eup %12369 }
0x1900   :  { %11837 = vmatprep.mubr.msk.f32.mxu0 %vm2421_vm14, %v7215_v16  ;;  %v7218_v49 = vmul.f32 %v12370_v54, %v12354_v40 }
0x1901   :  { %v12372_v44 = vpop.eup %12371  ;;  %11838 = vmatmul.mubr.msk.f32.vlgmr.msra.gmra.mxu0 %vm2421_vm14, %v7216_v35 }
0x1902   :  { %v7217_v11 = vmul.f32 %v12372_v44, %v12356_v0 }
0x1903   :  { %v12374_v25 = vpop.eup %12373 }
0x1904   :  { %11840 = vmatprep.mubr.msk.f32.mxu0 %vm2421_vm14, %v7217_v11  ;;  %v7220_v53 = vmul.f32 %v12374_v25, %v12358_v14 }
0x1905   :  { %v12376_v50 = vpop.eup %12375  ;;  %11841 = vmatmul.mubr.msk.f32.gmra.mxu0 %vm2421_vm14, %v7218_v49 }
0x1906   :  { %v7219_v55 = vmul.f32 %v12376_v50, %v12360_v43 }
0x1907   :  { %v12378_v63 = vpop.eup %12377 }
0x1908   :  { %11843 = vmatprep.mubr.msk.f32.mxu0 %vm2421_vm14, %v7219_v55  ;;  %v7222_v31 = vmul.f32 %v12378_v63, %v12362_v58 }
0x1909   :  { %v12380_v46 = vpop.eup %12379  ;;  %11844 = vmatmul.mubr.msk.f32.gmra.mxu0 %vm2421_vm14, %v7220_v53 }
0x190a   :  { %v7221_v30 = vmul.f32 %v12380_v46, %v12364_v56 }
0x190c   :  { %11846 = vmatprep.mubr.msk.f32.mxu0 %vm2421_vm14, %v7221_v30 }
0x190d   :  { %11847 = vmatmul.mubr.msk.f32.gmra.mxu0 %vm2421_vm14, %v7222_v31 }
0x19c1   :  { %v11839_v19 = vpop.f32.mrf.mxu0 }
0x19c2   :  { %v7463_v1 = vadd.f32 %v11839_v19, %v14835_v7 }
0x19c3   :  { %v7423_v41 = vpop.f32.mrf.mxu0 }
0x19c4   :  { %v7471_v40 = vadd.f32 %v7463_v1, %v14116_v36  ;;  %v7462_v28 = vadd.f32 %v7423_v41, %v14839_v22 }
0x19c5   :  { %v11842_v0 = vpop.f32.mrf.mxu0 }
0x19c6   :  { %v7470_v38 = vadd.f32 %v7462_v28, %v14113_v5  ;;  %v7465_v14 = vadd.f32 %v11842_v0, %v14843_v45  ;;  %v7483_v62 = vadd.f32 %v7481_v15, %v7471_v40 }
0x19c7   :  { %v7433_v43 = vpop.f32.mrf.mxu0 }
0x19c8   :  { %v7473_v34 = vadd.f32 %v7465_v14, %v14132_v10  ;;  %v7464_v7 = vadd.f32 %v7433_v43, %v14847_v27  ;;  %v7493_v58 = vsel %vm327_vm1, %v7483_v62, 0.0  ;;  %v7482_v20 = vadd.f32 %v7481_v15, %v7470_v38 }
0x19c9   :  { %7494 = vadd.xlane.f32.xlu1 %v7493_v58  ;;  %v11845_v8 = vpop.f32.mrf.mxu0 }
0x19ca   :  { %v7472_v36 = vadd.f32 %v7464_v7, %v14126_v21  ;;  %v7467_v22 = vadd.f32 %v11845_v8, %v14851_v3  ;;  %v7490_v56 = vsel %vm327_vm1, %v7482_v20, 0.0  ;;  %v7485_v5 = vadd.f32 %v7481_v15, %v7473_v34 }
0x19cb   :  { %7491 = vadd.xlane.f32.xlu0 %v7490_v56  ;;  %v7443_v45 = vpop.f32.mrf.mxu0 }
0x19cc   :  { %v7475_v13 = vadd.f32 %v7467_v22, %v14148_v39  ;;  %v7466_v10 = vadd.f32 %v7443_v45, %v14855_v59  ;;  %v7499_v27 = vsel %vm327_vm1, %v7485_v5, 0.0  ;;  %v7484_v24 = vadd.f32 %v7481_v15, %v7472_v36 }
0x19cd   :  { %7500 = vadd.xlane.f32.xlu1 %v7499_v27  ;;  %v11848_v47 = vpop.f32.mrf.mxu0 }
0x19ce   :  { %v7474_v61 = vadd.f32 %v7466_v10, %v14142_v42  ;;  %v7469_v21 = vadd.f32 %v11848_v47, %v14859_v51  ;;  %v7496_v3 = vsel %vm327_vm1, %v7484_v24, 0.0  ;;  %v7487_v33 = vadd.f32 %v7481_v15, %v7475_v13  ;;  %v9826_v47 = vld [vmem:[%s15498_s11 + $0x30] sm:$0xff] }
0x19cf   :  { %7497 = vadd.xlane.f32.xlu0 %v7496_v3  ;;  %v7453_v4 = vpop.f32.mrf.mxu0 }
0x19d0   :  { %v7477_v12 = vadd.f32 %v7469_v21, %v14150_v37  ;;  %v7468_v39 = vadd.f32 %v7453_v4, %v14861_v52  ;;  %v7505_v59 = vsel %vm327_vm1, %v7487_v33, 0.0  ;;  %v7486_v18 = vadd.f32 %v7481_v15, %v7474_v61  ;;  %v9825_v61 = vld [vmem:[%s15498_s11 + $0x28] sm:$0xff]  ;;  %v9824_v21 = vld [vmem:[%s15498_s11 + $0x20] sm:$0xff] }
0x19d1   :  { %7506 = vadd.xlane.f32.xlu1 %v7505_v59 }
0x19d2   :  { %v7476_v60 = vadd.f32 %v7468_v39, %v14156_v9  ;;  %v7502_v6 = vsel %vm327_vm1, %v7486_v18, 0.0  ;;  %v7489_v42 = vadd.f32 %v7481_v15, %v7477_v12 }
0x19d3   :  { %7503 = vadd.xlane.f32.xlu0 %v7502_v6 }
0x19d4   :  { %v7511_v51 = vsel %vm327_vm1, %v7489_v42, 0.0  ;;  %v7488_v2 = vadd.f32 %v7481_v15, %v7476_v60 }
0x19d5   :  { %7512 = vadd.xlane.f32.xlu1 %v7511_v51 }
0x19d6   :  { %v7508_v16 = vsel %vm327_vm1, %v7488_v2, 0.0 }
0x19d7   :  { %7509 = vadd.xlane.f32.xlu0 %v7508_v16 }
0x1a52   :  { %v7495_v37 = vpop.xlane.xlu1 %7494 }
0x1a53   :  { %v7515_v35 = vmul.f32 0.03125, %v7495_v37 }
0x1a54   :  { %v7492_v52 = vpop.xlane.xlu0 %7491 }
0x1a55   :  { %v14943_v54 = vsub.f32 %v7483_v62, %v7515_v35  ;;  %v7514_v44 = vmul.f32 0.03125, %v7492_v52 }
0x1a56   :  { %v7501_v11 = vpop.xlane.xlu1 %7500 }
0x1a57   :  { %v14945_v49 = vsub.f32 %v7482_v20, %v7514_v44  ;;  %v7517_v9 = vmul.f32 0.03125, %v7501_v11  ;;  %v7531_v25 = vmul.f32 %v14943_v54, %v14943_v54 }
0x1a58   :  { %v7498_v50 = vpop.xlane.xlu0 %7497 }
0x1a59   :  { %v14949_v55 = vsub.f32 %v7485_v5, %v7517_v9  ;;  %v7516_v53 = vmul.f32 0.03125, %v7498_v50  ;;  %v7541_v63 = vsel %vm327_vm1, %v7531_v25, 0.0  ;;  %v7530_v46 = vmul.f32 %v14945_v49, %v14945_v49 }
0x1a5a   :  { %v7507_v30 = vpop.xlane.xlu1 %7506  ;;  %7542 = vadd.xlane.f32.xlu1 %v7541_v63 }
0x1a5b   :  { %v14954_v31 = vsub.f32 %v7484_v24, %v7516_v53  ;;  %v7519_v19 = vmul.f32 0.03125, %v7507_v30  ;;  %v7538_v1 = vsel %vm327_vm1, %v7530_v46, 0.0  ;;  %v7533_v15 = vmul.f32 %v14949_v55, %v14949_v55  ;;  %v9827_v24 = vld [vmem:[%s15498_s11 + $0x38] sm:$0xff] }
0x1a5c   :  { %v7504_v41 = vpop.xlane.xlu0 %7503  ;;  %7539 = vadd.xlane.f32.xlu0 %v7538_v1  ;;  %11849 = vmatprep.subr.mxu1 %v9827_v24 }
0x1a5d   :  { %v14959_v40 = vsub.f32 %v7487_v33, %v7519_v19  ;;  %v7518_v28 = vmul.f32 0.03125, %v7504_v41  ;;  %v7547_v0 = vsel %vm327_vm1, %v7533_v15, 0.0  ;;  %v7532_v38 = vmul.f32 %v14954_v31, %v14954_v31  ;;  %11850 = vmatpush3.msra.mxu1 %v9827_v24 }
0x1a5e   :  { %7548 = vadd.xlane.f32.xlu1 %v7547_v0  ;;  %v7513_v14 = vpop.xlane.xlu1 %7512  ;;  %11851 = vmatprep.subr.mxu1 %v9826_v47  ;;  %v7597_v19 = vrot.slane %v14914_v48, %v4613_v23  ;;  %v7609_v0 = vrot.slane %v14914_v48, %v4625_v26 }
0x1a5f   :  { %v14964_v62 = vsub.f32 %v7486_v18, %v7518_v28  ;;  %v7521_v43 = vmul.f32 0.03125, %v7513_v14  ;;  %v7544_v34 = vsel %vm327_vm1, %v7532_v38, 0.0  ;;  %v7535_v7 = vmul.f32 %v14959_v40, %v14959_v40  ;;  %11852 = vmatpush3.msra.mxu1 %v9826_v47 }
0x1a60   :  { %7545 = vadd.xlane.f32.xlu0 %v7544_v34  ;;  %v7510_v58 = vpop.xlane.xlu0 %7509  ;;  %11853 = vmatprep.subr.mxu1 %v9825_v61 }
0x1a61   :  { %v14969_v20 = vsub.f32 %v7489_v42, %v7521_v43  ;;  %v7520_v8 = vmul.f32 0.03125, %v7510_v58  ;;  %v7553_v36 = vsel %vm327_vm1, %v7535_v7, 0.0  ;;  %v7534_v22 = vmul.f32 %v14964_v62, %v14964_v62  ;;  %11854 = vmatpush3.msra.mxu1 %v9825_v61 }
0x1a62   :  { %7554 = vadd.xlane.f32.xlu1 %v7553_v36  ;;  %11855 = vmatprep.subr.mxu1 %v9824_v21 }
0x1a63   :  { %v14974_v56 = vsub.f32 %v7488_v2, %v7520_v8  ;;  %v7550_v5 = vsel %vm327_vm1, %v7534_v22, 0.0  ;;  %v7537_v45 = vmul.f32 %v14969_v20, %v14969_v20  ;;  %11856 = vmatpush3.msra.mxu1 %v9824_v21 }
0x1a64   :  { %7551 = vadd.xlane.f32.xlu0 %v7550_v5 }
0x1a65   :  { %v7559_v13 = vsel %vm327_vm1, %v7537_v45, 0.0  ;;  %v7536_v10 = vmul.f32 %v14974_v56, %v14974_v56 }
0x1a66   :  { %7560 = vadd.xlane.f32.xlu1 %v7559_v13 }
0x1a67   :  { %v7556_v27 = vsel %vm327_vm1, %v7536_v10, 0.0 }
0x1a68   :  { %7557 = vadd.xlane.f32.xlu0 %v7556_v27 }
0x1ae3   :  { %v7543_v3 = vpop.xlane.xlu1 %7542 }
0x1ae4   :  { %v7563_v33 = vmul.f32 0.03125, %v7543_v3  ;;  %v9844_v3 = vld [vmem:[%s15499_s13 + $0x70] sm:$0xff] }
0x1ae5   :  { %v7540_v4 = vpop.xlane.xlu0 %7539 }
0x1ae6   :  { %v7571_v12 = vadd.f32 1e-05, %v7563_v33  ;;  %v7562_v39 = vmul.f32 0.03125, %v7540_v4  ;;  %v9843_v33 = vld [vmem:[%s15499_s13 + $0x68] sm:$0xff]  ;;  %v9842_v4 = vld [vmem:[%s15499_s13 + $0x60] sm:$0xff] }
0x1ae7   :  { %v7549_v59 = vpop.xlane.xlu1 %7548 }
0x1ae8   :  { %12381 = vrsqrt.f32 %v7571_v12  ;;  %v7570_v18 = vadd.f32 1e-05, %v7562_v39  ;;  %v7565_v60 = vmul.f32 0.03125, %v7549_v59  ;;  %v9841_v12 = vld [vmem:[%s15499_s13 + $0x58] sm:$0xff]  ;;  %v9840_v39 = vld [vmem:[%s15499_s13 + $0x50] sm:$0xff]  ;;  %v9839_v59 = vld [vmem:[%s15499_s13 + $0x48] sm:$0xff] }
0x1ae9   :  { %v7546_v6 = vpop.xlane.xlu0 %7545 }
0x1aea   :  { %12383 = vrsqrt.f32 %v7570_v18  ;;  %v7573_v42 = vadd.f32 1e-05, %v7565_v60  ;;  %v7564_v51 = vmul.f32 0.03125, %v7546_v6  ;;  %v9838_v18 = vld [vmem:[%s15499_s13 + $0x40] sm:$0xff] }
0x1aeb   :  { %v7555_v2 = vpop.xlane.xlu1 %7554  ;;  %v9829_v60 = vld [vmem:[%s15500_s12 + $0x1] ss:$0 sm:$0xff] }
0x1aec   :  { %12385 = vrsqrt.f32 %v7573_v42  ;;  %v7572_v16 = vadd.f32 1e-05, %v7564_v51  ;;  %v7567_v37 = vmul.f32 0.03125, %v7555_v2 }
0x1aed   :  { %v7552_v35 = vpop.xlane.xlu0 %7551 }
0x1aee   :  { %12387 = vrsqrt.f32 %v7572_v16  ;;  %v7575_v52 = vadd.f32 1e-05, %v7567_v37  ;;  %v7566_v44 = vmul.f32 0.03125, %v7552_v35 }
0x1aef   :  { %v7561_v11 = vpop.xlane.xlu1 %7560 }
0x1af0   :  { %12389 = vrsqrt.f32 %v7575_v52  ;;  %v7574_v9 = vadd.f32 1e-05, %v7566_v44  ;;  %v7569_v25 = vmul.f32 0.03125, %v7561_v11 }
0x1af1   :  { %v7558_v50 = vpop.xlane.xlu0 %7557 }
0x1af2   :  { %12391 = vrsqrt.f32 %v7574_v9  ;;  %v7577_v53 = vadd.f32 1e-05, %v7569_v25  ;;  %v7568_v63 = vmul.f32 0.03125, %v7558_v50 }
0x1af4   :  { %12393 = vrsqrt.f32 %v7577_v53  ;;  %v7576_v46 = vadd.f32 1e-05, %v7568_v63 }
0x1af5   :  { %v12382_v30 = vpop.eup %12381 }
0x1af6   :  { %v7587_v1 = vmul.f32 %v12382_v30, %v14943_v54  ;;  %12395 = vrsqrt.f32 %v7576_v46 }
0x1af7   :  { %v12384_v15 = vpop.eup %12383 }
0x1af8   :  { %v7586_v41 = vmul.f32 %v12384_v15, %v14945_v49  ;;  %v7599_v38 = vmul.f32 %v7597_v19, %v7587_v1 }
0x1af9   :  { %v12386_v28 = vpop.eup %12385 }
0x1afa   :  { %v7589_v14 = vmul.f32 %v12386_v28, %v14949_v55  ;;  %v7598_v43 = vmul.f32 %v7597_v19, %v7586_v41  ;;  %v15007_v54 = vadd.f32 %v7609_v0, %v7599_v38 }
0x1afb   :  { %v12388_v34 = vpop.eup %12387 }
0x1afc   :  { %v15004_v7 = vadd.f32 %v7609_v0, %v7598_v43  ;;  %v7588_v23 = vmul.f32 %v12388_v34, %v14954_v31  ;;  %v7601_v8 = vmul.f32 %v7597_v19, %v7589_v14 }
0x1afd   :  { %v12390_v58 = vpop.eup %12389 }
0x1afe   :  { %v7591_v49 = vmul.f32 %v12390_v58, %v14959_v40  ;;  %11857 = vmatprep.mubr.msk.f32.mxu1 %vm327_vm1, %v15004_v7  ;;  %v7600_v36 = vmul.f32 %v7597_v19, %v7588_v23  ;;  %v15017_v31 = vadd.f32 %v7609_v0, %v7601_v8 }
0x1aff   :  { %v12392_v26 = vpop.eup %12391  ;;  %11858 = vmatmul.mubr.msk.f32.vlgmr.msra.gmra.mxu1 %vm327_vm1, %v15007_v54 }
0x1b00   :  { %v15014_v55 = vadd.f32 %v7609_v0, %v7600_v36  ;;  %v7590_v22 = vmul.f32 %v12392_v26, %v14964_v62  ;;  %v7603_v45 = vmul.f32 %v7597_v19, %v7591_v49 }
0x1b01   :  { %v12394_v5 = vpop.eup %12393 }
0x1b02   :  { %v7593_v13 = vmul.f32 %v12394_v5, %v14969_v20  ;;  %11860 = vmatprep.mubr.msk.f32.mxu1 %vm327_vm1, %v15014_v55  ;;  %v7602_v40 = vmul.f32 %v7597_v19, %v7590_v22  ;;  %v15027_v47 = vadd.f32 %v7609_v0, %v7603_v45 }
0x1b03   :  { %v12396_v10 = vpop.eup %12395  ;;  %11861 = vmatmul.mubr.msk.f32.gmra.mxu1 %vm327_vm1, %v15017_v31 }
0x1b04   :  { %v15024_v27 = vadd.f32 %v7609_v0, %v7602_v40  ;;  %v7592_v24 = vmul.f32 %v12396_v10, %v14974_v56  ;;  %v7605_v62 = vmul.f32 %v7597_v19, %v7593_v13  ;;  %v9845_v56 = vld [vmem:[%s15499_s13 + $0x78] sm:$0xff] }
0x1b05   :  { %11869 = vmatprep.subr.mxu0 %v9845_v56 }
0x1b06   :  { %11863 = vmatprep.mubr.msk.f32.mxu1 %vm327_vm1, %v15024_v27  ;;  %v7604_v61 = vmul.f32 %v7597_v19, %v7592_v24  ;;  %v15035_v21 = vadd.f32 %v7609_v0, %v7605_v62  ;;  %11870 = vmatpush3.msra.mxu0 %v9845_v56 }
0x1b07   :  { %11864 = vmatmul.mubr.msk.f32.gmra.mxu1 %vm327_vm1, %v15027_v47  ;;  %11871 = vmatprep.subr.mxu0 %v9844_v3 }
0x1b08   :  { %v15033_v20 = vadd.f32 %v7609_v0, %v7604_v61  ;;  %11872 = vmatpush3.msra.mxu0 %v9844_v3 }
0x1b09   :  { %11873 = vmatprep.subr.mxu0 %v9843_v33 }
0x1b0a   :  { %11866 = vmatprep.mubr.msk.f32.mxu1 %vm327_vm1, %v15033_v20  ;;  %11874 = vmatpush3.msra.mxu0 %v9843_v33 }
0x1b0b   :  { %11867 = vmatmul.mubr.msk.f32.gmra.mxu1 %vm327_vm1, %v15035_v21  ;;  %11875 = vmatprep.subr.mxu0 %v9842_v4 }
0x1b0c   :  { %11876 = vmatpush3.msra.mxu0 %v9842_v4 }
0x1b0d   :  { %11877 = vmatprep.subr.mxu0 %v9841_v12 }
0x1b0e   :  { %11878 = vmatpush3.msra.mxu0 %v9841_v12 }
0x1b0f   :  { %11879 = vmatprep.subr.mxu0 %v9840_v39 }
0x1b10   :  { %11880 = vmatpush3.msra.mxu0 %v9840_v39 }
0x1b11   :  { %11881 = vmatprep.subr.mxu0 %v9839_v59 }
0x1b12   :  { %11882 = vmatpush3.msra.mxu0 %v9839_v59 }
0x1b13   :  { %11883 = vmatprep.subr.mxu0 %v9838_v18 }
0x1b14   :  { %11884 = vmatpush3.msra.mxu0 %v9838_v18 }
0x1bbf   :  { %v11859_v6 = vpop.f32.mrf.mxu1 }
0x1bc0   :  { %v15068_v42 = vadd.f32 %v11859_v6, %v9829_v60 }
0x1bc1   :  { %v7721_v51 = vpop.f32.mrf.mxu1 }
0x1bc2   :  { %v7769_v2 = vmul.f32 0.044715, %v15068_v42  ;;  %v15071_v16 = vadd.f32 %v9829_v60, %v7721_v51 }
0x1bc3   :  { %v11862_v37 = vpop.f32.mrf.mxu1 }
0x1bc4   :  { %v7777_v35 = vmul.f32 %v7769_v2, %v15068_v42  ;;  %v7768_v52 = vmul.f32 0.044715, %v15071_v16  ;;  %v15075_v44 = vadd.f32 %v11862_v37, %v9829_v60 }
0x1bc5   :  { %v7731_v11 = vpop.f32.mrf.mxu1 }
0x1bc6   :  { %v7785_v9 = vmul.f32 %v7777_v35, %v15068_v42  ;;  %v7776_v25 = vmul.f32 %v7768_v52, %v15071_v16  ;;  %v7771_v50 = vmul.f32 0.044715, %v15075_v44  ;;  %v15080_v53 = vadd.f32 %v9829_v60, %v7731_v11 }
0x1bc7   :  { %v11865_v63 = vpop.f32.mrf.mxu1 }
0x1bc8   :  { %v7793_v46 = vadd.f32 %v7785_v9, %v15068_v42  ;;  %v7784_v30 = vmul.f32 %v7776_v25, %v15071_v16  ;;  %v7779_v19 = vmul.f32 %v7771_v50, %v15075_v44  ;;  %v15085_v1 = vadd.f32 %v11865_v63, %v9829_v60 }
0x1bc9   :  { %v7770_v15 = vmul.f32 0.044715, %v15080_v53  ;;  %v7741_v41 = vpop.f32.mrf.mxu1  ;;  %v7760_v50 = vmul.f32 0.5, %v15071_v16 }
0x1bca   :  { %v7801_v28 = vmul.f32 0.7978846, %v7793_v46  ;;  %v7792_v0 = vadd.f32 %v7784_v30, %v15071_v16  ;;  %v7787_v38 = vmul.f32 %v7779_v19, %v15075_v44  ;;  %v7773_v43 = vmul.f32 0.044715, %v15085_v1 }
0x1bcb   :  { %v7778_v14 = vmul.f32 %v7770_v15, %v15080_v53  ;;  %v7742_v34 = vadd.f32 %v9829_v60, %v7741_v41  ;;  %v11868_v23 = vpop.f32.mrf.mxu1  ;;  %v7761_v46 = vmul.f32 0.5, %v15068_v42 }
0x1bcc   :  { %12397 = vtanh.f32 %v7801_v28  ;;  %v7795_v58 = vadd.f32 %v7787_v38, %v15075_v44  ;;  %v15093_v8 = vadd.f32 %v11868_v23, %v9829_v60  ;;  %v7800_v49 = vmul.f32 0.7978846, %v7792_v0 }
0x1bcd   :  { %v7786_v36 = vmul.f32 %v7778_v14, %v15080_v53  ;;  %v7781_v26 = vmul.f32 %v7773_v43, %v15085_v1  ;;  %v7772_v22 = vmul.f32 0.044715, %v7742_v34  ;;  %v7751_v5 = vpop.f32.mrf.mxu1  ;;  %v7762_v28 = vmul.f32 0.5, %v15080_v53 }
0x1bce   :  { %v7803_v45 = vmul.f32 0.7978846, %v7795_v58  ;;  %v7775_v13 = vmul.f32 0.044715, %v15093_v8  ;;  %v7752_v40 = vadd.f32 %v9829_v60, %v7751_v5  ;;  %12399 = vtanh.f32 %v7800_v49 }
0x1bcf   :  { %v7794_v10 = vadd.f32 %v7786_v36, %v15080_v53  ;;  %v7789_v24 = vmul.f32 %v7781_v26, %v15085_v1  ;;  %v7780_v62 = vmul.f32 %v7772_v22, %v7742_v34  ;;  %v7763_v14 = vmul.f32 0.5, %v15075_v44 }
0x1bd0   :  { %12401 = vtanh.f32 %v7803_v45  ;;  %v7783_v61 = vmul.f32 %v7775_v13, %v15093_v8  ;;  %v7774_v56 = vmul.f32 0.044715, %v7752_v40  ;;  %v7764_v42 = vmul.f32 0.5, %v7742_v34 }
0x1bd1   :  { %v7797_v3 = vadd.f32 %v7789_v24, %v15085_v1  ;;  %v7788_v33 = vmul.f32 %v7780_v62, %v7742_v34  ;;  %v7802_v4 = vmul.f32 0.7978846, %v7794_v10  ;;  %v7765_v26 = vmul.f32 0.5, %v15085_v1 }
0x1bd2   :  { %v7791_v12 = vmul.f32 %v7783_v61, %v15093_v8  ;;  %v7782_v39 = vmul.f32 %v7774_v56, %v7752_v40  ;;  %v7766_v45 = vmul.f32 0.5, %v7752_v40  ;;  %v7767_v10 = vmul.f32 0.5, %v15093_v8 }
0x1bd3   :  { %v7805_v59 = vmul.f32 0.7978846, %v7797_v3  ;;  %v7796_v18 = vadd.f32 %v7788_v33, %v7742_v34  ;;  %12403 = vtanh.f32 %v7802_v4  ;;  %v7981_v4 = vrot.slane %v14914_v48, %v4994_v29 }
0x1bd4   :  { %v7799_v60 = vadd.f32 %v7791_v12, %v15093_v8  ;;  %v7790_v6 = vmul.f32 %v7782_v39, %v7752_v40 }
0x1bd5   :  { %12405 = vtanh.f32 %v7805_v59  ;;  %v7804_v51 = vmul.f32 0.7978846, %v7796_v18 }
0x1bd6   :  { %v7807_v2 = vmul.f32 0.7978846, %v7799_v60  ;;  %v7798_v37 = vadd.f32 %v7790_v6, %v7752_v40 }
0x1bd7   :  { %12407 = vtanh.f32 %v7804_v51 }
0x1bd8   :  { %12409 = vtanh.f32 %v7807_v2  ;;  %v7806_v35 = vmul.f32 0.7978846, %v7798_v37 }
0x1bd9   :  { %v12398_v52 = vpop.eup %12397 }
0x1bda   :  { %12411 = vtanh.f32 %v7806_v35  ;;  %v7817_v9 = vadd.f32 1.0, %v12398_v52 }
0x1bdb   :  { %v12400_v11 = vpop.eup %12399 }
0x1bdc   :  { %v7816_v63 = vadd.f32 1.0, %v12400_v11  ;;  %v7825_v15 = vmul.f32 %v7817_v9, %v7761_v46 }
0x1bdd   :  { %v12402_v25 = vpop.eup %12401 }
0x1bde   :  { %v7824_v30 = vmul.f32 %v7816_v63, %v7760_v50  ;;  %v7819_v41 = vadd.f32 1.0, %v12402_v25 }
0x1be0   :  { %v12404_v19 = vpop.eup %12403  ;;  %11885 = vmatprep.mubr.msk.f32.mxu0 %vm2421_vm14, %v7824_v30  ;;  %v7827_v16 = vmul.f32 %v7819_v41, %v7763_v14 }
0x1be1   :  { %v7818_v0 = vadd.f32 1.0, %v12404_v19  ;;  %11886 = vmatmul.mubr.msk.f32.vlgmr.msra.gmra.mxu0 %vm2421_vm14, %v7825_v15 }
0x1be2   :  { %v12406_v38 = vpop.eup %12405 }
0x1be3   :  { %v7826_v43 = vmul.f32 %v7818_v0, %v7762_v28  ;;  %v7821_v58 = vadd.f32 1.0, %v12406_v38 }
0x1be4   :  { %v12408_v23 = vpop.eup %12407 }
0x1be5   :  { %v12410_v49 = vpop.eup %12409  ;;  %11888 = vmatprep.mubr.msk.f32.mxu0 %vm2421_vm14, %v7826_v43  ;;  %v7820_v36 = vadd.f32 1.0, %v12408_v23  ;;  %v7829_v5 = vmul.f32 %v7821_v58, %v7765_v26 }
0x1be6   :  { %11889 = vmatmul.mubr.msk.f32.gmra.mxu0 %vm2421_vm14, %v7827_v16  ;;  %v7823_v13 = vadd.f32 1.0, %v12410_v49 }
0x1be7   :  { %v12412_v53 = vpop.eup %12411  ;;  %v7828_v22 = vmul.f32 %v7820_v36, %v7764_v42 }
0x1be8   :  { %v7822_v44 = vadd.f32 1.0, %v12412_v53  ;;  %v7831_v34 = vmul.f32 %v7823_v13, %v7767_v10 }
0x1be9   :  { %11891 = vmatprep.mubr.msk.f32.mxu0 %vm2421_vm14, %v7828_v22 }
0x1bea   :  { %11892 = vmatmul.mubr.msk.f32.gmra.mxu0 %vm2421_vm14, %v7829_v5  ;;  %v7830_v24 = vmul.f32 %v7822_v44, %v7766_v45 }
0x1bec   :  { %11894 = vmatprep.mubr.msk.f32.mxu0 %vm2421_vm14, %v7830_v24 }
0x1bee   :  { %11895 = vmatmul.mubr.msk.f32.gmra.mxu0 %vm2421_vm14, %v7831_v34 }
0x1ca1   :  { %v11887_v1 = vpop.f32.mrf.mxu0 }
0x1ca3   :  { %v7931_v62 = vpop.f32.mrf.mxu0 }
0x1ca6   :  { %v11890_v61 = vpop.f32.mrf.mxu0 }
0x1ca7   :  { %v7973_v6 = vadd.f32 %v11890_v61, %v15017_v31 }
0x1ca8   :  { %v7941_v56 = vpop.f32.mrf.mxu0 }
0x1ca9   :  { %v7972_v35 = vadd.f32 %v7941_v56, %v15014_v55  ;;  %v7985_v52 = vadd.f32 %v7981_v4, %v7973_v6 }
0x1caa   :  { %v11893_v3 = vpop.f32.mrf.mxu0 }
0x1cab   :  { %v7975_v8 = vadd.f32 %v11893_v3, %v15027_v47  ;;  %v7984_v31 = vadd.f32 %v7981_v4, %v7972_v35  ;;  %v7999_v25 = vsel %vm327_vm1, %v7985_v52, 0.0 }
0x1cac   :  { %v7951_v40 = vpop.f32.mrf.mxu0 }
0x1cad   :  { %v7974_v59 = vadd.f32 %v7951_v40, %v15024_v27  ;;  %v7987_v51 = vadd.f32 %v7981_v4, %v7975_v8  ;;  %v7996_v50 = vsel %vm327_vm1, %v7984_v31, 0.0 }
0x1cae   :  { %v11896_v33 = vpop.f32.mrf.mxu0 }
0x1caf   :  { %v7977_v12 = vadd.f32 %v11896_v33, %v15035_v21  ;;  %v7986_v29 = vadd.f32 %v7981_v4, %v7974_v59  ;;  %v7971_v21 = vadd.f32 %v11887_v1, %v15007_v54  ;;  %v8005_v27 = vsel %vm327_vm1, %v7987_v51, 0.0 }
0x1cb0   :  { %v7961_v39 = vpop.f32.mrf.mxu0 }
0x1cb1   :  { %v7989_v18 = vadd.f32 %v7981_v4, %v7977_v12  ;;  %v7976_v60 = vadd.f32 %v7961_v39, %v15033_v20  ;;  %v7970_v20 = vadd.f32 %v7931_v62, %v15004_v7  ;;  %v8002_v11 = vsel %vm327_vm1, %v7986_v29, 0.0 }
0x1cb2   :  { %v7983_v9 = vadd.f32 %v7981_v4, %v7971_v21 }
0x1cb3   :  { %v7988_v2 = vadd.f32 %v7981_v4, %v7976_v60  ;;  %v8011_v37 = vsel %vm327_vm1, %v7989_v18, 0.0  ;;  %v7982_v55 = vadd.f32 %v7981_v4, %v7970_v20  ;;  %v8118_v60 = vld [vmem:[%s15501_s15] sm:$0xff] }
0x1cb4   :  { %8012 = vadd.xlane.f32.xlu0 %v8011_v37  ;;  %v7993_v54 = vsel %vm327_vm1, %v7983_v9, 0.0  ;;  %11913 = vmatprep.mubr.msk.f32.mxu1 %vm2421_vm14, %v8118_v60  ;;  %v8124_v60 = vld [vmem:[%s15501_s15 + $0x30] sm:$0xff] }
0x1cb5   :  { %v8008_v47 = vsel %vm327_vm1, %v7988_v2, 0.0  ;;  %v7990_v63 = vsel %vm327_vm1, %v7982_v55, 0.0 }
0x1cb6   :  { %8009 = vadd.xlane.f32.xlu1 %v8008_v47 }
0x1cb8   :  { %8006 = vadd.xlane.f32.xlu0 %v8005_v27 }
0x1cba   :  { %8003 = vadd.xlane.f32.xlu1 %v8002_v11 }
0x1cbc   :  { %8000 = vadd.xlane.f32.xlu0 %v7999_v25 }
0x1cbe   :  { %7997 = vadd.xlane.f32.xlu1 %v7996_v50 }
0x1cc0   :  { %7994 = vadd.xlane.f32.xlu0 %v7993_v54 }
0x1cc2   :  { %7991 = vadd.xlane.f32.xlu1 %v7990_v63 }
0x1d3d   :  { %v8013_v46 = vpop.xlane.xlu0 %8012 }
0x1d3e   :  { %v8021_v7 = vmul.f32 0.03125, %v8013_v46 }
0x1d3f   :  { %v8010_v30 = vpop.xlane.xlu1 %8009 }
0x1d40   :  { %v15137_v19 = vsub.f32 %v7989_v18, %v8021_v7  ;;  %v8020_v15 = vmul.f32 0.03125, %v8010_v30 }
0x1d41   :  { %v8007_v41 = vpop.xlane.xlu0 %8006 }
0x1d42   :  { %v15139_v28 = vsub.f32 %v7988_v2, %v8020_v15  ;;  %v8019_v0 = vmul.f32 0.03125, %v8007_v41  ;;  %v8037_v38 = vmul.f32 %v15137_v19, %v15137_v19 }
0x1d43   :  { %v8004_v14 = vpop.xlane.xlu1 %8003 }
0x1d44   :  { %v15143_v43 = vsub.f32 %v7987_v51, %v8019_v0  ;;  %v8018_v23 = vmul.f32 0.03125, %v8004_v14  ;;  %v8059_v16 = vsel %vm327_vm1, %v8037_v38, 0.0  ;;  %v8036_v58 = vmul.f32 %v15139_v28, %v15139_v28 }
0x1d45   :  { %8060 = vadd.xlane.f32.xlu0 %v8059_v16  ;;  %v8001_v49 = vpop.xlane.xlu0 %8000  ;;  %v8097_v0 = vrot.slane %v14914_v48, %v5110_v57 }
0x1d46   :  { %v15148_v42 = vsub.f32 %v7986_v29, %v8018_v23  ;;  %v8017_v36 = vmul.f32 0.03125, %v8001_v49  ;;  %v8056_v26 = vsel %vm327_vm1, %v8036_v58, 0.0  ;;  %v8035_v53 = vmul.f32 %v15143_v43, %v15143_v43 }
0x1d47   :  { %8057 = vadd.xlane.f32.xlu1 %v8056_v26  ;;  %v7998_v22 = vpop.xlane.xlu1 %7997  ;;  %v8109_v23 = vrot.slane %v14914_v48, %v5122_v17 }
0x1d48   :  { %v15153_v5 = vsub.f32 %v7985_v52, %v8017_v36  ;;  %v8016_v45 = vmul.f32 0.03125, %v7998_v22  ;;  %v8053_v44 = vsel %vm327_vm1, %v8035_v53, 0.0  ;;  %v8034_v13 = vmul.f32 %v15148_v42, %v15148_v42 }
0x1d49   :  { %8054 = vadd.xlane.f32.xlu0 %v8053_v44  ;;  %v7995_v10 = vpop.xlane.xlu0 %7994 }
0x1d4a   :  { %v15158_v24 = vsub.f32 %v7984_v31, %v8016_v45  ;;  %v8015_v34 = vmul.f32 0.03125, %v7995_v10  ;;  %v8050_v1 = vsel %vm327_vm1, %v8034_v13, 0.0  ;;  %v8033_v62 = vmul.f32 %v15153_v5, %v15153_v5 }
0x1d4b   :  { %8051 = vadd.xlane.f32.xlu1 %v8050_v1  ;;  %v7992_v61 = vpop.xlane.xlu1 %7991 }
0x1d4c   :  { %v15163_v56 = vsub.f32 %v7983_v9, %v8015_v34  ;;  %v8014_v3 = vmul.f32 0.03125, %v7992_v61  ;;  %v8047_v40 = vsel %vm327_vm1, %v8033_v62, 0.0  ;;  %v8032_v33 = vmul.f32 %v15158_v24, %v15158_v24 }
0x1d4d   :  { %8048 = vadd.xlane.f32.xlu0 %v8047_v40 }
0x1d4e   :  { %v15168_v4 = vsub.f32 %v7982_v55, %v8014_v3  ;;  %v8044_v8 = vsel %vm327_vm1, %v8032_v33, 0.0  ;;  %v8031_v12 = vmul.f32 %v15163_v56, %v15163_v56 }
0x1d4f   :  { %8045 = vadd.xlane.f32.xlu1 %v8044_v8 }
0x1d50   :  { %v8041_v39 = vsel %vm327_vm1, %v8031_v12, 0.0  ;;  %v8030_v59 = vmul.f32 %v15168_v4, %v15168_v4 }
0x1d51   :  { %8042 = vadd.xlane.f32.xlu0 %v8041_v39  ;;  %v8119_v39 = vld [vmem:[%s15501_s15 + $0x8] sm:$0xff] }
0x1d52   :  { %v8038_v18 = vsel %vm327_vm1, %v8030_v59, 0.0  ;;  %v8122_v59 = vld [vmem:[%s15501_s15 + $0x20] sm:$0xff] }
0x1d53   :  { %8039 = vadd.xlane.f32.xlu1 %v8038_v18  ;;  %v8123_v18 = vld [vmem:[%s15501_s15 + $0x28] sm:$0xff] }
0x1dce   :  { %v8061_v6 = vpop.xlane.xlu0 %8060 }
0x1dcf   :  { %v8069_v51 = vmul.f32 0.03125, %v8061_v6  ;;  %v8125_v6 = vld [vmem:[%s15501_s15 + $0x38] sm:$0xff] }
0x1dd0   :  { %v8058_v2 = vpop.xlane.xlu1 %8057 }
0x1dd1   :  { %v8077_v37 = vadd.f32 1e-05, %v8069_v51  ;;  %v8068_v35 = vmul.f32 0.03125, %v8058_v2  ;;  %v8126_v51 = vld [vmem:[%s15501_s15 + $0x40] sm:$0xff]  ;;  %v8127_v2 = vld [vmem:[%s15501_s15 + $0x48] sm:$0xff] }
0x1dd2   :  { %v8055_v29 = vpop.xlane.xlu0 %8054 }
0x1dd3   :  { %12413 = vrsqrt.f32 %v8077_v37  ;;  %v8076_v47 = vadd.f32 1e-05, %v8068_v35  ;;  %v8067_v21 = vmul.f32 0.03125, %v8055_v29  ;;  %v8128_v37 = vld [vmem:[%s15501_s15 + $0x50] sm:$0xff]  ;;  %v8129_v35 = vld [vmem:[%s15501_s15 + $0x58] sm:$0xff]  ;;  %v8130_v29 = vld [vmem:[%s15501_s15 + $0x60] sm:$0xff] }
0x1dd4   :  { %v8052_v52 = vpop.xlane.xlu1 %8051 }
0x1dd5   :  { %12415 = vrsqrt.f32 %v8076_v47  ;;  %v8075_v27 = vadd.f32 1e-05, %v8067_v21  ;;  %v8066_v20 = vmul.f32 0.03125, %v8052_v52  ;;  %v8131_v47 = vld [vmem:[%s15501_s15 + $0x68] sm:$0xff]  ;;  %v8132_v21 = vld [vmem:[%s15501_s15 + $0x70] sm:$0xff]  ;;  %v8133_v52 = vld [vmem:[%s15501_s15 + $0x78] sm:$0xff] }
0x1dd6   :  { %v8049_v31 = vpop.xlane.xlu0 %8048 }
0x1dd7   :  { %12417 = vrsqrt.f32 %v8075_v27  ;;  %v8074_v11 = vadd.f32 1e-05, %v8066_v20  ;;  %v8065_v9 = vmul.f32 0.03125, %v8049_v31  ;;  %v8134_v27 = vld [vmem:[%s15501_s15 + $0x80] sm:$0xff]  ;;  %v8135_v20 = vld [vmem:[%s15501_s15 + $0x88] sm:$0xff]  ;;  %v8136_v31 = vld [vmem:[%s15501_s15 + $0x90] sm:$0xff] }
0x1dd8   :  { %v8046_v25 = vpop.xlane.xlu1 %8045 }
0x1dd9   :  { %12419 = vrsqrt.f32 %v8074_v11  ;;  %v8073_v55 = vadd.f32 1e-05, %v8065_v9  ;;  %v8064_v50 = vmul.f32 0.03125, %v8046_v25  ;;  %v8137_v11 = vld [vmem:[%s15501_s15 + $0x98] sm:$0xff]  ;;  %v8138_v9 = vld [vmem:[%s15501_s15 + $0xa0] sm:$0xff]  ;;  %v8139_v25 = vld [vmem:[%s15501_s15 + $0xa8] sm:$0xff] }
0x1dda   :  { %v8043_v54 = vpop.xlane.xlu0 %8042 }
0x1ddb   :  { %12421 = vrsqrt.f32 %v8073_v55  ;;  %v8072_v63 = vadd.f32 1e-05, %v8064_v50  ;;  %v8063_v46 = vmul.f32 0.03125, %v8043_v54  ;;  %v8140_v55 = vld [vmem:[%s15501_s15 + $0xb0] sm:$0xff]  ;;  %v8141_v50 = vld [vmem:[%s15501_s15 + $0xb8] sm:$0xff]  ;;  %v8142_v54 = vld [vmem:[%s15501_s15 + $0xc0] sm:$0xff] }
0x1ddc   :  { %v8040_v7 = vpop.xlane.xlu1 %8039 }
0x1ddd   :  { %12423 = vrsqrt.f32 %v8072_v63  ;;  %v8071_v30 = vadd.f32 1e-05, %v8063_v46  ;;  %v8062_v15 = vmul.f32 0.03125, %v8040_v7  ;;  %v8143_v63 = vld [vmem:[%s15501_s15 + $0xc8] sm:$0xff]  ;;  %v8144_v46 = vld [vmem:[%s15501_s15 + $0xd0] sm:$0xff]  ;;  %v8145_v7 = vld [vmem:[%s15501_s15 + $0xd8] sm:$0xff] }
0x1ddf   :  { %12425 = vrsqrt.f32 %v8071_v30  ;;  %v8070_v41 = vadd.f32 1e-05, %v8062_v15  ;;  %v8146_v30 = vld [vmem:[%s15501_s15 + $0xe0] sm:$0xff]  ;;  %v8147_v15 = vld [vmem:[%s15501_s15 + $0xe8] sm:$0xff] }
0x1de0   :  { %v12414_v38 = vpop.eup %12413 }
0x1de1   :  { %12427 = vrsqrt.f32 %v8070_v41  ;;  %v8093_v14 = vmul.f32 %v12414_v38, %v15137_v19  ;;  %v8148_v41 = vld [vmem:[%s15501_s15 + $0xf0] sm:$0xff]  ;;  %v8150_v38 = vld [vmem:[%s15501_s15 + $0x100] sm:$0xff] }
0x1de2   :  { %v12416_v16 = vpop.eup %12415 }
0x1de3   :  { %v8105_v58 = vmul.f32 %v8097_v0, %v8093_v14  ;;  %v8092_v49 = vmul.f32 %v12416_v16, %v15139_v28  ;;  %v8151_v14 = vld [vmem:[%s15501_s15 + $0x108] sm:$0xff]  ;;  %v8153_v16 = vld [vmem:[%s15501_s15 + $0x118] sm:$0xff] }
0x1de4   :  { %v12418_v36 = vpop.eup %12417 }
0x1de5   :  { %v8117_v26 = vadd.f32 %v8109_v23, %v8105_v58  ;;  %v8104_v53 = vmul.f32 %v8097_v0, %v8092_v49  ;;  %v8091_v22 = vmul.f32 %v12418_v36, %v15143_v43  ;;  %v8154_v58 = vld [vmem:[%s15501_s15 + $0x120] sm:$0xff]  ;;  %v8155_v49 = vld [vmem:[%s15501_s15 + $0x128] sm:$0xff]  ;;  %v8156_v36 = vld [vmem:[%s15501_s15 + $0x130] sm:$0xff] }
0x1de6   :  { %v12420_v45 = vpop.eup %12419 }
0x1de7   :  { %11897 = vmatprep.subr.mxu1 %v8117_v26  ;;  %v8116_v57 = vadd.f32 %v8109_v23, %v8104_v53  ;;  %v8103_v44 = vmul.f32 %v8097_v0, %v8091_v22  ;;  %v8090_v13 = vmul.f32 %v12420_v45, %v15148_v42  ;;  %v9897_v53 = vld [vmem:[%s15502_s16 + $0x38] sm:$0xff]  ;;  %v9896_v22 = vld [vmem:[%s15502_s16 + $0x30] sm:$0xff]  ;;  %v9895_v45 = vld [vmem:[%s15502_s16 + $0x28] sm:$0xff] }
0x1de8   :  { %v12422_v19 = vpop.eup %12421  ;;  %11898 = vmatpush3.msra.mxu1 %v8117_v26  ;;  %v8157_v26 = vld [vmem:[%s15501_s15 + $0x138] sm:$0xff]  ;;  %11973 = vmatprep.subr.mxu0 %v9897_v53 }
0x1de9   :  { %11899 = vmatprep.subr.mxu1 %v8116_v57  ;;  %v8115_v32 = vadd.f32 %v8109_v23, %v8103_v44  ;;  %v8102_v17 = vmul.f32 %v8097_v0, %v8090_v13  ;;  %v8089_v48 = vmul.f32 %v12422_v19, %v15153_v5  ;;  %11974 = vmatpush3.msra.mxu0 %v9897_v53  ;;  %v8546_v44 = vld [vmem:[%s15502_s16 + $0x18] sm:$0xff] }
0x1dea   :  { %v12424_v10 = vpop.eup %12423  ;;  %11900 = vmatpush3.msra.mxu1 %v8116_v57  ;;  %11975 = vmatprep.subr.mxu0 %v9896_v22  ;;  %v9894_v57 = vld [vmem:[%s15502_s16 + $0x20] sm:$0xff] }
0x1deb   :  { %11901 = vmatprep.subr.mxu1 %v8115_v32  ;;  %v8114_v28 = vadd.f32 %v8109_v23, %v8102_v17  ;;  %v8101_v34 = vmul.f32 %v8097_v0, %v8089_v48  ;;  %v8088_v43 = vmul.f32 %v12424_v10, %v15158_v24  ;;  %11976 = vmatpush3.msra.mxu0 %v9896_v22 }
0x1dec   :  { %v12426_v1 = vpop.eup %12425  ;;  %11902 = vmatpush3.msra.mxu1 %v8115_v32  ;;  %11977 = vmatprep.subr.mxu0 %v9895_v45 }
0x1ded   :  { %11903 = vmatprep.subr.mxu1 %v8114_v28  ;;  %v8113_v62 = vadd.f32 %v8109_v23, %v8101_v34  ;;  %v8100_v61 = vmul.f32 %v8097_v0, %v8088_v43  ;;  %v8087_v42 = vmul.f32 %v12426_v1, %v15163_v56  ;;  %v8120_v56 = vld [vmem:[%s15501_s15 + $0x10] sm:$0xff]  ;;  %11978 = vmatpush3.msra.mxu0 %v9895_v45 }
0x1dee   :  { %v12428_v3 = vpop.eup %12427  ;;  %11904 = vmatpush3.msra.mxu1 %v8114_v28  ;;  %11979 = vmatprep.subr.mxu0 %v9894_v57 }
0x1def   :  { %11905 = vmatprep.subr.mxu1 %v8113_v62  ;;  %v8112_v40 = vadd.f32 %v8109_v23, %v8100_v61  ;;  %v8099_v33 = vmul.f32 %v8097_v0, %v8087_v42  ;;  %v8086_v5 = vmul.f32 %v12428_v3, %v15168_v4  ;;  %v8121_v4 = vld [vmem:[%s15501_s15 + $0x18] sm:$0xff]  ;;  %11980 = vmatpush3.msra.mxu0 %v9894_v57  ;;  %v8544_v42 = vld [vmem:[%s15502_s16 + $0x8] sm:$0xff] }
0x1df0   :  { %11906 = vmatpush3.msra.mxu1 %v8113_v62  ;;  %11993 = vmatprep.subr.mxu0 %v8546_v44  ;;  %v8545_v62 = vld [vmem:[%s15502_s16 + $0x10] sm:$0xff] }
0x1df1   :  { %11907 = vmatprep.subr.mxu1 %v8112_v40  ;;  %v8111_v8 = vadd.f32 %v8109_v23, %v8099_v33  ;;  %v8098_v12 = vmul.f32 %v8097_v0, %v8086_v5  ;;  %v8149_v0 = vld [vmem:[%s15501_s15 + $0xf8] sm:$0xff] }
0x1df2   :  { %11908 = vmatpush3.msra.mxu1 %v8112_v40  ;;  %v8543_v40 = vld [vmem:[%s15502_s16] sm:$0xff]  ;;  %v9917_v5 = vld [vmem:[%s15502_s16 + $0x58] sm:$0xff] }
0x1df3   :  { %11909 = vmatprep.subr.mxu1 %v8111_v8  ;;  %v8110_v24 = vadd.f32 %v8109_v23, %v8098_v12  ;;  %v8152_v23 = vld [vmem:[%s15501_s15 + $0x110] sm:$0xff] }
0x1df4   :  { %11910 = vmatpush3.msra.mxu1 %v8111_v8 }
0x1df5   :  { %11911 = vmatprep.subr.mxu1 %v8110_v24 }
0x1df6   :  { %11912 = vmatpush3.msra.mxu1 %v8110_v24 }
0x1df7   :  { %11914 = vmatmul.mubr.msk.f32.vlgmr.msra.gmra.mxu1 %vm2421_vm14, %v8119_v39 }
0x1df8   :  { %11916 = vmatprep.mubr.msk.f32.mxu1 %vm2421_vm14, %v8120_v56 }
0x1dfb   :  { %11917 = vmatmul.mubr.msk.f32.gmra.mxu1 %vm2421_vm14, %v8121_v4  ;;  %v9916_v4 = vld [vmem:[%s15502_s16 + $0x50] sm:$0xff] }
0x1dfc   :  { %11919 = vmatprep.mubr.msk.f32.mxu1 %vm2421_vm14, %v8122_v59 }
0x1dff   :  { %11920 = vmatmul.mubr.msk.f32.gmra.mxu1 %vm2421_vm14, %v8123_v18  ;;  %v9915_v18 = vld [vmem:[%s15502_s16 + $0x48] sm:$0xff] }
0x1e00   :  { %11922 = vmatprep.mubr.msk.f32.mxu1 %vm2421_vm14, %v8124_v60 }
0x1e03   :  { %11923 = vmatmul.mubr.msk.f32.gmra.mxu1 %vm2421_vm14, %v8125_v6  ;;  %v9914_v6 = vld [vmem:[%s15502_s16 + $0x40] sm:$0xff] }
0x1e04   :  { %11925 = vmatprep.mubr.msk.f32.mxu1 %vm2421_vm14, %v8126_v51 }
0x1e07   :  { %11926 = vmatmul.mubr.msk.f32.gmra.mxu1 %vm2421_vm14, %v8127_v2  ;;  %v9929_v2 = vld [vmem:[%s15502_s16 + $0x78] sm:$0xff] }
0x1e08   :  { %11928 = vmatprep.mubr.msk.f32.mxu1 %vm2421_vm14, %v8128_v37 }
0x1e0b   :  { %11929 = vmatmul.mubr.msk.f32.gmra.mxu1 %vm2421_vm14, %v8129_v35 }
0x1e0c   :  { %11931 = vmatprep.mubr.msk.f32.mxu1 %vm2421_vm14, %v8130_v29 }
0x1e0f   :  { %11932 = vmatmul.mubr.msk.f32.gmra.mxu1 %vm2421_vm14, %v8131_v47 }
0x1e10   :  { %11934 = vmatprep.mubr.msk.f32.mxu1 %vm2421_vm14, %v8132_v21 }
0x1e13   :  { %11935 = vmatmul.mubr.msk.f32.gmra.mxu1 %vm2421_vm14, %v8133_v52  ;;  %v9928_v52 = vld [vmem:[%s15502_s16 + $0x70] sm:$0xff] }
0x1e14   :  { %11937 = vmatprep.mubr.msk.f32.mxu1 %vm2421_vm14, %v8134_v27 }
0x1e17   :  { %11938 = vmatmul.mubr.msk.f32.gmra.mxu1 %vm2421_vm14, %v8135_v20  ;;  %v9927_v20 = vld [vmem:[%s15502_s16 + $0x68] sm:$0xff] }
0x1e18   :  { %11940 = vmatprep.mubr.msk.f32.mxu1 %vm2421_vm14, %v8136_v31 }
0x1e1b   :  { %11941 = vmatmul.mubr.msk.f32.gmra.mxu1 %vm2421_vm14, %v8137_v11  ;;  %v9926_v11 = vld [vmem:[%s15502_s16 + $0x60] sm:$0xff] }
0x1e1c   :  { %11943 = vmatprep.mubr.msk.f32.mxu1 %vm2421_vm14, %v8138_v9 }
0x1e1f   :  { %11944 = vmatmul.mubr.msk.f32.gmra.mxu1 %vm2421_vm14, %v8139_v25  ;;  %v9941_v25 = vld [vmem:[%s15502_s16 + $0x98] sm:$0xff] }
0x1e20   :  { %11946 = vmatprep.mubr.msk.f32.mxu1 %vm2421_vm14, %v8140_v55 }
0x1e23   :  { %11947 = vmatmul.mubr.msk.f32.gmra.mxu1 %vm2421_vm14, %v8141_v50 }
0x1e24   :  { %11949 = vmatprep.mubr.msk.f32.mxu1 %vm2421_vm14, %v8142_v54 }
0x1e27   :  { %11950 = vmatmul.mubr.msk.f32.gmra.mxu1 %vm2421_vm14, %v8143_v63 }
0x1e28   :  { %11952 = vmatprep.mubr.msk.f32.mxu1 %vm2421_vm14, %v8144_v46 }
0x1e2b   :  { %11953 = vmatmul.mubr.msk.f32.gmra.mxu1 %vm2421_vm14, %v8145_v7  ;;  %v9940_v7 = vld [vmem:[%s15502_s16 + $0x90] sm:$0xff] }
0x1e2c   :  { %11955 = vmatprep.mubr.msk.f32.mxu1 %vm2421_vm14, %v8146_v30  ;;  %v9939_v30 = vld [vmem:[%s15502_s16 + $0x88] sm:$0xff] }
0x1e2f   :  { %11956 = vmatmul.mubr.msk.f32.gmra.mxu1 %vm2421_vm14, %v8147_v15 }
0x1e30   :  { %11958 = vmatprep.mubr.msk.f32.mxu1 %vm2421_vm14, %v8148_v41  ;;  %v9938_v41 = vld [vmem:[%s15502_s16 + $0x80] sm:$0xff] }
0x1e33   :  { %11959 = vmatmul.mubr.msk.f32.gmra.mxu1 %vm2421_vm14, %v8149_v0 }
0x1e34   :  { %11961 = vmatprep.mubr.msk.f32.mxu1 %vm2421_vm14, %v8150_v38 }
0x1e37   :  { %11962 = vmatmul.mubr.msk.f32.gmra.mxu1 %vm2421_vm14, %v8151_v14 }
0x1e38   :  { %11964 = vmatprep.mubr.msk.f32.mxu1 %vm2421_vm14, %v8152_v23 }
0x1e3b   :  { %11965 = vmatmul.mubr.msk.f32.gmra.mxu1 %vm2421_vm14, %v8153_v16 }
0x1e3c   :  { %11967 = vmatprep.mubr.msk.f32.mxu1 %vm2421_vm14, %v8154_v58 }
0x1e3f   :  { %11968 = vmatmul.mubr.msk.f32.gmra.mxu1 %vm2421_vm14, %v8155_v49 }
0x1e40   :  { %11970 = vmatprep.mubr.msk.f32.mxu1 %vm2421_vm14, %v8156_v36 }
0x1e43   :  { %11971 = vmatmul.mubr.msk.f32.gmra.mxu1 %vm2421_vm14, %v8157_v26 }
0x1eb7   :  { %v11915_v13 = vpop.f32.mrf.mxu1 }
0x1eb9   :  { %v8344_v19 = vpop.f32.mrf.mxu1 }
0x1ebb   :  { %v11918_v32 = vpop.f32.mrf.mxu1 }
0x1ebd   :  { %v8354_v17 = vpop.f32.mrf.mxu1 }
0x1ebf   :  { %v11921_v48 = vpop.f32.mrf.mxu1 }
0x1ec1   :  { %v8364_v10 = vpop.f32.mrf.mxu1 }
0x1ec3   :  { %v11924_v28 = vpop.f32.mrf.mxu1 }
0x1ec5   :  { %v8374_v34 = vpop.f32.mrf.mxu1 }
0x1ec7   :  { %v11927_v43 = vpop.f32.mrf.mxu1 }
0x1ec9   :  { %v8384_v1 = vpop.f32.mrf.mxu1 }
0x1eca   :  { %11981 = vmatprep.mubr.msk.f32.mxu0 %vm327_vm1, %v8384_v1 }
0x1ecb   :  { %v11930_v61 = vpop.f32.mrf.mxu1  ;;  %11982 = vmatmul.mubr.msk.f32.vlgmr.msra.gmra.mxu0 %vm327_vm1, %v11927_v43 }
0x1ecc   :  { %11994 = vmatpush3.msra.mxu0 %v8546_v44 }
0x1ecd   :  { %v8394_v3 = vpop.f32.mrf.mxu1  ;;  %11995 = vmatprep.subr.mxu0 %v8545_v62 }
0x1ece   :  { %11984 = vmatprep.mubr.msk.f32.mxu0 %vm327_vm1, %v8394_v3  ;;  %11996 = vmatpush3.msra.mxu0 %v8545_v62 }
0x1ecf   :  { %v11933_v33 = vpop.f32.mrf.mxu1  ;;  %11985 = vmatmul.mubr.msk.f32.gmra.mxu0 %vm327_vm1, %v11930_v61  ;;  %11997 = vmatprep.subr.mxu0 %v8544_v42 }
0x1ed0   :  { %11998 = vmatpush3.msra.mxu0 %v8544_v42 }
0x1ed1   :  { %v8404_v8 = vpop.f32.mrf.mxu1  ;;  %11999 = vmatprep.subr.mxu0 %v8543_v40 }
0x1ed2   :  { %11987 = vmatprep.mubr.msk.f32.mxu0 %vm327_vm1, %v8404_v8  ;;  %12000 = vmatpush3.msra.mxu0 %v8543_v40 }
0x1ed3   :  { %v11936_v12 = vpop.f32.mrf.mxu1  ;;  %11988 = vmatmul.mubr.msk.f32.gmra.mxu0 %vm327_vm1, %v11933_v33  ;;  %12013 = vmatprep.subr.mxu0 %v9917_v5 }
0x1ed5   :  { %v8414_v24 = vpop.f32.mrf.mxu1 }
0x1ed6   :  { %11990 = vmatprep.mubr.msk.f32.mxu0 %vm327_vm1, %v8414_v24 }
0x1ed7   :  { %11991 = vmatmul.mubr.msk.f32.gmra.mxu0 %vm327_vm1, %v11936_v12  ;;  %v11939_v39 = vpop.f32.mrf.mxu1 }
0x1ed8   :  { %12001 = vmatprep.mubr.msk.f32.mxu0 %vm327_vm1, %v8344_v19 }
0x1ed9   :  { %v8424_v56 = vpop.f32.mrf.mxu1 }
0x1edb   :  { %12002 = vmatmul.mubr.msk.f32.vlgmr.msra.gmra.mxu0 %vm327_vm1, %v11915_v13  ;;  %v11942_v59 = vpop.f32.mrf.mxu1 }
0x1edc   :  { %12004 = vmatprep.mubr.msk.f32.mxu0 %vm327_vm1, %v8354_v17  ;;  %12014 = vmatpush3.msra.mxu0 %v9917_v5 }
0x1edd   :  { %12015 = vmatprep.subr.mxu0 %v9916_v4  ;;  %v8434_v60 = vpop.f32.mrf.mxu1 }
0x1ede   :  { %12016 = vmatpush3.msra.mxu0 %v9916_v4 }
0x1edf   :  { %12005 = vmatmul.mubr.msk.f32.gmra.mxu0 %vm327_vm1, %v11918_v32  ;;  %12017 = vmatprep.subr.mxu0 %v9915_v18  ;;  %v11945_v51 = vpop.f32.mrf.mxu1 }
0x1ee0   :  { %12007 = vmatprep.mubr.msk.f32.mxu0 %vm327_vm1, %v8364_v10  ;;  %12018 = vmatpush3.msra.mxu0 %v9915_v18 }
0x1ee1   :  { %12019 = vmatprep.subr.mxu0 %v9914_v6  ;;  %v8444_v37 = vpop.f32.mrf.mxu1 }
0x1ee2   :  { %12020 = vmatpush3.msra.mxu0 %v9914_v6 }
0x1ee3   :  { %12008 = vmatmul.mubr.msk.f32.gmra.mxu0 %vm327_vm1, %v11921_v48  ;;  %v11948_v35 = vpop.f32.mrf.mxu1  ;;  %12033 = vmatprep.subr.mxu0 %v9929_v2 }
0x1ee4   :  { %12010 = vmatprep.mubr.msk.f32.mxu0 %vm327_vm1, %v8374_v34 }
0x1ee5   :  { %v8454_v29 = vpop.f32.mrf.mxu1 }
0x1ee7   :  { %12011 = vmatmul.mubr.msk.f32.gmra.mxu0 %vm327_vm1, %v11924_v28  ;;  %v11951_v47 = vpop.f32.mrf.mxu1 }
0x1ee8   :  { %12021 = vmatprep.mubr.msk.f32.mxu0 %vm327_vm1, %v8424_v56 }
0x1ee9   :  { %v8464_v21 = vpop.f32.mrf.mxu1 }
0x1eeb   :  { %12022 = vmatmul.mubr.msk.f32.vlgmr.msra.gmra.mxu0 %vm327_vm1, %v11939_v39  ;;  %v11954_v27 = vpop.f32.mrf.mxu1 }
0x1eec   :  { %12024 = vmatprep.mubr.msk.f32.mxu0 %vm327_vm1, %v8434_v60  ;;  %12034 = vmatpush3.msra.mxu0 %v9929_v2 }
0x1eed   :  { %12035 = vmatprep.subr.mxu0 %v9928_v52  ;;  %v8474_v31 = vpop.f32.mrf.mxu1 }
0x1eee   :  { %12036 = vmatpush3.msra.mxu0 %v9928_v52 }
0x1eef   :  { %12025 = vmatmul.mubr.msk.f32.gmra.mxu0 %vm327_vm1, %v11942_v59  ;;  %12037 = vmatprep.subr.mxu0 %v9927_v20  ;;  %v11957_v9 = vpop.f32.mrf.mxu1 }
0x1ef0   :  { %12027 = vmatprep.mubr.msk.f32.mxu0 %vm327_vm1, %v8444_v37  ;;  %12038 = vmatpush3.msra.mxu0 %v9927_v20 }
0x1ef1   :  { %12039 = vmatprep.subr.mxu0 %v9926_v11  ;;  %v8484_v55 = vpop.f32.mrf.mxu1 }
0x1ef2   :  { %12040 = vmatpush3.msra.mxu0 %v9926_v11 }
0x1ef3   :  { %12028 = vmatmul.mubr.msk.f32.gmra.mxu0 %vm327_vm1, %v11945_v51  ;;  %v11960_v50 = vpop.f32.mrf.mxu1  ;;  %12053 = vmatprep.subr.mxu0 %v9941_v25 }
0x1ef4   :  { %12030 = vmatprep.mubr.msk.f32.mxu0 %vm327_vm1, %v8454_v29 }
0x1ef5   :  { %v8494_v54 = vpop.f32.mrf.mxu1 }
0x1ef7   :  { %12031 = vmatmul.mubr.msk.f32.gmra.mxu0 %vm327_vm1, %v11948_v35  ;;  %v11963_v63 = vpop.f32.mrf.mxu1  ;;  %v9950_v35 = vld [vmem:[%s15503_s17] ss:$0 sm:$0xff] }
0x1ef8   :  { %12041 = vmatprep.mubr.msk.f32.mxu0 %vm327_vm1, %v8464_v21 }
0x1ef9   :  { %v8504_v46 = vpop.f32.mrf.mxu1 }
0x1efb   :  { %12042 = vmatmul.mubr.msk.f32.vlgmr.msra.gmra.mxu0 %vm327_vm1, %v11951_v47  ;;  %v11966_v15 = vpop.f32.mrf.mxu1 }
0x1efc   :  { %12044 = vmatprep.mubr.msk.f32.mxu0 %vm327_vm1, %v8474_v31  ;;  %12054 = vmatpush3.msra.mxu0 %v9941_v25 }
0x1efd   :  { %12055 = vmatprep.subr.mxu0 %v9940_v7  ;;  %v8514_v0 = vpop.f32.mrf.mxu1 }
0x1efe   :  { %12056 = vmatpush3.msra.mxu0 %v9940_v7 }
0x1eff   :  { %12045 = vmatmul.mubr.msk.f32.gmra.mxu0 %vm327_vm1, %v11954_v27  ;;  %12057 = vmatprep.subr.mxu0 %v9939_v30  ;;  %v11969_v38 = vpop.f32.mrf.mxu1 }
0x1f00   :  { %12047 = vmatprep.mubr.msk.f32.mxu0 %vm327_vm1, %v8484_v55  ;;  %12058 = vmatpush3.msra.mxu0 %v9939_v30 }
0x1f01   :  { %12059 = vmatprep.subr.mxu0 %v9938_v41  ;;  %v8524_v14 = vpop.f32.mrf.mxu1 }
0x1f02   :  { %12060 = vmatpush3.msra.mxu0 %v9938_v41 }
0x1f03   :  { %12048 = vmatmul.mubr.msk.f32.gmra.mxu0 %vm327_vm1, %v11957_v9  ;;  %v11972_v23 = vpop.f32.mrf.mxu1 }
0x1f04   :  { %12050 = vmatprep.mubr.msk.f32.mxu0 %vm327_vm1, %v8494_v54 }
0x1f05   :  { %v8534_v16 = vpop.f32.mrf.mxu1 }
0x1f07   :  { %12051 = vmatmul.mubr.msk.f32.gmra.mxu0 %vm327_vm1, %v11960_v50 }
0x1f08   :  { %12061 = vmatprep.mubr.msk.f32.mxu0 %vm327_vm1, %v8504_v46 }
0x1f0b   :  { %12062 = vmatmul.mubr.msk.f32.vlgmr.msra.gmra.mxu0 %vm327_vm1, %v11963_v63 }
0x1f0c   :  { %12064 = vmatprep.mubr.msk.f32.mxu0 %vm327_vm1, %v8514_v0 }
0x1f0f   :  { %12065 = vmatmul.mubr.msk.f32.gmra.mxu0 %vm327_vm1, %v11966_v15 }
0x1f10   :  { %12067 = vmatprep.mubr.msk.f32.mxu0 %vm327_vm1, %v8524_v14 }
0x1f13   :  { %12068 = vmatmul.mubr.msk.f32.gmra.mxu0 %vm327_vm1, %v11969_v38 }
0x1f14   :  { %12070 = vmatprep.mubr.msk.f32.mxu0 %vm327_vm1, %v8534_v16 }
0x1f17   :  { %12071 = vmatmul.mubr.msk.f32.gmra.mxu0 %vm327_vm1, %v11972_v23 }
0x1f8b   :  { %v11983_v58 = vpop.f32.mrf.mxu0 }
0x1f8d   :  { %v8642_v49 = vpop.f32.mrf.mxu0 }
0x1f8f   :  { %v11986_v36 = vpop.f32.mrf.mxu0 }
0x1f91   :  { %v8652_v26 = vpop.f32.mrf.mxu0 }
0x1f93   :  { %v11989_v53 = vpop.f32.mrf.mxu0 }
0x1f95   :  { %v8662_v22 = vpop.f32.mrf.mxu0 }
0x1f97   :  { %v11992_v45 = vpop.f32.mrf.mxu0 }
0x1f99   :  { %v8672_v57 = vpop.f32.mrf.mxu0 }
0x1f9b   :  { %v12003_v44 = vpop.f32.mrf.mxu0 }
0x1f9c   :  { %v8777_v56 = vadd.f32 %v12003_v44, %v11983_v58 }
0x1f9d   :  { %v8771_v13 = vpop.f32.mrf.mxu0 }
0x1f9e   :  { %v8772_v59 = vadd.f32 %v8771_v13, %v8642_v49 }
0x1f9f   :  { %v12006_v19 = vpop.f32.mrf.mxu0 }
0x1fa0   :  { %v8787_v6 = vadd.f32 %v12006_v19, %v11986_v36 }
0x1fa1   :  { %v8781_v32 = vpop.f32.mrf.mxu0 }
0x1fa2   :  { %v8782_v29 = vadd.f32 %v8781_v32, %v8652_v26 }
0x1fa3   :  { %v12009_v17 = vpop.f32.mrf.mxu0 }
0x1fa4   :  { %v8797_v27 = vadd.f32 %v12009_v17, %v11989_v53 }
0x1fa5   :  { %v8791_v48 = vpop.f32.mrf.mxu0 }
0x1fa6   :  { %v8792_v55 = vadd.f32 %v8791_v48, %v8662_v22 }
0x1fa7   :  { %v12012_v10 = vpop.f32.mrf.mxu0 }
0x1fa8   :  { %v8807_v30 = vadd.f32 %v12012_v10, %v11992_v45 }
0x1fa9   :  { %v8801_v28 = vpop.f32.mrf.mxu0 }
0x1faa   :  { %v8802_v23 = vadd.f32 %v8801_v28, %v8672_v57 }
0x1fab   :  { %v12023_v34 = vpop.f32.mrf.mxu0 }
0x1fac   :  { %v8945_v18 = vadd.f32 %v12023_v34, %v8777_v56 }
0x1fad   :  { %v8905_v43 = vpop.f32.mrf.mxu0 }
0x1fae   :  { %v8944_v51 = vadd.f32 %v8905_v43, %v8772_v59 }
0x1faf   :  { %v12026_v1 = vpop.f32.mrf.mxu0 }
0x1fb0   :  { %v8947_v47 = vadd.f32 %v12026_v1, %v8787_v6 }
0x1fb1   :  { %v8915_v62 = vpop.f32.mrf.mxu0 }
0x1fb2   :  { %v8946_v31 = vadd.f32 %v8915_v62, %v8782_v29 }
0x1fb3   :  { %v12029_v61 = vpop.f32.mrf.mxu0 }
0x1fb4   :  { %v8949_v54 = vadd.f32 %v12029_v61, %v8797_v27 }
0x1fb5   :  { %v8925_v42 = vpop.f32.mrf.mxu0 }
0x1fb6   :  { %v8948_v41 = vadd.f32 %v8925_v42, %v8792_v55 }
0x1fb7   :  { %v12032_v3 = vpop.f32.mrf.mxu0 }
0x1fb8   :  { %v8951_v58 = vadd.f32 %v12032_v3, %v8807_v30 }
0x1fb9   :  { %v8935_v40 = vpop.f32.mrf.mxu0 }
0x1fba   :  { %v8950_v22 = vadd.f32 %v8935_v40, %v8802_v23 }
0x1fbb   :  { %v12043_v33 = vpop.f32.mrf.mxu0 }
0x1fbc   :  { %v9087_v2 = vadd.f32 %v12043_v33, %v8945_v18 }
0x1fbd   :  { %v9047_v5 = vpop.f32.mrf.mxu0 }
0x1fbe   :  { %v9086_v21 = vadd.f32 %v9047_v5, %v8944_v51 }
0x1fbf   :  { %v12046_v8 = vpop.f32.mrf.mxu0 }
0x1fc0   :  { %v9089_v11 = vadd.f32 %v12046_v8, %v8947_v47 }
0x1fc1   :  { %v9057_v12 = vpop.f32.mrf.mxu0 }
0x1fc2   :  { %v9088_v63 = vadd.f32 %v9057_v12, %v8946_v31 }
0x1fc3   :  { %v12049_v24 = vpop.f32.mrf.mxu0 }
0x1fc4   :  { %v9091_v0 = vadd.f32 %v12049_v24, %v8949_v54 }
0x1fc5   :  { %v9067_v39 = vpop.f32.mrf.mxu0 }
0x1fc6   :  { %v9090_v49 = vadd.f32 %v9067_v39, %v8948_v41 }
0x1fc7   :  { %v12052_v4 = vpop.f32.mrf.mxu0 }
0x1fc8   :  { %v9093_v45 = vadd.f32 %v12052_v4, %v8951_v58 }
0x1fc9   :  { %v9077_v60 = vpop.f32.mrf.mxu0 }
0x1fca   :  { %v9092_v19 = vadd.f32 %v9077_v60, %v8950_v22 }
0x1fcb   :  { %v12063_v37 = vpop.f32.mrf.mxu0 }
0x1fcc   :  { %v9229_v52 = vadd.f32 %v12063_v37, %v9087_v2 }
0x1fcd   :  { %v9189_v20 = vpop.f32.mrf.mxu0 }
0x1fce   :  { %v9244_v9 = vadd.f32 %v9950_v35, %v9229_v52  ;;  %v9228_v25 = vadd.f32 %v9189_v20, %v9086_v21 }
0x1fcf   :  { %v12066_v50 = vpop.f32.mrf.mxu0 }
0x1fd0   :  { %9252 = vst.msk [vmem:[%s15504_s18 + $0x8] sm:$0xff] %vm101_vm0, %v9244_v9  ;;  %v9243_v46 = vadd.f32 %v9950_v35, %v9228_v25  ;;  %v9231_v7 = vadd.f32 %v12066_v50, %v9089_v11 }
0x1fd1   :  { %v9199_v15 = vpop.f32.mrf.mxu0 }
0x1fd2   :  { %9251 = vst.msk [vmem:[%s15504_s18] sm:$0xff] %vm101_vm0, %v9243_v46  ;;  %v9246_v38 = vadd.f32 %v9950_v35, %v9231_v7  ;;  %v9230_v14 = vadd.f32 %v9199_v15, %v9088_v63 }
0x1fd3   :  { %v12069_v16 = vpop.f32.mrf.mxu0 }
0x1fd4   :  { %9254 = vst.msk [vmem:[%s15504_s18 + $0x18] sm:$0xff] %vm101_vm0, %v9246_v38  ;;  %v9245_v36 = vadd.f32 %v9950_v35, %v9230_v14  ;;  %v9233_v26 = vadd.f32 %v12069_v16, %v9091_v0 }
0x1fd5   :  { %v9209_v53 = vpop.f32.mrf.mxu0 }
0x1fd6   :  { %9253 = vst.msk [vmem:[%s15504_s18 + $0x10] sm:$0xff] %vm101_vm0, %v9245_v36  ;;  %v9248_v44 = vadd.f32 %v9950_v35, %v9233_v26  ;;  %v9232_v57 = vadd.f32 %v9209_v53, %v9090_v49 }
0x1fd7   :  { %v12072_v13 = vpop.f32.mrf.mxu0 }
0x1fd8   :  { %9256 = vst.msk [vmem:[%s15504_s18 + $0x28] sm:$0xff] %vm101_vm0, %v9248_v44  ;;  %v9247_v32 = vadd.f32 %v9950_v35, %v9232_v57  ;;  %v9235_v17 = vadd.f32 %v12072_v13, %v9093_v45 }
0x1fd9   :  { %v9219_v48 = vpop.f32.mrf.mxu0 }
0x1fda   :  { %9255 = vst.msk [vmem:[%s15504_s18 + $0x20] sm:$0xff] %vm101_vm0, %v9247_v32  ;;  %v9250_v10 = vadd.f32 %v9950_v35, %v9235_v17  ;;  %v9234_v28 = vadd.f32 %v9219_v48, %v9092_v19 }
0x1fdc   :  { %9258 = vst.msk [vmem:[%s15504_s18 + $0x38] sm:$0xff] %vm101_vm0, %v9250_v10  ;;  %v9249_v34 = vadd.f32 %v9950_v35, %v9234_v28 }
0x1fde   :  { %9257 = vst.msk [vmem:[%s15504_s18 + $0x30] sm:$0xff] %vm101_vm0, %v9249_v34 }

</bundles_post_ra>
